<compile_context>
chip_gen: v5e
topology: v5e:2x2
jax: 0.10.0
libtpu: 0.0.40
codegen_flags: <defaults>
</compile_context>

<pallas_src>
import numpy as np

import jax
import jax.numpy as jnp
from jax.experimental import pallas as pl
from jax.experimental.pallas import tpu as pltpu


_LAYER_SPECS = {
    # name: (KH, KW, Cin, Cout)
    "conv1": (3, 3, 1, 8),
    "conv2": (3, 3, 8, 8),
    "conv3": (1, 1, 8, 16),    # preceded by MaxPool2d(2, 2)
    "conv4": (3, 3, 16, 16),
    "conv5": (3, 3, 16, 16),
    "conv6": (1, 1, 16, 32),   # preceded by MaxPool2d(2, 2)
    "conv7": (3, 3, 32, 32),
    "conv8": (2, 2, 32, 10),   # no ReLU, feeds log_softmax
}
_POOL_BEFORE = ("conv3", "conv6")
_H0 = _W0 = 28                 # final view(-1, 10) requires 28x28 input


# --------------------------------------------------------------------------
# In-kernel building blocks (trace-time helpers; all offsets/shapes static)
# --------------------------------------------------------------------------

def _conv_valid(a, w_ref, b_ref, kh, kw, hv, wv, stride, relu):
    """Valid conv, stride 1, on a (Cin, P) feature map.

    `a` stores x[ci, i*stride + j] for i < hv, j < wv (P == (hv-1)*stride + wv).
    Output keeps the same row stride; positions with j >= wv-kw+1 contain junk
    that later layers never read (validity shrinks consistently).
    """
    cin = w_ref.shape[2]
    h_out, w_out = hv - kh + 1, wv - kw + 1
    n = (h_out - 1) * stride + w_out
    acc = None
    for di in range(kh):
        for dj in range(kw):
            off = di * stride + dj
            a_sl = a[:, off:off + n]               # (Cin, n), static lane slice
            w_tap = w_ref[di * kw + dj]            # (Cout, Cin)
            if cin == 1:
                term = w_tap * a_sl                # (Cout,1)*(1,n) broadcast
            else:
                term = jnp.dot(w_tap, a_sl, preferred_element_type=jnp.float32)
            acc = term if acc is None else acc + term
    acc = acc + b_ref[...]                         # (Cout, 1) broadcasts over lanes
    if relu:
        acc = jnp.maximum(acc, 0.0)
    return acc, h_out, w_out, stride


def _maxpool2x2(a, sel_ref, hv, wv, stride):
    """2x2 / stride-2 max pool on a (C, P) map; compacts to stride = wv//2."""
    h_out, w_out = hv // 2, wv // 2
    nm = 2 * (h_out - 1) * stride + 2 * (w_out - 1) + 1
    m = jnp.maximum(
        jnp.maximum(a[:, 0:nm], a[:, 1:1 + nm]),
        jnp.maximum(a[:, stride:stride + nm], a[:, stride + 1:stride + 1 + nm]))
    pooled = jnp.dot(m, sel_ref[...], preferred_element_type=jnp.float32)
    return pooled, h_out, w_out, w_out


def _net_kernel(x_ref, *refs):
    *wb_refs, s1_ref, s2_ref, o_ref = refs
    sel_refs = (s1_ref, s2_ref)
    tb = x_ref.shape[0]
    for t in range(tb):                            # unrolled over the batch tile
        a = x_ref[t]                               # (1, 784) flattened image
        hv, wv, st = _H0, _W0, _W0
        sel_i = 0
        wb_i = 0
        for name, (kh, kw, _cin, _cout) in _LAYER_SPECS.items():
            if name in _POOL_BEFORE:
                a, hv, wv, st = _maxpool2x2(a, sel_refs[sel_i], hv, wv, st)
                sel_i += 1
            a, hv, wv, st = _conv_valid(
                a, wb_refs[wb_i], wb_refs[wb_i + 1], kh, kw, hv, wv, st,
                relu=(name != "conv8"))
            wb_i += 2
        # a: (10, 1) logits column -> fused, numerically-stable log_softmax.
        z = a - jnp.max(a, axis=0, keepdims=True)
        o_ref[t] = z - jnp.log(jnp.sum(jnp.exp(z), axis=0, keepdims=True))


# --------------------------------------------------------------------------
# Host-side helpers: geometry walk, pool selection matrices, weight packing
# --------------------------------------------------------------------------

def _pool_geoms():
    hv, wv, st = _H0, _W0, _W0
    geoms = []
    for name, (kh, kw, _cin, _cout) in _LAYER_SPECS.items():
        if name in _POOL_BEFORE:
            geoms.append((hv, wv, st))
            hv, wv = hv // 2, wv // 2
            st = wv
        hv, wv = hv - kh + 1, wv - kw + 1
    return geoms


def _pool_select(hv, wv, stride):
    """0/1 matrix S with pooled[:, q] = windowed_max[:, row_of(q)]."""
    h_out, w_out = hv // 2, wv // 2
    nm = 2 * (h_out - 1) * stride + 2 * (w_out - 1) + 1
    s = np.zeros((nm, h_out * w_out), np.float32)
    for qi in range(h_out):
        for qj in range(w_out):
            s[2 * qi * stride + 2 * qj, qi * w_out + qj] = 1.0
    return s


def init_params(key):
    params = {}
    for name, (kh, kw, cin, cout) in _LAYER_SPECS.items():
        key, k_w, k_b = jax.random.split(key, 3)
        bound = 1.0 / ((kh * kw * cin) ** 0.5)   # PyTorch-style uniform init
        w = jax.random.uniform(k_w, (kh, kw, cin, cout), jnp.float32, -bound, bound)
        b = jax.random.uniform(k_b, (cout,), jnp.float32, -bound, bound)
        params[name] = (w, b)                    # HWIO + (Cout,)
    return params


def pack_params(params):
    """One-time re-pack of HWIO weights into the kernel's tap-major layout."""
    packed = {}
    for name, (kh, kw, cin, cout) in _LAYER_SPECS.items():
        w, b = params[name]
        w_tapmajor = jnp.transpose(w, (0, 1, 3, 2)).reshape(kh * kw, cout, cin)
        packed[name] = (w_tapmajor, b.reshape(cout, 1))
    return packed


def _batch_tile(b):
    for t in (8, 4, 2, 1):
        if b % t == 0:
            return t
    return 1


# --------------------------------------------------------------------------
# Forward pass: one fused pallas_call
# --------------------------------------------------------------------------

def net_initial_forward(x_nchw, packed_params):
    """NetInitial forward.  x_nchw: (B, 1, 28, 28) -> (B, 10) log-probs."""
    B = x_nchw.shape[0]
    assert x_nchw.shape[1:] == (1, _H0, _W0), x_nchw.shape
    x_flat = x_nchw.reshape(B, 1, _H0 * _W0).astype(jnp.float32)

    g1, g2 = _pool_geoms()
    sel1 = jnp.asarray(_pool_select(*g1))       # (639, 144) constant, ~360 KB
    sel2 = jnp.asarray(_pool_select(*g2))       # ( 79,  16) constant

    tb = _batch_tile(B)
    grid = (B // tb,)

    def _const(ndim):
        return lambda g: (0,) * ndim

    in_specs = [pl.BlockSpec((tb, 1, _H0 * _W0), lambda g: (g, 0, 0))]
    args = [x_flat]
    for name in _LAYER_SPECS:
        w, b = packed_params[name]
        in_specs.append(pl.BlockSpec(w.shape, _const(3)))
        in_specs.append(pl.BlockSpec(b.shape, _const(2)))
        args.extend([w, b])
    for sel in (sel1, sel2):
        in_specs.append(pl.BlockSpec(sel.shape, _const(2)))
        args.append(sel)

    out = pl.pallas_call(
        _net_kernel,
        grid=grid,
        in_specs=in_specs,
        out_specs=pl.BlockSpec((tb, 10, 1), lambda g: (g, 0, 0)),
        out_shape=jax.ShapeDtypeStruct((B, 10, 1), jnp.float32),
        compiler_params=pltpu.CompilerParams(
            dimension_semantics=("parallel",)),
    )(*args)
    return out.reshape(B, 10)


# --------------------------------------------------------------------------
# Pure-JAX reference (for numerical verification)
# --------------------------------------------------------------------------

def _ref_forward(x_nchw, params):
    x = jnp.transpose(x_nchw, (0, 2, 3, 1)).astype(jnp.float32)  # NCHW -> NHWC

    def conv(x, w, b):
        y = jax.lax.conv_general_dilated(
            x, w, window_strides=(1, 1), padding="VALID",
            dimension_numbers=("NHWC", "HWIO", "NHWC"))
        return y + b

    def pool(x):
        return jax.lax.reduce_window(x, -jnp.inf, jax.lax.max,
                                     (1, 2, 2, 1), (1, 2, 2, 1), "VALID")

    x = jax.nn.relu(conv(x, *params["conv1"]))
    x = jax.nn.relu(conv(x, *params["conv2"]))
    x = jax.nn.relu(conv(pool(x), *params["conv3"]))
    x = jax.nn.relu(conv(x, *params["conv4"]))
    x = jax.nn.relu(conv(x, *params["conv5"]))
    x = jax.nn.relu(conv(pool(x), *params["conv6"]))
    x = jax.nn.relu(conv(x, *params["conv7"]))
    x = conv(x, *params["conv8"])
    return jax.nn.log_softmax(x.reshape(-1, 10), axis=1)


if __name__ == "__main__":
    key = jax.random.PRNGKey(0)
    k_params, k_x = jax.random.split(key)
    params = init_params(k_params)
    packed = pack_params(params)
    # MNIST-shaped input: the architecture (final view(-1, 10)) requires 28x28.
    x = jax.random.normal(k_x, (2, 1, 28, 28), dtype=jnp.float32)

    out = jax.jit(net_initial_forward)(x, packed)
    out = jax.block_until_ready(out)

    ref = _ref_forward(x, params)
    assert out.shape == (2, 10), out.shape
    assert jnp.max(jnp.abs(out - ref)) < 2e-4, "mismatch vs. pure-JAX reference"
    print("KERNEL_OK")
</pallas_src>

<mosaic_0001>
module attributes {stable_mosaic.version = 11 : i64} {
  func.func @_net_kernel(%arg0: i32, %arg1: memref<2x1x784xf32, #tpu.memory_space<vmem>>, %arg2: memref<9x8x1xf32, #tpu.memory_space<vmem>>, %arg3: memref<8x1xf32, #tpu.memory_space<vmem>>, %arg4: memref<9x8x8xf32, #tpu.memory_space<vmem>>, %arg5: memref<8x1xf32, #tpu.memory_space<vmem>>, %arg6: memref<1x16x8xf32, #tpu.memory_space<vmem>>, %arg7: memref<16x1xf32, #tpu.memory_space<vmem>>, %arg8: memref<9x16x16xf32, #tpu.memory_space<vmem>>, %arg9: memref<16x1xf32, #tpu.memory_space<vmem>>, %arg10: memref<9x16x16xf32, #tpu.memory_space<vmem>>, %arg11: memref<16x1xf32, #tpu.memory_space<vmem>>, %arg12: memref<1x32x16xf32, #tpu.memory_space<vmem>>, %arg13: memref<32x1xf32, #tpu.memory_space<vmem>>, %arg14: memref<9x32x32xf32, #tpu.memory_space<vmem>>, %arg15: memref<32x1xf32, #tpu.memory_space<vmem>>, %arg16: memref<4x10x32xf32, #tpu.memory_space<vmem>>, %arg17: memref<10x1xf32, #tpu.memory_space<vmem>>, %arg18: memref<639x144xf32, #tpu.memory_space<vmem>>, %arg19: memref<79x16xf32, #tpu.memory_space<vmem>>, %arg20: memref<2x10x1xf32, #tpu.memory_space<vmem>>) attributes {dimension_semantics = [#tpu.dimension_semantics<parallel>], iteration_bounds = array<i64: 1>, scalar_prefetch = 0 : i64, scratch_operands = 0 : i64, tpu.core_type = #tpu.core_type<tc>, window_params = [{transform_indices = @transform_0, window_bounds = array<i64: 2, 1, 784>}, {pipeline_mode = #tpu.pipeline_mode<synchronous>, transform_indices = @transform_1, window_bounds = array<i64: 9, 8, 1>}, {pipeline_mode = #tpu.pipeline_mode<synchronous>, transform_indices = @transform_2, window_bounds = array<i64: 8, 1>}, {pipeline_mode = #tpu.pipeline_mode<synchronous>, transform_indices = @transform_3, window_bounds = array<i64: 9, 8, 8>}, {pipeline_mode = #tpu.pipeline_mode<synchronous>, transform_indices = @transform_4, window_bounds = array<i64: 8, 1>}, {pipeline_mode = #tpu.pipeline_mode<synchronous>, transform_indices = @transform_5, window_bounds = array<i64: 1, 16, 8>}, {pipeline_mode = #tpu.pipeline_mode<synchronous>, transform_indices = @transform_6, window_bounds = array<i64: 16, 1>}, {pipeline_mode = #tpu.pipeline_mode<synchronous>, transform_indices = @transform_7, window_bounds = array<i64: 9, 16, 16>}, {pipeline_mode = #tpu.pipeline_mode<synchronous>, transform_indices = @transform_8, window_bounds = array<i64: 16, 1>}, {pipeline_mode = #tpu.pipeline_mode<synchronous>, transform_indices = @transform_9, window_bounds = array<i64: 9, 16, 16>}, {pipeline_mode = #tpu.pipeline_mode<synchronous>, transform_indices = @transform_10, window_bounds = array<i64: 16, 1>}, {pipeline_mode = #tpu.pipeline_mode<synchronous>, transform_indices = @transform_11, window_bounds = array<i64: 1, 32, 16>}, {pipeline_mode = #tpu.pipeline_mode<synchronous>, transform_indices = @transform_12, window_bounds = array<i64: 32, 1>}, {pipeline_mode = #tpu.pipeline_mode<synchronous>, transform_indices = @transform_13, window_bounds = array<i64: 9, 32, 32>}, {pipeline_mode = #tpu.pipeline_mode<synchronous>, transform_indices = @transform_14, window_bounds = array<i64: 32, 1>}, {pipeline_mode = #tpu.pipeline_mode<synchronous>, transform_indices = @transform_15, window_bounds = array<i64: 4, 10, 32>}, {pipeline_mode = #tpu.pipeline_mode<synchronous>, transform_indices = @transform_16, window_bounds = array<i64: 10, 1>}, {pipeline_mode = #tpu.pipeline_mode<synchronous>, transform_indices = @transform_17, window_bounds = array<i64: 639, 144>}, {pipeline_mode = #tpu.pipeline_mode<synchronous>, transform_indices = @transform_18, window_bounds = array<i64: 79, 16>}, {transform_indices = @transform_19, window_bounds = array<i64: 2, 10, 1>}]} {
    %c0 = arith.constant 0 : index
    %c0_0 = arith.constant 0 : index
    %c0_1 = arith.constant 0 : index
    %0 = vector.load %arg1[%c0, %c0_0, %c0_1] : memref<2x1x784xf32, #tpu.memory_space<vmem>>, vector<1x1x784xf32>
    %1 = vector.shape_cast %0 : vector<1x1x784xf32> to vector<1x784xf32>
    %2 = vector.extract_strided_slice %1 {offsets = [0, 0], sizes = [1, 726], strides = [1, 1]} : vector<1x784xf32> to vector<1x726xf32>
    %c0_2 = arith.constant 0 : index
    %c0_3 = arith.constant 0 : index
    %c0_4 = arith.constant 0 : index
    %3 = vector.load %arg2[%c0_2, %c0_3, %c0_4] : memref<9x8x1xf32, #tpu.memory_space<vmem>>, vector<1x8x1xf32>
    %4 = vector.shape_cast %3 : vector<1x8x1xf32> to vector<8x1xf32>
    %5 = vector.broadcast %4 : vector<8x1xf32> to vector<8x726xf32>
    %6 = vector.broadcast %2 : vector<1x726xf32> to vector<8x726xf32>
    %7 = arith.mulf %5, %6 : vector<8x726xf32>
    %8 = vector.extract_strided_slice %1 {offsets = [0, 1], sizes = [1, 726], strides = [1, 1]} : vector<1x784xf32> to vector<1x726xf32>
    %c1 = arith.constant 1 : index
    %c0_5 = arith.constant 0 : index
    %c0_6 = arith.constant 0 : index
    %9 = vector.load %arg2[%c1, %c0_5, %c0_6] : memref<9x8x1xf32, #tpu.memory_space<vmem>>, vector<1x8x1xf32>
    %10 = vector.shape_cast %9 : vector<1x8x1xf32> to vector<8x1xf32>
    %11 = vector.broadcast %10 : vector<8x1xf32> to vector<8x726xf32>
    %12 = vector.broadcast %8 : vector<1x726xf32> to vector<8x726xf32>
    %13 = arith.mulf %11, %12 : vector<8x726xf32>
    %14 = arith.addf %7, %13 : vector<8x726xf32>
    %15 = vector.extract_strided_slice %1 {offsets = [0, 2], sizes = [1, 726], strides = [1, 1]} : vector<1x784xf32> to vector<1x726xf32>
    %c2 = arith.constant 2 : index
    %c0_7 = arith.constant 0 : index
    %c0_8 = arith.constant 0 : index
    %16 = vector.load %arg2[%c2, %c0_7, %c0_8] : memref<9x8x1xf32, #tpu.memory_space<vmem>>, vector<1x8x1xf32>
    %17 = vector.shape_cast %16 : vector<1x8x1xf32> to vector<8x1xf32>
    %18 = vector.broadcast %17 : vector<8x1xf32> to vector<8x726xf32>
    %19 = vector.broadcast %15 : vector<1x726xf32> to vector<8x726xf32>
    %20 = arith.mulf %18, %19 : vector<8x726xf32>
    %21 = arith.addf %14, %20 : vector<8x726xf32>
    %22 = vector.extract_strided_slice %1 {offsets = [0, 28], sizes = [1, 726], strides = [1, 1]} : vector<1x784xf32> to vector<1x726xf32>
    %c3 = arith.constant 3 : index
    %c0_9 = arith.constant 0 : index
    %c0_10 = arith.constant 0 : index
    %23 = vector.load %arg2[%c3, %c0_9, %c0_10] : memref<9x8x1xf32, #tpu.memory_space<vmem>>, vector<1x8x1xf32>
    %24 = vector.shape_cast %23 : vector<1x8x1xf32> to vector<8x1xf32>
    %25 = vector.broadcast %24 : vector<8x1xf32> to vector<8x726xf32>
    %26 = vector.broadcast %22 : vector<1x726xf32> to vector<8x726xf32>
    %27 = arith.mulf %25, %26 : vector<8x726xf32>
    %28 = arith.addf %21, %27 : vector<8x726xf32>
    %29 = vector.extract_strided_slice %1 {offsets = [0, 29], sizes = [1, 726], strides = [1, 1]} : vector<1x784xf32> to vector<1x726xf32>
    %c4 = arith.constant 4 : index
    %c0_11 = arith.constant 0 : index
    %c0_12 = arith.constant 0 : index
    %30 = vector.load %arg2[%c4, %c0_11, %c0_12] : memref<9x8x1xf32, #tpu.memory_space<vmem>>, vector<1x8x1xf32>
    %31 = vector.shape_cast %30 : vector<1x8x1xf32> to vector<8x1xf32>
    %32 = vector.broadcast %31 : vector<8x1xf32> to vector<8x726xf32>
    %33 = vector.broadcast %29 : vector<1x726xf32> to vector<8x726xf32>
    %34 = arith.mulf %32, %33 : vector<8x726xf32>
    %35 = arith.addf %28, %34 : vector<8x726xf32>
    %36 = vector.extract_strided_slice %1 {offsets = [0, 30], sizes = [1, 726], strides = [1, 1]} : vector<1x784xf32> to vector<1x726xf32>
    %c5 = arith.constant 5 : index
    %c0_13 = arith.constant 0 : index
    %c0_14 = arith.constant 0 : index
    %37 = vector.load %arg2[%c5, %c0_13, %c0_14] : memref<9x8x1xf32, #tpu.memory_space<vmem>>, vector<1x8x1xf32>
    %38 = vector.shape_cast %37 : vector<1x8x1xf32> to vector<8x1xf32>
    %39 = vector.broadcast %38 : vector<8x1xf32> to vector<8x726xf32>
    %40 = vector.broadcast %36 : vector<1x726xf32> to vector<8x726xf32>
    %41 = arith.mulf %39, %40 : vector<8x726xf32>
    %42 = arith.addf %35, %41 : vector<8x726xf32>
    %43 = vector.extract_strided_slice %1 {offsets = [0, 56], sizes = [1, 726], strides = [1, 1]} : vector<1x784xf32> to vector<1x726xf32>
    %c6 = arith.constant 6 : index
    %c0_15 = arith.constant 0 : index
    %c0_16 = arith.constant 0 : index
    %44 = vector.load %arg2[%c6, %c0_15, %c0_16] : memref<9x8x1xf32, #tpu.memory_space<vmem>>, vector<1x8x1xf32>
    %45 = vector.shape_cast %44 : vector<1x8x1xf32> to vector<8x1xf32>
    %46 = vector.broadcast %45 : vector<8x1xf32> to vector<8x726xf32>
    %47 = vector.broadcast %43 : vector<1x726xf32> to vector<8x726xf32>
    %48 = arith.mulf %46, %47 : vector<8x726xf32>
    %49 = arith.addf %42, %48 : vector<8x726xf32>
    %50 = vector.extract_strided_slice %1 {offsets = [0, 57], sizes = [1, 726], strides = [1, 1]} : vector<1x784xf32> to vector<1x726xf32>
    %c7 = arith.constant 7 : index
    %c0_17 = arith.constant 0 : index
    %c0_18 = arith.constant 0 : index
    %51 = vector.load %arg2[%c7, %c0_17, %c0_18] : memref<9x8x1xf32, #tpu.memory_space<vmem>>, vector<1x8x1xf32>
    %52 = vector.shape_cast %51 : vector<1x8x1xf32> to vector<8x1xf32>
    %53 = vector.broadcast %52 : vector<8x1xf32> to vector<8x726xf32>
    %54 = vector.broadcast %50 : vector<1x726xf32> to vector<8x726xf32>
    %55 = arith.mulf %53, %54 : vector<8x726xf32>
    %56 = arith.addf %49, %55 : vector<8x726xf32>
    %57 = vector.extract_strided_slice %1 {offsets = [0, 58], sizes = [1, 726], strides = [1, 1]} : vector<1x784xf32> to vector<1x726xf32>
    %c8 = arith.constant 8 : index
    %c0_19 = arith.constant 0 : index
    %c0_20 = arith.constant 0 : index
    %58 = vector.load %arg2[%c8, %c0_19, %c0_20] : memref<9x8x1xf32, #tpu.memory_space<vmem>>, vector<1x8x1xf32>
    %59 = vector.shape_cast %58 : vector<1x8x1xf32> to vector<8x1xf32>
    %60 = vector.broadcast %59 : vector<8x1xf32> to vector<8x726xf32>
    %61 = vector.broadcast %57 : vector<1x726xf32> to vector<8x726xf32>
    %62 = arith.mulf %60, %61 : vector<8x726xf32>
    %63 = arith.addf %56, %62 : vector<8x726xf32>
    %c0_21 = arith.constant 0 : index
    %c0_22 = arith.constant 0 : index
    %64 = vector.load %arg3[%c0_21, %c0_22] : memref<8x1xf32, #tpu.memory_space<vmem>>, vector<8x1xf32>
    %65 = vector.broadcast %64 : vector<8x1xf32> to vector<8x726xf32>
    %66 = arith.addf %63, %65 : vector<8x726xf32>
    %cst = arith.constant 0.000000e+00 : f32
    %67 = vector.broadcast %cst : f32 to vector<8x726xf32>
    %68 = arith.maximumf %66, %67 : vector<8x726xf32>
    %69 = vector.extract_strided_slice %68 {offsets = [0, 0], sizes = [8, 668], strides = [1, 1]} : vector<8x726xf32> to vector<8x668xf32>
    %c0_23 = arith.constant 0 : index
    %c0_24 = arith.constant 0 : index
    %c0_25 = arith.constant 0 : index
    %70 = vector.load %arg4[%c0_23, %c0_24, %c0_25] : memref<9x8x8xf32, #tpu.memory_space<vmem>>, vector<1x8x8xf32>
    %71 = vector.shape_cast %70 : vector<1x8x8xf32> to vector<8x8xf32>
    %cst_26 = arith.constant dense<0.000000e+00> : vector<8x668xf32>
    %72 = tpu.matmul %71, %69, %cst_26 {dimension_numbers = #tpu.dot_dimension_numbers<[1], [0], [0], [1], [0, 0, 1, 1], [], []>} : vector<8x8xf32>, vector<8x668xf32>, vector<8x668xf32> -> vector<8x668xf32>
    %73 = vector.extract_strided_slice %68 {offsets = [0, 1], sizes = [8, 668], strides = [1, 1]} : vector<8x726xf32> to vector<8x668xf32>
    %c1_27 = arith.constant 1 : index
    %c0_28 = arith.constant 0 : index
    %c0_29 = arith.constant 0 : index
    %74 = vector.load %arg4[%c1_27, %c0_28, %c0_29] : memref<9x8x8xf32, #tpu.memory_space<vmem>>, vector<1x8x8xf32>
    %75 = vector.shape_cast %74 : vector<1x8x8xf32> to vector<8x8xf32>
    %cst_30 = arith.constant dense<0.000000e+00> : vector<8x668xf32>
    %76 = tpu.matmul %75, %73, %cst_30 {dimension_numbers = #tpu.dot_dimension_numbers<[1], [0], [0], [1], [0, 0, 1, 1], [], []>} : vector<8x8xf32>, vector<8x668xf32>, vector<8x668xf32> -> vector<8x668xf32>
    %77 = arith.addf %72, %76 : vector<8x668xf32>
    %78 = vector.extract_strided_slice %68 {offsets = [0, 2], sizes = [8, 668], strides = [1, 1]} : vector<8x726xf32> to vector<8x668xf32>
    %c2_31 = arith.constant 2 : index
    %c0_32 = arith.constant 0 : index
    %c0_33 = arith.constant 0 : index
    %79 = vector.load %arg4[%c2_31, %c0_32, %c0_33] : memref<9x8x8xf32, #tpu.memory_space<vmem>>, vector<1x8x8xf32>
    %80 = vector.shape_cast %79 : vector<1x8x8xf32> to vector<8x8xf32>
    %cst_34 = arith.constant dense<0.000000e+00> : vector<8x668xf32>
    %81 = tpu.matmul %80, %78, %cst_34 {dimension_numbers = #tpu.dot_dimension_numbers<[1], [0], [0], [1], [0, 0, 1, 1], [], []>} : vector<8x8xf32>, vector<8x668xf32>, vector<8x668xf32> -> vector<8x668xf32>
    %82 = arith.addf %77, %81 : vector<8x668xf32>
    %83 = vector.extract_strided_slice %68 {offsets = [0, 28], sizes = [8, 668], strides = [1, 1]} : vector<8x726xf32> to vector<8x668xf32>
    %c3_35 = arith.constant 3 : index
    %c0_36 = arith.constant 0 : index
    %c0_37 = arith.constant 0 : index
    %84 = vector.load %arg4[%c3_35, %c0_36, %c0_37] : memref<9x8x8xf32, #tpu.memory_space<vmem>>, vector<1x8x8xf32>
    %85 = vector.shape_cast %84 : vector<1x8x8xf32> to vector<8x8xf32>
    %cst_38 = arith.constant dense<0.000000e+00> : vector<8x668xf32>
    %86 = tpu.matmul %85, %83, %cst_38 {dimension_numbers = #tpu.dot_dimension_numbers<[1], [0], [0], [1], [0, 0, 1, 1], [], []>} : vector<8x8xf32>, vector<8x668xf32>, vector<8x668xf32> -> vector<8x668xf32>
    %87 = arith.addf %82, %86 : vector<8x668xf32>
    %88 = vector.extract_strided_slice %68 {offsets = [0, 29], sizes = [8, 668], strides = [1, 1]} : vector<8x726xf32> to vector<8x668xf32>
    %c4_39 = arith.constant 4 : index
    %c0_40 = arith.constant 0 : index
    %c0_41 = arith.constant 0 : index
    %89 = vector.load %arg4[%c4_39, %c0_40, %c0_41] : memref<9x8x8xf32, #tpu.memory_space<vmem>>, vector<1x8x8xf32>
    %90 = vector.shape_cast %89 : vector<1x8x8xf32> to vector<8x8xf32>
    %cst_42 = arith.constant dense<0.000000e+00> : vector<8x668xf32>
    %91 = tpu.matmul %90, %88, %cst_42 {dimension_numbers = #tpu.dot_dimension_numbers<[1], [0], [0], [1], [0, 0, 1, 1], [], []>} : vector<8x8xf32>, vector<8x668xf32>, vector<8x668xf32> -> vector<8x668xf32>
    %92 = arith.addf %87, %91 : vector<8x668xf32>
    %93 = vector.extract_strided_slice %68 {offsets = [0, 30], sizes = [8, 668], strides = [1, 1]} : vector<8x726xf32> to vector<8x668xf32>
    %c5_43 = arith.constant 5 : index
    %c0_44 = arith.constant 0 : index
    %c0_45 = arith.constant 0 : index
    %94 = vector.load %arg4[%c5_43, %c0_44, %c0_45] : memref<9x8x8xf32, #tpu.memory_space<vmem>>, vector<1x8x8xf32>
    %95 = vector.shape_cast %94 : vector<1x8x8xf32> to vector<8x8xf32>
    %cst_46 = arith.constant dense<0.000000e+00> : vector<8x668xf32>
    %96 = tpu.matmul %95, %93, %cst_46 {dimension_numbers = #tpu.dot_dimension_numbers<[1], [0], [0], [1], [0, 0, 1, 1], [], []>} : vector<8x8xf32>, vector<8x668xf32>, vector<8x668xf32> -> vector<8x668xf32>
    %97 = arith.addf %92, %96 : vector<8x668xf32>
    %98 = vector.extract_strided_slice %68 {offsets = [0, 56], sizes = [8, 668], strides = [1, 1]} : vector<8x726xf32> to vector<8x668xf32>
    %c6_47 = arith.constant 6 : index
    %c0_48 = arith.constant 0 : index
    %c0_49 = arith.constant 0 : index
    %99 = vector.load %arg4[%c6_47, %c0_48, %c0_49] : memref<9x8x8xf32, #tpu.memory_space<vmem>>, vector<1x8x8xf32>
    %100 = vector.shape_cast %99 : vector<1x8x8xf32> to vector<8x8xf32>
    %cst_50 = arith.constant dense<0.000000e+00> : vector<8x668xf32>
    %101 = tpu.matmul %100, %98, %cst_50 {dimension_numbers = #tpu.dot_dimension_numbers<[1], [0], [0], [1], [0, 0, 1, 1], [], []>} : vector<8x8xf32>, vector<8x668xf32>, vector<8x668xf32> -> vector<8x668xf32>
    %102 = arith.addf %97, %101 : vector<8x668xf32>
    %103 = vector.extract_strided_slice %68 {offsets = [0, 57], sizes = [8, 668], strides = [1, 1]} : vector<8x726xf32> to vector<8x668xf32>
    %c7_51 = arith.constant 7 : index
    %c0_52 = arith.constant 0 : index
    %c0_53 = arith.constant 0 : index
    %104 = vector.load %arg4[%c7_51, %c0_52, %c0_53] : memref<9x8x8xf32, #tpu.memory_space<vmem>>, vector<1x8x8xf32>
    %105 = vector.shape_cast %104 : vector<1x8x8xf32> to vector<8x8xf32>
    %cst_54 = arith.constant dense<0.000000e+00> : vector<8x668xf32>
    %106 = tpu.matmul %105, %103, %cst_54 {dimension_numbers = #tpu.dot_dimension_numbers<[1], [0], [0], [1], [0, 0, 1, 1], [], []>} : vector<8x8xf32>, vector<8x668xf32>, vector<8x668xf32> -> vector<8x668xf32>
    %107 = arith.addf %102, %106 : vector<8x668xf32>
    %108 = vector.extract_strided_slice %68 {offsets = [0, 58], sizes = [8, 668], strides = [1, 1]} : vector<8x726xf32> to vector<8x668xf32>
    %c8_55 = arith.constant 8 : index
    %c0_56 = arith.constant 0 : index
    %c0_57 = arith.constant 0 : index
    %109 = vector.load %arg4[%c8_55, %c0_56, %c0_57] : memref<9x8x8xf32, #tpu.memory_space<vmem>>, vector<1x8x8xf32>
    %110 = vector.shape_cast %109 : vector<1x8x8xf32> to vector<8x8xf32>
    %cst_58 = arith.constant dense<0.000000e+00> : vector<8x668xf32>
    %111 = tpu.matmul %110, %108, %cst_58 {dimension_numbers = #tpu.dot_dimension_numbers<[1], [0], [0], [1], [0, 0, 1, 1], [], []>} : vector<8x8xf32>, vector<8x668xf32>, vector<8x668xf32> -> vector<8x668xf32>
    %112 = arith.addf %107, %111 : vector<8x668xf32>
    %c0_59 = arith.constant 0 : index
    %c0_60 = arith.constant 0 : index
    %113 = vector.load %arg5[%c0_59, %c0_60] : memref<8x1xf32, #tpu.memory_space<vmem>>, vector<8x1xf32>
    %114 = vector.broadcast %113 : vector<8x1xf32> to vector<8x668xf32>
    %115 = arith.addf %112, %114 : vector<8x668xf32>
    %cst_61 = arith.constant 0.000000e+00 : f32
    %116 = vector.broadcast %cst_61 : f32 to vector<8x668xf32>
    %117 = arith.maximumf %115, %116 : vector<8x668xf32>
    %118 = vector.extract_strided_slice %117 {offsets = [0, 0], sizes = [8, 639], strides = [1, 1]} : vector<8x668xf32> to vector<8x639xf32>
    %119 = vector.extract_strided_slice %117 {offsets = [0, 1], sizes = [8, 639], strides = [1, 1]} : vector<8x668xf32> to vector<8x639xf32>
    %120 = arith.maximumf %118, %119 : vector<8x639xf32>
    %121 = vector.extract_strided_slice %117 {offsets = [0, 28], sizes = [8, 639], strides = [1, 1]} : vector<8x668xf32> to vector<8x639xf32>
    %122 = vector.extract_strided_slice %117 {offsets = [0, 29], sizes = [8, 639], strides = [1, 1]} : vector<8x668xf32> to vector<8x639xf32>
    %123 = arith.maximumf %121, %122 : vector<8x639xf32>
    %124 = arith.maximumf %120, %123 : vector<8x639xf32>
    %c0_62 = arith.constant 0 : index
    %c0_63 = arith.constant 0 : index
    %125 = vector.load %arg18[%c0_62, %c0_63] : memref<639x144xf32, #tpu.memory_space<vmem>>, vector<639x144xf32>
    %cst_64 = arith.constant dense<0.000000e+00> : vector<8x144xf32>
    %126 = tpu.matmul %124, %125, %cst_64 {dimension_numbers = #tpu.dot_dimension_numbers<[1], [0], [0], [1], [0, 0, 1, 1], [], []>} : vector<8x639xf32>, vector<639x144xf32>, vector<8x144xf32> -> vector<8x144xf32>
    %c0_65 = arith.constant 0 : index
    %c0_66 = arith.constant 0 : index
    %c0_67 = arith.constant 0 : index
    %127 = vector.load %arg6[%c0_65, %c0_66, %c0_67] : memref<1x16x8xf32, #tpu.memory_space<vmem>>, vector<1x16x8xf32>
    %128 = vector.shape_cast %127 : vector<1x16x8xf32> to vector<16x8xf32>
    %cst_68 = arith.constant dense<0.000000e+00> : vector<16x144xf32>
    %129 = tpu.matmul %128, %126, %cst_68 {dimension_numbers = #tpu.dot_dimension_numbers<[1], [0], [0], [1], [0, 0, 1, 1], [], []>} : vector<16x8xf32>, vector<8x144xf32>, vector<16x144xf32> -> vector<16x144xf32>
    %c0_69 = arith.constant 0 : index
    %c0_70 = arith.constant 0 : index
    %130 = vector.load %arg7[%c0_69, %c0_70] : memref<16x1xf32, #tpu.memory_space<vmem>>, vector<16x1xf32>
    %131 = vector.broadcast %130 : vector<16x1xf32> to vector<16x144xf32>
    %132 = arith.addf %129, %131 : vector<16x144xf32>
    %cst_71 = arith.constant 0.000000e+00 : f32
    %133 = vector.broadcast %cst_71 : f32 to vector<16x144xf32>
    %134 = arith.maximumf %132, %133 : vector<16x144xf32>
    %135 = vector.extract_strided_slice %134 {offsets = [0, 0], sizes = [16, 118], strides = [1, 1]} : vector<16x144xf32> to vector<16x118xf32>
    %c0_72 = arith.constant 0 : index
    %c0_73 = arith.constant 0 : index
    %c0_74 = arith.constant 0 : index
    %136 = vector.load %arg8[%c0_72, %c0_73, %c0_74] : memref<9x16x16xf32, #tpu.memory_space<vmem>>, vector<1x16x16xf32>
    %137 = vector.shape_cast %136 : vector<1x16x16xf32> to vector<16x16xf32>
    %cst_75 = arith.constant dense<0.000000e+00> : vector<16x118xf32>
    %138 = tpu.matmul %137, %135, %cst_75 {dimension_numbers = #tpu.dot_dimension_numbers<[1], [0], [0], [1], [0, 0, 1, 1], [], []>} : vector<16x16xf32>, vector<16x118xf32>, vector<16x118xf32> -> vector<16x118xf32>
    %139 = vector.extract_strided_slice %134 {offsets = [0, 1], sizes = [16, 118], strides = [1, 1]} : vector<16x144xf32> to vector<16x118xf32>
    %c1_76 = arith.constant 1 : index
    %c0_77 = arith.constant 0 : index
    %c0_78 = arith.constant 0 : index
    %140 = vector.load %arg8[%c1_76, %c0_77, %c0_78] : memref<9x16x16xf32, #tpu.memory_space<vmem>>, vector<1x16x16xf32>
    %141 = vector.shape_cast %140 : vector<1x16x16xf32> to vector<16x16xf32>
    %cst_79 = arith.constant dense<0.000000e+00> : vector<16x118xf32>
    %142 = tpu.matmul %141, %139, %cst_79 {dimension_numbers = #tpu.dot_dimension_numbers<[1], [0], [0], [1], [0, 0, 1, 1], [], []>} : vector<16x16xf32>, vector<16x118xf32>, vector<16x118xf32> -> vector<16x118xf32>
    %143 = arith.addf %138, %142 : vector<16x118xf32>
    %144 = vector.extract_strided_slice %134 {offsets = [0, 2], sizes = [16, 118], strides = [1, 1]} : vector<16x144xf32> to vector<16x118xf32>
    %c2_80 = arith.constant 2 : index
    %c0_81 = arith.constant 0 : index
    %c0_82 = arith.constant 0 : index
    %145 = vector.load %arg8[%c2_80, %c0_81, %c0_82] : memref<9x16x16xf32, #tpu.memory_space<vmem>>, vector<1x16x16xf32>
    %146 = vector.shape_cast %145 : vector<1x16x16xf32> to vector<16x16xf32>
    %cst_83 = arith.constant dense<0.000000e+00> : vector<16x118xf32>
    %147 = tpu.matmul %146, %144, %cst_83 {dimension_numbers = #tpu.dot_dimension_numbers<[1], [0], [0], [1], [0, 0, 1, 1], [], []>} : vector<16x16xf32>, vector<16x118xf32>, vector<16x118xf32> -> vector<16x118xf32>
    %148 = arith.addf %143, %147 : vector<16x118xf32>
    %149 = vector.extract_strided_slice %134 {offsets = [0, 12], sizes = [16, 118], strides = [1, 1]} : vector<16x144xf32> to vector<16x118xf32>
    %c3_84 = arith.constant 3 : index
    %c0_85 = arith.constant 0 : index
    %c0_86 = arith.constant 0 : index
    %150 = vector.load %arg8[%c3_84, %c0_85, %c0_86] : memref<9x16x16xf32, #tpu.memory_space<vmem>>, vector<1x16x16xf32>
    %151 = vector.shape_cast %150 : vector<1x16x16xf32> to vector<16x16xf32>
    %cst_87 = arith.constant dense<0.000000e+00> : vector<16x118xf32>
    %152 = tpu.matmul %151, %149, %cst_87 {dimension_numbers = #tpu.dot_dimension_numbers<[1], [0], [0], [1], [0, 0, 1, 1], [], []>} : vector<16x16xf32>, vector<16x118xf32>, vector<16x118xf32> -> vector<16x118xf32>
    %153 = arith.addf %148, %152 : vector<16x118xf32>
    %154 = vector.extract_strided_slice %134 {offsets = [0, 13], sizes = [16, 118], strides = [1, 1]} : vector<16x144xf32> to vector<16x118xf32>
    %c4_88 = arith.constant 4 : index
    %c0_89 = arith.constant 0 : index
    %c0_90 = arith.constant 0 : index
    %155 = vector.load %arg8[%c4_88, %c0_89, %c0_90] : memref<9x16x16xf32, #tpu.memory_space<vmem>>, vector<1x16x16xf32>
    %156 = vector.shape_cast %155 : vector<1x16x16xf32> to vector<16x16xf32>
    %cst_91 = arith.constant dense<0.000000e+00> : vector<16x118xf32>
    %157 = tpu.matmul %156, %154, %cst_91 {dimension_numbers = #tpu.dot_dimension_numbers<[1], [0], [0], [1], [0, 0, 1, 1], [], []>} : vector<16x16xf32>, vector<16x118xf32>, vector<16x118xf32> -> vector<16x118xf32>
    %158 = arith.addf %153, %157 : vector<16x118xf32>
    %159 = vector.extract_strided_slice %134 {offsets = [0, 14], sizes = [16, 118], strides = [1, 1]} : vector<16x144xf32> to vector<16x118xf32>
    %c5_92 = arith.constant 5 : index
    %c0_93 = arith.constant 0 : index
    %c0_94 = arith.constant 0 : index
    %160 = vector.load %arg8[%c5_92, %c0_93, %c0_94] : memref<9x16x16xf32, #tpu.memory_space<vmem>>, vector<1x16x16xf32>
    %161 = vector.shape_cast %160 : vector<1x16x16xf32> to vector<16x16xf32>
    %cst_95 = arith.constant dense<0.000000e+00> : vector<16x118xf32>
    %162 = tpu.matmul %161, %159, %cst_95 {dimension_numbers = #tpu.dot_dimension_numbers<[1], [0], [0], [1], [0, 0, 1, 1], [], []>} : vector<16x16xf32>, vector<16x118xf32>, vector<16x118xf32> -> vector<16x118xf32>
    %163 = arith.addf %158, %162 : vector<16x118xf32>
    %164 = vector.extract_strided_slice %134 {offsets = [0, 24], sizes = [16, 118], strides = [1, 1]} : vector<16x144xf32> to vector<16x118xf32>
    %c6_96 = arith.constant 6 : index
    %c0_97 = arith.constant 0 : index
    %c0_98 = arith.constant 0 : index
    %165 = vector.load %arg8[%c6_96, %c0_97, %c0_98] : memref<9x16x16xf32, #tpu.memory_space<vmem>>, vector<1x16x16xf32>
    %166 = vector.shape_cast %165 : vector<1x16x16xf32> to vector<16x16xf32>
    %cst_99 = arith.constant dense<0.000000e+00> : vector<16x118xf32>
    %167 = tpu.matmul %166, %164, %cst_99 {dimension_numbers = #tpu.dot_dimension_numbers<[1], [0], [0], [1], [0, 0, 1, 1], [], []>} : vector<16x16xf32>, vector<16x118xf32>, vector<16x118xf32> -> vector<16x118xf32>
    %168 = arith.addf %163, %167 : vector<16x118xf32>
    %169 = vector.extract_strided_slice %134 {offsets = [0, 25], sizes = [16, 118], strides = [1, 1]} : vector<16x144xf32> to vector<16x118xf32>
    %c7_100 = arith.constant 7 : index
    %c0_101 = arith.constant 0 : index
    %c0_102 = arith.constant 0 : index
    %170 = vector.load %arg8[%c7_100, %c0_101, %c0_102] : memref<9x16x16xf32, #tpu.memory_space<vmem>>, vector<1x16x16xf32>
    %171 = vector.shape_cast %170 : vector<1x16x16xf32> to vector<16x16xf32>
    %cst_103 = arith.constant dense<0.000000e+00> : vector<16x118xf32>
    %172 = tpu.matmul %171, %169, %cst_103 {dimension_numbers = #tpu.dot_dimension_numbers<[1], [0], [0], [1], [0, 0, 1, 1], [], []>} : vector<16x16xf32>, vector<16x118xf32>, vector<16x118xf32> -> vector<16x118xf32>
    %173 = arith.addf %168, %172 : vector<16x118xf32>
    %174 = vector.extract_strided_slice %134 {offsets = [0, 26], sizes = [16, 118], strides = [1, 1]} : vector<16x144xf32> to vector<16x118xf32>
    %c8_104 = arith.constant 8 : index
    %c0_105 = arith.constant 0 : index
    %c0_106 = arith.constant 0 : index
    %175 = vector.load %arg8[%c8_104, %c0_105, %c0_106] : memref<9x16x16xf32, #tpu.memory_space<vmem>>, vector<1x16x16xf32>
    %176 = vector.shape_cast %175 : vector<1x16x16xf32> to vector<16x16xf32>
    %cst_107 = arith.constant dense<0.000000e+00> : vector<16x118xf32>
    %177 = tpu.matmul %176, %174, %cst_107 {dimension_numbers = #tpu.dot_dimension_numbers<[1], [0], [0], [1], [0, 0, 1, 1], [], []>} : vector<16x16xf32>, vector<16x118xf32>, vector<16x118xf32> -> vector<16x118xf32>
    %178 = arith.addf %173, %177 : vector<16x118xf32>
    %c0_108 = arith.constant 0 : index
    %c0_109 = arith.constant 0 : index
    %179 = vector.load %arg9[%c0_108, %c0_109] : memref<16x1xf32, #tpu.memory_space<vmem>>, vector<16x1xf32>
    %180 = vector.broadcast %179 : vector<16x1xf32> to vector<16x118xf32>
    %181 = arith.addf %178, %180 : vector<16x118xf32>
    %cst_110 = arith.constant 0.000000e+00 : f32
    %182 = vector.broadcast %cst_110 : f32 to vector<16x118xf32>
    %183 = arith.maximumf %181, %182 : vector<16x118xf32>
    %184 = vector.extract_strided_slice %183 {offsets = [0, 0], sizes = [16, 92], strides = [1, 1]} : vector<16x118xf32> to vector<16x92xf32>
    %c0_111 = arith.constant 0 : index
    %c0_112 = arith.constant 0 : index
    %c0_113 = arith.constant 0 : index
    %185 = vector.load %arg10[%c0_111, %c0_112, %c0_113] : memref<9x16x16xf32, #tpu.memory_space<vmem>>, vector<1x16x16xf32>
    %186 = vector.shape_cast %185 : vector<1x16x16xf32> to vector<16x16xf32>
    %cst_114 = arith.constant dense<0.000000e+00> : vector<16x92xf32>
    %187 = tpu.matmul %186, %184, %cst_114 {dimension_numbers = #tpu.dot_dimension_numbers<[1], [0], [0], [1], [0, 0, 1, 1], [], []>} : vector<16x16xf32>, vector<16x92xf32>, vector<16x92xf32> -> vector<16x92xf32>
    %188 = vector.extract_strided_slice %183 {offsets = [0, 1], sizes = [16, 92], strides = [1, 1]} : vector<16x118xf32> to vector<16x92xf32>
    %c1_115 = arith.constant 1 : index
    %c0_116 = arith.constant 0 : index
    %c0_117 = arith.constant 0 : index
    %189 = vector.load %arg10[%c1_115, %c0_116, %c0_117] : memref<9x16x16xf32, #tpu.memory_space<vmem>>, vector<1x16x16xf32>
    %190 = vector.shape_cast %189 : vector<1x16x16xf32> to vector<16x16xf32>
    %cst_118 = arith.constant dense<0.000000e+00> : vector<16x92xf32>
    %191 = tpu.matmul %190, %188, %cst_118 {dimension_numbers = #tpu.dot_dimension_numbers<[1], [0], [0], [1], [0, 0, 1, 1], [], []>} : vector<16x16xf32>, vector<16x92xf32>, vector<16x92xf32> -> vector<16x92xf32>
    %192 = arith.addf %187, %191 : vector<16x92xf32>
    %193 = vector.extract_strided_slice %183 {offsets = [0, 2], sizes = [16, 92], strides = [1, 1]} : vector<16x118xf32> to vector<16x92xf32>
    %c2_119 = arith.constant 2 : index
    %c0_120 = arith.constant 0 : index
    %c0_121 = arith.constant 0 : index
    %194 = vector.load %arg10[%c2_119, %c0_120, %c0_121] : memref<9x16x16xf32, #tpu.memory_space<vmem>>, vector<1x16x16xf32>
    %195 = vector.shape_cast %194 : vector<1x16x16xf32> to vector<16x16xf32>
    %cst_122 = arith.constant dense<0.000000e+00> : vector<16x92xf32>
    %196 = tpu.matmul %195, %193, %cst_122 {dimension_numbers = #tpu.dot_dimension_numbers<[1], [0], [0], [1], [0, 0, 1, 1], [], []>} : vector<16x16xf32>, vector<16x92xf32>, vector<16x92xf32> -> vector<16x92xf32>
    %197 = arith.addf %192, %196 : vector<16x92xf32>
    %198 = vector.extract_strided_slice %183 {offsets = [0, 12], sizes = [16, 92], strides = [1, 1]} : vector<16x118xf32> to vector<16x92xf32>
    %c3_123 = arith.constant 3 : index
    %c0_124 = arith.constant 0 : index
    %c0_125 = arith.constant 0 : index
    %199 = vector.load %arg10[%c3_123, %c0_124, %c0_125] : memref<9x16x16xf32, #tpu.memory_space<vmem>>, vector<1x16x16xf32>
    %200 = vector.shape_cast %199 : vector<1x16x16xf32> to vector<16x16xf32>
    %cst_126 = arith.constant dense<0.000000e+00> : vector<16x92xf32>
    %201 = tpu.matmul %200, %198, %cst_126 {dimension_numbers = #tpu.dot_dimension_numbers<[1], [0], [0], [1], [0, 0, 1, 1], [], []>} : vector<16x16xf32>, vector<16x92xf32>, vector<16x92xf32> -> vector<16x92xf32>
    %202 = arith.addf %197, %201 : vector<16x92xf32>
    %203 = vector.extract_strided_slice %183 {offsets = [0, 13], sizes = [16, 92], strides = [1, 1]} : vector<16x118xf32> to vector<16x92xf32>
    %c4_127 = arith.constant 4 : index
    %c0_128 = arith.constant 0 : index
    %c0_129 = arith.constant 0 : index
    %204 = vector.load %arg10[%c4_127, %c0_128, %c0_129] : memref<9x16x16xf32, #tpu.memory_space<vmem>>, vector<1x16x16xf32>
    %205 = vector.shape_cast %204 : vector<1x16x16xf32> to vector<16x16xf32>
    %cst_130 = arith.constant dense<0.000000e+00> : vector<16x92xf32>
    %206 = tpu.matmul %205, %203, %cst_130 {dimension_numbers = #tpu.dot_dimension_numbers<[1], [0], [0], [1], [0, 0, 1, 1], [], []>} : vector<16x16xf32>, vector<16x92xf32>, vector<16x92xf32> -> vector<16x92xf32>
    %207 = arith.addf %202, %206 : vector<16x92xf32>
    %208 = vector.extract_strided_slice %183 {offsets = [0, 14], sizes = [16, 92], strides = [1, 1]} : vector<16x118xf32> to vector<16x92xf32>
    %c5_131 = arith.constant 5 : index
    %c0_132 = arith.constant 0 : index
    %c0_133 = arith.constant 0 : index
    %209 = vector.load %arg10[%c5_131, %c0_132, %c0_133] : memref<9x16x16xf32, #tpu.memory_space<vmem>>, vector<1x16x16xf32>
    %210 = vector.shape_cast %209 : vector<1x16x16xf32> to vector<16x16xf32>
    %cst_134 = arith.constant dense<0.000000e+00> : vector<16x92xf32>
    %211 = tpu.matmul %210, %208, %cst_134 {dimension_numbers = #tpu.dot_dimension_numbers<[1], [0], [0], [1], [0, 0, 1, 1], [], []>} : vector<16x16xf32>, vector<16x92xf32>, vector<16x92xf32> -> vector<16x92xf32>
    %212 = arith.addf %207, %211 : vector<16x92xf32>
    %213 = vector.extract_strided_slice %183 {offsets = [0, 24], sizes = [16, 92], strides = [1, 1]} : vector<16x118xf32> to vector<16x92xf32>
    %c6_135 = arith.constant 6 : index
    %c0_136 = arith.constant 0 : index
    %c0_137 = arith.constant 0 : index
    %214 = vector.load %arg10[%c6_135, %c0_136, %c0_137] : memref<9x16x16xf32, #tpu.memory_space<vmem>>, vector<1x16x16xf32>
    %215 = vector.shape_cast %214 : vector<1x16x16xf32> to vector<16x16xf32>
    %cst_138 = arith.constant dense<0.000000e+00> : vector<16x92xf32>
    %216 = tpu.matmul %215, %213, %cst_138 {dimension_numbers = #tpu.dot_dimension_numbers<[1], [0], [0], [1], [0, 0, 1, 1], [], []>} : vector<16x16xf32>, vector<16x92xf32>, vector<16x92xf32> -> vector<16x92xf32>
    %217 = arith.addf %212, %216 : vector<16x92xf32>
    %218 = vector.extract_strided_slice %183 {offsets = [0, 25], sizes = [16, 92], strides = [1, 1]} : vector<16x118xf32> to vector<16x92xf32>
    %c7_139 = arith.constant 7 : index
    %c0_140 = arith.constant 0 : index
    %c0_141 = arith.constant 0 : index
    %219 = vector.load %arg10[%c7_139, %c0_140, %c0_141] : memref<9x16x16xf32, #tpu.memory_space<vmem>>, vector<1x16x16xf32>
    %220 = vector.shape_cast %219 : vector<1x16x16xf32> to vector<16x16xf32>
    %cst_142 = arith.constant dense<0.000000e+00> : vector<16x92xf32>
    %221 = tpu.matmul %220, %218, %cst_142 {dimension_numbers = #tpu.dot_dimension_numbers<[1], [0], [0], [1], [0, 0, 1, 1], [], []>} : vector<16x16xf32>, vector<16x92xf32>, vector<16x92xf32> -> vector<16x92xf32>
    %222 = arith.addf %217, %221 : vector<16x92xf32>
    %223 = vector.extract_strided_slice %183 {offsets = [0, 26], sizes = [16, 92], strides = [1, 1]} : vector<16x118xf32> to vector<16x92xf32>
    %c8_143 = arith.constant 8 : index
    %c0_144 = arith.constant 0 : index
    %c0_145 = arith.constant 0 : index
    %224 = vector.load %arg10[%c8_143, %c0_144, %c0_145] : memref<9x16x16xf32, #tpu.memory_space<vmem>>, vector<1x16x16xf32>
    %225 = vector.shape_cast %224 : vector<1x16x16xf32> to vector<16x16xf32>
    %cst_146 = arith.constant dense<0.000000e+00> : vector<16x92xf32>
    %226 = tpu.matmul %225, %223, %cst_146 {dimension_numbers = #tpu.dot_dimension_numbers<[1], [0], [0], [1], [0, 0, 1, 1], [], []>} : vector<16x16xf32>, vector<16x92xf32>, vector<16x92xf32> -> vector<16x92xf32>
    %227 = arith.addf %222, %226 : vector<16x92xf32>
    %c0_147 = arith.constant 0 : index
    %c0_148 = arith.constant 0 : index
    %228 = vector.load %arg11[%c0_147, %c0_148] : memref<16x1xf32, #tpu.memory_space<vmem>>, vector<16x1xf32>
    %229 = vector.broadcast %228 : vector<16x1xf32> to vector<16x92xf32>
    %230 = arith.addf %227, %229 : vector<16x92xf32>
    %cst_149 = arith.constant 0.000000e+00 : f32
    %231 = vector.broadcast %cst_149 : f32 to vector<16x92xf32>
    %232 = arith.maximumf %230, %231 : vector<16x92xf32>
    %233 = vector.extract_strided_slice %232 {offsets = [0, 0], sizes = [16, 79], strides = [1, 1]} : vector<16x92xf32> to vector<16x79xf32>
    %234 = vector.extract_strided_slice %232 {offsets = [0, 1], sizes = [16, 79], strides = [1, 1]} : vector<16x92xf32> to vector<16x79xf32>
    %235 = arith.maximumf %233, %234 : vector<16x79xf32>
    %236 = vector.extract_strided_slice %232 {offsets = [0, 12], sizes = [16, 79], strides = [1, 1]} : vector<16x92xf32> to vector<16x79xf32>
    %237 = vector.extract_strided_slice %232 {offsets = [0, 13], sizes = [16, 79], strides = [1, 1]} : vector<16x92xf32> to vector<16x79xf32>
    %238 = arith.maximumf %236, %237 : vector<16x79xf32>
    %239 = arith.maximumf %235, %238 : vector<16x79xf32>
    %c0_150 = arith.constant 0 : index
    %c0_151 = arith.constant 0 : index
    %240 = vector.load %arg19[%c0_150, %c0_151] : memref<79x16xf32, #tpu.memory_space<vmem>>, vector<79x16xf32>
    %cst_152 = arith.constant dense<0.000000e+00> : vector<16x16xf32>
    %241 = tpu.matmul %239, %240, %cst_152 {dimension_numbers = #tpu.dot_dimension_numbers<[1], [0], [0], [1], [0, 0, 1, 1], [], []>} : vector<16x79xf32>, vector<79x16xf32>, vector<16x16xf32> -> vector<16x16xf32>
    %c0_153 = arith.constant 0 : index
    %c0_154 = arith.constant 0 : index
    %c0_155 = arith.constant 0 : index
    %242 = vector.load %arg12[%c0_153, %c0_154, %c0_155] : memref<1x32x16xf32, #tpu.memory_space<vmem>>, vector<1x32x16xf32>
    %243 = vector.shape_cast %242 : vector<1x32x16xf32> to vector<32x16xf32>
    %cst_156 = arith.constant dense<0.000000e+00> : vector<32x16xf32>
    %244 = tpu.matmul %243, %241, %cst_156 {dimension_numbers = #tpu.dot_dimension_numbers<[1], [0], [0], [1], [0, 0, 1, 1], [], []>} : vector<32x16xf32>, vector<16x16xf32>, vector<32x16xf32> -> vector<32x16xf32>
    %c0_157 = arith.constant 0 : index
    %c0_158 = arith.constant 0 : index
    %245 = vector.load %arg13[%c0_157, %c0_158] : memref<32x1xf32, #tpu.memory_space<vmem>>, vector<32x1xf32>
    %246 = vector.broadcast %245 : vector<32x1xf32> to vector<32x16xf32>
    %247 = arith.addf %244, %246 : vector<32x16xf32>
    %cst_159 = arith.constant 0.000000e+00 : f32
    %248 = vector.broadcast %cst_159 : f32 to vector<32x16xf32>
    %249 = arith.maximumf %247, %248 : vector<32x16xf32>
    %250 = vector.extract_strided_slice %249 {offsets = [0, 0], sizes = [32, 6], strides = [1, 1]} : vector<32x16xf32> to vector<32x6xf32>
    %c0_160 = arith.constant 0 : index
    %c0_161 = arith.constant 0 : index
    %c0_162 = arith.constant 0 : index
    %251 = vector.load %arg14[%c0_160, %c0_161, %c0_162] : memref<9x32x32xf32, #tpu.memory_space<vmem>>, vector<1x32x32xf32>
    %252 = vector.shape_cast %251 : vector<1x32x32xf32> to vector<32x32xf32>
    %cst_163 = arith.constant dense<0.000000e+00> : vector<32x6xf32>
    %253 = tpu.matmul %252, %250, %cst_163 {dimension_numbers = #tpu.dot_dimension_numbers<[1], [0], [0], [1], [0, 0, 1, 1], [], []>} : vector<32x32xf32>, vector<32x6xf32>, vector<32x6xf32> -> vector<32x6xf32>
    %254 = vector.extract_strided_slice %249 {offsets = [0, 1], sizes = [32, 6], strides = [1, 1]} : vector<32x16xf32> to vector<32x6xf32>
    %c1_164 = arith.constant 1 : index
    %c0_165 = arith.constant 0 : index
    %c0_166 = arith.constant 0 : index
    %255 = vector.load %arg14[%c1_164, %c0_165, %c0_166] : memref<9x32x32xf32, #tpu.memory_space<vmem>>, vector<1x32x32xf32>
    %256 = vector.shape_cast %255 : vector<1x32x32xf32> to vector<32x32xf32>
    %cst_167 = arith.constant dense<0.000000e+00> : vector<32x6xf32>
    %257 = tpu.matmul %256, %254, %cst_167 {dimension_numbers = #tpu.dot_dimension_numbers<[1], [0], [0], [1], [0, 0, 1, 1], [], []>} : vector<32x32xf32>, vector<32x6xf32>, vector<32x6xf32> -> vector<32x6xf32>
    %258 = arith.addf %253, %257 : vector<32x6xf32>
    %259 = vector.extract_strided_slice %249 {offsets = [0, 2], sizes = [32, 6], strides = [1, 1]} : vector<32x16xf32> to vector<32x6xf32>
    %c2_168 = arith.constant 2 : index
    %c0_169 = arith.constant 0 : index
    %c0_170 = arith.constant 0 : index
    %260 = vector.load %arg14[%c2_168, %c0_169, %c0_170] : memref<9x32x32xf32, #tpu.memory_space<vmem>>, vector<1x32x32xf32>
    %261 = vector.shape_cast %260 : vector<1x32x32xf32> to vector<32x32xf32>
    %cst_171 = arith.constant dense<0.000000e+00> : vector<32x6xf32>
    %262 = tpu.matmul %261, %259, %cst_171 {dimension_numbers = #tpu.dot_dimension_numbers<[1], [0], [0], [1], [0, 0, 1, 1], [], []>} : vector<32x32xf32>, vector<32x6xf32>, vector<32x6xf32> -> vector<32x6xf32>
    %263 = arith.addf %258, %262 : vector<32x6xf32>
    %264 = vector.extract_strided_slice %249 {offsets = [0, 4], sizes = [32, 6], strides = [1, 1]} : vector<32x16xf32> to vector<32x6xf32>
    %c3_172 = arith.constant 3 : index
    %c0_173 = arith.constant 0 : index
    %c0_174 = arith.constant 0 : index
    %265 = vector.load %arg14[%c3_172, %c0_173, %c0_174] : memref<9x32x32xf32, #tpu.memory_space<vmem>>, vector<1x32x32xf32>
    %266 = vector.shape_cast %265 : vector<1x32x32xf32> to vector<32x32xf32>
    %cst_175 = arith.constant dense<0.000000e+00> : vector<32x6xf32>
    %267 = tpu.matmul %266, %264, %cst_175 {dimension_numbers = #tpu.dot_dimension_numbers<[1], [0], [0], [1], [0, 0, 1, 1], [], []>} : vector<32x32xf32>, vector<32x6xf32>, vector<32x6xf32> -> vector<32x6xf32>
    %268 = arith.addf %263, %267 : vector<32x6xf32>
    %269 = vector.extract_strided_slice %249 {offsets = [0, 5], sizes = [32, 6], strides = [1, 1]} : vector<32x16xf32> to vector<32x6xf32>
    %c4_176 = arith.constant 4 : index
    %c0_177 = arith.constant 0 : index
    %c0_178 = arith.constant 0 : index
    %270 = vector.load %arg14[%c4_176, %c0_177, %c0_178] : memref<9x32x32xf32, #tpu.memory_space<vmem>>, vector<1x32x32xf32>
    %271 = vector.shape_cast %270 : vector<1x32x32xf32> to vector<32x32xf32>
    %cst_179 = arith.constant dense<0.000000e+00> : vector<32x6xf32>
    %272 = tpu.matmul %271, %269, %cst_179 {dimension_numbers = #tpu.dot_dimension_numbers<[1], [0], [0], [1], [0, 0, 1, 1], [], []>} : vector<32x32xf32>, vector<32x6xf32>, vector<32x6xf32> -> vector<32x6xf32>
    %273 = arith.addf %268, %272 : vector<32x6xf32>
    %274 = vector.extract_strided_slice %249 {offsets = [0, 6], sizes = [32, 6], strides = [1, 1]} : vector<32x16xf32> to vector<32x6xf32>
    %c5_180 = arith.constant 5 : index
    %c0_181 = arith.constant 0 : index
    %c0_182 = arith.constant 0 : index
    %275 = vector.load %arg14[%c5_180, %c0_181, %c0_182] : memref<9x32x32xf32, #tpu.memory_space<vmem>>, vector<1x32x32xf32>
    %276 = vector.shape_cast %275 : vector<1x32x32xf32> to vector<32x32xf32>
    %cst_183 = arith.constant dense<0.000000e+00> : vector<32x6xf32>
    %277 = tpu.matmul %276, %274, %cst_183 {dimension_numbers = #tpu.dot_dimension_numbers<[1], [0], [0], [1], [0, 0, 1, 1], [], []>} : vector<32x32xf32>, vector<32x6xf32>, vector<32x6xf32> -> vector<32x6xf32>
    %278 = arith.addf %273, %277 : vector<32x6xf32>
    %279 = vector.extract_strided_slice %249 {offsets = [0, 8], sizes = [32, 6], strides = [1, 1]} : vector<32x16xf32> to vector<32x6xf32>
    %c6_184 = arith.constant 6 : index
    %c0_185 = arith.constant 0 : index
    %c0_186 = arith.constant 0 : index
    %280 = vector.load %arg14[%c6_184, %c0_185, %c0_186] : memref<9x32x32xf32, #tpu.memory_space<vmem>>, vector<1x32x32xf32>
    %281 = vector.shape_cast %280 : vector<1x32x32xf32> to vector<32x32xf32>
    %cst_187 = arith.constant dense<0.000000e+00> : vector<32x6xf32>
    %282 = tpu.matmul %281, %279, %cst_187 {dimension_numbers = #tpu.dot_dimension_numbers<[1], [0], [0], [1], [0, 0, 1, 1], [], []>} : vector<32x32xf32>, vector<32x6xf32>, vector<32x6xf32> -> vector<32x6xf32>
    %283 = arith.addf %278, %282 : vector<32x6xf32>
    %284 = vector.extract_strided_slice %249 {offsets = [0, 9], sizes = [32, 6], strides = [1, 1]} : vector<32x16xf32> to vector<32x6xf32>
    %c7_188 = arith.constant 7 : index
    %c0_189 = arith.constant 0 : index
    %c0_190 = arith.constant 0 : index
    %285 = vector.load %arg14[%c7_188, %c0_189, %c0_190] : memref<9x32x32xf32, #tpu.memory_space<vmem>>, vector<1x32x32xf32>
    %286 = vector.shape_cast %285 : vector<1x32x32xf32> to vector<32x32xf32>
    %cst_191 = arith.constant dense<0.000000e+00> : vector<32x6xf32>
    %287 = tpu.matmul %286, %284, %cst_191 {dimension_numbers = #tpu.dot_dimension_numbers<[1], [0], [0], [1], [0, 0, 1, 1], [], []>} : vector<32x32xf32>, vector<32x6xf32>, vector<32x6xf32> -> vector<32x6xf32>
    %288 = arith.addf %283, %287 : vector<32x6xf32>
    %289 = vector.extract_strided_slice %249 {offsets = [0, 10], sizes = [32, 6], strides = [1, 1]} : vector<32x16xf32> to vector<32x6xf32>
    %c8_192 = arith.constant 8 : index
    %c0_193 = arith.constant 0 : index
    %c0_194 = arith.constant 0 : index
    %290 = vector.load %arg14[%c8_192, %c0_193, %c0_194] : memref<9x32x32xf32, #tpu.memory_space<vmem>>, vector<1x32x32xf32>
    %291 = vector.shape_cast %290 : vector<1x32x32xf32> to vector<32x32xf32>
    %cst_195 = arith.constant dense<0.000000e+00> : vector<32x6xf32>
    %292 = tpu.matmul %291, %289, %cst_195 {dimension_numbers = #tpu.dot_dimension_numbers<[1], [0], [0], [1], [0, 0, 1, 1], [], []>} : vector<32x32xf32>, vector<32x6xf32>, vector<32x6xf32> -> vector<32x6xf32>
    %293 = arith.addf %288, %292 : vector<32x6xf32>
    %c0_196 = arith.constant 0 : index
    %c0_197 = arith.constant 0 : index
    %294 = vector.load %arg15[%c0_196, %c0_197] : memref<32x1xf32, #tpu.memory_space<vmem>>, vector<32x1xf32>
    %295 = vector.broadcast %294 : vector<32x1xf32> to vector<32x6xf32>
    %296 = arith.addf %293, %295 : vector<32x6xf32>
    %cst_198 = arith.constant 0.000000e+00 : f32
    %297 = vector.broadcast %cst_198 : f32 to vector<32x6xf32>
    %298 = arith.maximumf %296, %297 : vector<32x6xf32>
    %299 = vector.extract_strided_slice %298 {offsets = [0, 0], sizes = [32, 1], strides = [1, 1]} : vector<32x6xf32> to vector<32x1xf32>
    %c0_199 = arith.constant 0 : index
    %c0_200 = arith.constant 0 : index
    %c0_201 = arith.constant 0 : index
    %300 = vector.load %arg16[%c0_199, %c0_200, %c0_201] : memref<4x10x32xf32, #tpu.memory_space<vmem>>, vector<1x10x32xf32>
    %301 = vector.shape_cast %300 : vector<1x10x32xf32> to vector<10x32xf32>
    %cst_202 = arith.constant dense<0.000000e+00> : vector<10x1xf32>
    %302 = tpu.matmul %301, %299, %cst_202 {dimension_numbers = #tpu.dot_dimension_numbers<[1], [0], [0], [1], [0, 0, 1, 1], [], []>} : vector<10x32xf32>, vector<32x1xf32>, vector<10x1xf32> -> vector<10x1xf32>
    %303 = vector.extract_strided_slice %298 {offsets = [0, 1], sizes = [32, 1], strides = [1, 1]} : vector<32x6xf32> to vector<32x1xf32>
    %c1_203 = arith.constant 1 : index
    %c0_204 = arith.constant 0 : index
    %c0_205 = arith.constant 0 : index
    %304 = vector.load %arg16[%c1_203, %c0_204, %c0_205] : memref<4x10x32xf32, #tpu.memory_space<vmem>>, vector<1x10x32xf32>
    %305 = vector.shape_cast %304 : vector<1x10x32xf32> to vector<10x32xf32>
    %cst_206 = arith.constant dense<0.000000e+00> : vector<10x1xf32>
    %306 = tpu.matmul %305, %303, %cst_206 {dimension_numbers = #tpu.dot_dimension_numbers<[1], [0], [0], [1], [0, 0, 1, 1], [], []>} : vector<10x32xf32>, vector<32x1xf32>, vector<10x1xf32> -> vector<10x1xf32>
    %307 = arith.addf %302, %306 : vector<10x1xf32>
    %308 = vector.extract_strided_slice %298 {offsets = [0, 4], sizes = [32, 1], strides = [1, 1]} : vector<32x6xf32> to vector<32x1xf32>
    %c2_207 = arith.constant 2 : index
    %c0_208 = arith.constant 0 : index
    %c0_209 = arith.constant 0 : index
    %309 = vector.load %arg16[%c2_207, %c0_208, %c0_209] : memref<4x10x32xf32, #tpu.memory_space<vmem>>, vector<1x10x32xf32>
    %310 = vector.shape_cast %309 : vector<1x10x32xf32> to vector<10x32xf32>
    %cst_210 = arith.constant dense<0.000000e+00> : vector<10x1xf32>
    %311 = tpu.matmul %310, %308, %cst_210 {dimension_numbers = #tpu.dot_dimension_numbers<[1], [0], [0], [1], [0, 0, 1, 1], [], []>} : vector<10x32xf32>, vector<32x1xf32>, vector<10x1xf32> -> vector<10x1xf32>
    %312 = arith.addf %307, %311 : vector<10x1xf32>
    %313 = vector.extract_strided_slice %298 {offsets = [0, 5], sizes = [32, 1], strides = [1, 1]} : vector<32x6xf32> to vector<32x1xf32>
    %c3_211 = arith.constant 3 : index
    %c0_212 = arith.constant 0 : index
    %c0_213 = arith.constant 0 : index
    %314 = vector.load %arg16[%c3_211, %c0_212, %c0_213] : memref<4x10x32xf32, #tpu.memory_space<vmem>>, vector<1x10x32xf32>
    %315 = vector.shape_cast %314 : vector<1x10x32xf32> to vector<10x32xf32>
    %cst_214 = arith.constant dense<0.000000e+00> : vector<10x1xf32>
    %316 = tpu.matmul %315, %313, %cst_214 {dimension_numbers = #tpu.dot_dimension_numbers<[1], [0], [0], [1], [0, 0, 1, 1], [], []>} : vector<10x32xf32>, vector<32x1xf32>, vector<10x1xf32> -> vector<10x1xf32>
    %317 = arith.addf %312, %316 : vector<10x1xf32>
    %c0_215 = arith.constant 0 : index
    %c0_216 = arith.constant 0 : index
    %318 = vector.load %arg17[%c0_215, %c0_216] : memref<10x1xf32, #tpu.memory_space<vmem>>, vector<10x1xf32>
    %319 = arith.addf %317, %318 : vector<10x1xf32>
    %cst_217 = arith.constant dense<0xFF800000> : vector<1xf32>
    %320 = vector.multi_reduction <maximumf>, %319, %cst_217 [0] : vector<10x1xf32> to vector<1xf32>
    %321 = vector.shape_cast %320 : vector<1xf32> to vector<1x1xf32>
    %322 = vector.broadcast %321 : vector<1x1xf32> to vector<10x1xf32>
    %323 = arith.subf %319, %322 : vector<10x1xf32>
    %324 = math.exp %323 : vector<10x1xf32>
    %cst_218 = arith.constant dense<0.000000e+00> : vector<1xf32>
    %325 = vector.multi_reduction <add>, %324, %cst_218 [0] : vector<10x1xf32> to vector<1xf32>
    %326 = vector.shape_cast %325 : vector<1xf32> to vector<1x1xf32>
    %327 = math.log %326 : vector<1x1xf32>
    %328 = vector.broadcast %327 : vector<1x1xf32> to vector<10x1xf32>
    %329 = arith.subf %323, %328 : vector<10x1xf32>
    %c0_219 = arith.constant 0 : index
    %c0_220 = arith.constant 0 : index
    %c0_221 = arith.constant 0 : index
    %330 = vector.load %arg20[%c0_219, %c0_220, %c0_221] : memref<2x10x1xf32, #tpu.memory_space<vmem>>, vector<1x10x1xf32>
    %331 = vector.shape_cast %330 : vector<1x10x1xf32> to vector<10x1xf32>
    %332 = vector.shape_cast %329 : vector<10x1xf32> to vector<1x10x1xf32>
    tpu.vector_store %arg20[%c0_219, %c0_220, %c0_221], %332 {strides = array<i32>} : memref<2x10x1xf32, #tpu.memory_space<vmem>>, vector<1x10x1xf32>,
    %c1_222 = arith.constant 1 : index
    %c0_223 = arith.constant 0 : index
    %c0_224 = arith.constant 0 : index
    %333 = vector.load %arg1[%c1_222, %c0_223, %c0_224] : memref<2x1x784xf32, #tpu.memory_space<vmem>>, vector<1x1x784xf32>
    %334 = vector.shape_cast %333 : vector<1x1x784xf32> to vector<1x784xf32>
    %335 = vector.extract_strided_slice %334 {offsets = [0, 0], sizes = [1, 726], strides = [1, 1]} : vector<1x784xf32> to vector<1x726xf32>
    %c0_225 = arith.constant 0 : index
    %c0_226 = arith.constant 0 : index
    %c0_227 = arith.constant 0 : index
    %336 = vector.load %arg2[%c0_225, %c0_226, %c0_227] : memref<9x8x1xf32, #tpu.memory_space<vmem>>, vector<1x8x1xf32>
    %337 = vector.shape_cast %336 : vector<1x8x1xf32> to vector<8x1xf32>
    %338 = vector.broadcast %337 : vector<8x1xf32> to vector<8x726xf32>
    %339 = vector.broadcast %335 : vector<1x726xf32> to vector<8x726xf32>
    %340 = arith.mulf %338, %339 : vector<8x726xf32>
    %341 = vector.extract_strided_slice %334 {offsets = [0, 1], sizes = [1, 726], strides = [1, 1]} : vector<1x784xf32> to vector<1x726xf32>
    %c1_228 = arith.constant 1 : index
    %c0_229 = arith.constant 0 : index
    %c0_230 = arith.constant 0 : index
    %342 = vector.load %arg2[%c1_228, %c0_229, %c0_230] : memref<9x8x1xf32, #tpu.memory_space<vmem>>, vector<1x8x1xf32>
    %343 = vector.shape_cast %342 : vector<1x8x1xf32> to vector<8x1xf32>
    %344 = vector.broadcast %343 : vector<8x1xf32> to vector<8x726xf32>
    %345 = vector.broadcast %341 : vector<1x726xf32> to vector<8x726xf32>
    %346 = arith.mulf %344, %345 : vector<8x726xf32>
    %347 = arith.addf %340, %346 : vector<8x726xf32>
    %348 = vector.extract_strided_slice %334 {offsets = [0, 2], sizes = [1, 726], strides = [1, 1]} : vector<1x784xf32> to vector<1x726xf32>
    %c2_231 = arith.constant 2 : index
    %c0_232 = arith.constant 0 : index
    %c0_233 = arith.constant 0 : index
    %349 = vector.load %arg2[%c2_231, %c0_232, %c0_233] : memref<9x8x1xf32, #tpu.memory_space<vmem>>, vector<1x8x1xf32>
    %350 = vector.shape_cast %349 : vector<1x8x1xf32> to vector<8x1xf32>
    %351 = vector.broadcast %350 : vector<8x1xf32> to vector<8x726xf32>
    %352 = vector.broadcast %348 : vector<1x726xf32> to vector<8x726xf32>
    %353 = arith.mulf %351, %352 : vector<8x726xf32>
    %354 = arith.addf %347, %353 : vector<8x726xf32>
    %355 = vector.extract_strided_slice %334 {offsets = [0, 28], sizes = [1, 726], strides = [1, 1]} : vector<1x784xf32> to vector<1x726xf32>
    %c3_234 = arith.constant 3 : index
    %c0_235 = arith.constant 0 : index
    %c0_236 = arith.constant 0 : index
    %356 = vector.load %arg2[%c3_234, %c0_235, %c0_236] : memref<9x8x1xf32, #tpu.memory_space<vmem>>, vector<1x8x1xf32>
    %357 = vector.shape_cast %356 : vector<1x8x1xf32> to vector<8x1xf32>
    %358 = vector.broadcast %357 : vector<8x1xf32> to vector<8x726xf32>
    %359 = vector.broadcast %355 : vector<1x726xf32> to vector<8x726xf32>
    %360 = arith.mulf %358, %359 : vector<8x726xf32>
    %361 = arith.addf %354, %360 : vector<8x726xf32>
    %362 = vector.extract_strided_slice %334 {offsets = [0, 29], sizes = [1, 726], strides = [1, 1]} : vector<1x784xf32> to vector<1x726xf32>
    %c4_237 = arith.constant 4 : index
    %c0_238 = arith.constant 0 : index
    %c0_239 = arith.constant 0 : index
    %363 = vector.load %arg2[%c4_237, %c0_238, %c0_239] : memref<9x8x1xf32, #tpu.memory_space<vmem>>, vector<1x8x1xf32>
    %364 = vector.shape_cast %363 : vector<1x8x1xf32> to vector<8x1xf32>
    %365 = vector.broadcast %364 : vector<8x1xf32> to vector<8x726xf32>
    %366 = vector.broadcast %362 : vector<1x726xf32> to vector<8x726xf32>
    %367 = arith.mulf %365, %366 : vector<8x726xf32>
    %368 = arith.addf %361, %367 : vector<8x726xf32>
    %369 = vector.extract_strided_slice %334 {offsets = [0, 30], sizes = [1, 726], strides = [1, 1]} : vector<1x784xf32> to vector<1x726xf32>
    %c5_240 = arith.constant 5 : index
    %c0_241 = arith.constant 0 : index
    %c0_242 = arith.constant 0 : index
    %370 = vector.load %arg2[%c5_240, %c0_241, %c0_242] : memref<9x8x1xf32, #tpu.memory_space<vmem>>, vector<1x8x1xf32>
    %371 = vector.shape_cast %370 : vector<1x8x1xf32> to vector<8x1xf32>
    %372 = vector.broadcast %371 : vector<8x1xf32> to vector<8x726xf32>
    %373 = vector.broadcast %369 : vector<1x726xf32> to vector<8x726xf32>
    %374 = arith.mulf %372, %373 : vector<8x726xf32>
    %375 = arith.addf %368, %374 : vector<8x726xf32>
    %376 = vector.extract_strided_slice %334 {offsets = [0, 56], sizes = [1, 726], strides = [1, 1]} : vector<1x784xf32> to vector<1x726xf32>
    %c6_243 = arith.constant 6 : index
    %c0_244 = arith.constant 0 : index
    %c0_245 = arith.constant 0 : index
    %377 = vector.load %arg2[%c6_243, %c0_244, %c0_245] : memref<9x8x1xf32, #tpu.memory_space<vmem>>, vector<1x8x1xf32>
    %378 = vector.shape_cast %377 : vector<1x8x1xf32> to vector<8x1xf32>
    %379 = vector.broadcast %378 : vector<8x1xf32> to vector<8x726xf32>
    %380 = vector.broadcast %376 : vector<1x726xf32> to vector<8x726xf32>
    %381 = arith.mulf %379, %380 : vector<8x726xf32>
    %382 = arith.addf %375, %381 : vector<8x726xf32>
    %383 = vector.extract_strided_slice %334 {offsets = [0, 57], sizes = [1, 726], strides = [1, 1]} : vector<1x784xf32> to vector<1x726xf32>
    %c7_246 = arith.constant 7 : index
    %c0_247 = arith.constant 0 : index
    %c0_248 = arith.constant 0 : index
    %384 = vector.load %arg2[%c7_246, %c0_247, %c0_248] : memref<9x8x1xf32, #tpu.memory_space<vmem>>, vector<1x8x1xf32>
    %385 = vector.shape_cast %384 : vector<1x8x1xf32> to vector<8x1xf32>
    %386 = vector.broadcast %385 : vector<8x1xf32> to vector<8x726xf32>
    %387 = vector.broadcast %383 : vector<1x726xf32> to vector<8x726xf32>
    %388 = arith.mulf %386, %387 : vector<8x726xf32>
    %389 = arith.addf %382, %388 : vector<8x726xf32>
    %390 = vector.extract_strided_slice %334 {offsets = [0, 58], sizes = [1, 726], strides = [1, 1]} : vector<1x784xf32> to vector<1x726xf32>
    %c8_249 = arith.constant 8 : index
    %c0_250 = arith.constant 0 : index
    %c0_251 = arith.constant 0 : index
    %391 = vector.load %arg2[%c8_249, %c0_250, %c0_251] : memref<9x8x1xf32, #tpu.memory_space<vmem>>, vector<1x8x1xf32>
    %392 = vector.shape_cast %391 : vector<1x8x1xf32> to vector<8x1xf32>
    %393 = vector.broadcast %392 : vector<8x1xf32> to vector<8x726xf32>
    %394 = vector.broadcast %390 : vector<1x726xf32> to vector<8x726xf32>
    %395 = arith.mulf %393, %394 : vector<8x726xf32>
    %396 = arith.addf %389, %395 : vector<8x726xf32>
    %c0_252 = arith.constant 0 : index
    %c0_253 = arith.constant 0 : index
    %397 = vector.load %arg3[%c0_252, %c0_253] : memref<8x1xf32, #tpu.memory_space<vmem>>, vector<8x1xf32>
    %398 = vector.broadcast %397 : vector<8x1xf32> to vector<8x726xf32>
    %399 = arith.addf %396, %398 : vector<8x726xf32>
    %cst_254 = arith.constant 0.000000e+00 : f32
    %400 = vector.broadcast %cst_254 : f32 to vector<8x726xf32>
    %401 = arith.maximumf %399, %400 : vector<8x726xf32>
    %402 = vector.extract_strided_slice %401 {offsets = [0, 0], sizes = [8, 668], strides = [1, 1]} : vector<8x726xf32> to vector<8x668xf32>
    %c0_255 = arith.constant 0 : index
    %c0_256 = arith.constant 0 : index
    %c0_257 = arith.constant 0 : index
    %403 = vector.load %arg4[%c0_255, %c0_256, %c0_257] : memref<9x8x8xf32, #tpu.memory_space<vmem>>, vector<1x8x8xf32>
    %404 = vector.shape_cast %403 : vector<1x8x8xf32> to vector<8x8xf32>
    %cst_258 = arith.constant dense<0.000000e+00> : vector<8x668xf32>
    %405 = tpu.matmul %404, %402, %cst_258 {dimension_numbers = #tpu.dot_dimension_numbers<[1], [0], [0], [1], [0, 0, 1, 1], [], []>} : vector<8x8xf32>, vector<8x668xf32>, vector<8x668xf32> -> vector<8x668xf32>
    %406 = vector.extract_strided_slice %401 {offsets = [0, 1], sizes = [8, 668], strides = [1, 1]} : vector<8x726xf32> to vector<8x668xf32>
    %c1_259 = arith.constant 1 : index
    %c0_260 = arith.constant 0 : index
    %c0_261 = arith.constant 0 : index
    %407 = vector.load %arg4[%c1_259, %c0_260, %c0_261] : memref<9x8x8xf32, #tpu.memory_space<vmem>>, vector<1x8x8xf32>
    %408 = vector.shape_cast %407 : vector<1x8x8xf32> to vector<8x8xf32>
    %cst_262 = arith.constant dense<0.000000e+00> : vector<8x668xf32>
    %409 = tpu.matmul %408, %406, %cst_262 {dimension_numbers = #tpu.dot_dimension_numbers<[1], [0], [0], [1], [0, 0, 1, 1], [], []>} : vector<8x8xf32>, vector<8x668xf32>, vector<8x668xf32> -> vector<8x668xf32>
    %410 = arith.addf %405, %409 : vector<8x668xf32>
    %411 = vector.extract_strided_slice %401 {offsets = [0, 2], sizes = [8, 668], strides = [1, 1]} : vector<8x726xf32> to vector<8x668xf32>
    %c2_263 = arith.constant 2 : index
    %c0_264 = arith.constant 0 : index
    %c0_265 = arith.constant 0 : index
    %412 = vector.load %arg4[%c2_263, %c0_264, %c0_265] : memref<9x8x8xf32, #tpu.memory_space<vmem>>, vector<1x8x8xf32>
    %413 = vector.shape_cast %412 : vector<1x8x8xf32> to vector<8x8xf32>
    %cst_266 = arith.constant dense<0.000000e+00> : vector<8x668xf32>
    %414 = tpu.matmul %413, %411, %cst_266 {dimension_numbers = #tpu.dot_dimension_numbers<[1], [0], [0], [1], [0, 0, 1, 1], [], []>} : vector<8x8xf32>, vector<8x668xf32>, vector<8x668xf32> -> vector<8x668xf32>
    %415 = arith.addf %410, %414 : vector<8x668xf32>
    %416 = vector.extract_strided_slice %401 {offsets = [0, 28], sizes = [8, 668], strides = [1, 1]} : vector<8x726xf32> to vector<8x668xf32>
    %c3_267 = arith.constant 3 : index
    %c0_268 = arith.constant 0 : index
    %c0_269 = arith.constant 0 : index
    %417 = vector.load %arg4[%c3_267, %c0_268, %c0_269] : memref<9x8x8xf32, #tpu.memory_space<vmem>>, vector<1x8x8xf32>
    %418 = vector.shape_cast %417 : vector<1x8x8xf32> to vector<8x8xf32>
    %cst_270 = arith.constant dense<0.000000e+00> : vector<8x668xf32>
    %419 = tpu.matmul %418, %416, %cst_270 {dimension_numbers = #tpu.dot_dimension_numbers<[1], [0], [0], [1], [0, 0, 1, 1], [], []>} : vector<8x8xf32>, vector<8x668xf32>, vector<8x668xf32> -> vector<8x668xf32>
    %420 = arith.addf %415, %419 : vector<8x668xf32>
    %421 = vector.extract_strided_slice %401 {offsets = [0, 29], sizes = [8, 668], strides = [1, 1]} : vector<8x726xf32> to vector<8x668xf32>
    %c4_271 = arith.constant 4 : index
    %c0_272 = arith.constant 0 : index
    %c0_273 = arith.constant 0 : index
    %422 = vector.load %arg4[%c4_271, %c0_272, %c0_273] : memref<9x8x8xf32, #tpu.memory_space<vmem>>, vector<1x8x8xf32>
    %423 = vector.shape_cast %422 : vector<1x8x8xf32> to vector<8x8xf32>
    %cst_274 = arith.constant dense<0.000000e+00> : vector<8x668xf32>
    %424 = tpu.matmul %423, %421, %cst_274 {dimension_numbers = #tpu.dot_dimension_numbers<[1], [0], [0], [1], [0, 0, 1, 1], [], []>} : vector<8x8xf32>, vector<8x668xf32>, vector<8x668xf32> -> vector<8x668xf32>
    %425 = arith.addf %420, %424 : vector<8x668xf32>
    %426 = vector.extract_strided_slice %401 {offsets = [0, 30], sizes = [8, 668], strides = [1, 1]} : vector<8x726xf32> to vector<8x668xf32>
    %c5_275 = arith.constant 5 : index
    %c0_276 = arith.constant 0 : index
    %c0_277 = arith.constant 0 : index
    %427 = vector.load %arg4[%c5_275, %c0_276, %c0_277] : memref<9x8x8xf32, #tpu.memory_space<vmem>>, vector<1x8x8xf32>
    %428 = vector.shape_cast %427 : vector<1x8x8xf32> to vector<8x8xf32>
    %cst_278 = arith.constant dense<0.000000e+00> : vector<8x668xf32>
    %429 = tpu.matmul %428, %426, %cst_278 {dimension_numbers = #tpu.dot_dimension_numbers<[1], [0], [0], [1], [0, 0, 1, 1], [], []>} : vector<8x8xf32>, vector<8x668xf32>, vector<8x668xf32> -> vector<8x668xf32>
    %430 = arith.addf %425, %429 : vector<8x668xf32>
    %431 = vector.extract_strided_slice %401 {offsets = [0, 56], sizes = [8, 668], strides = [1, 1]} : vector<8x726xf32> to vector<8x668xf32>
    %c6_279 = arith.constant 6 : index
    %c0_280 = arith.constant 0 : index
    %c0_281 = arith.constant 0 : index
    %432 = vector.load %arg4[%c6_279, %c0_280, %c0_281] : memref<9x8x8xf32, #tpu.memory_space<vmem>>, vector<1x8x8xf32>
    %433 = vector.shape_cast %432 : vector<1x8x8xf32> to vector<8x8xf32>
    %cst_282 = arith.constant dense<0.000000e+00> : vector<8x668xf32>
    %434 = tpu.matmul %433, %431, %cst_282 {dimension_numbers = #tpu.dot_dimension_numbers<[1], [0], [0], [1], [0, 0, 1, 1], [], []>} : vector<8x8xf32>, vector<8x668xf32>, vector<8x668xf32> -> vector<8x668xf32>
    %435 = arith.addf %430, %434 : vector<8x668xf32>
    %436 = vector.extract_strided_slice %401 {offsets = [0, 57], sizes = [8, 668], strides = [1, 1]} : vector<8x726xf32> to vector<8x668xf32>
    %c7_283 = arith.constant 7 : index
    %c0_284 = arith.constant 0 : index
    %c0_285 = arith.constant 0 : index
    %437 = vector.load %arg4[%c7_283, %c0_284, %c0_285] : memref<9x8x8xf32, #tpu.memory_space<vmem>>, vector<1x8x8xf32>
    %438 = vector.shape_cast %437 : vector<1x8x8xf32> to vector<8x8xf32>
    %cst_286 = arith.constant dense<0.000000e+00> : vector<8x668xf32>
    %439 = tpu.matmul %438, %436, %cst_286 {dimension_numbers = #tpu.dot_dimension_numbers<[1], [0], [0], [1], [0, 0, 1, 1], [], []>} : vector<8x8xf32>, vector<8x668xf32>, vector<8x668xf32> -> vector<8x668xf32>
    %440 = arith.addf %435, %439 : vector<8x668xf32>
    %441 = vector.extract_strided_slice %401 {offsets = [0, 58], sizes = [8, 668], strides = [1, 1]} : vector<8x726xf32> to vector<8x668xf32>
    %c8_287 = arith.constant 8 : index
    %c0_288 = arith.constant 0 : index
    %c0_289 = arith.constant 0 : index
    %442 = vector.load %arg4[%c8_287, %c0_288, %c0_289] : memref<9x8x8xf32, #tpu.memory_space<vmem>>, vector<1x8x8xf32>
    %443 = vector.shape_cast %442 : vector<1x8x8xf32> to vector<8x8xf32>
    %cst_290 = arith.constant dense<0.000000e+00> : vector<8x668xf32>
    %444 = tpu.matmul %443, %441, %cst_290 {dimension_numbers = #tpu.dot_dimension_numbers<[1], [0], [0], [1], [0, 0, 1, 1], [], []>} : vector<8x8xf32>, vector<8x668xf32>, vector<8x668xf32> -> vector<8x668xf32>
    %445 = arith.addf %440, %444 : vector<8x668xf32>
    %c0_291 = arith.constant 0 : index
    %c0_292 = arith.constant 0 : index
    %446 = vector.load %arg5[%c0_291, %c0_292] : memref<8x1xf32, #tpu.memory_space<vmem>>, vector<8x1xf32>
    %447 = vector.broadcast %446 : vector<8x1xf32> to vector<8x668xf32>
    %448 = arith.addf %445, %447 : vector<8x668xf32>
    %cst_293 = arith.constant 0.000000e+00 : f32
    %449 = vector.broadcast %cst_293 : f32 to vector<8x668xf32>
    %450 = arith.maximumf %448, %449 : vector<8x668xf32>
    %451 = vector.extract_strided_slice %450 {offsets = [0, 0], sizes = [8, 639], strides = [1, 1]} : vector<8x668xf32> to vector<8x639xf32>
    %452 = vector.extract_strided_slice %450 {offsets = [0, 1], sizes = [8, 639], strides = [1, 1]} : vector<8x668xf32> to vector<8x639xf32>
    %453 = arith.maximumf %451, %452 : vector<8x639xf32>
    %454 = vector.extract_strided_slice %450 {offsets = [0, 28], sizes = [8, 639], strides = [1, 1]} : vector<8x668xf32> to vector<8x639xf32>
    %455 = vector.extract_strided_slice %450 {offsets = [0, 29], sizes = [8, 639], strides = [1, 1]} : vector<8x668xf32> to vector<8x639xf32>
    %456 = arith.maximumf %454, %455 : vector<8x639xf32>
    %457 = arith.maximumf %453, %456 : vector<8x639xf32>
    %c0_294 = arith.constant 0 : index
    %c0_295 = arith.constant 0 : index
    %458 = vector.load %arg18[%c0_294, %c0_295] : memref<639x144xf32, #tpu.memory_space<vmem>>, vector<639x144xf32>
    %cst_296 = arith.constant dense<0.000000e+00> : vector<8x144xf32>
    %459 = tpu.matmul %457, %458, %cst_296 {dimension_numbers = #tpu.dot_dimension_numbers<[1], [0], [0], [1], [0, 0, 1, 1], [], []>} : vector<8x639xf32>, vector<639x144xf32>, vector<8x144xf32> -> vector<8x144xf32>
    %c0_297 = arith.constant 0 : index
    %c0_298 = arith.constant 0 : index
    %c0_299 = arith.constant 0 : index
    %460 = vector.load %arg6[%c0_297, %c0_298, %c0_299] : memref<1x16x8xf32, #tpu.memory_space<vmem>>, vector<1x16x8xf32>
    %461 = vector.shape_cast %460 : vector<1x16x8xf32> to vector<16x8xf32>
    %cst_300 = arith.constant dense<0.000000e+00> : vector<16x144xf32>
    %462 = tpu.matmul %461, %459, %cst_300 {dimension_numbers = #tpu.dot_dimension_numbers<[1], [0], [0], [1], [0, 0, 1, 1], [], []>} : vector<16x8xf32>, vector<8x144xf32>, vector<16x144xf32> -> vector<16x144xf32>
    %c0_301 = arith.constant 0 : index
    %c0_302 = arith.constant 0 : index
    %463 = vector.load %arg7[%c0_301, %c0_302] : memref<16x1xf32, #tpu.memory_space<vmem>>, vector<16x1xf32>
    %464 = vector.broadcast %463 : vector<16x1xf32> to vector<16x144xf32>
    %465 = arith.addf %462, %464 : vector<16x144xf32>
    %cst_303 = arith.constant 0.000000e+00 : f32
    %466 = vector.broadcast %cst_303 : f32 to vector<16x144xf32>
    %467 = arith.maximumf %465, %466 : vector<16x144xf32>
    %468 = vector.extract_strided_slice %467 {offsets = [0, 0], sizes = [16, 118], strides = [1, 1]} : vector<16x144xf32> to vector<16x118xf32>
    %c0_304 = arith.constant 0 : index
    %c0_305 = arith.constant 0 : index
    %c0_306 = arith.constant 0 : index
    %469 = vector.load %arg8[%c0_304, %c0_305, %c0_306] : memref<9x16x16xf32, #tpu.memory_space<vmem>>, vector<1x16x16xf32>
    %470 = vector.shape_cast %469 : vector<1x16x16xf32> to vector<16x16xf32>
    %cst_307 = arith.constant dense<0.000000e+00> : vector<16x118xf32>
    %471 = tpu.matmul %470, %468, %cst_307 {dimension_numbers = #tpu.dot_dimension_numbers<[1], [0], [0], [1], [0, 0, 1, 1], [], []>} : vector<16x16xf32>, vector<16x118xf32>, vector<16x118xf32> -> vector<16x118xf32>
    %472 = vector.extract_strided_slice %467 {offsets = [0, 1], sizes = [16, 118], strides = [1, 1]} : vector<16x144xf32> to vector<16x118xf32>
    %c1_308 = arith.constant 1 : index
    %c0_309 = arith.constant 0 : index
    %c0_310 = arith.constant 0 : index
    %473 = vector.load %arg8[%c1_308, %c0_309, %c0_310] : memref<9x16x16xf32, #tpu.memory_space<vmem>>, vector<1x16x16xf32>
    %474 = vector.shape_cast %473 : vector<1x16x16xf32> to vector<16x16xf32>
    %cst_311 = arith.constant dense<0.000000e+00> : vector<16x118xf32>
    %475 = tpu.matmul %474, %472, %cst_311 {dimension_numbers = #tpu.dot_dimension_numbers<[1], [0], [0], [1], [0, 0, 1, 1], [], []>} : vector<16x16xf32>, vector<16x118xf32>, vector<16x118xf32> -> vector<16x118xf32>
    %476 = arith.addf %471, %475 : vector<16x118xf32>
    %477 = vector.extract_strided_slice %467 {offsets = [0, 2], sizes = [16, 118], strides = [1, 1]} : vector<16x144xf32> to vector<16x118xf32>
    %c2_312 = arith.constant 2 : index
    %c0_313 = arith.constant 0 : index
    %c0_314 = arith.constant 0 : index
    %478 = vector.load %arg8[%c2_312, %c0_313, %c0_314] : memref<9x16x16xf32, #tpu.memory_space<vmem>>, vector<1x16x16xf32>
    %479 = vector.shape_cast %478 : vector<1x16x16xf32> to vector<16x16xf32>
    %cst_315 = arith.constant dense<0.000000e+00> : vector<16x118xf32>
    %480 = tpu.matmul %479, %477, %cst_315 {dimension_numbers = #tpu.dot_dimension_numbers<[1], [0], [0], [1], [0, 0, 1, 1], [], []>} : vector<16x16xf32>, vector<16x118xf32>, vector<16x118xf32> -> vector<16x118xf32>
    %481 = arith.addf %476, %480 : vector<16x118xf32>
    %482 = vector.extract_strided_slice %467 {offsets = [0, 12], sizes = [16, 118], strides = [1, 1]} : vector<16x144xf32> to vector<16x118xf32>
    %c3_316 = arith.constant 3 : index
    %c0_317 = arith.constant 0 : index
    %c0_318 = arith.constant 0 : index
    %483 = vector.load %arg8[%c3_316, %c0_317, %c0_318] : memref<9x16x16xf32, #tpu.memory_space<vmem>>, vector<1x16x16xf32>
    %484 = vector.shape_cast %483 : vector<1x16x16xf32> to vector<16x16xf32>
    %cst_319 = arith.constant dense<0.000000e+00> : vector<16x118xf32>
    %485 = tpu.matmul %484, %482, %cst_319 {dimension_numbers = #tpu.dot_dimension_numbers<[1], [0], [0], [1], [0, 0, 1, 1], [], []>} : vector<16x16xf32>, vector<16x118xf32>, vector<16x118xf32> -> vector<16x118xf32>
    %486 = arith.addf %481, %485 : vector<16x118xf32>
    %487 = vector.extract_strided_slice %467 {offsets = [0, 13], sizes = [16, 118], strides = [1, 1]} : vector<16x144xf32> to vector<16x118xf32>
    %c4_320 = arith.constant 4 : index
    %c0_321 = arith.constant 0 : index
    %c0_322 = arith.constant 0 : index
    %488 = vector.load %arg8[%c4_320, %c0_321, %c0_322] : memref<9x16x16xf32, #tpu.memory_space<vmem>>, vector<1x16x16xf32>
    %489 = vector.shape_cast %488 : vector<1x16x16xf32> to vector<16x16xf32>
    %cst_323 = arith.constant dense<0.000000e+00> : vector<16x118xf32>
    %490 = tpu.matmul %489, %487, %cst_323 {dimension_numbers = #tpu.dot_dimension_numbers<[1], [0], [0], [1], [0, 0, 1, 1], [], []>} : vector<16x16xf32>, vector<16x118xf32>, vector<16x118xf32> -> vector<16x118xf32>
    %491 = arith.addf %486, %490 : vector<16x118xf32>
    %492 = vector.extract_strided_slice %467 {offsets = [0, 14], sizes = [16, 118], strides = [1, 1]} : vector<16x144xf32> to vector<16x118xf32>
    %c5_324 = arith.constant 5 : index
    %c0_325 = arith.constant 0 : index
    %c0_326 = arith.constant 0 : index
    %493 = vector.load %arg8[%c5_324, %c0_325, %c0_326] : memref<9x16x16xf32, #tpu.memory_space<vmem>>, vector<1x16x16xf32>
    %494 = vector.shape_cast %493 : vector<1x16x16xf32> to vector<16x16xf32>
    %cst_327 = arith.constant dense<0.000000e+00> : vector<16x118xf32>
    %495 = tpu.matmul %494, %492, %cst_327 {dimension_numbers = #tpu.dot_dimension_numbers<[1], [0], [0], [1], [0, 0, 1, 1], [], []>} : vector<16x16xf32>, vector<16x118xf32>, vector<16x118xf32> -> vector<16x118xf32>
    %496 = arith.addf %491, %495 : vector<16x118xf32>
    %497 = vector.extract_strided_slice %467 {offsets = [0, 24], sizes = [16, 118], strides = [1, 1]} : vector<16x144xf32> to vector<16x118xf32>
    %c6_328 = arith.constant 6 : index
    %c0_329 = arith.constant 0 : index
    %c0_330 = arith.constant 0 : index
    %498 = vector.load %arg8[%c6_328, %c0_329, %c0_330] : memref<9x16x16xf32, #tpu.memory_space<vmem>>, vector<1x16x16xf32>
    %499 = vector.shape_cast %498 : vector<1x16x16xf32> to vector<16x16xf32>
    %cst_331 = arith.constant dense<0.000000e+00> : vector<16x118xf32>
    %500 = tpu.matmul %499, %497, %cst_331 {dimension_numbers = #tpu.dot_dimension_numbers<[1], [0], [0], [1], [0, 0, 1, 1], [], []>} : vector<16x16xf32>, vector<16x118xf32>, vector<16x118xf32> -> vector<16x118xf32>
    %501 = arith.addf %496, %500 : vector<16x118xf32>
    %502 = vector.extract_strided_slice %467 {offsets = [0, 25], sizes = [16, 118], strides = [1, 1]} : vector<16x144xf32> to vector<16x118xf32>
    %c7_332 = arith.constant 7 : index
    %c0_333 = arith.constant 0 : index
    %c0_334 = arith.constant 0 : index
    %503 = vector.load %arg8[%c7_332, %c0_333, %c0_334] : memref<9x16x16xf32, #tpu.memory_space<vmem>>, vector<1x16x16xf32>
    %504 = vector.shape_cast %503 : vector<1x16x16xf32> to vector<16x16xf32>
    %cst_335 = arith.constant dense<0.000000e+00> : vector<16x118xf32>
    %505 = tpu.matmul %504, %502, %cst_335 {dimension_numbers = #tpu.dot_dimension_numbers<[1], [0], [0], [1], [0, 0, 1, 1], [], []>} : vector<16x16xf32>, vector<16x118xf32>, vector<16x118xf32> -> vector<16x118xf32>
    %506 = arith.addf %501, %505 : vector<16x118xf32>
    %507 = vector.extract_strided_slice %467 {offsets = [0, 26], sizes = [16, 118], strides = [1, 1]} : vector<16x144xf32> to vector<16x118xf32>
    %c8_336 = arith.constant 8 : index
    %c0_337 = arith.constant 0 : index
    %c0_338 = arith.constant 0 : index
    %508 = vector.load %arg8[%c8_336, %c0_337, %c0_338] : memref<9x16x16xf32, #tpu.memory_space<vmem>>, vector<1x16x16xf32>
    %509 = vector.shape_cast %508 : vector<1x16x16xf32> to vector<16x16xf32>
    %cst_339 = arith.constant dense<0.000000e+00> : vector<16x118xf32>
    %510 = tpu.matmul %509, %507, %cst_339 {dimension_numbers = #tpu.dot_dimension_numbers<[1], [0], [0], [1], [0, 0, 1, 1], [], []>} : vector<16x16xf32>, vector<16x118xf32>, vector<16x118xf32> -> vector<16x118xf32>
    %511 = arith.addf %506, %510 : vector<16x118xf32>
    %c0_340 = arith.constant 0 : index
    %c0_341 = arith.constant 0 : index
    %512 = vector.load %arg9[%c0_340, %c0_341] : memref<16x1xf32, #tpu.memory_space<vmem>>, vector<16x1xf32>
    %513 = vector.broadcast %512 : vector<16x1xf32> to vector<16x118xf32>
    %514 = arith.addf %511, %513 : vector<16x118xf32>
    %cst_342 = arith.constant 0.000000e+00 : f32
    %515 = vector.broadcast %cst_342 : f32 to vector<16x118xf32>
    %516 = arith.maximumf %514, %515 : vector<16x118xf32>
    %517 = vector.extract_strided_slice %516 {offsets = [0, 0], sizes = [16, 92], strides = [1, 1]} : vector<16x118xf32> to vector<16x92xf32>
    %c0_343 = arith.constant 0 : index
    %c0_344 = arith.constant 0 : index
    %c0_345 = arith.constant 0 : index
    %518 = vector.load %arg10[%c0_343, %c0_344, %c0_345] : memref<9x16x16xf32, #tpu.memory_space<vmem>>, vector<1x16x16xf32>
    %519 = vector.shape_cast %518 : vector<1x16x16xf32> to vector<16x16xf32>
    %cst_346 = arith.constant dense<0.000000e+00> : vector<16x92xf32>
    %520 = tpu.matmul %519, %517, %cst_346 {dimension_numbers = #tpu.dot_dimension_numbers<[1], [0], [0], [1], [0, 0, 1, 1], [], []>} : vector<16x16xf32>, vector<16x92xf32>, vector<16x92xf32> -> vector<16x92xf32>
    %521 = vector.extract_strided_slice %516 {offsets = [0, 1], sizes = [16, 92], strides = [1, 1]} : vector<16x118xf32> to vector<16x92xf32>
    %c1_347 = arith.constant 1 : index
    %c0_348 = arith.constant 0 : index
    %c0_349 = arith.constant 0 : index
    %522 = vector.load %arg10[%c1_347, %c0_348, %c0_349] : memref<9x16x16xf32, #tpu.memory_space<vmem>>, vector<1x16x16xf32>
    %523 = vector.shape_cast %522 : vector<1x16x16xf32> to vector<16x16xf32>
    %cst_350 = arith.constant dense<0.000000e+00> : vector<16x92xf32>
    %524 = tpu.matmul %523, %521, %cst_350 {dimension_numbers = #tpu.dot_dimension_numbers<[1], [0], [0], [1], [0, 0, 1, 1], [], []>} : vector<16x16xf32>, vector<16x92xf32>, vector<16x92xf32> -> vector<16x92xf32>
    %525 = arith.addf %520, %524 : vector<16x92xf32>
    %526 = vector.extract_strided_slice %516 {offsets = [0, 2], sizes = [16, 92], strides = [1, 1]} : vector<16x118xf32> to vector<16x92xf32>
    %c2_351 = arith.constant 2 : index
    %c0_352 = arith.constant 0 : index
    %c0_353 = arith.constant 0 : index
    %527 = vector.load %arg10[%c2_351, %c0_352, %c0_353] : memref<9x16x16xf32, #tpu.memory_space<vmem>>, vector<1x16x16xf32>
    %528 = vector.shape_cast %527 : vector<1x16x16xf32> to vector<16x16xf32>
    %cst_354 = arith.constant dense<0.000000e+00> : vector<16x92xf32>
    %529 = tpu.matmul %528, %526, %cst_354 {dimension_numbers = #tpu.dot_dimension_numbers<[1], [0], [0], [1], [0, 0, 1, 1], [], []>} : vector<16x16xf32>, vector<16x92xf32>, vector<16x92xf32> -> vector<16x92xf32>
    %530 = arith.addf %525, %529 : vector<16x92xf32>
    %531 = vector.extract_strided_slice %516 {offsets = [0, 12], sizes = [16, 92], strides = [1, 1]} : vector<16x118xf32> to vector<16x92xf32>
    %c3_355 = arith.constant 3 : index
    %c0_356 = arith.constant 0 : index
    %c0_357 = arith.constant 0 : index
    %532 = vector.load %arg10[%c3_355, %c0_356, %c0_357] : memref<9x16x16xf32, #tpu.memory_space<vmem>>, vector<1x16x16xf32>
    %533 = vector.shape_cast %532 : vector<1x16x16xf32> to vector<16x16xf32>
    %cst_358 = arith.constant dense<0.000000e+00> : vector<16x92xf32>
    %534 = tpu.matmul %533, %531, %cst_358 {dimension_numbers = #tpu.dot_dimension_numbers<[1], [0], [0], [1], [0, 0, 1, 1], [], []>} : vector<16x16xf32>, vector<16x92xf32>, vector<16x92xf32> -> vector<16x92xf32>
    %535 = arith.addf %530, %534 : vector<16x92xf32>
    %536 = vector.extract_strided_slice %516 {offsets = [0, 13], sizes = [16, 92], strides = [1, 1]} : vector<16x118xf32> to vector<16x92xf32>
    %c4_359 = arith.constant 4 : index
    %c0_360 = arith.constant 0 : index
    %c0_361 = arith.constant 0 : index
    %537 = vector.load %arg10[%c4_359, %c0_360, %c0_361] : memref<9x16x16xf32, #tpu.memory_space<vmem>>, vector<1x16x16xf32>
    %538 = vector.shape_cast %537 : vector<1x16x16xf32> to vector<16x16xf32>
    %cst_362 = arith.constant dense<0.000000e+00> : vector<16x92xf32>
    %539 = tpu.matmul %538, %536, %cst_362 {dimension_numbers = #tpu.dot_dimension_numbers<[1], [0], [0], [1], [0, 0, 1, 1], [], []>} : vector<16x16xf32>, vector<16x92xf32>, vector<16x92xf32> -> vector<16x92xf32>
    %540 = arith.addf %535, %539 : vector<16x92xf32>
    %541 = vector.extract_strided_slice %516 {offsets = [0, 14], sizes = [16, 92], strides = [1, 1]} : vector<16x118xf32> to vector<16x92xf32>
    %c5_363 = arith.constant 5 : index
    %c0_364 = arith.constant 0 : index
    %c0_365 = arith.constant 0 : index
    %542 = vector.load %arg10[%c5_363, %c0_364, %c0_365] : memref<9x16x16xf32, #tpu.memory_space<vmem>>, vector<1x16x16xf32>
    %543 = vector.shape_cast %542 : vector<1x16x16xf32> to vector<16x16xf32>
    %cst_366 = arith.constant dense<0.000000e+00> : vector<16x92xf32>
    %544 = tpu.matmul %543, %541, %cst_366 {dimension_numbers = #tpu.dot_dimension_numbers<[1], [0], [0], [1], [0, 0, 1, 1], [], []>} : vector<16x16xf32>, vector<16x92xf32>, vector<16x92xf32> -> vector<16x92xf32>
    %545 = arith.addf %540, %544 : vector<16x92xf32>
    %546 = vector.extract_strided_slice %516 {offsets = [0, 24], sizes = [16, 92], strides = [1, 1]} : vector<16x118xf32> to vector<16x92xf32>
    %c6_367 = arith.constant 6 : index
    %c0_368 = arith.constant 0 : index
    %c0_369 = arith.constant 0 : index
    %547 = vector.load %arg10[%c6_367, %c0_368, %c0_369] : memref<9x16x16xf32, #tpu.memory_space<vmem>>, vector<1x16x16xf32>
    %548 = vector.shape_cast %547 : vector<1x16x16xf32> to vector<16x16xf32>
    %cst_370 = arith.constant dense<0.000000e+00> : vector<16x92xf32>
    %549 = tpu.matmul %548, %546, %cst_370 {dimension_numbers = #tpu.dot_dimension_numbers<[1], [0], [0], [1], [0, 0, 1, 1], [], []>} : vector<16x16xf32>, vector<16x92xf32>, vector<16x92xf32> -> vector<16x92xf32>
    %550 = arith.addf %545, %549 : vector<16x92xf32>
    %551 = vector.extract_strided_slice %516 {offsets = [0, 25], sizes = [16, 92], strides = [1, 1]} : vector<16x118xf32> to vector<16x92xf32>
    %c7_371 = arith.constant 7 : index
    %c0_372 = arith.constant 0 : index
    %c0_373 = arith.constant 0 : index
    %552 = vector.load %arg10[%c7_371, %c0_372, %c0_373] : memref<9x16x16xf32, #tpu.memory_space<vmem>>, vector<1x16x16xf32>
    %553 = vector.shape_cast %552 : vector<1x16x16xf32> to vector<16x16xf32>
    %cst_374 = arith.constant dense<0.000000e+00> : vector<16x92xf32>
    %554 = tpu.matmul %553, %551, %cst_374 {dimension_numbers = #tpu.dot_dimension_numbers<[1], [0], [0], [1], [0, 0, 1, 1], [], []>} : vector<16x16xf32>, vector<16x92xf32>, vector<16x92xf32> -> vector<16x92xf32>
    %555 = arith.addf %550, %554 : vector<16x92xf32>
    %556 = vector.extract_strided_slice %516 {offsets = [0, 26], sizes = [16, 92], strides = [1, 1]} : vector<16x118xf32> to vector<16x92xf32>
    %c8_375 = arith.constant 8 : index
    %c0_376 = arith.constant 0 : index
    %c0_377 = arith.constant 0 : index
    %557 = vector.load %arg10[%c8_375, %c0_376, %c0_377] : memref<9x16x16xf32, #tpu.memory_space<vmem>>, vector<1x16x16xf32>
    %558 = vector.shape_cast %557 : vector<1x16x16xf32> to vector<16x16xf32>
    %cst_378 = arith.constant dense<0.000000e+00> : vector<16x92xf32>
    %559 = tpu.matmul %558, %556, %cst_378 {dimension_numbers = #tpu.dot_dimension_numbers<[1], [0], [0], [1], [0, 0, 1, 1], [], []>} : vector<16x16xf32>, vector<16x92xf32>, vector<16x92xf32> -> vector<16x92xf32>
    %560 = arith.addf %555, %559 : vector<16x92xf32>
    %c0_379 = arith.constant 0 : index
    %c0_380 = arith.constant 0 : index
    %561 = vector.load %arg11[%c0_379, %c0_380] : memref<16x1xf32, #tpu.memory_space<vmem>>, vector<16x1xf32>
    %562 = vector.broadcast %561 : vector<16x1xf32> to vector<16x92xf32>
    %563 = arith.addf %560, %562 : vector<16x92xf32>
    %cst_381 = arith.constant 0.000000e+00 : f32
    %564 = vector.broadcast %cst_381 : f32 to vector<16x92xf32>
    %565 = arith.maximumf %563, %564 : vector<16x92xf32>
    %566 = vector.extract_strided_slice %565 {offsets = [0, 0], sizes = [16, 79], strides = [1, 1]} : vector<16x92xf32> to vector<16x79xf32>
    %567 = vector.extract_strided_slice %565 {offsets = [0, 1], sizes = [16, 79], strides = [1, 1]} : vector<16x92xf32> to vector<16x79xf32>
    %568 = arith.maximumf %566, %567 : vector<16x79xf32>
    %569 = vector.extract_strided_slice %565 {offsets = [0, 12], sizes = [16, 79], strides = [1, 1]} : vector<16x92xf32> to vector<16x79xf32>
    %570 = vector.extract_strided_slice %565 {offsets = [0, 13], sizes = [16, 79], strides = [1, 1]} : vector<16x92xf32> to vector<16x79xf32>
    %571 = arith.maximumf %569, %570 : vector<16x79xf32>
    %572 = arith.maximumf %568, %571 : vector<16x79xf32>
    %c0_382 = arith.constant 0 : index
    %c0_383 = arith.constant 0 : index
    %573 = vector.load %arg19[%c0_382, %c0_383] : memref<79x16xf32, #tpu.memory_space<vmem>>, vector<79x16xf32>
    %cst_384 = arith.constant dense<0.000000e+00> : vector<16x16xf32>
    %574 = tpu.matmul %572, %573, %cst_384 {dimension_numbers = #tpu.dot_dimension_numbers<[1], [0], [0], [1], [0, 0, 1, 1], [], []>} : vector<16x79xf32>, vector<79x16xf32>, vector<16x16xf32> -> vector<16x16xf32>
    %c0_385 = arith.constant 0 : index
    %c0_386 = arith.constant 0 : index
    %c0_387 = arith.constant 0 : index
    %575 = vector.load %arg12[%c0_385, %c0_386, %c0_387] : memref<1x32x16xf32, #tpu.memory_space<vmem>>, vector<1x32x16xf32>
    %576 = vector.shape_cast %575 : vector<1x32x16xf32> to vector<32x16xf32>
    %cst_388 = arith.constant dense<0.000000e+00> : vector<32x16xf32>
    %577 = tpu.matmul %576, %574, %cst_388 {dimension_numbers = #tpu.dot_dimension_numbers<[1], [0], [0], [1], [0, 0, 1, 1], [], []>} : vector<32x16xf32>, vector<16x16xf32>, vector<32x16xf32> -> vector<32x16xf32>
    %c0_389 = arith.constant 0 : index
    %c0_390 = arith.constant 0 : index
    %578 = vector.load %arg13[%c0_389, %c0_390] : memref<32x1xf32, #tpu.memory_space<vmem>>, vector<32x1xf32>
    %579 = vector.broadcast %578 : vector<32x1xf32> to vector<32x16xf32>
    %580 = arith.addf %577, %579 : vector<32x16xf32>
    %cst_391 = arith.constant 0.000000e+00 : f32
    %581 = vector.broadcast %cst_391 : f32 to vector<32x16xf32>
    %582 = arith.maximumf %580, %581 : vector<32x16xf32>
    %583 = vector.extract_strided_slice %582 {offsets = [0, 0], sizes = [32, 6], strides = [1, 1]} : vector<32x16xf32> to vector<32x6xf32>
    %c0_392 = arith.constant 0 : index
    %c0_393 = arith.constant 0 : index
    %c0_394 = arith.constant 0 : index
    %584 = vector.load %arg14[%c0_392, %c0_393, %c0_394] : memref<9x32x32xf32, #tpu.memory_space<vmem>>, vector<1x32x32xf32>
    %585 = vector.shape_cast %584 : vector<1x32x32xf32> to vector<32x32xf32>
    %cst_395 = arith.constant dense<0.000000e+00> : vector<32x6xf32>
    %586 = tpu.matmul %585, %583, %cst_395 {dimension_numbers = #tpu.dot_dimension_numbers<[1], [0], [0], [1], [0, 0, 1, 1], [], []>} : vector<32x32xf32>, vector<32x6xf32>, vector<32x6xf32> -> vector<32x6xf32>
    %587 = vector.extract_strided_slice %582 {offsets = [0, 1], sizes = [32, 6], strides = [1, 1]} : vector<32x16xf32> to vector<32x6xf32>
    %c1_396 = arith.constant 1 : index
    %c0_397 = arith.constant 0 : index
    %c0_398 = arith.constant 0 : index
    %588 = vector.load %arg14[%c1_396, %c0_397, %c0_398] : memref<9x32x32xf32, #tpu.memory_space<vmem>>, vector<1x32x32xf32>
    %589 = vector.shape_cast %588 : vector<1x32x32xf32> to vector<32x32xf32>
    %cst_399 = arith.constant dense<0.000000e+00> : vector<32x6xf32>
    %590 = tpu.matmul %589, %587, %cst_399 {dimension_numbers = #tpu.dot_dimension_numbers<[1], [0], [0], [1], [0, 0, 1, 1], [], []>} : vector<32x32xf32>, vector<32x6xf32>, vector<32x6xf32> -> vector<32x6xf32>
    %591 = arith.addf %586, %590 : vector<32x6xf32>
    %592 = vector.extract_strided_slice %582 {offsets = [0, 2], sizes = [32, 6], strides = [1, 1]} : vector<32x16xf32> to vector<32x6xf32>
    %c2_400 = arith.constant 2 : index
    %c0_401 = arith.constant 0 : index
    %c0_402 = arith.constant 0 : index
    %593 = vector.load %arg14[%c2_400, %c0_401, %c0_402] : memref<9x32x32xf32, #tpu.memory_space<vmem>>, vector<1x32x32xf32>
    %594 = vector.shape_cast %593 : vector<1x32x32xf32> to vector<32x32xf32>
    %cst_403 = arith.constant dense<0.000000e+00> : vector<32x6xf32>
    %595 = tpu.matmul %594, %592, %cst_403 {dimension_numbers = #tpu.dot_dimension_numbers<[1], [0], [0], [1], [0, 0, 1, 1], [], []>} : vector<32x32xf32>, vector<32x6xf32>, vector<32x6xf32> -> vector<32x6xf32>
    %596 = arith.addf %591, %595 : vector<32x6xf32>
    %597 = vector.extract_strided_slice %582 {offsets = [0, 4], sizes = [32, 6], strides = [1, 1]} : vector<32x16xf32> to vector<32x6xf32>
    %c3_404 = arith.constant 3 : index
    %c0_405 = arith.constant 0 : index
    %c0_406 = arith.constant 0 : index
    %598 = vector.load %arg14[%c3_404, %c0_405, %c0_406] : memref<9x32x32xf32, #tpu.memory_space<vmem>>, vector<1x32x32xf32>
    %599 = vector.shape_cast %598 : vector<1x32x32xf32> to vector<32x32xf32>
    %cst_407 = arith.constant dense<0.000000e+00> : vector<32x6xf32>
    %600 = tpu.matmul %599, %597, %cst_407 {dimension_numbers = #tpu.dot_dimension_numbers<[1], [0], [0], [1], [0, 0, 1, 1], [], []>} : vector<32x32xf32>, vector<32x6xf32>, vector<32x6xf32> -> vector<32x6xf32>
    %601 = arith.addf %596, %600 : vector<32x6xf32>
    %602 = vector.extract_strided_slice %582 {offsets = [0, 5], sizes = [32, 6], strides = [1, 1]} : vector<32x16xf32> to vector<32x6xf32>
    %c4_408 = arith.constant 4 : index
    %c0_409 = arith.constant 0 : index
    %c0_410 = arith.constant 0 : index
    %603 = vector.load %arg14[%c4_408, %c0_409, %c0_410] : memref<9x32x32xf32, #tpu.memory_space<vmem>>, vector<1x32x32xf32>
    %604 = vector.shape_cast %603 : vector<1x32x32xf32> to vector<32x32xf32>
    %cst_411 = arith.constant dense<0.000000e+00> : vector<32x6xf32>
    %605 = tpu.matmul %604, %602, %cst_411 {dimension_numbers = #tpu.dot_dimension_numbers<[1], [0], [0], [1], [0, 0, 1, 1], [], []>} : vector<32x32xf32>, vector<32x6xf32>, vector<32x6xf32> -> vector<32x6xf32>
    %606 = arith.addf %601, %605 : vector<32x6xf32>
    %607 = vector.extract_strided_slice %582 {offsets = [0, 6], sizes = [32, 6], strides = [1, 1]} : vector<32x16xf32> to vector<32x6xf32>
    %c5_412 = arith.constant 5 : index
    %c0_413 = arith.constant 0 : index
    %c0_414 = arith.constant 0 : index
    %608 = vector.load %arg14[%c5_412, %c0_413, %c0_414] : memref<9x32x32xf32, #tpu.memory_space<vmem>>, vector<1x32x32xf32>
    %609 = vector.shape_cast %608 : vector<1x32x32xf32> to vector<32x32xf32>
    %cst_415 = arith.constant dense<0.000000e+00> : vector<32x6xf32>
    %610 = tpu.matmul %609, %607, %cst_415 {dimension_numbers = #tpu.dot_dimension_numbers<[1], [0], [0], [1], [0, 0, 1, 1], [], []>} : vector<32x32xf32>, vector<32x6xf32>, vector<32x6xf32> -> vector<32x6xf32>
    %611 = arith.addf %606, %610 : vector<32x6xf32>
    %612 = vector.extract_strided_slice %582 {offsets = [0, 8], sizes = [32, 6], strides = [1, 1]} : vector<32x16xf32> to vector<32x6xf32>
    %c6_416 = arith.constant 6 : index
    %c0_417 = arith.constant 0 : index
    %c0_418 = arith.constant 0 : index
    %613 = vector.load %arg14[%c6_416, %c0_417, %c0_418] : memref<9x32x32xf32, #tpu.memory_space<vmem>>, vector<1x32x32xf32>
    %614 = vector.shape_cast %613 : vector<1x32x32xf32> to vector<32x32xf32>
    %cst_419 = arith.constant dense<0.000000e+00> : vector<32x6xf32>
    %615 = tpu.matmul %614, %612, %cst_419 {dimension_numbers = #tpu.dot_dimension_numbers<[1], [0], [0], [1], [0, 0, 1, 1], [], []>} : vector<32x32xf32>, vector<32x6xf32>, vector<32x6xf32> -> vector<32x6xf32>
    %616 = arith.addf %611, %615 : vector<32x6xf32>
    %617 = vector.extract_strided_slice %582 {offsets = [0, 9], sizes = [32, 6], strides = [1, 1]} : vector<32x16xf32> to vector<32x6xf32>
    %c7_420 = arith.constant 7 : index
    %c0_421 = arith.constant 0 : index
    %c0_422 = arith.constant 0 : index
    %618 = vector.load %arg14[%c7_420, %c0_421, %c0_422] : memref<9x32x32xf32, #tpu.memory_space<vmem>>, vector<1x32x32xf32>
    %619 = vector.shape_cast %618 : vector<1x32x32xf32> to vector<32x32xf32>
    %cst_423 = arith.constant dense<0.000000e+00> : vector<32x6xf32>
    %620 = tpu.matmul %619, %617, %cst_423 {dimension_numbers = #tpu.dot_dimension_numbers<[1], [0], [0], [1], [0, 0, 1, 1], [], []>} : vector<32x32xf32>, vector<32x6xf32>, vector<32x6xf32> -> vector<32x6xf32>
    %621 = arith.addf %616, %620 : vector<32x6xf32>
    %622 = vector.extract_strided_slice %582 {offsets = [0, 10], sizes = [32, 6], strides = [1, 1]} : vector<32x16xf32> to vector<32x6xf32>
    %c8_424 = arith.constant 8 : index
    %c0_425 = arith.constant 0 : index
    %c0_426 = arith.constant 0 : index
    %623 = vector.load %arg14[%c8_424, %c0_425, %c0_426] : memref<9x32x32xf32, #tpu.memory_space<vmem>>, vector<1x32x32xf32>
    %624 = vector.shape_cast %623 : vector<1x32x32xf32> to vector<32x32xf32>
    %cst_427 = arith.constant dense<0.000000e+00> : vector<32x6xf32>
    %625 = tpu.matmul %624, %622, %cst_427 {dimension_numbers = #tpu.dot_dimension_numbers<[1], [0], [0], [1], [0, 0, 1, 1], [], []>} : vector<32x32xf32>, vector<32x6xf32>, vector<32x6xf32> -> vector<32x6xf32>
    %626 = arith.addf %621, %625 : vector<32x6xf32>
    %c0_428 = arith.constant 0 : index
    %c0_429 = arith.constant 0 : index
    %627 = vector.load %arg15[%c0_428, %c0_429] : memref<32x1xf32, #tpu.memory_space<vmem>>, vector<32x1xf32>
    %628 = vector.broadcast %627 : vector<32x1xf32> to vector<32x6xf32>
    %629 = arith.addf %626, %628 : vector<32x6xf32>
    %cst_430 = arith.constant 0.000000e+00 : f32
    %630 = vector.broadcast %cst_430 : f32 to vector<32x6xf32>
    %631 = arith.maximumf %629, %630 : vector<32x6xf32>
    %632 = vector.extract_strided_slice %631 {offsets = [0, 0], sizes = [32, 1], strides = [1, 1]} : vector<32x6xf32> to vector<32x1xf32>
    %c0_431 = arith.constant 0 : index
    %c0_432 = arith.constant 0 : index
    %c0_433 = arith.constant 0 : index
    %633 = vector.load %arg16[%c0_431, %c0_432, %c0_433] : memref<4x10x32xf32, #tpu.memory_space<vmem>>, vector<1x10x32xf32>
    %634 = vector.shape_cast %633 : vector<1x10x32xf32> to vector<10x32xf32>
    %cst_434 = arith.constant dense<0.000000e+00> : vector<10x1xf32>
    %635 = tpu.matmul %634, %632, %cst_434 {dimension_numbers = #tpu.dot_dimension_numbers<[1], [0], [0], [1], [0, 0, 1, 1], [], []>} : vector<10x32xf32>, vector<32x1xf32>, vector<10x1xf32> -> vector<10x1xf32>
    %636 = vector.extract_strided_slice %631 {offsets = [0, 1], sizes = [32, 1], strides = [1, 1]} : vector<32x6xf32> to vector<32x1xf32>
    %c1_435 = arith.constant 1 : index
    %c0_436 = arith.constant 0 : index
    %c0_437 = arith.constant 0 : index
    %637 = vector.load %arg16[%c1_435, %c0_436, %c0_437] : memref<4x10x32xf32, #tpu.memory_space<vmem>>, vector<1x10x32xf32>
    %638 = vector.shape_cast %637 : vector<1x10x32xf32> to vector<10x32xf32>
    %cst_438 = arith.constant dense<0.000000e+00> : vector<10x1xf32>
    %639 = tpu.matmul %638, %636, %cst_438 {dimension_numbers = #tpu.dot_dimension_numbers<[1], [0], [0], [1], [0, 0, 1, 1], [], []>} : vector<10x32xf32>, vector<32x1xf32>, vector<10x1xf32> -> vector<10x1xf32>
    %640 = arith.addf %635, %639 : vector<10x1xf32>
    %641 = vector.extract_strided_slice %631 {offsets = [0, 4], sizes = [32, 1], strides = [1, 1]} : vector<32x6xf32> to vector<32x1xf32>
    %c2_439 = arith.constant 2 : index
    %c0_440 = arith.constant 0 : index
    %c0_441 = arith.constant 0 : index
    %642 = vector.load %arg16[%c2_439, %c0_440, %c0_441] : memref<4x10x32xf32, #tpu.memory_space<vmem>>, vector<1x10x32xf32>
    %643 = vector.shape_cast %642 : vector<1x10x32xf32> to vector<10x32xf32>
    %cst_442 = arith.constant dense<0.000000e+00> : vector<10x1xf32>
    %644 = tpu.matmul %643, %641, %cst_442 {dimension_numbers = #tpu.dot_dimension_numbers<[1], [0], [0], [1], [0, 0, 1, 1], [], []>} : vector<10x32xf32>, vector<32x1xf32>, vector<10x1xf32> -> vector<10x1xf32>
    %645 = arith.addf %640, %644 : vector<10x1xf32>
    %646 = vector.extract_strided_slice %631 {offsets = [0, 5], sizes = [32, 1], strides = [1, 1]} : vector<32x6xf32> to vector<32x1xf32>
    %c3_443 = arith.constant 3 : index
    %c0_444 = arith.constant 0 : index
    %c0_445 = arith.constant 0 : index
    %647 = vector.load %arg16[%c3_443, %c0_444, %c0_445] : memref<4x10x32xf32, #tpu.memory_space<vmem>>, vector<1x10x32xf32>
    %648 = vector.shape_cast %647 : vector<1x10x32xf32> to vector<10x32xf32>
    %cst_446 = arith.constant dense<0.000000e+00> : vector<10x1xf32>
    %649 = tpu.matmul %648, %646, %cst_446 {dimension_numbers = #tpu.dot_dimension_numbers<[1], [0], [0], [1], [0, 0, 1, 1], [], []>} : vector<10x32xf32>, vector<32x1xf32>, vector<10x1xf32> -> vector<10x1xf32>
    %650 = arith.addf %645, %649 : vector<10x1xf32>
    %c0_447 = arith.constant 0 : index
    %c0_448 = arith.constant 0 : index
    %651 = vector.load %arg17[%c0_447, %c0_448] : memref<10x1xf32, #tpu.memory_space<vmem>>, vector<10x1xf32>
    %652 = arith.addf %650, %651 : vector<10x1xf32>
    %cst_449 = arith.constant dense<0xFF800000> : vector<1xf32>
    %653 = vector.multi_reduction <maximumf>, %652, %cst_449 [0] : vector<10x1xf32> to vector<1xf32>
    %654 = vector.shape_cast %653 : vector<1xf32> to vector<1x1xf32>
    %655 = vector.broadcast %654 : vector<1x1xf32> to vector<10x1xf32>
    %656 = arith.subf %652, %655 : vector<10x1xf32>
    %657 = math.exp %656 : vector<10x1xf32>
    %cst_450 = arith.constant dense<0.000000e+00> : vector<1xf32>
    %658 = vector.multi_reduction <add>, %657, %cst_450 [0] : vector<10x1xf32> to vector<1xf32>
    %659 = vector.shape_cast %658 : vector<1xf32> to vector<1x1xf32>
    %660 = math.log %659 : vector<1x1xf32>
    %661 = vector.broadcast %660 : vector<1x1xf32> to vector<10x1xf32>
    %662 = arith.subf %656, %661 : vector<10x1xf32>
    %c1_451 = arith.constant 1 : index
    %c0_452 = arith.constant 0 : index
    %c0_453 = arith.constant 0 : index
    %663 = vector.load %arg20[%c1_451, %c0_452, %c0_453] : memref<2x10x1xf32, #tpu.memory_space<vmem>>, vector<1x10x1xf32>
    %664 = vector.shape_cast %663 : vector<1x10x1xf32> to vector<10x1xf32>
    %665 = vector.shape_cast %662 : vector<10x1xf32> to vector<1x10x1xf32>
    tpu.vector_store %arg20[%c1_451, %c0_452, %c0_453], %665 {strides = array<i32>} : memref<2x10x1xf32, #tpu.memory_space<vmem>>, vector<1x10x1xf32>,
    return
  }
  func.func @transform_0(%arg0: i32) -> (i32, i32, i32) {
    %c0_i32 = arith.constant 0 : i32
    %c0_i32_0 = arith.constant 0 : i32
    %c0_i32_1 = arith.constant 0 : i32
    return %arg0, %c0_i32, %c0_i32_0 : i32, i32, i32
  }
  func.func @transform_1(%arg0: i32) -> (i32, i32, i32) {
    %c0_i32 = arith.constant 0 : i32
    %c0_i32_0 = arith.constant 0 : i32
    %c0_i32_1 = arith.constant 0 : i32
    %c0_i32_2 = arith.constant 0 : i32
    return %c0_i32, %c0_i32_0, %c0_i32_1 : i32, i32, i32
  }
  func.func @transform_2(%arg0: i32) -> (i32, i32) {
    %c0_i32 = arith.constant 0 : i32
    %c0_i32_0 = arith.constant 0 : i32
    %c0_i32_1 = arith.constant 0 : i32
    return %c0_i32, %c0_i32_0 : i32, i32
  }
  func.func @transform_3(%arg0: i32) -> (i32, i32, i32) {
    %c0_i32 = arith.constant 0 : i32
    %c0_i32_0 = arith.constant 0 : i32
    %c0_i32_1 = arith.constant 0 : i32
    %c0_i32_2 = arith.constant 0 : i32
    return %c0_i32, %c0_i32_0, %c0_i32_1 : i32, i32, i32
  }
  func.func @transform_4(%arg0: i32) -> (i32, i32) {
    %c0_i32 = arith.constant 0 : i32
    %c0_i32_0 = arith.constant 0 : i32
    %c0_i32_1 = arith.constant 0 : i32
    return %c0_i32, %c0_i32_0 : i32, i32
  }
  func.func @transform_5(%arg0: i32) -> (i32, i32, i32) {
    %c0_i32 = arith.constant 0 : i32
    %c0_i32_0 = arith.constant 0 : i32
    %c0_i32_1 = arith.constant 0 : i32
    %c0_i32_2 = arith.constant 0 : i32
    return %c0_i32, %c0_i32_0, %c0_i32_1 : i32, i32, i32
  }
  func.func @transform_6(%arg0: i32) -> (i32, i32) {
    %c0_i32 = arith.constant 0 : i32
    %c0_i32_0 = arith.constant 0 : i32
    %c0_i32_1 = arith.constant 0 : i32
    return %c0_i32, %c0_i32_0 : i32, i32
  }
  func.func @transform_7(%arg0: i32) -> (i32, i32, i32) {
    %c0_i32 = arith.constant 0 : i32
    %c0_i32_0 = arith.constant 0 : i32
    %c0_i32_1 = arith.constant 0 : i32
    %c0_i32_2 = arith.constant 0 : i32
    return %c0_i32, %c0_i32_0, %c0_i32_1 : i32, i32, i32
  }
  func.func @transform_8(%arg0: i32) -> (i32, i32) {
    %c0_i32 = arith.constant 0 : i32
    %c0_i32_0 = arith.constant 0 : i32
    %c0_i32_1 = arith.constant 0 : i32
    return %c0_i32, %c0_i32_0 : i32, i32
  }
  func.func @transform_9(%arg0: i32) -> (i32, i32, i32) {
    %c0_i32 = arith.constant 0 : i32
    %c0_i32_0 = arith.constant 0 : i32
    %c0_i32_1 = arith.constant 0 : i32
    %c0_i32_2 = arith.constant 0 : i32
    return %c0_i32, %c0_i32_0, %c0_i32_1 : i32, i32, i32
  }
  func.func @transform_10(%arg0: i32) -> (i32, i32) {
    %c0_i32 = arith.constant 0 : i32
    %c0_i32_0 = arith.constant 0 : i32
    %c0_i32_1 = arith.constant 0 : i32
    return %c0_i32, %c0_i32_0 : i32, i32
  }
  func.func @transform_11(%arg0: i32) -> (i32, i32, i32) {
    %c0_i32 = arith.constant 0 : i32
    %c0_i32_0 = arith.constant 0 : i32
    %c0_i32_1 = arith.constant 0 : i32
    %c0_i32_2 = arith.constant 0 : i32
    return %c0_i32, %c0_i32_0, %c0_i32_1 : i32, i32, i32
  }
  func.func @transform_12(%arg0: i32) -> (i32, i32) {
    %c0_i32 = arith.constant 0 : i32
    %c0_i32_0 = arith.constant 0 : i32
    %c0_i32_1 = arith.constant 0 : i32
    return %c0_i32, %c0_i32_0 : i32, i32
  }
  func.func @transform_13(%arg0: i32) -> (i32, i32, i32) {
    %c0_i32 = arith.constant 0 : i32
    %c0_i32_0 = arith.constant 0 : i32
    %c0_i32_1 = arith.constant 0 : i32
    %c0_i32_2 = arith.constant 0 : i32
    return %c0_i32, %c0_i32_0, %c0_i32_1 : i32, i32, i32
  }
  func.func @transform_14(%arg0: i32) -> (i32, i32) {
    %c0_i32 = arith.constant 0 : i32
    %c0_i32_0 = arith.constant 0 : i32
    %c0_i32_1 = arith.constant 0 : i32
    return %c0_i32, %c0_i32_0 : i32, i32
  }
  func.func @transform_15(%arg0: i32) -> (i32, i32, i32) {
    %c0_i32 = arith.constant 0 : i32
    %c0_i32_0 = arith.constant 0 : i32
    %c0_i32_1 = arith.constant 0 : i32
    %c0_i32_2 = arith.constant 0 : i32
    return %c0_i32, %c0_i32_0, %c0_i32_1 : i32, i32, i32
  }
  func.func @transform_16(%arg0: i32) -> (i32, i32) {
    %c0_i32 = arith.constant 0 : i32
    %c0_i32_0 = arith.constant 0 : i32
    %c0_i32_1 = arith.constant 0 : i32
    return %c0_i32, %c0_i32_0 : i32, i32
  }
  func.func @transform_17(%arg0: i32) -> (i32, i32) {
    %c0_i32 = arith.constant 0 : i32
    %c0_i32_0 = arith.constant 0 : i32
    %c0_i32_1 = arith.constant 0 : i32
    return %c0_i32, %c0_i32_0 : i32, i32
  }
  func.func @transform_18(%arg0: i32) -> (i32, i32) {
    %c0_i32 = arith.constant 0 : i32
    %c0_i32_0 = arith.constant 0 : i32
    %c0_i32_1 = arith.constant 0 : i32
    return %c0_i32, %c0_i32_0 : i32, i32
  }
  func.func @transform_19(%arg0: i32) -> (i32, i32, i32) {
    %c0_i32 = arith.constant 0 : i32
    %c0_i32_0 = arith.constant 0 : i32
    %c0_i32_1 = arith.constant 0 : i32
    return %arg0, %c0_i32, %c0_i32_0 : i32, i32, i32
  }
}

</mosaic_0001>

<bundles_post_ra>
// kernel: net_initial_forward.1
= control target key start
LH: loop header
LB: loop body
LE: loop exit
PB: predicated region body
PF: predicated region fallthrough
CT: control target
= control target key end

     0   :  { %s11776_s0 = inlined_call_operand.vmem [shape: f32[2,1,784], index: 0, kind: input, shape index: {}]   ;;  %s11777_s1 = inlined_call_operand.vmem [shape: f32[9,8,1], index: 1, kind: input, shape index: {}]   ;;  %s11778_s2 = inlined_call_operand.vmem [shape: f32[8,1], index: 2, kind: input, shape index: {}]   ;;  %s11779_s3 = inlined_call_operand.vmem [shape: f32[9,8,8], index: 3, kind: input, shape index: {}]   ;;  %s11780_s4 = inlined_call_operand.vmem [shape: f32[8,1], index: 4, kind: input, shape index: {}]   ;;  %s11781_s5 = inlined_call_operand.vmem [shape: f32[1,16,8], index: 5, kind: input, shape index: {}]   ;;  %s11782_s6 = inlined_call_operand.vmem [shape: f32[16,1], index: 6, kind: input, shape index: {}]   ;;  %s11783_s7 = inlined_call_operand.vmem [shape: f32[9,16,16], index: 7, kind: input, shape index: {}]   ;;  %s11784_s8 = inlined_call_operand.vmem [shape: f32[16,1], index: 8, kind: input, shape index: {}]   ;;  %s11785_s9 = inlined_call_operand.vmem [shape: f32[9,16,16], index: 9, kind: input, shape index: {}]   ;;  %s11786_s10 = inlined_call_operand.vmem [shape: f32[16,1], index: 10, kind: input, shape index: {}]   ;;  %s11787_s11 = inlined_call_operand.vmem [shape: f32[1,32,16], index: 11, kind: input, shape index: {}]   ;;  %s11788_s12 = inlined_call_operand.vmem [shape: f32[32,1], index: 12, kind: input, shape index: {}]   ;;  %s11789_s13 = inlined_call_operand.hbm [shape: f32[9,32,32], index: 13, kind: input, shape index: {}]   ;;  %s11790_s14 = inlined_call_operand.vmem [shape: f32[32,1], index: 14, kind: input, shape index: {}]   ;;  %s11791_s15 = inlined_call_operand.vmem [shape: f32[4,10,32], index: 15, kind: input, shape index: {}]   ;;  %s11792_s16 = inlined_call_operand.vmem [shape: f32[10,1], index: 16, kind: input, shape index: {}]   ;;  %s11793_s17 = inlined_call_operand.hbm [shape: f32[639,144], index: 17, kind: input, shape index: {}]   ;;  %s11794_s18 = inlined_call_operand.vmem [shape: f32[79,16], index: 18, kind: input, shape index: {}]   ;;  %s11795_s19 = inlined_call_operand.vmem [shape: f32[2,10,1], index: 19, kind: output, shape index: {}]  }
   0x1   :  { %11847 = sst [smem:[#allocation8_spill]] %s11776_s0 }
   0x2   :  { %11848 = sst [smem:[#allocation9_spill]] %s11777_s1 }
   0x3   :  { %11849 = sst [smem:[#allocation10_spill]] %s11778_s2 }
   0x4   :  { %11850 = sst [smem:[#allocation11_spill]] %s11779_s3 }
   0x5   :  { %11851 = sst [smem:[#allocation12_spill]] %s11787_s11 }
   0x6   :  { %11852 = sst [smem:[#allocation13_spill]] %s11788_s12 }
   0x7   :  { %11853 = sst [smem:[#allocation14_spill]] %s11794_s18 }
   0x8   :  { %24 = vsyncpa [#allocation3], 0  ;;  %s56_s20 = sshll.u32 %s11789_s13, 4  ;;  %s57_s20 = int_to_ptr.hbm [resolvable:$true] %s56_s20 }
   0x9   :  { %25 = vsyncpa [#allocation5], 0  ;;  %s9309_s21 = smov [#allocation2]   ;;  %s75_s23 = sshll.u32 %s11793_s17, 4  ;;  %s76_s23 = int_to_ptr.hbm [resolvable:$true] %s75_s23 }
   0xa   :  { %s58_s1 = sshll.u32 %s9309_s21, 4  ;;  %s9310_s24 = smov 128   ;;  %s59_s1 = int_to_ptr.vmem [resolvable:$true] %s58_s1 }
   0xb   :  { %s9311_s25 = smov 8   ;;  %s9312_s3 = smov [#allocation4]  }
   0xc   :  { %64 = dma.hbm_to_vmem [thread:$0]  %s57_s20, 4608, %s59_s1, [#allocation3], %s9310_s24, %s9310_s24, %s9311_s25  }
   0xd   :  { %s77_s26 = sshll.u32 %s9312_s3, 4  ;;  %s9313_s27 = smov 256   ;;  %s78_s26 = int_to_ptr.vmem [resolvable:$true] %s77_s26 }
   0xe   :  { %s9314_s28 = smov 16  }
   0xf   :  { %83 = dma.hbm_to_vmem [thread:$0]  %s76_s23, 20480, %s78_s26, [#allocation5], %s9313_s27, %s9313_s27, %s9314_s28  }
  0x10   :  { %9305 = dma.done.wait [#allocation3], 4608  }
  0x11   :  { %9306 = vsyncadd [#allocation3], 4294962688 }
  0x12   :  { %9307 = dma.done.wait [#allocation5], 20480  }
  0x13   :  { %9308 = vsyncadd [#allocation5], 4294946816  ;;  %v9315_v0 = vmov 0   ;;  %s11854_s29 = sld [smem:[#allocation9_spill]]  ;;  %s11827_s2 = smov 127   ;;  %vm151_vm0 = vcmask 1039360  }
  0x14   :  { %8543 = vset.pattern.permute.xlu1 %v9315_v0  ;;  %8542 = vset.pattern.permute.xlu0 %v9315_v0  ;;  %s11855_s20 = sld [smem:[#allocation10_spill]]  ;;  %s11823_s23 = smov 126   ;;  %vm200_vm1 = vcmask 1031168   ;;  %vm249_vm2 = vcmask 818176   ;;  %vm298_vm3 = vcmask 809984   ;;  %vm347_vm4 = vcmask 801792  }
  0x15   :  { %8544 = vset.pattern.permute.xlu2 %v9315_v0  ;;  %s11856_s22 = sld [smem:[#allocation8_spill]]  ;;  %s11810_s24 = smov 100   ;;  %vm402_vm5 = vcmask 588800   ;;  %vm456_vm6 = vcmask 580608   ;;  %vm510_vm7 = vcmask 572416   ;;  %vm579_vm8 = vcmask 64512  }
  0x16   :  { %s11808_s25 = smov 99   ;;  %s11806_s3 = smov 98   ;;  %vm2155_vm9 = vcmask 1046528   ;;  %vm2445_vm10 = vcmask 130048   ;;  %vm11814_vm11 = vcmask 850944   ;;  %vm2651_vm12 = vcmask 932864  }
  0x17   :  { %s11804_s26 = smov 72   ;;  %s11802_s27 = smov 71   ;;  %vm2604_vm13 = vcmask 941056   ;;  %vm2557_vm14 = vcmask 949248   ;;  %vm11829_vm15 = vcmask 834560  }
  0x18   :  { %s11800_s28 = smov 70   ;;  %s11857_s0 = sld [smem:[#allocation11_spill]] }
  0x19   :  { %v8108_v1 = vld [vmem:[%s11854_s29 + $0x18] sm:$0xff]  ;;  %v8106_v2 = vld [vmem:[%s11854_s29 + $0x8] sm:$0xff]  ;;  %v8109_v4 = vld [vmem:[%s11854_s29 + $0x20] sm:$0xff]  ;;  %s11825_s21 = smov 116   ;;  %s11817_s1 = smov 115  }
  0x1a   :  { %222 = vperm.xlu1 %8543, %v8108_v1   ;;  %124 = vperm.xlu0 %8542, %v8106_v2   ;;  %v8110_v3 = vld [vmem:[%s11854_s29 + $0x28] sm:$0xff]  ;;  %v8107_v5 = vld [vmem:[%s11854_s29 + $0x10] sm:$0xff]  ;;  %v8113_v7 = vld [vmem:[%s11854_s29 + $0x40] sm:$0xff]  ;;  %s11819_s13 = smov 104   ;;  %s11821_s17 = smov 114  }
  0x1b   :  { %320 = vperm.xlu2 %8544, %v8110_v3   ;;  %v8111_v6 = vld [vmem:[%s11854_s29 + $0x30] sm:$0xff]  ;;  %v8112_v8 = vld [vmem:[%s11854_s29 + $0x38] sm:$0xff]  ;;  %v95_v9 = vld [vmem:[%s11854_s29] sm:$0xff]  ;;  %s11812_s30 = smov 103  }
  0x1c   :  { %v529_v10 = vld [vmem:[%s11855_s20] sm:$0xff] }
  0x1d   :  { %v9475_v11 = vld [vmem:[%s11856_s22] sm:$0x7f] }
  0x1e   :  { %v9478_v12 = vperm.slane %v9475_v11, 4  ;;  %v9481_v13 = vperm.slane %v9475_v11, 3  ;;  %v9484_v14 = vperm.slane %v9475_v11, 2  ;;  %v9528_v32 = vperm.slane %v9475_v11, 5 }
  0x1f   :  { %v9550_v40 = vperm.slane %v9475_v11, 0  ;;  %v9563_v45 = vperm.slane %v9475_v11, 1 }
  0x22   :  { %271 = vperm.xlu1 %8543, %v8109_v4   ;;  %173 = vperm.xlu0 %8542, %v8107_v5  }
  0x23   :  { %369 = vperm.xlu2 %8544, %v8111_v6  }
  0x2a   :  { %479 = vperm.xlu1 %8543, %v8113_v7   ;;  %425 = vperm.xlu0 %8542, %v8112_v8  }
  0x2b   :  { %98 = vperm.xlu2 %8544, %v95_v9  }
  0x33   :  { %532 = vperm.xlu2 %8544, %v529_v10  }
  0x75   :  { %v9525_v31 = vpop.permute.xlu2 %320 }
  0x76   :  { %v326_v33 = vmul.f32 %v9525_v31, %v9481_v13  ;;  %v325_v34 = vmul.f32 %v9525_v31, %v9484_v14  ;;  %v327_v39 = vmul.f32 %v9525_v31, %v9478_v12  ;;  %v328_v60 = vmul.f32 %v9525_v31, %v9528_v32 }
  0x77   :  { %v324_v4 = vmul.f32 %v9525_v31, %v9563_v45  ;;  %v323_v6 = vmul.f32 %v9525_v31, %v9550_v40 }
  0x7d   :  { %v9538_v36 = vpop.permute.xlu2 %369 }
  0x7e   :  { %v376_v37 = vmul.f32 %v9538_v36, %v9484_v14  ;;  %v378_v41 = vmul.f32 %v9538_v36, %v9478_v12  ;;  %v377_v43 = vmul.f32 %v9538_v36, %v9481_v13  ;;  %v379_v61 = vmul.f32 %v9538_v36, %v9528_v32 }
  0x7f   :  { %v375_v8 = vmul.f32 %v9538_v36, %v9563_v45  ;;  %v374_v10 = vmul.f32 %v9538_v36, %v9550_v40 }
  0x85   :  { %v9593_v58 = vpop.permute.xlu2 %98 }
  0x8c   :  { %v125_v15 = vpop.permute.xlu0 %124  ;;  %v9503_v23 = vpop.permute.xlu1 %222 }
  0x8d   :  { %v131_v16 = vmul.f32 %v125_v15, %v9478_v12  ;;  %v130_v17 = vmul.f32 %v125_v15, %v9481_v13  ;;  %v129_v18 = vmul.f32 %v125_v15, %v9484_v14  ;;  %v229_v24 = vmul.f32 %v9503_v23, %v9478_v12  ;;  %v9607_v63 = vpop.permute.xlu2 %532 }
  0x8e   :  { %v228_v25 = vmul.f32 %v9503_v23, %v9481_v13  ;;  %v227_v26 = vmul.f32 %v9503_v23, %v9484_v14  ;;  %v132_v35 = vmul.f32 %v125_v15, %v9528_v32  ;;  %v127_v42 = vmul.f32 %v125_v15, %v9550_v40 }
  0x8f   :  { %147 = vrot.lane.b32.xlu2 %v131_v16, %s11827_s2  ;;  %145 = vrot.lane.b32.xlu1 %v130_v17, %s11827_s2  ;;  %v230_v46 = vmul.f32 %v9503_v23, %v9528_v32  ;;  %v128_v48 = vmul.f32 %v125_v15, %v9563_v45  ;;  %v225_v57 = vmul.f32 %v9503_v23, %v9550_v40  ;;  %v372_v16 = vperm.slane %v9475_v11, 6 }
  0x90   :  { %143 = vrot.lane.b32.xlu0 %v129_v18, %s11827_s2  ;;  %v226_v62 = vmul.f32 %v9503_v23, %v9563_v45 }
  0x91   :  { %v380_v23 = vmul.f32 %v372_v16, %v9538_v36 }
  0x94   :  { %v9492_v19 = vpop.permute.xlu0 %173  ;;  %v9514_v27 = vpop.permute.xlu1 %271 }
  0x95   :  { %v180_v20 = vmul.f32 %v9492_v19, %v9478_v12  ;;  %v179_v21 = vmul.f32 %v9492_v19, %v9481_v13  ;;  %v178_v22 = vmul.f32 %v9492_v19, %v9484_v14  ;;  %v278_v28 = vmul.f32 %v9514_v27, %v9478_v12 }
  0x96   :  { %v277_v29 = vmul.f32 %v9514_v27, %v9481_v13  ;;  %v276_v30 = vmul.f32 %v9514_v27, %v9484_v14  ;;  %v181_v38 = vmul.f32 %v9492_v19, %v9528_v32  ;;  %v176_v50 = vmul.f32 %v9492_v19, %v9550_v40 }
  0x97   :  { %196 = vrot.lane.b32.xlu2 %v180_v20, %s11823_s23  ;;  %194 = vrot.lane.b32.xlu1 %v179_v21, %s11823_s23  ;;  %v279_v53 = vmul.f32 %v9514_v27, %v9528_v32  ;;  %v177_v55 = vmul.f32 %v9492_v19, %v9563_v45  ;;  %v275_v0 = vmul.f32 %v9514_v27, %v9563_v45 }
  0x98   :  { %192 = vrot.lane.b32.xlu0 %v178_v22, %s11823_s23  ;;  %v274_v2 = vmul.f32 %v9514_v27, %v9550_v40 }
  0x9c   :  { %v9560_v44 = vpop.permute.xlu0 %425  ;;  %v480_v52 = vpop.permute.xlu1 %479 }
  0x9d   :  { %v430_v47 = vmul.f32 %v9560_v44, %v9484_v14  ;;  %v432_v49 = vmul.f32 %v9560_v44, %v9478_v12  ;;  %v431_v51 = vmul.f32 %v9560_v44, %v9481_v13  ;;  %v484_v54 = vmul.f32 %v480_v52, %v9484_v14 }
  0x9e   :  { %v486_v56 = vmul.f32 %v480_v52, %v9478_v12  ;;  %v485_v59 = vmul.f32 %v480_v52, %v9481_v13  ;;  %v433_v1 = vmul.f32 %v9560_v44, %v9528_v32  ;;  %v487_v5 = vmul.f32 %v480_v52, %v9528_v32 }
  0x9f   :  { %245 = vrot.lane.b32.xlu2 %v229_v24, %s11810_s24  ;;  %243 = vrot.lane.b32.xlu1 %v228_v25, %s11810_s24  ;;  %v482_v9 = vmul.f32 %v480_v52, %v9550_v40  ;;  %v429_v19 = vmul.f32 %v9560_v44, %v9563_v45  ;;  %v434_v20 = vmul.f32 %v9560_v44, %v372_v16 }
  0xa0   :  { %241 = vrot.lane.b32.xlu0 %v227_v26, %s11810_s24  ;;  %v428_v21 = vmul.f32 %v9560_v44, %v9550_v40  ;;  %v483_v25 = vmul.f32 %v480_v52, %v9563_v45 }
  0xa7   :  { %294 = vrot.lane.b32.xlu2 %v278_v28, %s11808_s25  ;;  %292 = vrot.lane.b32.xlu1 %v277_v29, %s11808_s25  ;;  %v488_v28 = vmul.f32 %v480_v52, %v372_v16  ;;  %v116_v52 = vmul.f32 %v9484_v14, %v9593_v58 }
  0xa8   :  { %290 = vrot.lane.b32.xlu0 %v276_v30, %s11808_s25 }
  0xaf   :  { %341 = vrot.lane.b32.xlu2 %v326_v33, %s11806_s3  ;;  %339 = vrot.lane.b32.xlu1 %v325_v34, %s11806_s3 }
  0xb0   :  { %149 = vrot.lane.b32.xlu0 %v132_v35, %s11827_s2 }
  0xb7   :  { %392 = vrot.lane.b32.xlu2 %v376_v37, %s11804_s26  ;;  %198 = vrot.lane.b32.xlu1 %v181_v38, %s11823_s23 }
  0xb8   :  { %343 = vrot.lane.b32.xlu0 %v327_v39, %s11806_s3 }
  0xbf   :  { %396 = vrot.lane.b32.xlu1 %v378_v41, %s11804_s26  ;;  %139 = vrot.lane.b32.xlu2 %v127_v42, %s11827_s2 }
  0xc0   :  { %394 = vrot.lane.b32.xlu0 %v377_v43, %s11804_s26 }
  0xc7   :  { %247 = vrot.lane.b32.xlu1 %v230_v46, %s11810_s24  ;;  %446 = vrot.lane.b32.xlu2 %v430_v47, %s11802_s27 }
  0xc8   :  { %141 = vrot.lane.b32.xlu0 %v128_v48, %s11827_s2 }
  0xcf   :  { %450 = vrot.lane.b32.xlu1 %v432_v49, %s11802_s27  ;;  %188 = vrot.lane.b32.xlu2 %v176_v50, %s11823_s23 }
  0xd0   :  { %448 = vrot.lane.b32.xlu0 %v431_v51, %s11802_s27  ;;  %v117_v51 = vmul.f32 %v9481_v13, %v9593_v58 }
  0xd7   :  { %296 = vrot.lane.b32.xlu1 %v279_v53, %s11808_s25  ;;  %500 = vrot.lane.b32.xlu2 %v484_v54, %s11800_s28 }
  0xd8   :  { %190 = vrot.lane.b32.xlu0 %v177_v55, %s11823_s23 }
  0xdf   :  { %504 = vrot.lane.b32.xlu1 %v486_v56, %s11800_s28  ;;  %237 = vrot.lane.b32.xlu2 %v225_v57, %s11810_s24 }
  0xe0   :  { %502 = vrot.lane.b32.xlu0 %v485_v59, %s11800_s28 }
  0xe7   :  { %345 = vrot.lane.b32.xlu1 %v328_v60, %s11806_s3  ;;  %398 = vrot.lane.b32.xlu2 %v379_v61, %s11804_s26 }
  0xe8   :  { %239 = vrot.lane.b32.xlu0 %v226_v62, %s11810_s24 }
  0xe9   :  { %v9618_v3 = vpop.permute.xlu2 %147 }
  0xef   :  { %288 = vrot.lane.b32.xlu1 %v275_v0, %s11808_s25  ;;  %452 = vrot.lane.b32.xlu2 %v433_v1, %s11802_s27 }
  0xf0   :  { %286 = vrot.lane.b32.xlu0 %v274_v2, %s11808_s25 }
  0xf1   :  { %v9629_v7 = vpop.permute.xlu2 %196 }
  0xf7   :  { %337 = vrot.lane.b32.xlu1 %v324_v4, %s11806_s3  ;;  %506 = vrot.lane.b32.xlu2 %v487_v5, %s11800_s28 }
  0xf8   :  { %335 = vrot.lane.b32.xlu0 %v323_v6, %s11806_s3 }
  0xf9   :  { %v9642_v18 = vpop.permute.xlu2 %245 }
  0xff   :  { %390 = vrot.lane.b32.xlu1 %v375_v8, %s11804_s26  ;;  %496 = vrot.lane.b32.xlu2 %v482_v9, %s11800_s28 }
 0x100   :  { %388 = vrot.lane.b32.xlu0 %v374_v10, %s11804_s26 }
 0x101   :  { %v146_v15 = vpop.permute.xlu1 %145  ;;  %v9655_v24 = vpop.permute.xlu2 %294 }
 0x102   :  { %v9640_v17 = vpop.permute.xlu0 %143  ;;  %v155_v49 = vsel %vm151_vm0, %v146_v15, %v9618_v3 }
 0x103   :  { %v154_v50 = vsel %vm151_vm0, %v9640_v17, %v146_v15  ;;  %v166_v55 = vadd.f32 %v155_v49, %v117_v51 }
 0x104   :  { %v165_v56 = vadd.f32 %v154_v50, %v116_v52 }
 0x107   :  { %444 = vrot.lane.b32.xlu1 %v429_v19, %s11802_s27  ;;  %454 = vrot.lane.b32.xlu2 %v434_v20, %s11802_s27 }
 0x108   :  { %442 = vrot.lane.b32.xlu0 %v428_v21, %s11802_s27 }
 0x109   :  { %v195_v22 = vpop.permute.xlu1 %194  ;;  %v342_v29 = vpop.permute.xlu2 %341 }
 0x10a   :  { %v9652_v11 = vpop.permute.xlu0 %192  ;;  %v204_v53 = vsel %vm200_vm1, %v195_v22, %v9629_v7 }
 0x10b   :  { %v203_v54 = vsel %vm200_vm1, %v9652_v11, %v195_v22  ;;  %v215_v13 = vadd.f32 %v204_v53, %v166_v55 }
 0x10c   :  { %v214_v60 = vadd.f32 %v203_v54, %v165_v56 }
 0x10f   :  { %400 = vrot.lane.b32.xlu1 %v380_v23, %s11804_s26 }
 0x110   :  { %498 = vrot.lane.b32.xlu0 %v483_v25, %s11800_s28 }
 0x111   :  { %v244_v26 = vpop.permute.xlu1 %243  ;;  %v9667_v34 = vpop.permute.xlu2 %392 }
 0x112   :  { %v9660_v27 = vpop.permute.xlu0 %241  ;;  %v253_v57 = vsel %vm249_vm2, %v244_v26, %v9642_v18 }
 0x113   :  { %v252_v59 = vsel %vm249_vm2, %v9660_v27, %v244_v26  ;;  %v264_v0 = vadd.f32 %v253_v57, %v215_v13 }
 0x114   :  { %v263_v1 = vadd.f32 %v252_v59, %v214_v60 }
 0x118   :  { %508 = vrot.lane.b32.xlu0 %v488_v28, %s11800_s28 }
 0x119   :  { %v293_v30 = vpop.permute.xlu1 %292  ;;  %v9675_v38 = vpop.permute.xlu2 %139 }
 0x11a   :  { %v9663_v31 = vpop.permute.xlu0 %290  ;;  %v302_v14 = vsel %vm298_vm3, %v293_v30, %v9655_v24 }
 0x11b   :  { %v301_v61 = vsel %vm298_vm3, %v9663_v31, %v293_v30  ;;  %v313_v8 = vadd.f32 %v302_v14, %v264_v0 }
 0x11c   :  { %v312_v9 = vadd.f32 %v301_v61, %v263_v1  ;;  %v118_v1 = vmul.f32 %v9478_v12, %v9593_v58 }
 0x121   :  { %v9665_v33 = vpop.permute.xlu1 %339  ;;  %v9679_v42 = vpop.permute.xlu2 %446 }
 0x122   :  { %v9669_v35 = vpop.permute.xlu0 %149  ;;  %v350_v5 = vsel %vm347_vm4, %v9665_v33, %v342_v29 }
 0x123   :  { %v361_v16 = vadd.f32 %v350_v5, %v312_v9  ;;  %v156_v61 = vsel %vm151_vm0, %v9618_v3, %v9669_v35 }
 0x129   :  { %v9671_v36 = vpop.permute.xlu1 %198  ;;  %v9685_v46 = vpop.permute.xlu2 %188 }
 0x12a   :  { %v9673_v37 = vpop.permute.xlu0 %343 }
 0x12b   :  { %v351_v6 = vsel %vm347_vm4, %v342_v29, %v9673_v37 }
 0x12c   :  { %v362_v19 = vadd.f32 %v351_v6, %v313_v8  ;;  %v205_v6 = vsel %vm200_vm1, %v9629_v7, %v9671_v36  ;;  %v167_v8 = vadd.f32 %v156_v61, %v118_v1 }
 0x131   :  { %v9677_v39 = vpop.permute.xlu1 %396  ;;  %v9711_v2 = vpop.permute.xlu2 %500 }
 0x132   :  { %v395_v41 = vpop.permute.xlu0 %394 }
 0x133   :  { %v405_v10 = vsel %vm402_vm5, %v9667_v34, %v395_v41  ;;  %v406_v15 = vsel %vm402_vm5, %v395_v41, %v9677_v39 }
 0x134   :  { %v417_v22 = vadd.f32 %v405_v10, %v361_v16  ;;  %v418_v23 = vadd.f32 %v406_v15, %v362_v19  ;;  %v216_v10 = vadd.f32 %v205_v6, %v167_v8 }
 0x139   :  { %v9681_v43 = vpop.permute.xlu1 %247  ;;  %v238_v49 = vpop.permute.xlu2 %237 }
 0x13a   :  { %v9683_v44 = vpop.permute.xlu0 %141  ;;  %v254_v9 = vsel %vm249_vm2, %v9642_v18, %v9681_v43 }
 0x13b   :  { %v265_v3 = vadd.f32 %v254_v9, %v216_v10  ;;  %v153_v18 = vsel %vm151_vm0, %v9683_v44, %v9640_v17 }
 0x141   :  { %v9687_v47 = vpop.permute.xlu1 %450  ;;  %v9745_v59 = vpop.permute.xlu2 %398 }
 0x142   :  { %v449_v48 = vpop.permute.xlu0 %448 }
 0x143   :  { %v459_v20 = vsel %vm456_vm6, %v9679_v42, %v449_v48  ;;  %v460_v21 = vsel %vm456_vm6, %v449_v48, %v9687_v47 }
 0x144   :  { %v471_v26 = vadd.f32 %v459_v20, %v417_v22  ;;  %v472_v28 = vadd.f32 %v460_v21, %v418_v23  ;;  %v152_v21 = vsel %vm151_vm0, %v9675_v38, %v9683_v44  ;;  %v115_v22 = vmul.f32 %v9563_v45, %v9593_v58 }
 0x145   :  { %v407_v38 = vsel %vm402_vm5, %v9677_v39, %v9745_v59 }
 0x149   :  { %v9709_v62 = vpop.permute.xlu1 %296  ;;  %v9749_v14 = vpop.permute.xlu2 %452 }
 0x14a   :  { %v191_v4 = vpop.permute.xlu0 %190  ;;  %v303_v15 = vsel %vm298_vm3, %v9655_v24, %v9709_v62  ;;  %v114_v24 = vmul.f32 %v9550_v40, %v9593_v58 }
 0x14b   :  { %v314_v19 = vadd.f32 %v303_v15, %v265_v3  ;;  %v201_v23 = vsel %vm200_vm1, %v9685_v46, %v191_v4 }
 0x151   :  { %v9725_v25 = vpop.permute.xlu1 %504  ;;  %v9768_v20 = vpop.permute.xlu2 %506 }
 0x152   :  { %v503_v29 = vpop.permute.xlu0 %502 }
 0x153   :  { %v513_v30 = vsel %vm510_vm7, %v9711_v2, %v503_v29  ;;  %v514_v41 = vsel %vm510_vm7, %v503_v29, %v9725_v25  ;;  %v164_v29 = vadd.f32 %v153_v18, %v115_v22 }
 0x154   :  { %v525_v50 = vadd.f32 %v513_v30, %v471_v26  ;;  %v526_v51 = vadd.f32 %v514_v41, %v472_v28  ;;  %v202_v26 = vsel %vm200_vm1, %v191_v4, %v9652_v11  ;;  %v163_v28 = vadd.f32 %v152_v21, %v114_v24 }
 0x155   :  { %v213_v45 = vadd.f32 %v202_v26, %v164_v29  ;;  %v119_v4 = vmul.f32 %v9528_v32, %v9593_v58 }
 0x156   :  { %v537_v52 = vadd.f32 %v9607_v63, %v525_v50  ;;  %v538_v48 = vadd.f32 %v9607_v63, %v526_v51  ;;  %v212_v44 = vadd.f32 %v201_v23, %v163_v28 }
 0x158   :  { %v9733_v53 = vmax.f32 %v537_v52, 0.0  ;;  %v9735_v54 = vmax.f32 %v538_v48, 0.0 }
 0x159   :  { %v9737_v55 = vpop.permute.xlu1 %345 }
 0x15a   :  { %v240_v56 = vpop.permute.xlu0 %239  ;;  %v9741_v57 = vpack.i.bf16 %v9735_v54, %v9733_v53  ;;  %v352_v12 = vsel %vm347_vm4, %v9673_v37, %v9737_v55 }
 0x15b   :  { %v363_v37 = vadd.f32 %v352_v12, %v314_v19  ;;  %v250_v17 = vsel %vm249_vm2, %v238_v49, %v240_v56  ;;  %v251_v40 = vsel %vm249_vm2, %v240_v56, %v9660_v27  ;;  %v461_v49 = vsel %vm456_vm6, %v9687_v47, %v9749_v14  ;;  %v497_v56 = vpop.permute.xlu2 %496 }
 0x15c   :  { %8546 = vrot.lane.b32.xlu1 %v9741_v57, %s11827_s2  ;;  %v261_v50 = vadd.f32 %v250_v17, %v212_v44  ;;  %v262_v51 = vadd.f32 %v251_v40, %v213_v45  ;;  %v9857_v44 = vld [vmem:[%s11857_s0] sm:$0xff] }
 0x15d   :  { %v419_v30 = vadd.f32 %v407_v38, %v363_v37 }
 0x15f   :  { %v473_v48 = vadd.f32 %v461_v49, %v419_v30 }
 0x161   :  { %v289_v13 = vpop.permute.xlu1 %288 }
 0x162   :  { %v287_v60 = vpop.permute.xlu0 %286  ;;  %v300_v46 = vsel %vm298_vm3, %v289_v13, %v9663_v31  ;;  %v168_v31 = vadd.f32 %v9669_v35, %v119_v4 }
 0x163   :  { %v299_v41 = vsel %vm298_vm3, %v287_v60, %v289_v13  ;;  %v311_v13 = vadd.f32 %v300_v46, %v262_v51  ;;  %v455_v21 = vpop.permute.xlu2 %454 }
 0x164   :  { %8561 = vrot.lane.b32.xlu1 %v9741_v57, %s11823_s23  ;;  %v310_v60 = vadd.f32 %v299_v41, %v261_v50  ;;  %v217_v61 = vadd.f32 %v9671_v36, %v168_v31  ;;  %v462_v23 = vsel %vm456_vm6, %v9749_v14, %v455_v21  ;;  %v8114_v41 = vld [vmem:[%s11857_s0 + $0x8] sm:$0xff]  ;;  %v9883_v31 = vld [vmem:[%s11857_s0 + $0x10] sm:$0xff] }
 0x169   :  { %v338_v0 = vpop.permute.xlu1 %337 }
 0x16a   :  { %v336_v5 = vpop.permute.xlu0 %335  ;;  %v349_v27 = vsel %vm347_vm4, %v338_v0, %v9665_v33  ;;  %v515_v33 = vsel %vm510_vm7, %v9725_v25, %v9768_v20 }
 0x16b   :  { %v348_v52 = vsel %vm347_vm4, %v336_v5, %v338_v0  ;;  %v360_v1 = vadd.f32 %v349_v27, %v311_v13  ;;  %v266_v5 = vadd.f32 %v9681_v43, %v217_v61  ;;  %v527_v6 = vadd.f32 %v515_v33, %v473_v48 }
 0x16c   :  { %v359_v47 = vadd.f32 %v348_v52, %v310_v60 }
 0x16d   :  { %v315_v10 = vadd.f32 %v9709_v62, %v266_v5  ;;  %v539_v43 = vadd.f32 %v9607_v63, %v527_v6 }
 0x16f   :  { %v545_v22 = vmax.f32 %v539_v43, 0.0 }
 0x171   :  { %v391_v16 = vpop.permute.xlu1 %390 }
 0x172   :  { %v389_v7 = vpop.permute.xlu0 %388  ;;  %v404_v32 = vsel %vm402_vm5, %v391_v16, %v9667_v34 }
 0x173   :  { %v403_v58 = vsel %vm402_vm5, %v389_v7, %v391_v16  ;;  %v416_v8 = vadd.f32 %v404_v32, %v360_v1  ;;  %v364_v16 = vadd.f32 %v9737_v55, %v315_v10 }
 0x174   :  { %v415_v34 = vadd.f32 %v403_v58, %v359_v47  ;;  %v9905_v47 = vld [vmem:[%s11857_s0 + $0x18] sm:$0xff] }
 0x179   :  { %v445_v11 = vpop.permute.xlu1 %444 }
 0x17a   :  { %v443_v39 = vpop.permute.xlu0 %442  ;;  %v458_v35 = vsel %vm456_vm6, %v445_v11, %v9679_v42 }
 0x17b   :  { %v457_v0 = vsel %vm456_vm6, %v443_v39, %v445_v11  ;;  %v470_v36 = vadd.f32 %v458_v35, %v416_v8 }
 0x17c   :  { %v469_v15 = vadd.f32 %v457_v0, %v415_v34 }
 0x181   :  { %v401_v9 = vpop.permute.xlu1 %400 }
 0x182   :  { %v499_v3 = vpop.permute.xlu0 %498  ;;  %v408_v12 = vsel %vm402_vm5, %v9745_v59, %v401_v9 }
 0x183   :  { %v511_v25 = vsel %vm510_vm7, %v497_v56, %v499_v3  ;;  %v512_v42 = vsel %vm510_vm7, %v499_v3, %v9711_v2  ;;  %v420_v18 = vadd.f32 %v408_v12, %v364_v16 }
 0x184   :  { %v523_v19 = vadd.f32 %v511_v25, %v469_v15  ;;  %v524_v7 = vadd.f32 %v512_v42, %v470_v36 }
 0x185   :  { %v474_v26 = vadd.f32 %v462_v23, %v420_v18 }
 0x186   :  { %v535_v62 = vadd.f32 %v9607_v63, %v523_v19  ;;  %v536_v24 = vadd.f32 %v9607_v63, %v524_v7 }
 0x188   :  { %v541_v37 = vmax.f32 %v535_v62, 0.0  ;;  %v9823_v59 = vmax.f32 %v536_v24, 0.0 }
 0x18a   :  { %v509_v2 = vpop.permute.xlu0 %508  ;;  %721 = vmatpush.msra.mxu2 %v541_v37  ;;  %v8575_v55 = vpack.i.bf16 %v9823_v59, %v541_v37  ;;  %v8550_v28 = vpack.i.bf16 %v541_v37, %v545_v22 }
 0x18b   :  { %v516_v29 = vsel %vm510_vm7, %v9768_v20, %v509_v2  ;;  %v8580_v20 = vpack.i.bf16 %v545_v22, %v9733_v53  ;;  %8121 = vmatmul.msk.f32.vlgmr.msra.gmra.mxu2 %vm579_vm8, %v9857_v44 }
 0x18c   :  { %801 = vmatpush.msrb.mxu2 %v545_v22  ;;  %v528_v38 = vadd.f32 %v516_v29, %v474_v26  ;;  %8576 = vrot.lane.b32.xlu1 %v8575_v55, %s11810_s24 }
 0x18d   :  { %8551 = vrot.lane.b32.xlu2 %v8550_v28, %s11827_s2 }
 0x18e   :  { %v540_v17 = vadd.f32 %v9607_v63, %v528_v38 }
 0x190   :  { %v546_v40 = vmax.f32 %v540_v17, 0.0 }
 0x192   :  { %v8555_v14 = vpack.i.bf16 %v546_v40, %v9823_v59  ;;  %v8585_v63 = vpack.i.bf16 %v9735_v54, %v546_v40 }
 0x193   :  { %8125 = vmatmul.msk.f32.vlgmr.msrb.gmra.mxu2 %vm579_vm8, %v9857_v44 }
 0x194   :  { %8556 = vrot.lane.b32.xlu0 %v8555_v14, %s11827_s2  ;;  %8591 = vrot.lane.b32.xlu1 %v9741_v57, %s11808_s25 }
 0x195   :  { %8566 = vrot.lane.b32.xlu2 %v8550_v28, %s11823_s23 }
 0x19c   :  { %8571 = vrot.lane.b32.xlu0 %v8555_v14, %s11823_s23  ;;  %8606 = vrot.lane.b32.xlu1 %v8575_v55, %s11806_s3 }
 0x19d   :  { %8581 = vrot.lane.b32.xlu2 %v8580_v20, %s11810_s24 }
 0x1a4   :  { %8586 = vrot.lane.b32.xlu0 %v8585_v63, %s11810_s24  ;;  %8621 = vrot.lane.b32.xlu1 %v9741_v57, %s11804_s26 }
 0x1a5   :  { %8596 = vrot.lane.b32.xlu2 %v8550_v28, %s11808_s25 }
 0x1ac   :  { %8601 = vrot.lane.b32.xlu0 %v8555_v14, %s11808_s25  ;;  %8636 = vrot.lane.b32.xlu1 %v8575_v55, %s11802_s27  ;;  %s11838_s25 = smov 119  }
 0x1ad   :  { %8611 = vrot.lane.b32.xlu2 %v8580_v20, %s11806_s3 }
 0x1b4   :  { %8616 = vrot.lane.b32.xlu0 %v8585_v63, %s11806_s3  ;;  %8651 = vrot.lane.b32.xlu1 %v9741_v57, %s11800_s28  ;;  %v1904_v57 = vld [vmem:[%s11780_s4] sm:$0xff]  ;;  %s11859_s3 = smov 102  }
 0x1b5   :  { %8626 = vrot.lane.b32.xlu2 %v8550_v28, %s11804_s26 }
 0x1bc   :  { %8631 = vrot.lane.b32.xlu0 %v8555_v14, %s11804_s26  ;;  %1762 = vrot.lane.b32.xlu1 %v546_v40, %s11800_s28  ;;  %s11830_s26 = smov 124  }
 0x1bd   :  { %8641 = vrot.lane.b32.xlu2 %v8580_v20, %s11802_s27 }
 0x1c4   :  { %8646 = vrot.lane.b32.xlu0 %v8585_v63, %s11802_s27 }
 0x1c5   :  { %8656 = vrot.lane.b32.xlu2 %v8550_v28, %s11800_s28 }
 0x1cc   :  { %1754 = vrot.lane.b32.xlu0 %v9823_v59, %s11800_s28  ;;  %s11815_s28 = smov 102  }
 0x1cd   :  { %1907 = vperm.xlu2 %8544, %v1904_v57  }
 0x1ce   :  { %v8547_v45 = vpop.permute.xlu1 %8546 }
 0x1cf   :  { %v8549_v30 = vunpack.i.h.bf16 %v8547_v45  ;;  %v8548_v46 = vunpack.i.l.bf16 %v8547_v45 }
 0x1d1   :  { %v570_v11 = vsel %vm151_vm0, %v8548_v46, %v8549_v30 }
 0x1d2   :  { %638 = vmatpush.msra.mxu3 %v570_v11  ;;  %v9986_v11 = vld [vmem:[%s11857_s0 + $0x28] sm:$0xff] }
 0x1d3   :  { %8117 = vmatmul.msk.f32.vlgmr.msra.gmra.mxu3 %vm579_vm8, %v8114_v41 }
 0x1d6   :  { %v8562_v4 = vpop.permute.xlu1 %8561 }
 0x1d7   :  { %v8564_v50 = vunpack.i.h.bf16 %v8562_v4  ;;  %v8563_v51 = vunpack.i.l.bf16 %v8562_v4 }
 0x1d9   :  { %v842_v39 = vsel %vm200_vm1, %v8563_v51, %v8564_v50 }
 0x1da   :  { %909 = vmatpush.msra.mxu2 %v842_v39 }
 0x1db   :  { %8130 = vmatmul.msk.f32.vlgmr.msra.gmra.mxu2 %vm579_vm8, %v9883_v31 }
 0x1e7   :  { %v8552_v49 = vpop.permute.xlu2 %8551 }
 0x1e8   :  { %v8553_v27 = vunpack.i.l.bf16 %v8552_v49  ;;  %v8554_v5 = vunpack.i.h.bf16 %v8552_v49 }
 0x1ea   :  { %v571_v52 = vsel %vm151_vm0, %v8549_v30, %v8553_v27 }
 0x1eb   :  { %658 = vmatpush.msrb.mxu3 %v571_v52 }
 0x1ec   :  { %8118 = vmatmul.msk.f32.vlgmr.msrb.gmra.mxu3 %vm579_vm8, %v8114_v41 }
 0x1ed   :  { %741 = vmatpush.msra.mxu3 %v9823_v59 }
 0x1ef   :  { %821 = vmatpush.msrb.mxu3 %v546_v40  ;;  %v9889_v48 = vpop.permute.xlu2 %8566  ;;  %v9963_v40 = vld [vmem:[%s11857_s0 + $0x20] sm:$0xff] }
 0x1f0   :  { %v8568_v56 = vunpack.i.l.bf16 %v9889_v48  ;;  %v8569_v12 = vunpack.i.h.bf16 %v9889_v48 }
 0x1f2   :  { %v843_v13 = vsel %vm200_vm1, %v8564_v50, %v8568_v56 }
 0x1f4   :  { %8122 = vmatmul.msk.f32.vlgmr.msra.gmra.mxu3 %vm579_vm8, %v9857_v44 }
 0x1f5   :  { %929 = vmatpush.msra.mxu3 %v843_v13 }
 0x1f7   :  { %v9899_v60 = vpop.permute.xlu2 %8581 }
 0x1f8   :  { %v8583_v58 = vunpack.i.l.bf16 %v9899_v60  ;;  %v8584_v19 = vunpack.i.h.bf16 %v9899_v60 }
 0x1fc   :  { %8126 = vmatmul.msk.f32.vlgmr.msrb.gmra.mxu3 %vm579_vm8, %v9857_v44 }
 0x1fe   :  { %v8577_v32 = vpop.permute.xlu1 %8576 }
 0x1ff   :  { %v8579_v61 = vunpack.i.h.bf16 %v8577_v32  ;;  %v8578_v1 = vunpack.i.l.bf16 %v8577_v32  ;;  %v9924_v15 = vpop.permute.xlu2 %8596 }
 0x200   :  { %v8598_v18 = vunpack.i.l.bf16 %v9924_v15  ;;  %v8599_v50 = vunpack.i.h.bf16 %v9924_v15 }
 0x201   :  { %v994_v33 = vsel %vm249_vm2, %v8578_v1, %v8579_v61  ;;  %v995_v35 = vsel %vm249_vm2, %v8579_v61, %v8583_v58 }
 0x202   :  { %1023 = vmatpush.msrb.mxu2 %v994_v33  ;;  %1043 = vmatpush.msrb.mxu3 %v995_v35 }
 0x203   :  { %8135 = vmatmul.msk.f32.vlgmr.msrb.gmra.mxu2 %vm579_vm8, %v9905_v47 }
 0x204   :  { %8131 = vmatmul.msk.f32.vlgmr.msra.gmra.mxu3 %vm579_vm8, %v9883_v31 }
 0x206   :  { %v8557_v0 = vpop.permute.xlu0 %8556  ;;  %v9920_v36 = vpop.permute.xlu1 %8591 }
 0x207   :  { %v8559_v6 = vunpack.i.h.bf16 %v8557_v0  ;;  %v8558_v8 = vunpack.i.l.bf16 %v8557_v0  ;;  %v9936_v62 = vpop.permute.xlu2 %8611  ;;  %v8593_v24 = vunpack.i.l.bf16 %v9920_v36 }
 0x208   :  { %v8613_v2 = vunpack.i.l.bf16 %v9936_v62  ;;  %v8614_v30 = vunpack.i.h.bf16 %v9936_v62 }
 0x209   :  { %v568_v34 = vsel %vm151_vm0, %v8554_v5, %v8558_v8  ;;  %v569_v9 = vsel %vm151_vm0, %v8558_v8, %v8548_v46  ;;  %v572_v10 = vsel %vm151_vm0, %v8553_v27, %v8559_v6  ;;  %v8155_v8 = vld [vmem:[%s11857_s0 + $0x30] sm:$0xff] }
 0x20a   :  { %598 = vmatpush.msra.mxu0 %v568_v34  ;;  %618 = vmatpush.msra.mxu1 %v569_v9 }
 0x20b   :  { %8115 = vmatmul.msk.f32.vlgmr.msra.gmra.mxu0 %vm579_vm8, %v8114_v41  ;;  %8116 = vmatmul.msk.f32.vlgmr.msra.gmra.mxu1 %vm579_vm8, %v8114_v41 }
 0x20c   :  { %678 = vmatpush.msrb.mxu0 %v572_v10  ;;  %698 = vmatpush.msrb.mxu1 %v8559_v6 }
 0x20d   :  { %8136 = vmatmul.msk.f32.vlgmr.msrb.gmra.mxu3 %vm579_vm8, %v9905_v47 }
 0x20e   :  { %761 = vmatpush.msra.mxu0 %v9733_v53  ;;  %781 = vmatpush.msra.mxu1 %v9735_v54  ;;  %v8572_v3 = vpop.permute.xlu0 %8571  ;;  %v8594_v53 = vunpack.i.h.bf16 %v9920_v36  ;;  %v8607_v54 = vpop.permute.xlu1 %8606 }
 0x20f   :  { %v8573_v25 = vunpack.i.l.bf16 %v8572_v3  ;;  %v8574_v7 = vunpack.i.h.bf16 %v8572_v3  ;;  %v8609_v22 = vunpack.i.h.bf16 %v8607_v54  ;;  %v8608_v59 = vunpack.i.l.bf16 %v8607_v54  ;;  %v9969_v20 = vpop.permute.xlu2 %8626 }
 0x210   :  { %v1151_v23 = vsel %vm298_vm3, %v8594_v53, %v8598_v18  ;;  %v1150_v55 = vsel %vm298_vm3, %v8593_v24, %v8594_v53  ;;  %v8628_v4 = vunpack.i.l.bf16 %v9969_v20 }
 0x211   :  { %v840_v42 = vsel %vm200_vm1, %v8569_v12, %v8573_v25  ;;  %v841_v16 = vsel %vm200_vm1, %v8573_v25, %v8563_v51  ;;  %v844_v26 = vsel %vm200_vm1, %v8568_v56, %v8574_v7  ;;  %v1303_v28 = vsel %vm347_vm4, %v8609_v22, %v8613_v2  ;;  %v8162_v25 = vld [vmem:[%s11857_s0 + $0x38] sm:$0xff] }
 0x212   :  { %v1302_v29 = vsel %vm347_vm4, %v8608_v59, %v8609_v22 }
 0x213   :  { %8119 = vmatmul.msk.f32.vlgmr.msrb.gmra.mxu0 %vm579_vm8, %v8114_v41  ;;  %8120 = vmatmul.msk.f32.vlgmr.msrb.gmra.mxu1 %vm579_vm8, %v8114_v41 }
 0x214   :  { %869 = vmatpush.msrb.mxu0 %v840_v42  ;;  %889 = vmatpush.msrb.mxu1 %v841_v16  ;;  %v8629_v16 = vunpack.i.h.bf16 %v9969_v20 }
 0x216   :  { %v8587_v43 = vpop.permute.xlu0 %8586  ;;  %v9965_v14 = vpop.permute.xlu1 %8621 }
 0x217   :  { %v8588_v21 = vunpack.i.l.bf16 %v8587_v43  ;;  %v8589_v17 = vunpack.i.h.bf16 %v8587_v43  ;;  %v8624_v57 = vunpack.i.h.bf16 %v9965_v14  ;;  %v8623_v51 = vunpack.i.l.bf16 %v9965_v14  ;;  %v10003_v56 = vpop.permute.xlu2 %8641 }
 0x218   :  { %v8643_v61 = vunpack.i.l.bf16 %v10003_v56  ;;  %v8644_v34 = vunpack.i.h.bf16 %v10003_v56 }
 0x219   :  { %1123 = vmatpush.msra.mxu3 %v8588_v21  ;;  %v998_v37 = vsel %vm249_vm2, %v8584_v19, %v8588_v21  ;;  %v996_v63 = vsel %vm249_vm2, %v8583_v58, %v8589_v17  ;;  %v1459_v49 = vsel %vm402_vm5, %v8624_v57, %v8628_v4  ;;  %v1458_v13 = vsel %vm402_vm5, %v8623_v51, %v8624_v57 }
 0x21a   :  { %1103 = vmatpush.msra.mxu2 %v998_v37  ;;  %8140 = vmatmul.msk.f32.vlgmr.msra.gmra.mxu3 %vm579_vm8, %v9905_v47 }
 0x21b   :  { %1237 = vmatpush.msrb.mxu3 %v1151_v23  ;;  %8123 = vmatmul.msk.f32.vlgmr.msra.gmra.mxu0 %vm579_vm8, %v9857_v44 }
 0x21c   :  { %8124 = vmatmul.msk.f32.vlgmr.msra.gmra.mxu1 %vm579_vm8, %v9857_v44  ;;  %949 = vmatpush.msra.mxu0 %v844_v26  ;;  %v997_v44 = vsel %vm249_vm2, %v8589_v17, %v8584_v19 }
 0x21d   :  { %969 = vmatpush.msra.mxu1 %v8574_v7  ;;  %8139 = vmatmul.msk.f32.vlgmr.msra.gmra.mxu2 %vm579_vm8, %v9905_v47 }
 0x21e   :  { %1217 = vmatpush.msrb.mxu2 %v1150_v55  ;;  %1351 = vmatpush.msra.mxu3 %v1303_v28  ;;  %v8602_v38 = vpop.permute.xlu0 %8601  ;;  %v8637_v27 = vpop.permute.xlu1 %8636 }
 0x21f   :  { %v8603_v46 = vunpack.i.l.bf16 %v8602_v38  ;;  %v8639_v60 = vunpack.i.h.bf16 %v8637_v27  ;;  %v8604_v58 = vunpack.i.h.bf16 %v8602_v38  ;;  %v8657_v15 = vpop.permute.xlu2 %8656 }
 0x220   :  { %1331 = vmatpush.msra.mxu2 %v1302_v29  ;;  %v8658_v42 = vunpack.i.l.bf16 %v8657_v15  ;;  %v8659_v23 = vunpack.i.h.bf16 %v8657_v15 }
 0x221   :  { %v1148_v52 = vsel %vm298_vm3, %v8599_v50, %v8603_v46  ;;  %v1149_v48 = vsel %vm298_vm3, %v8603_v46, %v8593_v24  ;;  %v1611_v1 = vsel %vm456_vm6, %v8639_v60, %v8643_v61  ;;  %v1152_v33 = vsel %vm298_vm3, %v8598_v18, %v8604_v58  ;;  %v8169_v24 = vld [vmem:[%s11857_s0 + $0x40] sm:$0xff] }
 0x222   :  { %8145 = vmatmul.msk.f32.vlgmr.msrb.gmra.mxu3 %vm579_vm8, %v9963_v40 }
 0x223   :  { %8128 = vmatmul.msk.f32.vlgmr.msrb.gmra.mxu0 %vm579_vm8, %v9883_v31 }
 0x224   :  { %8129 = vmatmul.msk.f32.vlgmr.msrb.gmra.mxu1 %vm579_vm8, %v9883_v31  ;;  %1063 = vmatpush.msrb.mxu0 %v996_v63 }
 0x225   :  { %1083 = vmatpush.msrb.mxu1 %v997_v44  ;;  %8144 = vmatmul.msk.f32.vlgmr.msrb.gmra.mxu2 %vm579_vm8, %v9963_v40 }
 0x226   :  { %v8617_v45 = vpop.permute.xlu0 %8616 }
 0x227   :  { %v8618_v41 = vunpack.i.l.bf16 %v8617_v45  ;;  %v8619_v5 = vunpack.i.h.bf16 %v8617_v45 }
 0x229   :  { %1431 = vmatpush.msrb.mxu3 %v8618_v41  ;;  %v1306_v39 = vsel %vm347_vm4, %v8614_v30, %v8618_v41  ;;  %v1304_v9 = vsel %vm347_vm4, %v8613_v2, %v8619_v5  ;;  %v1305_v36 = vsel %vm347_vm4, %v8619_v5, %v8614_v30 }
 0x22a   :  { %8150 = vmatmul.msk.f32.vlgmr.msra.gmra.mxu3 %vm579_vm8, %v9986_v11  ;;  %1411 = vmatpush.msrb.mxu2 %v1306_v39 }
 0x22b   :  { %1545 = vmatpush.msra.mxu3 %v1459_v49  ;;  %8132 = vmatmul.msk.f32.vlgmr.msra.gmra.mxu0 %vm579_vm8, %v9883_v31 }
 0x22c   :  { %8133 = vmatmul.msk.f32.vlgmr.msra.gmra.mxu1 %vm579_vm8, %v9883_v31  ;;  %1177 = vmatpush.msra.mxu0 %v1148_v52  ;;  %v8638_v31 = vunpack.i.l.bf16 %v8637_v27 }
 0x22d   :  { %1197 = vmatpush.msra.mxu1 %v1149_v48  ;;  %8149 = vmatmul.msk.f32.vlgmr.msra.gmra.mxu2 %vm579_vm8, %v9986_v11 }
 0x22e   :  { %1525 = vmatpush.msra.mxu2 %v1458_v13  ;;  %v8632_v32 = vpop.permute.xlu0 %8631  ;;  %v1610_v35 = vsel %vm456_vm6, %v8638_v31, %v8639_v60 }
 0x22f   :  { %v8633_v12 = vunpack.i.l.bf16 %v8632_v32  ;;  %v8634_v21 = vunpack.i.h.bf16 %v8632_v32 }
 0x231   :  { %v1456_v43 = vsel %vm402_vm5, %v8629_v16, %v8633_v12  ;;  %v1457_v19 = vsel %vm402_vm5, %v8633_v12, %v8623_v51  ;;  %v1460_v18 = vsel %vm402_vm5, %v8628_v4, %v8634_v21 }
 0x232   :  { %8154 = vmatmul.msk.f32.vlgmr.msrb.gmra.mxu3 %vm579_vm8, %v9986_v11 }
 0x233   :  { %1659 = vmatpush.msrb.mxu3 %v1611_v1  ;;  %8137 = vmatmul.msk.f32.vlgmr.msrb.gmra.mxu0 %vm579_vm8, %v9905_v47 }
 0x234   :  { %8138 = vmatmul.msk.f32.vlgmr.msrb.gmra.mxu1 %vm579_vm8, %v9905_v47  ;;  %1257 = vmatpush.msrb.mxu0 %v1152_v33  ;;  %v8652_v47 = vpop.permute.xlu1 %8651 }
 0x235   :  { %1277 = vmatpush.msrb.mxu1 %v8604_v58  ;;  %8153 = vmatmul.msk.f32.vlgmr.msrb.gmra.mxu2 %vm579_vm8, %v9986_v11  ;;  %v8654_v3 = vunpack.i.h.bf16 %v8652_v47  ;;  %v8653_v53 = vunpack.i.l.bf16 %v8652_v47 }
 0x236   :  { %1639 = vmatpush.msrb.mxu2 %v1610_v35  ;;  %v8647_v0 = vpop.permute.xlu0 %8646 }
 0x237   :  { %v8648_v6 = vunpack.i.l.bf16 %v8647_v0  ;;  %v1767_v54 = vsel %vm510_vm7, %v8654_v3, %v8658_v42  ;;  %v1766_v7 = vsel %vm510_vm7, %v8653_v53, %v8654_v3  ;;  %v8649_v62 = vunpack.i.h.bf16 %v8647_v0 }
 0x239   :  { %v1614_v10 = vsel %vm456_vm6, %v8644_v34, %v8648_v6  ;;  %v1612_v22 = vsel %vm456_vm6, %v8643_v61, %v8649_v62  ;;  %v1613_v37 = vsel %vm456_vm6, %v8649_v62, %v8644_v34 }
 0x23a   :  { %8159 = vmatmul.msk.f32.vlgmr.msra.gmra.mxu3 %vm579_vm8, %v8155_v8 }
 0x23b   :  { %1739 = vmatpush.msra.mxu3 %v8648_v6  ;;  %8142 = vmatmul.msk.f32.vlgmr.msra.gmra.mxu0 %vm579_vm8, %v9963_v40 }
 0x23c   :  { %8143 = vmatmul.msk.f32.vlgmr.msra.gmra.mxu1 %vm579_vm8, %v9963_v40  ;;  %1371 = vmatpush.msra.mxu0 %v1304_v9  ;;  %v1763_v55 = vpop.permute.xlu1 %1762 }
 0x23d   :  { %1391 = vmatpush.msra.mxu1 %v1305_v36  ;;  %8158 = vmatmul.msk.f32.vlgmr.msra.gmra.mxu2 %vm579_vm8, %v8155_v8  ;;  %v1768_v28 = vsel %vm510_vm7, %v8658_v42, %v1763_v55 }
 0x23e   :  { %1719 = vmatpush.msra.mxu2 %v1614_v10  ;;  %v1755_v59 = vpop.permute.xlu0 %1754 }
 0x23f   :  { %v1764_v2 = vsel %vm510_vm7, %v8659_v23, %v1755_v59  ;;  %v1765_v26 = vsel %vm510_vm7, %v1755_v59, %v8653_v53 }
 0x242   :  { %8164 = vmatmul.msk.f32.vlgmr.msrb.gmra.mxu3 %vm579_vm8, %v8162_v25 }
 0x243   :  { %1853 = vmatpush.msrb.mxu3 %v1767_v54  ;;  %8146 = vmatmul.msk.f32.vlgmr.msrb.gmra.mxu0 %vm579_vm8, %v9963_v40 }
 0x244   :  { %8147 = vmatmul.msk.f32.vlgmr.msrb.gmra.mxu1 %vm579_vm8, %v9963_v40  ;;  %1485 = vmatpush.msrb.mxu0 %v1456_v43  ;;  %v723_v40 = vpop.f32.mrf.mxu2 }
 0x245   :  { %1505 = vmatpush.msrb.mxu1 %v1457_v19  ;;  %8163 = vmatmul.msk.f32.vlgmr.msrb.gmra.mxu2 %vm579_vm8, %v8162_v25 }
 0x246   :  { %1833 = vmatpush.msrb.mxu2 %v1766_v7 }
 0x24a   :  { %8168 = vmatmul.msk.f32.vlgmr.msra.gmra.mxu3 %vm579_vm8, %v8162_v25 }
 0x24b   :  { %8151 = vmatmul.msk.f32.vlgmr.msra.gmra.mxu0 %vm579_vm8, %v9986_v11 }
 0x24c   :  { %8152 = vmatmul.msk.f32.vlgmr.msra.gmra.mxu1 %vm579_vm8, %v9986_v11  ;;  %1565 = vmatpush.msra.mxu0 %v1460_v18  ;;  %v803_v20 = vpop.f32.mrf.mxu2 }
 0x24d   :  { %1585 = vmatpush.msra.mxu1 %v8634_v21  ;;  %8167 = vmatmul.msk.f32.vlgmr.msra.gmra.mxu2 %vm579_vm8, %v8162_v25 }
 0x252   :  { %8173 = vmatmul.msk.f32.vlgmr.msrb.gmra.mxu3 %vm579_vm8, %v8169_v24 }
 0x253   :  { %8156 = vmatmul.msk.f32.vlgmr.msrb.gmra.mxu0 %vm579_vm8, %v8155_v8 }
 0x254   :  { %8157 = vmatmul.msk.f32.vlgmr.msrb.gmra.mxu1 %vm579_vm8, %v8155_v8  ;;  %1679 = vmatpush.msrb.mxu0 %v1612_v22 }
 0x255   :  { %1699 = vmatpush.msrb.mxu1 %v1613_v37  ;;  %8172 = vmatmul.msk.f32.vlgmr.msrb.gmra.mxu2 %vm579_vm8, %v8169_v24 }
 0x256   :  { %v640_v29 = vpop.f32.mrf.mxu3 }
 0x25b   :  { %8160 = vmatmul.msk.f32.vlgmr.msra.gmra.mxu0 %vm579_vm8, %v8155_v8 }
 0x25c   :  { %8161 = vmatmul.msk.f32.vlgmr.msra.gmra.mxu1 %vm579_vm8, %v8155_v8  ;;  %1793 = vmatpush.msra.mxu0 %v1764_v2 }
 0x25d   :  { %1813 = vmatpush.msra.mxu1 %v1765_v26 }
 0x25e   :  { %v911_v45 = vpop.f32.mrf.mxu2 }
 0x263   :  { %8165 = vmatmul.msk.f32.vlgmr.msrb.gmra.mxu0 %vm579_vm8, %v8162_v25 }
 0x264   :  { %8166 = vmatmul.msk.f32.vlgmr.msrb.gmra.mxu1 %vm579_vm8, %v8162_v25  ;;  %1873 = vmatpush.msrb.mxu0 %v1768_v28 }
 0x265   :  { %1893 = vmatpush.msrb.mxu1 %v1763_v55 }
 0x26b   :  { %8170 = vmatmul.msk.f32.vlgmr.msra.gmra.mxu0 %vm579_vm8, %v8169_v24 }
 0x26c   :  { %8171 = vmatmul.msk.f32.vlgmr.msra.gmra.mxu1 %vm579_vm8, %v8169_v24 }
 0x26f   :  { %v660_v38 = vpop.f32.mrf.mxu3 }
 0x273   :  { %8174 = vmatmul.msk.f32.vlgmr.msrb.gmra.mxu0 %vm579_vm8, %v8169_v24 }
 0x274   :  { %8175 = vmatmul.msk.f32.vlgmr.msrb.gmra.mxu1 %vm579_vm8, %v8169_v24 }
 0x277   :  { %v743_v17 = vpop.f32.mrf.mxu3 }
 0x27f   :  { %v823_v14 = vpop.f32.mrf.mxu3 }
 0x286   :  { %v1025_v11 = vpop.f32.mrf.mxu2 }
 0x287   :  { %v931_v57 = vpop.f32.mrf.mxu3 }
 0x288   :  { %v600_v63 = vpop.f32.mrf.mxu0  ;;  %v620_v44 = vpop.f32.mrf.mxu1 }
 0x289   :  { %v724_v16 = vadd.f32 %v723_v40, %v600_v63  ;;  %v744_v54 = vadd.f32 %v743_v17, %v620_v44 }
 0x290   :  { %v680_v30 = vpop.f32.mrf.mxu0  ;;  %v700_v46 = vpop.f32.mrf.mxu1 }
 0x291   :  { %v1045_v41 = vpop.f32.mrf.mxu3  ;;  %v804_v55 = vadd.f32 %v803_v20, %v680_v30 }
 0x298   :  { %v763_v4 = vpop.f32.mrf.mxu0 }
 0x299   :  { %v783_v50 = vpop.f32.mrf.mxu1  ;;  %v764_v36 = vadd.f32 %v763_v4, %v640_v29  ;;  %v824_v29 = vadd.f32 %v823_v14, %v700_v46 }
 0x29a   :  { %v784_v15 = vadd.f32 %v783_v50, %v660_v38 }
 0x29b   :  { %v976_v25 = vadd.f32 %v911_v45, %v764_v36 }
 0x29c   :  { %v977_v42 = vadd.f32 %v931_v57, %v784_v15 }
 0x29d   :  { %v10084_v51 = vpop.f32.mrf.mxu3 }
 0x2a0   :  { %v871_v39 = vpop.f32.mrf.mxu0  ;;  %v1105_v49 = vpop.f32.mrf.mxu2 }
 0x2a1   :  { %v891_v27 = vpop.f32.mrf.mxu1  ;;  %v974_v7 = vadd.f32 %v871_v39, %v724_v16 }
 0x2a2   :  { %v975_v18 = vadd.f32 %v891_v27, %v744_v54 }
 0x2a3   :  { %v1128_v59 = vadd.f32 %v1025_v11, %v974_v7 }
 0x2a4   :  { %v1129_v2 = vadd.f32 %v1045_v41, %v975_v18 }
 0x2a5   :  { %v1239_v52 = vpop.f32.mrf.mxu3 }
 0x2a8   :  { %v951_v48 = vpop.f32.mrf.mxu0  ;;  %v1219_v56 = vpop.f32.mrf.mxu2 }
 0x2a9   :  { %v971_v13 = vpop.f32.mrf.mxu1  ;;  %v978_v40 = vadd.f32 %v951_v48, %v804_v55 }
 0x2aa   :  { %v979_v17 = vadd.f32 %v971_v13, %v824_v29  ;;  %v2082_v29 = vld [vmem:[#allocation4 + $0x2d0] sm:$0xff] }
 0x2ab   :  { %v1132_v11 = vadd.f32 %v1105_v49, %v978_v40  ;;  %v2048_v40 = vld [vmem:[#allocation4 + $0x1c0] sm:$0xff] }
 0x2ac   :  { %v1133_v20 = vadd.f32 %v10084_v51, %v979_v17  ;;  %v2080_v17 = vld [vmem:[#allocation4 + $0x2c0] sm:$0xff] }
 0x2ad   :  { %v1353_v60 = vpop.f32.mrf.mxu3 }
 0x2b0   :  { %v1065_v32 = vpop.f32.mrf.mxu0  ;;  %v1333_v58 = vpop.f32.mrf.mxu2 }
 0x2b1   :  { %v1085_v61 = vpop.f32.mrf.mxu1  ;;  %v1130_v53 = vadd.f32 %v1065_v32, %v976_v25 }
 0x2b2   :  { %v1131_v43 = vadd.f32 %v1085_v61, %v977_v42  ;;  %v1908_v61 = vpop.permute.xlu2 %1907 }
 0x2b3   :  { %v1284_v24 = vadd.f32 %v1219_v56, %v1130_v53 }
 0x2b4   :  { %v1285_v37 = vadd.f32 %v1239_v52, %v1131_v43 }
 0x2b5   :  { %v10088_v35 = vpop.f32.mrf.mxu3 }
 0x2b8   :  { %v1179_v31 = vpop.f32.mrf.mxu0  ;;  %v10086_v1 = vpop.f32.mrf.mxu2 }
 0x2b9   :  { %v1199_v33 = vpop.f32.mrf.mxu1  ;;  %v1282_v28 = vadd.f32 %v1179_v31, %v1128_v59  ;;  %v2084_v59 = vld [vmem:[#allocation4 + $0x2e0] sm:$0xff] }
 0x2ba   :  { %v1283_v38 = vadd.f32 %v1199_v33, %v1129_v2  ;;  %v2018_v2 = vld [vmem:[#allocation4 + $0xd0] sm:$0xff] }
 0x2bb   :  { %v1436_v4 = vadd.f32 %v1333_v58, %v1282_v28 }
 0x2bc   :  { %v1437_v56 = vadd.f32 %v1353_v60, %v1283_v38  ;;  %v2016_v38 = vld [vmem:[#allocation4 + $0xc0] sm:$0xff] }
 0x2bd   :  { %v1547_v8 = vpop.f32.mrf.mxu3 }
 0x2c0   :  { %v1259_v0 = vpop.f32.mrf.mxu0  ;;  %v1527_v6 = vpop.f32.mrf.mxu2 }
 0x2c1   :  { %v1279_v5 = vpop.f32.mrf.mxu1  ;;  %v1286_v46 = vadd.f32 %v1259_v0, %v1132_v11 }
 0x2c2   :  { %v1287_v13 = vadd.f32 %v1279_v5, %v1133_v20  ;;  %v2010_v20 = vld [vmem:[#allocation4 + $0x90] sm:$0xff] }
 0x2c3   :  { %v1440_v49 = vadd.f32 %v10086_v1, %v1286_v46 }
 0x2c4   :  { %v1441_v36 = vadd.f32 %v10088_v35, %v1287_v13  ;;  %v2074_v13 = vld [vmem:[#allocation4 + $0x290] sm:$0xff] }
 0x2c5   :  { %v1661_v10 = vpop.f32.mrf.mxu3 }
 0x2c8   :  { %v1373_v34 = vpop.f32.mrf.mxu0  ;;  %v1641_v9 = vpop.f32.mrf.mxu2 }
 0x2c9   :  { %v1393_v47 = vpop.f32.mrf.mxu1  ;;  %v1438_v23 = vadd.f32 %v1373_v34, %v1284_v24  ;;  %v2086_v24 = vld [vmem:[#allocation4 + $0x2f0] sm:$0xff] }
 0x2ca   :  { %v1439_v26 = vadd.f32 %v1393_v47, %v1285_v37  ;;  %v2052_v37 = vld [vmem:[#allocation4 + $0x1e0] sm:$0xff]  ;;  %2202 = vmatpush.msra.mxu0 %v2086_v24  ;;  %v1998_v24 = vld [vmem:[#allocation4 + $0x30] sm:$0xff] }
 0x2cb   :  { %v1592_v63 = vadd.f32 %v1527_v6, %v1438_v23 }
 0x2cc   :  { %v1593_v44 = vadd.f32 %v1547_v8, %v1439_v26  ;;  %v2050_v26 = vld [vmem:[#allocation4 + $0x1d0] sm:$0xff]  ;;  %2203 = vmatpush.msra.mxu0 %v2084_v59  ;;  %v2365_v59 = vld [vmem:[%s11782_s6 + $0x8] sm:$0xff] }
 0x2cd   :  { %v1741_v21 = vpop.f32.mrf.mxu3 }
 0x2ce   :  { %2204 = vmatpush.msra.mxu0 %v2082_v29  ;;  %v2026_v29 = vld [vmem:[#allocation4 + $0x110] sm:$0xff] }
 0x2d0   :  { %v1487_v3 = vpop.f32.mrf.mxu0  ;;  %v1721_v19 = vpop.f32.mrf.mxu2  ;;  %2205 = vmatpush.msra.mxu0 %v2080_v17  ;;  %v2024_v17 = vld [vmem:[#allocation4 + $0x100] sm:$0xff] }
 0x2d1   :  { %v1507_v12 = vpop.f32.mrf.mxu1  ;;  %v1590_v32 = vadd.f32 %v1487_v3, %v1436_v4  ;;  %v2078_v4 = vld [vmem:[#allocation4 + $0x2b0] sm:$0xff] }
 0x2d2   :  { %v1591_v14 = vadd.f32 %v1507_v12, %v1437_v56  ;;  %v2044_v56 = vld [vmem:[#allocation4 + $0x1a0] sm:$0xff]  ;;  %2206 = vmatpush.msra.mxu0 %v2078_v4  ;;  %v2150_v4 = vld [vmem:[#allocation4 + $0x4f0] sm:$0x7f] }
 0x2d3   :  { %v1744_v33 = vadd.f32 %v1641_v9, %v1590_v32  ;;  %v2076_v32 = vld [vmem:[#allocation4 + $0x2a0] sm:$0xff] }
 0x2d4   :  { %v1745_v6 = vadd.f32 %v1661_v10, %v1591_v14  ;;  %v2042_v14 = vld [vmem:[#allocation4 + $0x190] sm:$0xff]  ;;  %2207 = vmatpush.msra.mxu0 %v2076_v32 }
 0x2d5   :  { %v1855_v27 = vpop.f32.mrf.mxu3  ;;  %v2094_v32 = vld [vmem:[#allocation4 + $0x330] sm:$0xff] }
 0x2d6   :  { %2208 = vmatpush.msra.mxu0 %v2074_v13  ;;  %v2049_v13 = vld [vmem:[#allocation4 + $0x1c8] sm:$0xff] }
 0x2d8   :  { %v1567_v62 = vpop.f32.mrf.mxu0  ;;  %v1835_v45 = vpop.f32.mrf.mxu2 }
 0x2d9   :  { %v1587_v22 = vpop.f32.mrf.mxu1  ;;  %v1594_v15 = vadd.f32 %v1567_v62, %v1440_v49  ;;  %v2054_v62 = vld [vmem:[#allocation4 + $0x1f0] sm:$0xff]  ;;  %v2040_v49 = vld [vmem:[#allocation4 + $0x180] sm:$0xff] }
 0x2da   :  { %v1595_v3 = vadd.f32 %v1587_v22, %v1441_v36  ;;  %2182 = vmatpush.msra.mxu3 %v2054_v62  ;;  %v2020_v22 = vld [vmem:[#allocation4 + $0xe0] sm:$0xff]  ;;  %v2106_v62 = vld [vmem:[#allocation4 + $0x390] sm:$0xff] }
 0x2db   :  { %v1748_v12 = vadd.f32 %v1721_v19, %v1594_v15  ;;  %v2072_v36 = vld [vmem:[#allocation4 + $0x280] sm:$0xff] }
 0x2dc   :  { %v1749_v25 = vadd.f32 %v1741_v21, %v1595_v3  ;;  %v2022_v21 = vld [vmem:[#allocation4 + $0xf0] sm:$0xff]  ;;  %2183 = vmatpush.msra.mxu3 %v2052_v37  ;;  %v2112_v15 = vld [vmem:[#allocation4 + $0x3c0] sm:$0xff]  ;;  %2209 = vmatpush.msra.mxu0 %v2072_v36 }
 0x2dd   :  { %2162 = vmatpush.msra.mxu2 %v2022_v21  ;;  %v2064_v21 = vld [vmem:[#allocation4 + $0x240] sm:$0xff]  ;;  %v2062_v37 = vld [vmem:[#allocation4 + $0x230] sm:$0xff] }
 0x2de   :  { %2184 = vmatpush.msra.mxu3 %v2050_v26  ;;  %v2060_v26 = vld [vmem:[#allocation4 + $0x220] sm:$0xff] }
 0x2df   :  { %2163 = vmatpush.msra.mxu2 %v2020_v22  ;;  %v2030_v22 = vld [vmem:[#allocation4 + $0x130] sm:$0xff]  ;;  %v2088_v36 = vld [vmem:[#allocation4 + $0x300] sm:$0xff] }
 0x2e0   :  { %v1681_v57 = vpop.f32.mrf.mxu0  ;;  %2185 = vmatpush.msra.mxu3 %v2048_v40  ;;  %v2100_v40 = vld [vmem:[#allocation4 + $0x360] sm:$0xff] }
 0x2e1   :  { %v1746_v50 = vadd.f32 %v1681_v57, %v1592_v63  ;;  %v1701_v39 = vpop.f32.mrf.mxu1  ;;  %2164 = vmatpush.msra.mxu2 %v2018_v2  ;;  %v2014_v57 = vld [vmem:[#allocation4 + $0xb0] sm:$0xff]  ;;  %v2028_v2 = vld [vmem:[#allocation4 + $0x120] sm:$0xff] }
 0x2e2   :  { %v1747_v52 = vadd.f32 %v1701_v39, %v1593_v44 }
 0x2e3   :  { %v1900_v41 = vadd.f32 %v1835_v45, %v1746_v50  ;;  %v2046_v45 = vld [vmem:[#allocation4 + $0x1b0] sm:$0xff]  ;;  %2165 = vmatpush.msra.mxu2 %v2016_v38 }
 0x2e4   :  { %v1901_v30 = vadd.f32 %v1855_v27, %v1747_v52  ;;  %v2118_v50 = vld [vmem:[#allocation4 + $0x3f0] sm:$0xff]  ;;  %v2012_v27 = vld [vmem:[#allocation4 + $0xa0] sm:$0xff]  ;;  %2186 = vmatpush.msra.mxu3 %v2046_v45 }
 0x2e5   :  { %v1912_v48 = vadd.f32 %v1908_v61, %v1900_v41  ;;  %2166 = vmatpush.msra.mxu2 %v2014_v57  ;;  %v2116_v41 = vld [vmem:[#allocation4 + $0x3e0] sm:$0xff]  ;;  %2222 = vmatpush.msra.mxu1 %v2118_v50  ;;  %v2058_v38 = vld [vmem:[#allocation4 + $0x210] sm:$0xff]  ;;  %v2023_v50 = vld [vmem:[#allocation4 + $0xf8] sm:$0xff] }
 0x2e6   :  { %v10091_v31 = vadd.f32 %v1908_v61, %v1901_v30  ;;  %2187 = vmatpush.msra.mxu3 %v2044_v56  ;;  %v2056_v57 = vld [vmem:[#allocation4 + $0x200] sm:$0xff]  ;;  %v2098_v45 = vld [vmem:[#allocation4 + $0x350] sm:$0xff] }
 0x2e7   :  { %v1918_v58 = vmax.f32 %v1912_v48, 0.0  ;;  %2167 = vmatpush.msra.mxu2 %v2012_v27  ;;  %2223 = vmatpush.msra.mxu1 %v2116_v41  ;;  %v2096_v27 = vld [vmem:[#allocation4 + $0x340] sm:$0xff]  ;;  %v2146_v41 = vld [vmem:[#allocation4 + $0x4d0] sm:$0xff] }
 0x2e8   :  { %v1919_v8 = vmax.f32 %v10091_v31, 0.0  ;;  %v1795_v60 = vpop.f32.mrf.mxu0  ;;  %2188 = vmatpush.msra.mxu3 %v2042_v14  ;;  %v2070_v31 = vld [vmem:[#allocation4 + $0x270] sm:$0xff]  ;;  %v2148_v56 = vld [vmem:[#allocation4 + $0x4e0] sm:$0xff]  ;;  %v2051_v14 = vld [vmem:[#allocation4 + $0x1d8] sm:$0xff] }
 0x2e9   :  { %v1898_v34 = vadd.f32 %v1795_v60, %v1744_v33  ;;  %v1815_v47 = vpop.f32.mrf.mxu1  ;;  %v2114_v33 = vld [vmem:[#allocation4 + $0x3d0] sm:$0xff]  ;;  %v2008_v60 = vld [vmem:[#allocation4 + $0x80] sm:$0xff]  ;;  %2168 = vmatpush.msra.mxu2 %v2010_v20  ;;  %2210 = vmatpush.msra.mxu0 %v2070_v31  ;;  %v2019_v20 = vld [vmem:[#allocation4 + $0xd8] sm:$0xff] }
 0x2ea   :  { %v1899_v51 = vadd.f32 %v1815_v47, %v1745_v6  ;;  %v8665_v0 = vpack.i.bf16 %v1919_v8, %v1918_v58  ;;  %2224 = vmatpush.msra.mxu1 %v2114_v33  ;;  %2189 = vmatpush.msra.mxu3 %v2040_v49  ;;  %v2090_v33 = vld [vmem:[#allocation4 + $0x310] sm:$0xff]  ;;  %v2015_v49 = vld [vmem:[#allocation4 + $0xb8] sm:$0xff] }
 0x2eb   :  { %v10098_v5 = vadd.f32 %v1908_v61, %v1898_v34  ;;  %2169 = vmatpush.msra.mxu2 %v2008_v60  ;;  %v2142_v60 = vld [vmem:[#allocation4 + $0x4b0] sm:$0xff] }
 0x2ec   :  { %v10100_v9 = vadd.f32 %v1908_v61, %v1899_v51  ;;  %8666 = vrot.lane.b32.xlu1 %v8665_v0, %s11827_s2  ;;  %v2006_v51 = vld [vmem:[#allocation4 + $0x70] sm:$0xff]  ;;  %2225 = vmatpush.msra.mxu1 %v2112_v15  ;;  %v2045_v15 = vld [vmem:[#allocation4 + $0x1a8] sm:$0xff] }
 0x2ed   :  { %v1916_v10 = vmax.f32 %v10098_v5, 0.0  ;;  %v2038_v0 = vld [vmem:[#allocation4 + $0x170] sm:$0xff]  ;;  %2170 = vmatpush.msra.mxu2 %v2006_v51  ;;  %v2140_v51 = vld [vmem:[#allocation4 + $0x4a0] sm:$0xff] }
 0x2ee   :  { %v1917_v1 = vmax.f32 %v10100_v9, 0.0  ;;  %v2036_v9 = vld [vmem:[#allocation4 + $0x160] sm:$0xff]  ;;  %2190 = vmatpush.msra.mxu3 %v2038_v0  ;;  %v2013_v0 = vld [vmem:[#allocation4 + $0xa8] sm:$0xff]  ;;  %v2138_v31 = vld [vmem:[#allocation4 + $0x490] sm:$0xff] }
 0x2f0   :  { %v1875_v42 = vpop.f32.mrf.mxu0  ;;  %v8660_v35 = vpack.i.bf16 %v1917_v1, %v1916_v10  ;;  %2191 = vmatpush.msra.mxu3 %v2036_v9  ;;  %v2085_v9 = vld [vmem:[#allocation4 + $0x2e8] sm:$0xff] }
 0x2f1   :  { %v1902_v16 = vadd.f32 %v1875_v42, %v1748_v12  ;;  %v1895_v53 = vpop.f32.mrf.mxu1  ;;  %v2110_v12 = vld [vmem:[#allocation4 + $0x3b0] sm:$0xff] }
 0x2f2   :  { %v1903_v54 = vadd.f32 %v1895_v53, %v1749_v25  ;;  %8661 = vrot.lane.b32.xlu0 %v8660_v35, %s11827_s2  ;;  %v2002_v25 = vld [vmem:[#allocation4 + $0x50] sm:$0xff]  ;;  %2226 = vmatpush.msra.mxu1 %v2110_v12  ;;  %v2000_v53 = vld [vmem:[#allocation4 + $0x40] sm:$0xff]  ;;  %v2041_v12 = vld [vmem:[#allocation4 + $0x188] sm:$0xff] }
 0x2f3   :  { %v1914_v43 = vadd.f32 %v1908_v61, %v1902_v16  ;;  %v2034_v42 = vld [vmem:[#allocation4 + $0x150] sm:$0xff]  ;;  %v2108_v16 = vld [vmem:[#allocation4 + $0x3a0] sm:$0xff] }
 0x2f4   :  { %v10110_v7 = vadd.f32 %v1908_v61, %v1903_v54  ;;  %v2066_v35 = vld [vmem:[#allocation4 + $0x250] sm:$0xff]  ;;  %2192 = vmatpush.msra.mxu3 %v2034_v42  ;;  %2227 = vmatpush.msra.mxu1 %v2108_v16  ;;  %v2039_v16 = vld [vmem:[#allocation4 + $0x178] sm:$0xff] }
 0x2f5   :  { %v10112_v18 = vmax.f32 %v1914_v43, 0.0  ;;  %v2032_v43 = vld [vmem:[#allocation4 + $0x140] sm:$0xff]  ;;  %v2134_v42 = vld [vmem:[#allocation4 + $0x470] sm:$0xff] }
 0x2f6   :  { %v1921_v19 = vmax.f32 %v10110_v7, 0.0  ;;  %2193 = vmatpush.msra.mxu3 %v2032_v43  ;;  %v2104_v7 = vld [vmem:[#allocation4 + $0x380] sm:$0xff]  ;;  %2228 = vmatpush.msra.mxu1 %v2106_v62  ;;  %v2005_v43 = vld [vmem:[#allocation4 + $0x68] sm:$0xff]  ;;  %v2079_v62 = vld [vmem:[#allocation4 + $0x2b8] sm:$0xff] }
 0x2f7   :  { %1935 = vrot.lane.b32.xlu2 %v10112_v18, %s11827_s2 }
 0x2f8   :  { %2194 = vmatpush.msra.mxu3 %v2030_v22  ;;  %2229 = vmatpush.msra.mxu1 %v2104_v7  ;;  %v2003_v22 = vld [vmem:[#allocation4 + $0x58] sm:$0xff]  ;;  %v2128_v7 = vld [vmem:[#allocation4 + $0x440] sm:$0xff] }
 0x2fa   :  { %1952 = vrot.lane.b32.xlu0 %v1921_v19, %s11827_s2  ;;  %2195 = vmatpush.msra.mxu3 %v2028_v2  ;;  %v2075_v2 = vld [vmem:[#allocation4 + $0x298] sm:$0xff] }
 0x2fc   :  { %2196 = vmatpush.msra.mxu3 %v2026_v29  ;;  %v2073_v29 = vld [vmem:[#allocation4 + $0x288] sm:$0xff] }
 0x2fe   :  { %2197 = vmatpush.msra.mxu3 %v2024_v17  ;;  %v2029_v17 = vld [vmem:[#allocation4 + $0x128] sm:$0xff] }
 0x300   :  { %2262 = vmatpush.msrb.mxu3 %v2023_v50  ;;  %v2027_v50 = vld [vmem:[#allocation4 + $0x118] sm:$0xff] }
 0x351   :  { %v10125_v61 = vpop.permute.xlu2 %1935 }
 0x35e   :  { %v8667_v23 = vpop.permute.xlu1 %8666 }
 0x35f   :  { %v8669_v55 = vunpack.i.h.bf16 %v8667_v23  ;;  %v8668_v28 = vunpack.i.l.bf16 %v8667_v23  ;;  %v1996_v23 = vld [vmem:[#allocation4 + $0x20] sm:$0xff] }
 0x361   :  { %v1939_v63 = vsel %vm151_vm0, %v8668_v28, %v8669_v55  ;;  %v1940_v30 = vsel %vm151_vm0, %v8669_v55, %v10125_v61  ;;  %v2102_v55 = vld [vmem:[#allocation4 + $0x370] sm:$0xff] }
 0x362   :  { %v10121_v44 = vmax.f32 %v1918_v58, %v1939_v63  ;;  %v10141_v34 = vmax.f32 %v1919_v8, %v1940_v30  ;;  %v2004_v8 = vld [vmem:[#allocation4 + $0x60] sm:$0xff]  ;;  %2230 = vmatpush.msra.mxu1 %v2102_v55  ;;  %v1999_v55 = vld [vmem:[#allocation4 + $0x38] sm:$0xff] }
 0x363   :  { %2171 = vmatpush.msra.mxu2 %v2004_v8  ;;  %v1992_v63 = vld [vmem:[#allocation4] sm:$0xff]  ;;  %v2011_v8 = vld [vmem:[#allocation4 + $0x98] sm:$0xff] }
 0x364   :  { %1969 = vrot.lane.b32.xlu2 %v10121_v44, %s11810_s24  ;;  %v8662_v39 = vpop.permute.xlu0 %8661  ;;  %2231 = vmatpush.msra.mxu1 %v2100_v40  ;;  %v2092_v30 = vld [vmem:[#allocation4 + $0x320] sm:$0xff] }
 0x365   :  { %v8664_v52 = vunpack.i.h.bf16 %v8662_v39  ;;  %v8663_v11 = vunpack.i.l.bf16 %v8662_v39  ;;  %2172 = vmatpush.msra.mxu2 %v2002_v25  ;;  %v2055_v39 = vld [vmem:[#allocation4 + $0x1f8] sm:$0xff]  ;;  %v2124_v40 = vld [vmem:[#allocation4 + $0x420] sm:$0xff] }
 0x366   :  { %2232 = vmatpush.msra.mxu1 %v2098_v45  ;;  %v2083_v25 = vld [vmem:[#allocation4 + $0x2d8] sm:$0xff]  ;;  %v2122_v45 = vld [vmem:[#allocation4 + $0x410] sm:$0xff] }
 0x367   :  { %v1937_v46 = vsel %vm151_vm0, %v8663_v11, %v8664_v52  ;;  %v1938_v48 = vsel %vm151_vm0, %v8664_v52, %v8668_v28  ;;  %2173 = vmatpush.msra.mxu2 %v2000_v53  ;;  %v1994_v28 = vld [vmem:[#allocation4 + $0x10] sm:$0xff]  ;;  %v2021_v52 = vld [vmem:[#allocation4 + $0xe8] sm:$0xff] }
 0x368   :  { %v10133_v58 = vmax.f32 %v1916_v10, %v1937_v46  ;;  %v10137_v6 = vmax.f32 %v1917_v1, %v1938_v48  ;;  %v2068_v1 = vld [vmem:[#allocation4 + $0x260] sm:$0xff]  ;;  %2233 = vmatpush.msra.mxu1 %v2096_v27  ;;  %v2053_v11 = vld [vmem:[#allocation4 + $0x1e8] sm:$0xff]  ;;  %2263 = vmatpush.msrb.mxu3 %v2021_v52 }
 0x369   :  { %2211 = vmatpush.msra.mxu0 %v2068_v1  ;;  %2174 = vmatpush.msra.mxu2 %v1998_v24  ;;  %v2144_v46 = vld [vmem:[#allocation4 + $0x4c0] sm:$0xff]  ;;  %v2017_v48 = vld [vmem:[#allocation4 + $0xc8] sm:$0xff]  ;;  %v2130_v24 = vld [vmem:[#allocation4 + $0x450] sm:$0xff] }
 0x36a   :  { %v8670_v47 = vpack.i.bf16 %v10137_v6, %v10133_v58  ;;  %2234 = vmatpush.msra.mxu1 %v2094_v32  ;;  %2264 = vmatpush.msrb.mxu3 %v2019_v20  ;;  %v2009_v1 = vld [vmem:[#allocation4 + $0x88] sm:$0xff]  ;;  %v2120_v27 = vld [vmem:[#allocation4 + $0x400] sm:$0xff] }
 0x36b   :  { %2212 = vmatpush.msra.mxu0 %v2066_v35  ;;  %2175 = vmatpush.msra.mxu2 %v1996_v23  ;;  %v2007_v35 = vld [vmem:[#allocation4 + $0x78] sm:$0xff]  ;;  %v2081_v53 = vld [vmem:[#allocation4 + $0x2c8] sm:$0xff] }
 0x36c   :  { %1971 = vrot.lane.b32.xlu2 %v10141_v34, %s11810_s24  ;;  %v1953_v5 = vpop.permute.xlu0 %1952  ;;  %8671 = vrot.lane.b32.xlu1 %v8670_v47, %s11810_s24  ;;  %v2047_v47 = vld [vmem:[#allocation4 + $0x1b8] sm:$0xff]  ;;  %v2033_v23 = vld [vmem:[#allocation4 + $0x148] sm:$0xff] }
 0x36d   :  { %v1954_v3 = vsel %vm151_vm0, %v10125_v61, %v1953_v5  ;;  %v1958_v54 = vmax.f32 %v1921_v19, %v1953_v5  ;;  %2213 = vmatpush.msra.mxu0 %v2064_v21  ;;  %v2364_v19 = vld [vmem:[%s11782_s6] sm:$0xff]  ;;  %2176 = vmatpush.msra.mxu2 %v1994_v28  ;;  %v2087_v5 = vld [vmem:[#allocation4 + $0x2f8] sm:$0xff]  ;;  %v2037_v21 = vld [vmem:[#allocation4 + $0x168] sm:$0xff] }
 0x36e   :  { %v1957_v10 = vmax.f32 %v10112_v18, %v1954_v3  ;;  %2235 = vmatpush.msra.mxu1 %v2092_v30  ;;  %2265 = vmatpush.msrb.mxu3 %v2017_v48  ;;  %v2043_v3 = vld [vmem:[#allocation4 + $0x198] sm:$0xff]  ;;  %v2025_v52 = vld [vmem:[#allocation4 + $0x108] sm:$0xff] }
 0x36f   :  { %2214 = vmatpush.msra.mxu0 %v2062_v37  ;;  %2177 = vmatpush.msra.mxu2 %v1992_v63  ;;  %v2035_v37 = vld [vmem:[#allocation4 + $0x158] sm:$0xff]  ;;  %v1997_v63 = vld [vmem:[#allocation4 + $0x28] sm:$0xff] }
 0x370   :  { %1973 = vrot.lane.b32.xlu0 %v1957_v10, %s11810_s24  ;;  %2236 = vmatpush.msra.mxu1 %v2090_v33  ;;  %v2136_v10 = vld [vmem:[#allocation4 + $0x480] sm:$0xff]  ;;  %v2031_v28 = vld [vmem:[#allocation4 + $0x138] sm:$0xff] }
 0x371   :  { %2215 = vmatpush.msra.mxu0 %v2060_v26  ;;  %8176 = vmatpush.msk.msrb.mxu2 %vm2155_vm9, %v2150_v4  ;;  %v2126_v26 = vld [vmem:[#allocation4 + $0x430] sm:$0xff]  ;;  %v1995_v4 = vld [vmem:[#allocation4 + $0x18] sm:$0xff] }
 0x372   :  { %2266 = vmatpush.msrb.mxu3 %v2015_v49  ;;  %2237 = vmatpush.msra.mxu1 %v2088_v36  ;;  %v2063_v30 = vld [vmem:[#allocation4 + $0x238] sm:$0xff] }
 0x373   :  { %2216 = vmatpush.msra.mxu0 %v2058_v38  ;;  %2243 = vmatpush.msrb.mxu2 %v2148_v56  ;;  %v1993_v56 = vld [vmem:[#allocation4 + $0x8] sm:$0xff]  ;;  %v2059_v48 = vld [vmem:[#allocation4 + $0x218] sm:$0xff] }
 0x374   :  { %1975 = vrot.lane.b32.xlu1 %v1958_v54, %s11810_s24  ;;  %2267 = vmatpush.msrb.mxu3 %v2013_v0  ;;  %v2132_v54 = vld [vmem:[#allocation4 + $0x460] sm:$0xff]  ;;  %s11860_s24 = smov 103  }
 0x375   :  { %2217 = vmatpush.msra.mxu0 %v2056_v57  ;;  %2244 = vmatpush.msrb.mxu2 %v2146_v41  ;;  %v2071_v57 = vld [vmem:[#allocation4 + $0x278] sm:$0xff]  ;;  %v2065_v41 = vld [vmem:[#allocation4 + $0x248] sm:$0xff] }
 0x376   :  { %2302 = vmatpush.msrb.mxu1 %v2087_v5  ;;  %2268 = vmatpush.msrb.mxu3 %v2011_v8 }
 0x377   :  { %2282 = vmatpush.msrb.mxu0 %v2055_v39  ;;  %2245 = vmatpush.msrb.mxu2 %v2144_v46  ;;  %v2069_v39 = vld [vmem:[#allocation4 + $0x268] sm:$0xff] }
 0x378   :  { %2373 = vperm.xlu0 %8542, %v2365_v59   ;;  %2303 = vmatpush.msrb.mxu1 %v2085_v9  ;;  %v2077_v59 = vld [vmem:[#allocation4 + $0x2a8] sm:$0xff] }
 0x379   :  { %2283 = vmatpush.msrb.mxu0 %v2053_v11  ;;  %2246 = vmatpush.msrb.mxu2 %v2142_v60  ;;  %v2067_v11 = vld [vmem:[#allocation4 + $0x258] sm:$0xff]  ;;  %v2061_v46 = vld [vmem:[#allocation4 + $0x228] sm:$0xff] }
 0x37a   :  { %2269 = vmatpush.msrb.mxu3 %v2009_v1  ;;  %2304 = vmatpush.msrb.mxu1 %v2083_v25  ;;  %v2149_v9 = vld [vmem:[#allocation4 + $0x4e8] sm:$0xff]  ;;  %v2147_v1 = vld [vmem:[#allocation4 + $0x4d8] sm:$0xff] }
 0x37b   :  { %2284 = vmatpush.msrb.mxu0 %v2051_v14  ;;  %2247 = vmatpush.msrb.mxu2 %v2140_v51  ;;  %v2145_v25 = vld [vmem:[#allocation4 + $0x4c8] sm:$0xff] }
 0x37c   :  { %2368 = vperm.xlu1 %8543, %v2364_v19   ;;  %2270 = vmatpush.msrb.mxu3 %v2007_v35  ;;  %v2001_v19 = vld [vmem:[#allocation4 + $0x48] sm:$0xff]  ;;  %v2111_v35 = vld [vmem:[#allocation4 + $0x3b8] sm:$0xff] }
 0x37d   :  { %2285 = vmatpush.msrb.mxu0 %v2049_v13  ;;  %2248 = vmatpush.msrb.mxu2 %v2138_v31  ;;  %v2057_v13 = vld [vmem:[#allocation4 + $0x208] sm:$0xff]  ;;  %v2151_v31 = vld [vmem:[#allocation4 + $0x4f8] sm:$0x7f] }
 0x37e   :  { %2305 = vmatpush.msrb.mxu1 %v2081_v53  ;;  %2271 = vmatpush.msrb.mxu3 %v2005_v43  ;;  %v2109_v53 = vld [vmem:[#allocation4 + $0x3a8] sm:$0xff]  ;;  %v2107_v43 = vld [vmem:[#allocation4 + $0x398] sm:$0xff] }
 0x37f   :  { %2286 = vmatpush.msrb.mxu0 %v2047_v47  ;;  %2249 = vmatpush.msrb.mxu2 %v2136_v10  ;;  %v2115_v10 = vld [vmem:[#allocation4 + $0x3d8] sm:$0xff] }
 0x380   :  { %2306 = vmatpush.msrb.mxu1 %v2079_v62  ;;  %2272 = vmatpush.msrb.mxu3 %v2003_v22  ;;  %v2103_v62 = vld [vmem:[#allocation4 + $0x378] sm:$0xff]  ;;  %v2101_v22 = vld [vmem:[#allocation4 + $0x368] sm:$0xff] }
 0x381   :  { %2287 = vmatpush.msrb.mxu0 %v2045_v15  ;;  %2250 = vmatpush.msrb.mxu2 %v2134_v42  ;;  %v2119_v15 = vld [vmem:[#allocation4 + $0x3f8] sm:$0xff] }
 0x382   :  { %2307 = vmatpush.msrb.mxu1 %v2077_v59  ;;  %2273 = vmatpush.msrb.mxu3 %v2001_v19  ;;  %v2099_v59 = vld [vmem:[#allocation4 + $0x358] sm:$0xff]  ;;  %v2097_v19 = vld [vmem:[#allocation4 + $0x348] sm:$0xff] }
 0x383   :  { %2288 = vmatpush.msrb.mxu0 %v2043_v3  ;;  %2251 = vmatpush.msrb.mxu2 %v2132_v54  ;;  %v2117_v3 = vld [vmem:[#allocation4 + $0x3e8] sm:$0xff] }
 0x384   :  { %2308 = vmatpush.msrb.mxu1 %v2075_v2  ;;  %2274 = vmatpush.msrb.mxu3 %v1999_v55  ;;  %v2141_v54 = vld [vmem:[#allocation4 + $0x4a8] sm:$0xff]  ;;  %v2095_v2 = vld [vmem:[#allocation4 + $0x338] sm:$0xff] }
 0x385   :  { %2289 = vmatpush.msrb.mxu0 %v2041_v12  ;;  %2252 = vmatpush.msrb.mxu2 %v2130_v24  ;;  %v2113_v12 = vld [vmem:[#allocation4 + $0x3c8] sm:$0xff]  ;;  %v2135_v24 = vld [vmem:[#allocation4 + $0x478] sm:$0xff] }
 0x386   :  { %2309 = vmatpush.msrb.mxu1 %v2073_v29  ;;  %2275 = vmatpush.msrb.mxu3 %v1997_v63  ;;  %v2093_v55 = vld [vmem:[#allocation4 + $0x328] sm:$0xff]  ;;  %v2091_v29 = vld [vmem:[#allocation4 + $0x318] sm:$0xff] }
 0x387   :  { %2290 = vmatpush.msrb.mxu0 %v2039_v16  ;;  %2253 = vmatpush.msrb.mxu2 %v2128_v7  ;;  %v2143_v16 = vld [vmem:[#allocation4 + $0x4b8] sm:$0xff]  ;;  %v2121_v63 = vld [vmem:[#allocation4 + $0x408] sm:$0xff] }
 0x388   :  { %2310 = vmatpush.msrb.mxu1 %v2071_v57  ;;  %2276 = vmatpush.msrb.mxu3 %v1995_v4  ;;  %v2131_v7 = vld [vmem:[#allocation4 + $0x458] sm:$0xff] }
 0x389   :  { %2291 = vmatpush.msrb.mxu0 %v2037_v21  ;;  %2254 = vmatpush.msrb.mxu2 %v2126_v26  ;;  %v2137_v21 = vld [vmem:[#allocation4 + $0x488] sm:$0xff]  ;;  %v2127_v26 = vld [vmem:[#allocation4 + $0x438] sm:$0xff] }
 0x38a   :  { %2311 = vmatpush.msrb.mxu1 %v2069_v39  ;;  %2277 = vmatpush.msrb.mxu3 %v1993_v56 }
 0x38b   :  { %2292 = vmatpush.msrb.mxu0 %v2035_v37  ;;  %2255 = vmatpush.msrb.mxu2 %v2124_v40  ;;  %v2133_v37 = vld [vmem:[#allocation4 + $0x468] sm:$0xff] }
 0x38c   :  { %2312 = vmatpush.msrb.mxu1 %v2067_v11  ;;  %v2089_v40 = vld [vmem:[#allocation4 + $0x308] sm:$0xff]  ;;  %v2362_v11 = vld [vmem:[%s11781_s5] sm:$0xff] }
 0x38d   :  { %2293 = vmatpush.msrb.mxu0 %v2033_v23  ;;  %2256 = vmatpush.msrb.mxu2 %v2122_v45  ;;  %v2129_v23 = vld [vmem:[#allocation4 + $0x448] sm:$0xff] }
 0x38e   :  { %2313 = vmatpush.msrb.mxu1 %v2065_v41 }
 0x38f   :  { %2294 = vmatpush.msrb.mxu0 %v2031_v28  ;;  %2257 = vmatpush.msrb.mxu2 %v2120_v27  ;;  %v2125_v28 = vld [vmem:[#allocation4 + $0x428] sm:$0xff] }
 0x390   :  { %2314 = vmatpush.msrb.mxu1 %v2063_v30 }
 0x391   :  { %2295 = vmatpush.msrb.mxu0 %v2029_v17 }
 0x392   :  { %2315 = vmatpush.msrb.mxu1 %v2061_v46 }
 0x393   :  { %2296 = vmatpush.msrb.mxu0 %v2027_v50 }
 0x394   :  { %2316 = vmatpush.msrb.mxu1 %v2059_v48 }
 0x395   :  { %2297 = vmatpush.msrb.mxu0 %v2025_v52 }
 0x396   :  { %2317 = vmatpush.msrb.mxu1 %v2057_v13 }
 0x3be   :  { %v1970_v38 = vpop.permute.xlu2 %1969 }
 0x3c6   :  { %v1972_v32 = vpop.permute.xlu2 %1971 }
 0x3c7   :  { %v1979_v20 = vsel %vm249_vm2, %v1970_v38, %v1972_v32 }
 0x3c8   :  { %v1989_v14 = vmax.f32 %v10121_v44, %v1979_v20 }
 0x3ca   :  { %2218 = vmatmul.f32.vlgmr.msra.gmra.mxu0 %v1989_v14 }
 0x3de   :  { %v8672_v33 = vpop.permute.xlu1 %8671 }
 0x3df   :  { %v8674_v60 = vunpack.i.h.bf16 %v8672_v33  ;;  %v8673_v49 = vunpack.i.l.bf16 %v8672_v33 }
 0x3e1   :  { %v1978_v47 = vsel %vm249_vm2, %v8674_v60, %v1970_v38  ;;  %v1977_v36 = vsel %vm249_vm2, %v8673_v49, %v8674_v60  ;;  %v2123_v38 = vld [vmem:[#allocation4 + $0x418] sm:$0xff] }
 0x3e2   :  { %v1974_v51 = vpop.permute.xlu0 %1973  ;;  %v1987_v44 = vmax.f32 %v10133_v58, %v1977_v36  ;;  %v1988_v0 = vmax.f32 %v10137_v6, %v1978_v47 }
 0x3e3   :  { %v1980_v5 = vsel %vm249_vm2, %v1972_v32, %v1974_v51  ;;  %v2363_v32 = vld [vmem:[%s11781_s5 + $0x8] sm:$0xff] }
 0x3e4   :  { %v10170_v8 = vmax.f32 %v10141_v34, %v1980_v5  ;;  %2178 = vmatmul.f32.vlgmr.msra.gmra.mxu2 %v1987_v44  ;;  %2198 = vmatmul.f32.vlgmr.msra.gmra.mxu3 %v1988_v0  ;;  %v1950_v34 = vmax.f32 %v10112_v18, %v10125_v61  ;;  %v2139_v18 = vld [vmem:[#allocation4 + $0x498] sm:$0xff]  ;;  %v2105_v61 = vld [vmem:[#allocation4 + $0x388] sm:$0xff] }
 0x3e5   :  { %2298 = vmatmul.f32.vlgmr.msrb.gmra.mxu0 %v1988_v0  ;;  %2322 = vmatpush.msra.mxu2 %v2119_v15 }
 0x3e6   :  { %8178 = vmatpush.msk.msra.mxu3 %vm2155_vm9, %v2151_v31  ;;  %2238 = vmatmul.f32.vlgmr.msra.gmra.mxu1 %v10170_v8  ;;  %v1976_v58 = vpop.permute.xlu1 %1975 }
 0x3e7   :  { %v1981_v6 = vsel %vm249_vm2, %v1974_v51, %v1976_v58  ;;  %2323 = vmatpush.msra.mxu2 %v2117_v3 }
 0x3e8   :  { %2343 = vmatpush.msra.mxu3 %v2149_v9  ;;  %v1991_v42 = vmax.f32 %v1950_v34, %v1981_v6 }
 0x3e9   :  { %2324 = vmatpush.msra.mxu2 %v2115_v10 }
 0x3ea   :  { %2344 = vmatpush.msra.mxu3 %v2147_v1  ;;  %v2374_v51 = vpop.permute.xlu0 %2373 }
 0x3eb   :  { %2325 = vmatpush.msra.mxu2 %v2113_v12  ;;  %v2828_v12 = vld [vmem:[%s11784_s8] sm:$0xff] }
 0x3ec   :  { %2345 = vmatpush.msra.mxu3 %v2145_v25  ;;  %8177 = vmatmul.msk.f32.vlgmr.msrb.gmra.mxu2 %vm151_vm0, %v1991_v42  ;;  %v2829_v25 = vld [vmem:[%s11784_s8 + $0x8] sm:$0xff] }
 0x3ed   :  { %2278 = vmatmul.f32.vlgmr.msrb.gmra.mxu3 %v1987_v44  ;;  %2326 = vmatpush.msra.mxu2 %v2111_v35 }
 0x3ee   :  { %2346 = vmatpush.msra.mxu3 %v2143_v16  ;;  %2318 = vmatmul.f32.vlgmr.msrb.gmra.mxu1 %v1989_v14  ;;  %v2369_v47 = vpop.permute.xlu1 %2368 }
 0x3ef   :  { %2327 = vmatpush.msra.mxu2 %v2109_v53  ;;  %v8184_v53 = vld [vmem:[%s11783_s7 + $0x10] sm:$0xff] }
 0x3f0   :  { %2347 = vmatpush.msra.mxu3 %v2141_v54 }
 0x3f1   :  { %2328 = vmatpush.msra.mxu2 %v2107_v43  ;;  %v2432_v43 = vld [vmem:[%s11783_s7] sm:$0xff] }
 0x3f2   :  { %2348 = vmatpush.msra.mxu3 %v2139_v18 }
 0x3f3   :  { %2329 = vmatpush.msra.mxu2 %v2105_v61  ;;  %v8185_v61 = vld [vmem:[%s11783_s7 + $0x18] sm:$0xff] }
 0x3f4   :  { %2349 = vmatpush.msra.mxu3 %v2137_v21 }
 0x3f5   :  { %2330 = vmatpush.msra.mxu2 %v2103_v62 }
 0x3f6   :  { %2350 = vmatpush.msra.mxu3 %v2135_v24 }
 0x3f7   :  { %2331 = vmatpush.msra.mxu2 %v2101_v22  ;;  %v8190_v22 = vld [vmem:[%s11783_s7 + $0x20] sm:$0xff] }
 0x3f8   :  { %2351 = vmatpush.msra.mxu3 %v2133_v37  ;;  %v2433_v37 = vld [vmem:[%s11783_s7 + $0x8] sm:$0xff] }
 0x3f9   :  { %2332 = vmatpush.msra.mxu2 %v2099_v59 }
 0x3fa   :  { %2352 = vmatpush.msra.mxu3 %v2131_v7 }
 0x3fb   :  { %2333 = vmatpush.msra.mxu2 %v2097_v19 }
 0x3fc   :  { %2353 = vmatpush.msra.mxu3 %v2129_v23 }
 0x3fd   :  { %2334 = vmatpush.msra.mxu2 %v2095_v2  ;;  %v8191_v2 = vld [vmem:[%s11783_s7 + $0x28] sm:$0xff] }
 0x3fe   :  { %2354 = vmatpush.msra.mxu3 %v2127_v26 }
 0x3ff   :  { %2335 = vmatpush.msra.mxu2 %v2093_v55 }
 0x400   :  { %2355 = vmatpush.msra.mxu3 %v2125_v28 }
 0x401   :  { %2336 = vmatpush.msra.mxu2 %v2091_v29 }
 0x402   :  { %2356 = vmatpush.msra.mxu3 %v2123_v38 }
 0x403   :  { %2337 = vmatpush.msra.mxu2 %v2089_v40 }
 0x404   :  { %2357 = vmatpush.msra.mxu3 %v2121_v63  ;;  %2338 = vmatmul.f32.vlgmr.msra.gmra.mxu2 %v10170_v8 }
 0x405   :  { %8179 = vmatmul.msk.f32.vlgmr.msra.gmra.mxu3 %vm151_vm0, %v1991_v42 }
 0x447   :  { %v2219_v4 = vpop.f32.mrf.mxu0 }
 0x462   :  { %v2299_v20 = vpop.f32.mrf.mxu0 }
 0x463   :  { %v2239_v39 = vpop.f32.mrf.mxu1 }
 0x467   :  { %v2179_v17 = vpop.f32.mrf.mxu2  ;;  %v2199_v57 = vpop.f32.mrf.mxu3 }
 0x468   :  { %v2200_v45 = vadd.f32 %v2199_v57, %v2179_v17 }
 0x46a   :  { %v2220_v50 = vadd.f32 %v2219_v4, %v2200_v45 }
 0x46b   :  { %v2319_v30 = vpop.f32.mrf.mxu1 }
 0x46c   :  { %v2240_v27 = vadd.f32 %v2239_v39, %v2220_v50 }
 0x46f   :  { %v2259_v56 = vpop.f32.mrf.mxu2 }
 0x470   :  { %v2260_v52 = vadd.f32 %v2259_v56, %v2240_v27  ;;  %v2279_v41 = vpop.f32.mrf.mxu3  ;;  %v8194_v27 = vld [vmem:[%s11783_s7 + $0x30] sm:$0xff] }
 0x471   :  { %v2300_v14 = vadd.f32 %v2299_v20, %v2279_v41 }
 0x472   :  { %2397 = vmatpush.msra.mxu0 %v2260_v52 }
 0x473   :  { %8180 = vmatmul.msk.f32.vlgmr.msra.gmra.mxu0 %vm579_vm8, %v2362_v11  ;;  %v2320_v46 = vadd.f32 %v2319_v30, %v2300_v14 }
 0x47b   :  { %8181 = vmatmul.msk.f32.gmra.mxu0 %vm579_vm8, %v2363_v32 }
 0x487   :  { %v2339_v48 = vpop.f32.mrf.mxu2 }
 0x488   :  { %v2340_v13 = vadd.f32 %v2339_v48, %v2320_v46  ;;  %v2359_v33 = vpop.f32.mrf.mxu3 }
 0x48a   :  { %v2360_v60 = vadd.f32 %v2359_v33, %v2340_v13  ;;  %v8206_v13 = vld [vmem:[%s11783_s7 + $0x60] sm:$0xff] }
 0x48c   :  { %2420 = vmatpush.msra.mxu1 %v2360_v60 }
 0x48d   :  { %8182 = vmatmul.msk.f32.vlgmr.msra.gmra.mxu1 %vm579_vm8, %v2362_v11 }
 0x495   :  { %8183 = vmatmul.msk.f32.gmra.mxu1 %vm579_vm8, %v2363_v32 }
 0x4f0   :  { %v2399_v49 = vpop.f32.mrf.mxu0 }
 0x4f1   :  { %v2400_v36 = vadd.f32 %v2399_v49, %v2369_v47  ;;  %v8198_v49 = vld [vmem:[%s11783_s7 + $0x40] sm:$0xff] }
 0x4f3   :  { %v2428_v15 = vmax.f32 %v2400_v36, 0.0  ;;  %v8195_v36 = vld [vmem:[%s11783_s7 + $0x38] sm:$0xff] }
 0x4f8   :  { %v2402_v44 = vpop.f32.mrf.mxu0 }
 0x4f9   :  { %v2403_v0 = vadd.f32 %v2402_v44, %v2374_v51 }
 0x4fb   :  { %v2430_v5 = vmax.f32 %v2403_v0, 0.0 }
 0x4fd   :  { %2495 = vmatpush.msrb.mxu1 %v2430_v5  ;;  %v8680_v31 = vpack.i.bf16 %v2428_v15, %v2430_v5 }
 0x4ff   :  { %8681 = vrot.lane.b32.xlu0 %v8680_v31, %s11823_s23  ;;  %8676 = vrot.lane.b32.xlu2 %v8680_v31, %s11827_s2 }
 0x500   :  { %2496 = vmatpush.msrb.mxu1 %v2428_v15 }
 0x501   :  { %8188 = vmatmul.msk.f32.vlgmr.msrb.gmra.mxu1 %vm2445_vm10, %v2432_v43  ;;  %v8211_v43 = vld [vmem:[%s11783_s7 + $0x78] sm:$0xff] }
 0x509   :  { %8189 = vmatmul.msk.f32.gmra.mxu1 %vm2445_vm10, %v2433_v37 }
 0x50a   :  { %v2422_v8 = vpop.f32.mrf.mxu1 }
 0x50b   :  { %v2423_v3 = vadd.f32 %v2422_v8, %v2369_v47  ;;  %v8207_v8 = vld [vmem:[%s11783_s7 + $0x68] sm:$0xff] }
 0x50d   :  { %v2429_v9 = vmax.f32 %v2423_v3, 0.0 }
 0x50f   :  { %v8685_v58 = vpack.i.bf16 %v2429_v9, %v2428_v15  ;;  %v8199_v9 = vld [vmem:[%s11783_s7 + $0x48] sm:$0xff] }
 0x511   :  { %8686 = vrot.lane.b32.xlu2 %v8685_v58, %s11825_s21 }
 0x512   :  { %v2425_v10 = vpop.f32.mrf.mxu1 }
 0x513   :  { %v2426_v6 = vadd.f32 %v2425_v10, %v2374_v51 }
 0x515   :  { %v2431_v1 = vmax.f32 %v2426_v6, 0.0 }
 0x517   :  { %v8690_v34 = vpack.i.bf16 %v2431_v1, %v2430_v5 }
 0x519   :  { %8691 = vrot.lane.b32.xlu1 %v8690_v34, %s11825_s21  ;;  %8701 = vrot.lane.b32.xlu0 %v8690_v34, %s11817_s1 }
 0x51a   :  { %8716 = vrot.lane.b32.xlu2 %v8690_v34, %s11819_s13 }
 0x521   :  { %8696 = vrot.lane.b32.xlu1 %v8685_v58, %s11817_s1  ;;  %8706 = vrot.lane.b32.xlu0 %v8685_v58, %s11819_s13  ;;  %s11864_s1 = smov 99  }
 0x522   :  { %8731 = vrot.lane.b32.xlu2 %v8690_v34, %s11821_s17 }
 0x529   :  { %8721 = vrot.lane.b32.xlu1 %v8690_v34, %s11812_s30  ;;  %8711 = vrot.lane.b32.xlu0 %v8685_v58, %s11812_s30  ;;  %s11866_s30 = smov 72  }
 0x52a   :  { %8736 = vrot.lane.b32.xlu2 %v8690_v34, %s11815_s28 }
 0x531   :  { %8726 = vrot.lane.b32.xlu1 %v8685_v58, %s11821_s17  ;;  %8741 = vrot.lane.b32.xlu0 %v8685_v58, %s11815_s28  ;;  %v8210_v58 = vld [vmem:[%s11783_s7 + $0x70] sm:$0xff]  ;;  %s11858_s28 = smov 115  }
 0x532   :  { %2832 = vperm.xlu2 %8544, %v2828_v12  }
 0x539   :  { %2837 = vperm.xlu1 %8543, %v2829_v25  }
 0x559   :  { %v8677_v42 = vpop.permute.xlu2 %8676 }
 0x55a   :  { %v8678_v35 = vunpack.i.l.bf16 %v8677_v42  ;;  %v8679_v16 = vunpack.i.h.bf16 %v8677_v42 }
 0x55c   :  { %2466 = vmatpush.msrb.mxu0 %v8678_v35  ;;  %v8202_v35 = vld [vmem:[%s11783_s7 + $0x50] sm:$0xff] }
 0x55e   :  { %2467 = vmatpush.msrb.mxu0 %v8679_v16 }
 0x55f   :  { %8186 = vmatmul.msk.f32.vlgmr.msrb.gmra.mxu0 %vm2445_vm10, %v8184_v53 }
 0x567   :  { %8187 = vmatmul.msk.f32.gmra.mxu0 %vm2445_vm10, %v8185_v61  ;;  %v8215_v61 = vld [vmem:[%s11783_s7 + $0x88] sm:$0xff] }
 0x56b   :  { %v8687_v54 = vpop.permute.xlu2 %8686 }
 0x56c   :  { %v8689_v29 = vunpack.i.h.bf16 %v8687_v54  ;;  %v8688_v38 = vunpack.i.l.bf16 %v8687_v54  ;;  %v8214_v54 = vld [vmem:[%s11783_s7 + $0x80] sm:$0xff] }
 0x56e   :  { %v2558_v52 = vsel %vm2557_vm14, %v8688_v38, %v8689_v29 }
 0x571   :  { %v8682_v18 = vpop.permute.xlu0 %8681 }
 0x572   :  { %v8683_v21 = vunpack.i.l.bf16 %v8682_v18  ;;  %v8684_v62 = vunpack.i.h.bf16 %v8682_v18  ;;  %v8203_v18 = vld [vmem:[%s11783_s7 + $0x58] sm:$0xff] }
 0x574   :  { %v8717_v24 = vpop.permute.xlu2 %8716  ;;  %2533 = vmatpush.msrb.mxu2 %v8683_v21 }
 0x575   :  { %v8719_v59 = vunpack.i.h.bf16 %v8717_v24  ;;  %v8718_v7 = vunpack.i.l.bf16 %v8717_v24 }
 0x576   :  { %2534 = vmatpush.msrb.mxu2 %v8684_v62 }
 0x577   :  { %v2700_v19 = vsel %vm11814_vm11, %v8718_v7, %v8719_v59  ;;  %8192 = vmatmul.msk.f32.vlgmr.msrb.gmra.mxu2 %vm2445_vm10, %v8190_v22 }
 0x578   :  { %2723 = vmatpush.msra.mxu2 %v2700_v19 }
 0x57c   :  { %v8732_v23 = vpop.permute.xlu2 %8731 }
 0x57d   :  { %v8734_v26 = vunpack.i.h.bf16 %v8732_v23  ;;  %v8733_v55 = vunpack.i.l.bf16 %v8732_v23 }
 0x57e   :  { %v2498_v22 = vpop.f32.mrf.mxu1 }
 0x57f   :  { %v2653_v28 = vsel %vm2651_vm12, %v8733_v55, %v8734_v26  ;;  %8193 = vmatmul.msk.f32.gmra.mxu2 %vm2445_vm10, %v8191_v2 }
 0x580   :  { %2676 = vmatpush.msra.mxu1 %v2653_v28 }
 0x584   :  { %v8737_v56 = vpop.permute.xlu2 %8736 }
 0x585   :  { %v8739_v11 = vunpack.i.h.bf16 %v8737_v56  ;;  %v8738_v32 = vunpack.i.l.bf16 %v8737_v56 }
 0x586   :  { %v2501_v23 = vpop.f32.mrf.mxu1 }
 0x587   :  { %v2794_v47 = vsel %vm11829_vm15, %v8738_v32, %v8739_v11 }
 0x58b   :  { %v8692_v40 = vpop.permute.xlu1 %8691  ;;  %v8702_v63 = vpop.permute.xlu0 %8701 }
 0x58c   :  { %v8694_v17 = vunpack.i.h.bf16 %v8692_v40  ;;  %v8693_v57 = vunpack.i.l.bf16 %v8692_v40  ;;  %v8704_v45 = vunpack.i.h.bf16 %v8702_v63  ;;  %v8703_v4 = vunpack.i.l.bf16 %v8702_v63 }
 0x58e   :  { %v2559_v50 = vsel %vm2557_vm14, %v8693_v57, %v8694_v17  ;;  %v2606_v39 = vsel %vm2604_vm13, %v8703_v4, %v8704_v45 }
 0x58f   :  { %2582 = vmatpush.msrb.mxu3 %v2559_v50  ;;  %2629 = vmatpush.msra.mxu0 %v2606_v39 }
 0x591   :  { %2583 = vmatpush.msrb.mxu3 %v2558_v52 }
 0x592   :  { %8196 = vmatmul.msk.f32.vlgmr.msrb.gmra.mxu3 %vm2445_vm10, %v8194_v27 }
 0x593   :  { %v8697_v41 = vpop.permute.xlu1 %8696  ;;  %v8707_v20 = vpop.permute.xlu0 %8706 }
 0x594   :  { %v8699_v14 = vunpack.i.h.bf16 %v8697_v41  ;;  %v8698_v30 = vunpack.i.l.bf16 %v8697_v41  ;;  %v8709_v46 = vunpack.i.h.bf16 %v8707_v20  ;;  %v8708_v48 = vunpack.i.l.bf16 %v8707_v20 }
 0x596   :  { %v2605_v33 = vsel %vm2604_vm13, %v8698_v30, %v8699_v14  ;;  %v2699_v60 = vsel %vm11814_vm11, %v8708_v48, %v8709_v46  ;;  %vm2745_vm11 = vcmask 842752   ;;  %v2833_v48 = vpop.permute.xlu2 %2832 }
 0x597   :  { %2630 = vmatpush.msra.mxu0 %v2605_v33  ;;  %2724 = vmatpush.msra.mxu2 %v2699_v60 }
 0x598   :  { %8208 = vmatmul.msk.f32.vlgmr.msra.gmra.mxu2 %vm2445_vm10, %v8206_v13  ;;  %8200 = vmatmul.msk.f32.vlgmr.msra.gmra.mxu0 %vm2445_vm10, %v8198_v49 }
 0x599   :  { %2817 = vmatpush.msrb.mxu0 %v2794_v47 }
 0x59a   :  { %8197 = vmatmul.msk.f32.gmra.mxu3 %vm2445_vm10, %v8195_v36 }
 0x59b   :  { %v8722_v51 = vpop.permute.xlu1 %8721  ;;  %v8712_v44 = vpop.permute.xlu0 %8711 }
 0x59c   :  { %v8724_v0 = vunpack.i.h.bf16 %v8722_v51  ;;  %v8723_v15 = vunpack.i.l.bf16 %v8722_v51  ;;  %v8714_v5 = vunpack.i.h.bf16 %v8712_v44  ;;  %v8713_v31 = vunpack.i.l.bf16 %v8712_v44  ;;  %v3195_v44 = vld [vmem:[%s11786_s10] sm:$0xff] }
 0x59e   :  { %v2747_v3 = vsel %vm2745_vm11, %v8723_v15, %v8724_v0  ;;  %v2746_v10 = vsel %vm2745_vm11, %v8713_v31, %v8714_v5  ;;  %v3196_v0 = vld [vmem:[%s11786_s10 + $0x8] sm:$0xff]  ;;  %v2844_v15 = vld [vmem:[%s11785_s9] sm:$0xff] }
 0x59f   :  { %2770 = vmatpush.msra.mxu3 %v2747_v3  ;;  %v2845_v31 = vld [vmem:[%s11785_s9 + $0x8] sm:$0xff] }
 0x5a0   :  { %8209 = vmatmul.msk.f32.gmra.mxu2 %vm2445_vm10, %v8207_v8  ;;  %8201 = vmatmul.msk.f32.gmra.mxu0 %vm2445_vm10, %v8199_v9  ;;  %v8228_v9 = vld [vmem:[%s11785_s9 + $0x30] sm:$0xff] }
 0x5a1   :  { %2771 = vmatpush.msra.mxu3 %v2746_v10 }
 0x5a2   :  { %8212 = vmatmul.msk.f32.vlgmr.msra.gmra.mxu3 %vm2445_vm10, %v8210_v58  ;;  %v8229_v58 = vld [vmem:[%s11785_s9 + $0x38] sm:$0xff] }
 0x5a3   :  { %v8727_v6 = vpop.permute.xlu1 %8726  ;;  %v8742_v1 = vpop.permute.xlu0 %8741 }
 0x5a4   :  { %v8729_v34 = vunpack.i.h.bf16 %v8727_v6  ;;  %v8728_v12 = vunpack.i.l.bf16 %v8727_v6  ;;  %v8744_v25 = vunpack.i.h.bf16 %v8742_v1  ;;  %v8743_v42 = vunpack.i.l.bf16 %v8742_v1 }
 0x5a6   :  { %v2652_v16 = vsel %vm2651_vm12, %v8728_v12, %v8729_v34  ;;  %v2793_v53 = vsel %vm11829_vm15, %v8743_v42, %v8744_v25  ;;  %v8224_v42 = vld [vmem:[%s11785_s9 + $0x20] sm:$0xff]  ;;  %vm11846_vm15 = vcmask 646144  }
 0x5a7   :  { %2677 = vmatpush.msra.mxu1 %v2652_v16  ;;  %2818 = vmatpush.msrb.mxu0 %v2793_v53  ;;  %v8218_v16 = vld [vmem:[%s11785_s9 + $0x10] sm:$0xff] }
 0x5a8   :  { %8204 = vmatmul.msk.f32.vlgmr.msra.gmra.mxu1 %vm2445_vm10, %v8202_v35  ;;  %8216 = vmatmul.msk.f32.vlgmr.msrb.gmra.mxu0 %vm2445_vm10, %v8214_v54 }
 0x5aa   :  { %8213 = vmatmul.msk.f32.gmra.mxu3 %vm2445_vm10, %v8211_v43 }
 0x5ab   :  { %v2838_v60 = vpop.permute.xlu1 %2837 }
 0x5b0   :  { %8205 = vmatmul.msk.f32.gmra.mxu1 %vm2445_vm10, %v8203_v18  ;;  %8217 = vmatmul.msk.f32.gmra.mxu0 %vm2445_vm10, %v8215_v61 }
 0x5dc   :  { %v2469_v21 = vpop.f32.mrf.mxu0 }
 0x5dd   :  { %v2499_v7 = vadd.f32 %v2498_v22, %v2469_v21 }
 0x5e4   :  { %v2472_v62 = vpop.f32.mrf.mxu0 }
 0x5e5   :  { %v2502_v29 = vadd.f32 %v2501_v23, %v2472_v62 }
 0x5fa   :  { %v2536_v24 = vpop.f32.mrf.mxu2 }
 0x5fb   :  { %v2542_v26 = vadd.f32 %v2536_v24, %v2499_v7  ;;  %v8225_v24 = vld [vmem:[%s11785_s9 + $0x28] sm:$0xff] }
 0x602   :  { %v2539_v19 = vpop.f32.mrf.mxu2 }
 0x603   :  { %v2543_v57 = vadd.f32 %v2539_v19, %v2502_v29  ;;  %v8232_v29 = vld [vmem:[%s11785_s9 + $0x40] sm:$0xff] }
 0x615   :  { %v2585_v37 = vpop.f32.mrf.mxu3  ;;  %v2632_v59 = vpop.f32.mrf.mxu0 }
 0x616   :  { %v2591_v28 = vadd.f32 %v2585_v37, %v2542_v26  ;;  %v8219_v37 = vld [vmem:[%s11785_s9 + $0x18] sm:$0xff] }
 0x618   :  { %v2638_v40 = vadd.f32 %v2632_v59, %v2591_v28  ;;  %v8236_v59 = vld [vmem:[%s11785_s9 + $0x50] sm:$0xff] }
 0x61b   :  { %v2726_v38 = vpop.f32.mrf.mxu2 }
 0x61d   :  { %v2588_v2 = vpop.f32.mrf.mxu3  ;;  %v2635_v55 = vpop.f32.mrf.mxu0 }
 0x61e   :  { %v2592_v50 = vadd.f32 %v2588_v2, %v2543_v57  ;;  %v8245_v57 = vld [vmem:[%s11785_s9 + $0x78] sm:$0xff] }
 0x620   :  { %v2639_v27 = vadd.f32 %v2635_v55, %v2592_v50  ;;  %v8240_v55 = vld [vmem:[%s11785_s9 + $0x60] sm:$0xff] }
 0x623   :  { %v2729_v11 = vpop.f32.mrf.mxu2 }
 0x625   :  { %v2679_v63 = vpop.f32.mrf.mxu1  ;;  %v2773_v17 = vpop.f32.mrf.mxu3 }
 0x626   :  { %v2685_v45 = vadd.f32 %v2679_v63, %v2638_v40  ;;  %v2820_v4 = vpop.f32.mrf.mxu0  ;;  %v8244_v40 = vld [vmem:[%s11785_s9 + $0x70] sm:$0xff]  ;;  %v8241_v63 = vld [vmem:[%s11785_s9 + $0x68] sm:$0xff] }
 0x628   :  { %v2732_v39 = vadd.f32 %v2726_v38, %v2685_v45  ;;  %v8237_v38 = vld [vmem:[%s11785_s9 + $0x58] sm:$0xff]  ;;  %v8248_v45 = vld [vmem:[%s11785_s9 + $0x80] sm:$0xff] }
 0x62a   :  { %v2779_v56 = vadd.f32 %v2773_v17, %v2732_v39  ;;  %v8233_v17 = vld [vmem:[%s11785_s9 + $0x48] sm:$0xff] }
 0x62c   :  { %v2826_v20 = vadd.f32 %v2820_v4, %v2779_v56  ;;  %v8249_v4 = vld [vmem:[%s11785_s9 + $0x88] sm:$0xff] }
 0x62d   :  { %v2682_v52 = vpop.f32.mrf.mxu1  ;;  %v2776_v41 = vpop.f32.mrf.mxu3 }
 0x62e   :  { %v2686_v32 = vadd.f32 %v2682_v52, %v2639_v27  ;;  %v2823_v30 = vpop.f32.mrf.mxu0  ;;  %v2840_v13 = vadd.f32 %v2833_v48, %v2826_v20 }
 0x630   :  { %v2733_v14 = vadd.f32 %v2729_v11, %v2686_v32  ;;  %v2842_v47 = vmax.f32 %v2840_v13, 0.0 }
 0x632   :  { %v2780_v46 = vadd.f32 %v2776_v41, %v2733_v14 }
 0x634   :  { %v2827_v33 = vadd.f32 %v2823_v30, %v2780_v46 }
 0x636   :  { %v2841_v49 = vadd.f32 %v2838_v60, %v2827_v33 }
 0x638   :  { %v2843_v36 = vmax.f32 %v2841_v49, 0.0 }
 0x63a   :  { %2906 = vmatpush.msrb.mxu2 %v2843_v36  ;;  %v8755_v51 = vpack.i.bf16 %v2842_v47, %v2843_v36 }
 0x63c   :  { %8756 = vrot.lane.b32.xlu2 %v8755_v51, %s11825_s21  ;;  %8751 = vrot.lane.b32.xlu1 %v8755_v51, %s11823_s23  ;;  %s11840_s23 = smov 120  }
 0x63d   :  { %8746 = vrot.lane.b32.xlu0 %v8755_v51, %s11827_s2  ;;  %2907 = vmatpush.msrb.mxu2 %v2842_v47 }
 0x63e   :  { %8222 = vmatmul.msk.f32.vlgmr.msrb.gmra.mxu2 %vm2445_vm10, %v2844_v15 }
 0x644   :  { %8771 = vrot.lane.b32.xlu2 %v8755_v51, %s11819_s13  ;;  %8766 = vrot.lane.b32.xlu1 %v8755_v51, %s11821_s17  ;;  %s11832_s13 = smov 123   ;;  %s11834_s17 = smov 122  }
 0x645   :  { %8761 = vrot.lane.b32.xlu0 %v8755_v51, %s11858_s28 }
 0x646   :  { %8223 = vmatmul.msk.f32.gmra.mxu2 %vm2445_vm10, %v2845_v31 }
 0x64c   :  { %3199 = vperm.xlu2 %8544, %v3195_v44   ;;  %8781 = vrot.lane.b32.xlu1 %v8755_v51, %s11859_s3 }
 0x64d   :  { %8776 = vrot.lane.b32.xlu0 %v8755_v51, %s11860_s24 }
 0x655   :  { %3204 = vperm.xlu0 %8542, %v3196_v0  }
 0x696   :  { %v8757_v5 = vpop.permute.xlu2 %8756 }
 0x697   :  { %v8758_v8 = vunpack.i.l.bf16 %v8757_v5  ;;  %v8759_v3 = vunpack.i.h.bf16 %v8757_v5 }
 0x699   :  { %2984 = vmatpush.msra.mxu0 %v8758_v8 }
 0x69b   :  { %2985 = vmatpush.msra.mxu0 %v8759_v3 }
 0x69c   :  { %8230 = vmatmul.msk.f32.vlgmr.msra.gmra.mxu0 %vm2445_vm10, %v8228_v9 }
 0x69e   :  { %v8772_v34 = vpop.permute.xlu2 %8771 }
 0x69f   :  { %v8773_v53 = vunpack.i.l.bf16 %v8772_v34  ;;  %v8774_v54 = vunpack.i.h.bf16 %v8772_v34 }
 0x6a4   :  { %8231 = vmatmul.msk.f32.gmra.mxu0 %vm2445_vm10, %v8229_v58 }
 0x6ae   :  { %v8752_v10 = vpop.permute.xlu1 %8751 }
 0x6af   :  { %v8753_v6 = vunpack.i.l.bf16 %v8752_v10  ;;  %v8747_v1 = vpop.permute.xlu0 %8746  ;;  %v8754_v25 = vunpack.i.h.bf16 %v8752_v10  ;;  %v3200_v10 = vpop.permute.xlu2 %3199 }
 0x6b0   :  { %v8748_v12 = vunpack.i.l.bf16 %v8747_v1  ;;  %v8749_v35 = vunpack.i.h.bf16 %v8747_v1 }
 0x6b1   :  { %2944 = vmatpush.msrb.mxu3 %v8753_v6 }
 0x6b2   :  { %2877 = vmatpush.msrb.mxu1 %v8748_v12 }
 0x6b3   :  { %2945 = vmatpush.msrb.mxu3 %v8754_v25 }
 0x6b4   :  { %2878 = vmatpush.msrb.mxu1 %v8749_v35  ;;  %8226 = vmatmul.msk.f32.vlgmr.msrb.gmra.mxu3 %vm2445_vm10, %v8224_v42 }
 0x6b5   :  { %8220 = vmatmul.msk.f32.vlgmr.msrb.gmra.mxu1 %vm2445_vm10, %v8218_v16  ;;  %3104 = vmatpush.msra.mxu3 %v8773_v53 }
 0x6b6   :  { %v8767_v43 = vpop.permute.xlu1 %8766 }
 0x6b7   :  { %v8768_v18 = vunpack.i.l.bf16 %v8767_v43  ;;  %3105 = vmatpush.msra.mxu3 %v8774_v54  ;;  %v8762_v61 = vpop.permute.xlu0 %8761  ;;  %v8769_v62 = vunpack.i.h.bf16 %v8767_v43  ;;  %v3281_v43 = vld [vmem:[%s11788_s12 + $0x18] sm:$0xff] }
 0x6b8   :  { %v8763_v21 = vunpack.i.l.bf16 %v8762_v61  ;;  %v8764_v22 = vunpack.i.h.bf16 %v8762_v61  ;;  %v3240_v61 = vld [vmem:[%s11794_s18 + $0x48] sm:$0x7f] }
 0x6b9   :  { %3064 = vmatpush.msra.mxu2 %v8768_v18  ;;  %v3278_v18 = vld [vmem:[%s11788_s12] sm:$0xff] }
 0x6ba   :  { %3024 = vmatpush.msra.mxu1 %v8763_v21 }
 0x6bb   :  { %3065 = vmatpush.msra.mxu2 %v8769_v62 }
 0x6bc   :  { %3025 = vmatpush.msra.mxu1 %v8764_v22  ;;  %8227 = vmatmul.msk.f32.gmra.mxu3 %vm2445_vm10, %v8225_v24  ;;  %v3279_v24 = vld [vmem:[%s11788_s12 + $0x8] sm:$0xff] }
 0x6bd   :  { %8221 = vmatmul.msk.f32.gmra.mxu1 %vm2445_vm10, %v8219_v37  ;;  %8238 = vmatmul.msk.f32.vlgmr.msra.gmra.mxu2 %vm2445_vm10, %v8236_v59  ;;  %v3280_v59 = vld [vmem:[%s11788_s12 + $0x10] sm:$0xff]  ;;  %s11867_s12 = smov 71  }
 0x6be   :  { %v8782_v7 = vpop.permute.xlu1 %8781  ;;  %8252 = vmatpush.msk.msrb.mxu2 %vm2155_vm9, %v3240_v61 }
 0x6bf   :  { %v8783_v19 = vunpack.i.l.bf16 %v8782_v7  ;;  %v8777_v23 = vpop.permute.xlu0 %8776  ;;  %v8784_v26 = vunpack.i.h.bf16 %v8782_v7  ;;  %v3239_v7 = vld [vmem:[%s11794_s18 + $0x40] sm:$0xff] }
 0x6c0   :  { %v8778_v2 = vunpack.i.l.bf16 %v8777_v23  ;;  %v8779_v28 = vunpack.i.h.bf16 %v8777_v23  ;;  %3258 = vmatpush.msrb.mxu2 %v3239_v7  ;;  %v3237_v23 = vld [vmem:[%s11794_s18 + $0x30] sm:$0xff] }
 0x6c1   :  { %3184 = vmatpush.msrb.mxu1 %v8783_v19  ;;  %v2909_v39 = vpop.f32.mrf.mxu2  ;;  %v3238_v19 = vld [vmem:[%s11794_s18 + $0x38] sm:$0xff] }
 0x6c2   :  { %3144 = vmatpush.msrb.mxu0 %v8778_v2  ;;  %3259 = vmatpush.msrb.mxu2 %v3238_v19  ;;  %v3236_v2 = vld [vmem:[%s11794_s18 + $0x28] sm:$0xff] }
 0x6c3   :  { %3185 = vmatpush.msrb.mxu1 %v8784_v26  ;;  %v3235_v26 = vld [vmem:[%s11794_s18 + $0x20] sm:$0xff] }
 0x6c4   :  { %3145 = vmatpush.msrb.mxu0 %v8779_v28  ;;  %8242 = vmatmul.msk.f32.vlgmr.msra.gmra.mxu3 %vm2445_vm10, %v8240_v55  ;;  %v3234_v55 = vld [vmem:[%s11794_s18 + $0x18] sm:$0xff]  ;;  %v3233_v28 = vld [vmem:[%s11794_s18 + $0x10] sm:$0xff] }
 0x6c5   :  { %8234 = vmatmul.msk.f32.vlgmr.msra.gmra.mxu1 %vm2445_vm10, %v8232_v29  ;;  %8239 = vmatmul.msk.f32.gmra.mxu2 %vm2445_vm10, %v8237_v38  ;;  %v3232_v29 = vld [vmem:[%s11794_s18 + $0x8] sm:$0xff]  ;;  %v3231_v38 = vld [vmem:[%s11794_s18] sm:$0xff]  ;;  %s11868_s18 = smov 70  }
 0x6c6   :  { %8246 = vmatmul.msk.f32.vlgmr.msrb.gmra.mxu0 %vm2445_vm10, %v8244_v40  ;;  %3260 = vmatpush.msrb.mxu2 %v3237_v23 }
 0x6c7   :  { %v3205_v16 = vpop.permute.xlu0 %3204 }
 0x6c8   :  { %3261 = vmatpush.msrb.mxu2 %v3236_v2 }
 0x6c9   :  { %v2912_v11 = vpop.f32.mrf.mxu2 }
 0x6ca   :  { %3262 = vmatpush.msrb.mxu2 %v3235_v26 }
 0x6cc   :  { %8243 = vmatmul.msk.f32.gmra.mxu3 %vm2445_vm10, %v8241_v63  ;;  %3263 = vmatpush.msrb.mxu2 %v3234_v55 }
 0x6cd   :  { %8235 = vmatmul.msk.f32.gmra.mxu1 %vm2445_vm10, %v8233_v17 }
 0x6ce   :  { %8247 = vmatmul.msk.f32.gmra.mxu0 %vm2445_vm10, %v8245_v57  ;;  %3264 = vmatpush.msrb.mxu2 %v3233_v28 }
 0x6d0   :  { %3265 = vmatpush.msrb.mxu2 %v3232_v29 }
 0x6d2   :  { %3266 = vmatpush.msrb.mxu2 %v3231_v38  ;;  %v3457_v38 = vld [vmem:[#allocation2 + $0x48] sm:$0xff] }
 0x6d5   :  { %8250 = vmatmul.msk.f32.vlgmr.msrb.gmra.mxu1 %vm2445_vm10, %v8248_v45 }
 0x6dd   :  { %8251 = vmatmul.msk.f32.gmra.mxu1 %vm2445_vm10, %v8249_v4 }
 0x719   :  { %v2987_v56 = vpop.f32.mrf.mxu0 }
 0x721   :  { %v2990_v14 = vpop.f32.mrf.mxu0 }
 0x732   :  { %v2880_v50 = vpop.f32.mrf.mxu1 }
 0x733   :  { %v2910_v32 = vadd.f32 %v2909_v39, %v2880_v50  ;;  %v3274_v50 = vld [vmem:[%s11787_s11] sm:$0xff]  ;;  %v3275_v39 = vld [vmem:[%s11787_s11 + $0x8] sm:$0xff] }
 0x737   :  { %v2947_v27 = vpop.f32.mrf.mxu3 }
 0x738   :  { %v2953_v20 = vadd.f32 %v2947_v27, %v2910_v32  ;;  %v3276_v27 = vld [vmem:[%s11787_s11 + $0x10] sm:$0xff] }
 0x73a   :  { %v2883_v52 = vpop.f32.mrf.mxu1  ;;  %v2993_v46 = vadd.f32 %v2987_v56, %v2953_v20  ;;  %v3277_v56 = vld [vmem:[%s11787_s11 + $0x18] sm:$0xff]  ;;  %s11870_s11 = smov 123  }
 0x73b   :  { %v2913_v13 = vadd.f32 %v2912_v11, %v2883_v52 }
 0x73f   :  { %v2950_v41 = vpop.f32.mrf.mxu3 }
 0x740   :  { %v3067_v48 = vpop.f32.mrf.mxu2  ;;  %v2954_v49 = vadd.f32 %v2950_v41, %v2913_v13 }
 0x742   :  { %v3027_v30 = vpop.f32.mrf.mxu1  ;;  %v2994_v44 = vadd.f32 %v2990_v14, %v2954_v49 }
 0x743   :  { %v3033_v33 = vadd.f32 %v3027_v30, %v2993_v46  ;;  %v3147_v51 = vpop.f32.mrf.mxu0 }
 0x745   :  { %v3073_v36 = vadd.f32 %v3067_v48, %v3033_v33 }
 0x747   :  { %v3107_v60 = vpop.f32.mrf.mxu3 }
 0x748   :  { %v3113_v0 = vadd.f32 %v3107_v60, %v3073_v36  ;;  %v3070_v5 = vpop.f32.mrf.mxu2 }
 0x74a   :  { %v3030_v47 = vpop.f32.mrf.mxu1  ;;  %v3153_v31 = vadd.f32 %v3147_v51, %v3113_v0 }
 0x74b   :  { %v3034_v15 = vadd.f32 %v3030_v47, %v2994_v44  ;;  %v3150_v34 = vpop.f32.mrf.mxu0 }
 0x74d   :  { %v3074_v9 = vadd.f32 %v3070_v5, %v3034_v15  ;;  %v8310_v15 = vld [vmem:[%s11854_s29 + $0x8] sm:$0xff]  ;;  %v8313_v5 = vld [vmem:[%s11854_s29 + $0x20] sm:$0xff] }
 0x74f   :  { %v3110_v8 = vpop.f32.mrf.mxu3 }
 0x750   :  { %v3114_v6 = vadd.f32 %v3110_v8, %v3074_v9  ;;  %v8316_v8 = vld [vmem:[%s11854_s29 + $0x38] sm:$0xff]  ;;  %v8314_v9 = vld [vmem:[%s11854_s29 + $0x28] sm:$0xff] }
 0x752   :  { %v3187_v3 = vpop.f32.mrf.mxu1  ;;  %v3154_v25 = vadd.f32 %v3150_v34, %v3114_v6  ;;  %v8317_v6 = vld [vmem:[%s11854_s29 + $0x40] sm:$0xff]  ;;  %v3892_v34 = vld [vmem:[%s11790_s14 + $0x18] sm:$0xff] }
 0x753   :  { %v3193_v58 = vadd.f32 %v3187_v3, %v3153_v31  ;;  %v8311_v31 = vld [vmem:[%s11854_s29 + $0x10] sm:$0xff]  ;;  %v8312_v3 = vld [vmem:[%s11854_s29 + $0x18] sm:$0xff] }
 0x755   :  { %v3207_v1 = vadd.f32 %v3200_v10, %v3193_v58  ;;  %v3891_v58 = vld [vmem:[%s11790_s14 + $0x10] sm:$0xff] }
 0x756   :  { %v8315_v10 = vld [vmem:[%s11854_s29 + $0x30] sm:$0xff] }
 0x757   :  { %v3209_v12 = vmax.f32 %v3207_v1, 0.0  ;;  %v4130_v1 = vld [vmem:[%s11854_s29] sm:$0xff] }
 0x759   :  { %3213 = vrot.lane.b32.xlu1 %v3209_v12, %s11827_s2 }
 0x75a   :  { %v3190_v42 = vpop.f32.mrf.mxu1 }
 0x75b   :  { %v3194_v35 = vadd.f32 %v3190_v42, %v3154_v25  ;;  %v3889_v25 = vld [vmem:[%s11790_s14] sm:$0xff] }
 0x75d   :  { %v3208_v53 = vadd.f32 %v3205_v16, %v3194_v35 }
 0x75f   :  { %v3210_v54 = vmax.f32 %v3208_v53, 0.0  ;;  %v3347_v53 = vld [vmem:[#allocation2] sm:$0xff] }
 0x761   :  { %3215 = vrot.lane.b32.xlu2 %v3210_v54, %s11827_s2  ;;  %s11861_s2 = smov 127  }
 0x769   :  { %3299 = vperm.xlu2 %8544, %v3281_v43  }
 0x771   :  { %3284 = vperm.xlu2 %8544, %v3278_v18   ;;  %v3348_v18 = vld [vmem:[#allocation2 + $0x8] sm:$0xff] }
 0x7bb   :  { %v3216_v21 = vpop.permute.xlu2 %3215 }
 0x7bc   :  { %v3220_v62 = vmax.f32 %v3210_v54, %v3216_v21 }
 0x7be   :  { %3225 = vrot.lane.b32.xlu1 %v3220_v62, %s11825_s21 }
 0x7c3   :  { %v3300_v52 = vpop.permute.xlu2 %3299 }
 0x7c6   :  { %3289 = vperm.xlu1 %8543, %v3279_v24  }
 0x7cb   :  { %v3214_v22 = vpop.permute.xlu1 %3213  ;;  %v3285_v32 = vpop.permute.xlu2 %3284 }
 0x7cc   :  { %v3219_v37 = vmax.f32 %v3209_v12, %v3214_v22  ;;  %v3890_v12 = vld [vmem:[%s11790_s14 + $0x8] sm:$0xff] }
 0x7ce   :  { %3223 = vrot.lane.b32.xlu0 %v3219_v37, %s11825_s21  ;;  %s11862_s21 = smov 126  }
 0x7d6   :  { %3294 = vperm.xlu0 %8542, %v3280_v59   ;;  %v3349_v59 = vld [vmem:[#allocation2 + $0x10] sm:$0xff] }
 0x830   :  { %v3226_v17 = vpop.permute.xlu1 %3225 }
 0x831   :  { %v3230_v57 = vmax.f32 %v3220_v62, %v3226_v17 }
 0x838   :  { %v3290_v20 = vpop.permute.xlu1 %3289 }
 0x840   :  { %v3224_v40 = vpop.permute.xlu0 %3223 }
 0x841   :  { %v3229_v63 = vmax.f32 %v3219_v37, %v3224_v40  ;;  %v3456_v37 = vld [vmem:[#allocation2 + $0x40] sm:$0xff] }
 0x843   :  { %8253 = vmatmul.msk.f32.vlgmr.msrb.gmra.mxu2 %vm11846_vm15, %v3229_v63  ;;  %v3350_v63 = vld [vmem:[#allocation2 + $0x18] sm:$0xff] }
 0x848   :  { %v3295_v60 = vpop.permute.xlu0 %3294 }
 0x84b   :  { %8254 = vmatmul.msk.f32.gmra.mxu2 %vm11846_vm15, %v3230_v57  ;;  %vm3372_vm15 = vcmask 261120   ;;  %v3352_v57 = vld [vmem:[#allocation2 + $0x20] sm:$0xff] }
 0x8c6   :  { %v3268_v45 = vpop.f32.mrf.mxu2 }
 0x8ce   :  { %v3271_v4 = vpop.f32.mrf.mxu2 }
 0x8cf   :  { %3328 = vmatpush.msrb.mxu3 %v3271_v4 }
 0x8d1   :  { %3329 = vmatpush.msrb.mxu3 %v3268_v45 }
 0x8d2   :  { %8255 = vmatmul.msk.f32.vlgmr.msrb.gmra.mxu3 %vm2445_vm10, %v3274_v50 }
 0x8da   :  { %8256 = vmatmul.msk.f32.gmra.mxu3 %vm2445_vm10, %v3275_v39 }
 0x8e2   :  { %8257 = vmatmul.msk.f32.gmra.mxu3 %vm2445_vm10, %v3276_v27 }
 0x8ea   :  { %8258 = vmatmul.msk.f32.gmra.mxu3 %vm2445_vm10, %v3277_v56 }
 0x955   :  { %v3331_v11 = vpop.f32.mrf.mxu3 }
 0x956   :  { %v3332_v41 = vadd.f32 %v3331_v11, %v3285_v32 }
 0x958   :  { %v3343_v46 = vmax.f32 %v3332_v41, 0.0  ;;  %v3353_v41 = vld [vmem:[#allocation2 + $0x28] sm:$0xff] }
 0x95d   :  { %v3334_v14 = vpop.f32.mrf.mxu3 }
 0x95e   :  { %v3335_v30 = vadd.f32 %v3334_v14, %v3290_v20  ;;  %v3518_v20 = vld [vmem:[#allocation2 + $0x60] sm:$0xff] }
 0x960   :  { %v3344_v48 = vmax.f32 %v3335_v30, 0.0 }
 0x962   :  { %v8790_v13 = vpack.i.bf16 %v3343_v46, %v3344_v48 }
 0x964   :  { %8791 = vrot.lane.b32.xlu1 %v8790_v13, %s11861_s2 }
 0x965   :  { %v3337_v33 = vpop.f32.mrf.mxu3 }
 0x966   :  { %v3338_v49 = vadd.f32 %v3337_v33, %v3295_v60  ;;  %v3459_v60 = vld [vmem:[#allocation2 + $0x58] sm:$0xff] }
 0x968   :  { %v3345_v51 = vmax.f32 %v3338_v49, 0.0 }
 0x96c   :  { %8796 = vrot.lane.b32.xlu1 %v8790_v13, %s11862_s21 }
 0x96d   :  { %v3340_v47 = vpop.f32.mrf.mxu3 }
 0x96e   :  { %v3341_v36 = vadd.f32 %v3340_v47, %v3300_v52  ;;  %v3458_v52 = vld [vmem:[#allocation2 + $0x50] sm:$0xff] }
 0x970   :  { %v3346_v44 = vmax.f32 %v3341_v36, 0.0  ;;  %v10516_v36 = vld [vmem:[%s11856_s22 + $0x7] sm:$0x7f]  ;;  %s11863_s22 = smov 100  }
 0x972   :  { %3438 = vmatpush.msra.mxu1 %v3346_v44  ;;  %v8800_v0 = vpack.i.bf16 %v3345_v51, %v3346_v44 }
 0x974   :  { %8801 = vrot.lane.b32.xlu2 %v8800_v0, %s11862_s21  ;;  %8786 = vrot.lane.b32.xlu0 %v8800_v0, %s11861_s2 }
 0x975   :  { %3439 = vmatpush.msra.mxu1 %v3345_v51  ;;  %8821 = vrot.lane.b32.xlu1 %v8790_v13, %s11832_s13  ;;  %v3642_v51 = vld [vmem:[#allocation2 + $0xa0] sm:$0xff] }
 0x977   :  { %3440 = vmatpush.msra.mxu1 %v3344_v48 }
 0x979   :  { %3441 = vmatpush.msra.mxu1 %v3343_v46 }
 0x97a   :  { %8263 = vmatmul.msk.f32.vlgmr.msra.gmra.mxu1 %vm3372_vm15, %v3347_v53  ;;  %v3355_v53 = vld [vmem:[#allocation2 + $0x38] sm:$0xff] }
 0x97c   :  { %8811 = vrot.lane.b32.xlu0 %v8800_v0, %s11830_s26  ;;  %8806 = vrot.lane.b32.xlu2 %v8790_v13, %s11830_s26  ;;  %s11865_s26 = smov 98  }
 0x97d   :  { %8846 = vrot.lane.b32.xlu1 %v8800_v0, %s11834_s17 }
 0x982   :  { %8264 = vmatmul.msk.f32.gmra.mxu1 %vm3372_vm15, %v3348_v18 }
 0x984   :  { %8816 = vrot.lane.b32.xlu0 %v8800_v0, %s11832_s13  ;;  %8826 = vrot.lane.b32.xlu2 %v8800_v0, %s11840_s23  ;;  %s9335_s13 = smov 118  }
 0x985   :  { %8851 = vrot.lane.b32.xlu1 %v8790_v13, %s11834_s17 }
 0x98a   :  { %8265 = vmatmul.msk.f32.gmra.mxu1 %vm3372_vm15, %v3349_v59  ;;  %v3521_v59 = vld [vmem:[#allocation2 + $0x78] sm:$0xff] }
 0x98c   :  { %8836 = vrot.lane.b32.xlu0 %v8800_v0, %s11838_s25  ;;  %8831 = vrot.lane.b32.xlu2 %v8790_v13, %s11840_s23  ;;  %s11873_s23 = smov 114  }
 0x98d   :  { %4158 = vperm.xlu1 %8543, %v8310_v15   ;;  %v3519_v15 = vld [vmem:[#allocation2 + $0x68] sm:$0xff] }
 0x992   :  { %8266 = vmatmul.msk.f32.gmra.mxu1 %vm3372_vm15, %v3350_v63 }
 0x994   :  { %8841 = vrot.lane.b32.xlu0 %v8790_v13, %s11838_s25  ;;  %8856 = vrot.lane.b32.xlu2 %v8800_v0, %s9335_s13  ;;  %v3354_v0 = vld [vmem:[#allocation2 + $0x30] sm:$0xff] }
 0x995   :  { %4299 = vperm.xlu1 %8543, %v8313_v5  }
 0x99c   :  { %8861 = vrot.lane.b32.xlu0 %v8790_v13, %s9335_s13  ;;  %4205 = vperm.xlu2 %8544, %v8311_v31   ;;  %v10521_v31 = vperm.slane %v10516_v36, 2 }
 0x99d   :  { %4447 = vperm.xlu1 %8543, %v8316_v8   ;;  %v10524_v8 = vperm.slane %v10516_v36, 1 }
 0x9a4   :  { %4252 = vperm.xlu0 %8542, %v8312_v3   ;;  %4346 = vperm.xlu2 %8544, %v8314_v9   ;;  %v10527_v3 = vperm.slane %v10516_v36, 0 }
 0x9a5   :  { %3905 = vperm.xlu1 %8543, %v3891_v58  }
 0x9ac   :  { %4393 = vperm.xlu0 %8542, %v8315_v10   ;;  %4499 = vperm.xlu2 %8544, %v8317_v6  }
 0x9ad   :  { %4133 = vperm.xlu1 %8543, %v4130_v1  }
 0x9b4   :  { %3910 = vperm.xlu0 %8542, %v3892_v34   ;;  %3900 = vperm.xlu2 %8544, %v3890_v12  }
 0x9bc   :  { %3895 = vperm.xlu0 %8542, %v3889_v25  }
 0x9ce   :  { %v8802_v42 = vpop.permute.xlu2 %8801 }
 0x9cf   :  { %v8803_v35 = vunpack.i.l.bf16 %v8802_v42  ;;  %v8804_v16 = vunpack.i.h.bf16 %v8802_v42  ;;  %v3704_v42 = vld [vmem:[#allocation2 + $0xc0] sm:$0xff] }
 0x9d1   :  { %3496 = vmatpush.msra.mxu2 %v8803_v35  ;;  %v3643_v35 = vld [vmem:[#allocation2 + $0xa8] sm:$0xff] }
 0x9d3   :  { %3497 = vmatpush.msra.mxu2 %v8804_v16 }
 0x9d6   :  { %v8807_v54 = vpop.permute.xlu2 %8806  ;;  %v8792_v43 = vpop.permute.xlu1 %8791 }
 0x9d7   :  { %v8793_v40 = vunpack.i.l.bf16 %v8792_v43  ;;  %v8794_v17 = vunpack.i.h.bf16 %v8792_v43  ;;  %v8808_v11 = vunpack.i.l.bf16 %v8807_v54  ;;  %v8809_v32 = vunpack.i.h.bf16 %v8807_v54  ;;  %v3520_v54 = vld [vmem:[#allocation2 + $0x70] sm:$0xff] }
 0x9de   :  { %v8827_v61 = vpop.permute.xlu2 %8826  ;;  %v8797_v21 = vpop.permute.xlu1 %8796 }
 0x9df   :  { %v8798_v62 = vunpack.i.l.bf16 %v8797_v21  ;;  %v8799_v24 = vunpack.i.h.bf16 %v8797_v21  ;;  %v8828_v22 = vunpack.i.l.bf16 %v8827_v61  ;;  %v8829_v7 = vunpack.i.h.bf16 %v8827_v61 }
 0x9e1   :  { %3498 = vmatpush.msra.mxu2 %v8798_v62 }
 0x9e3   :  { %3499 = vmatpush.msra.mxu2 %v8799_v24 }
 0x9e4   :  { %8267 = vmatmul.msk.f32.vlgmr.msra.gmra.mxu2 %vm3372_vm15, %v3456_v37  ;;  %v3644_v37 = vld [vmem:[#allocation2 + $0xb0] sm:$0xff] }
 0x9e5   :  { %3744 = vmatpush.msrb.mxu2 %v8828_v22  ;;  %v3705_v22 = vld [vmem:[#allocation2 + $0xc8] sm:$0xff] }
 0x9e6   :  { %v8787_v19 = vpop.permute.xlu0 %8786  ;;  %v8832_v23 = vpop.permute.xlu2 %8831 }
 0x9e7   :  { %3745 = vmatpush.msrb.mxu2 %v8829_v7  ;;  %v8788_v2 = vunpack.i.l.bf16 %v8787_v19  ;;  %v8833_v26 = vunpack.i.l.bf16 %v8832_v23  ;;  %v10504_v55 = vpop.permute.xlu1 %8821  ;;  %v8789_v28 = vunpack.i.h.bf16 %v8787_v19  ;;  %v8834_v29 = vunpack.i.h.bf16 %v8832_v23  ;;  %v3580_v7 = vld [vmem:[#allocation2 + $0x80] sm:$0xff] }
 0x9e8   :  { %v8823_v49 = vunpack.i.l.bf16 %v10504_v55  ;;  %v8824_v44 = vunpack.i.h.bf16 %v10504_v55  ;;  %v3645_v55 = vld [vmem:[#allocation2 + $0xb8] sm:$0xff] }
 0x9e9   :  { %3397 = vmatpush.msra.mxu0 %v8788_v2  ;;  %3746 = vmatpush.msrb.mxu2 %v8833_v26  ;;  %v3706_v26 = vld [vmem:[#allocation2 + $0xd0] sm:$0xff] }
 0x9eb   :  { %3398 = vmatpush.msra.mxu0 %v8789_v28  ;;  %3747 = vmatpush.msrb.mxu2 %v8834_v29  ;;  %v3581_v28 = vld [vmem:[#allocation2 + $0x88] sm:$0xff]  ;;  %v3766_v29 = vld [vmem:[#allocation2 + $0xe0] sm:$0xff] }
 0x9ec   :  { %8268 = vmatmul.msk.f32.gmra.mxu2 %vm3372_vm15, %v3457_v38 }
 0x9ed   :  { %3399 = vmatpush.msra.mxu0 %v8793_v40 }
 0x9ee   :  { %v8812_v45 = vpop.permute.xlu0 %8811  ;;  %v8857_v47 = vpop.permute.xlu2 %8856 }
 0x9ef   :  { %v8813_v4 = vunpack.i.l.bf16 %v8812_v45  ;;  %v8847_v50 = vpop.permute.xlu1 %8846  ;;  %3400 = vmatpush.msra.mxu0 %v8794_v17  ;;  %v8814_v27 = vunpack.i.h.bf16 %v8812_v45  ;;  %v8858_v9 = vunpack.i.l.bf16 %v8857_v47  ;;  %v8859_v12 = vunpack.i.h.bf16 %v8857_v47 }
 0x9f0   :  { %v8848_v39 = vunpack.i.l.bf16 %v8847_v50  ;;  %8259 = vmatmul.msk.f32.vlgmr.msra.gmra.mxu0 %vm3372_vm15, %v3352_v57  ;;  %v8849_v56 = vunpack.i.h.bf16 %v8847_v50  ;;  %v3707_v57 = vld [vmem:[#allocation2 + $0xd8] sm:$0xff]  ;;  %v3767_v50 = vld [vmem:[#allocation2 + $0xe8] sm:$0xff] }
 0x9f1   :  { %3558 = vmatpush.msra.mxu3 %v8813_v4  ;;  %v3582_v4 = vld [vmem:[#allocation2 + $0x90] sm:$0xff] }
 0x9f2   :  { %3682 = vmatpush.msrb.mxu1 %v8848_v39 }
 0x9f3   :  { %3559 = vmatpush.msra.mxu3 %v8814_v27 }
 0x9f4   :  { %3683 = vmatpush.msrb.mxu1 %v8849_v56  ;;  %8269 = vmatmul.msk.f32.gmra.mxu2 %vm3372_vm15, %v3458_v52  ;;  %v3583_v52 = vld [vmem:[#allocation2 + $0x98] sm:$0xff] }
 0x9f5   :  { %3560 = vmatpush.msra.mxu3 %v8808_v11  ;;  %v3768_v11 = vld [vmem:[#allocation2 + $0xf0] sm:$0xff] }
 0x9f6   :  { %v8817_v14 = vpop.permute.xlu0 %8816  ;;  %v10543_v16 = vpop.permute.xlu2 %4205 }
 0x9f7   :  { %v8818_v30 = vunpack.i.l.bf16 %v8817_v14  ;;  %v8852_v46 = vpop.permute.xlu1 %8851  ;;  %3561 = vmatpush.msra.mxu3 %v8809_v32  ;;  %v8819_v13 = vunpack.i.h.bf16 %v8817_v14  ;;  %v4210_v61 = vmul.f32 %v10543_v16, %v10521_v31  ;;  %v4209_v21 = vmul.f32 %v10543_v16, %v10524_v8 }
 0x9f8   :  { %v8853_v48 = vunpack.i.l.bf16 %v8852_v46  ;;  %8260 = vmatmul.msk.f32.gmra.mxu0 %vm3372_vm15, %v3353_v41  ;;  %8271 = vmatmul.msk.f32.vlgmr.msra.gmra.mxu3 %vm3372_vm15, %v3518_v20  ;;  %v8854_v33 = vunpack.i.h.bf16 %v8852_v46  ;;  %v4208_v24 = vmul.f32 %v10543_v16, %v10527_v3  ;;  %v10592_v32 = vperm.slane %v10516_v36, 5 }
 0x9f9   :  { %3620 = vmatpush.msrb.mxu0 %v8818_v30  ;;  %v10595_v41 = vperm.slane %v10516_v36, 4  ;;  %v10598_v20 = vperm.slane %v10516_v36, 3 }
 0x9fa   :  { %3684 = vmatpush.msrb.mxu1 %v8853_v48 }
 0x9fb   :  { %3621 = vmatpush.msrb.mxu0 %v8819_v13  ;;  %v3769_v13 = vld [vmem:[#allocation2 + $0xf8] sm:$0xff] }
 0x9fc   :  { %3685 = vmatpush.msrb.mxu1 %v8854_v33  ;;  %8270 = vmatmul.msk.f32.gmra.mxu2 %vm3372_vm15, %v3459_v60  ;;  %v3828_v33 = vld [vmem:[#allocation2 + $0x100] sm:$0xff] }
 0x9fd   :  { %3622 = vmatpush.msrb.mxu0 %v8823_v49  ;;  %8279 = vmatmul.msk.f32.vlgmr.msrb.gmra.mxu1 %vm3372_vm15, %v3642_v51  ;;  %v3829_v51 = vld [vmem:[#allocation2 + $0x108] sm:$0xff] }
 0x9fe   :  { %v8837_v5 = vpop.permute.xlu0 %8836  ;;  %v4347_v48 = vpop.permute.xlu2 %4346 }
 0x9ff   :  { %v8838_v58 = vunpack.i.l.bf16 %v8837_v5  ;;  %v10530_v10 = vpop.permute.xlu1 %4158  ;;  %3623 = vmatpush.msrb.mxu0 %v8824_v44  ;;  %v8839_v25 = vunpack.i.h.bf16 %v8837_v5  ;;  %v4351_v60 = vmul.f32 %v4347_v48, %v10521_v31  ;;  %v4350_v49 = vmul.f32 %v4347_v48, %v10524_v8 }
 0xa00   :  { %8261 = vmatmul.msk.f32.gmra.mxu0 %vm3372_vm15, %v3354_v0  ;;  %8272 = vmatmul.msk.f32.gmra.mxu3 %vm3372_vm15, %v3519_v15  ;;  %v4163_v6 = vmul.f32 %v10530_v10, %v10521_v31  ;;  %v4162_v1 = vmul.f32 %v10530_v10, %v10524_v8  ;;  %v4161_v34 = vmul.f32 %v10530_v10, %v10527_v3 }
 0xa01   :  { %3868 = vmatpush.msra.mxu0 %v8858_v9  ;;  %3806 = vmatpush.msrb.mxu3 %v8838_v58  ;;  %v4166_v14 = vmul.f32 %v10530_v10, %v10592_v32  ;;  %v4165_v30 = vmul.f32 %v10530_v10, %v10595_v41  ;;  %v4164_v46 = vmul.f32 %v10530_v10, %v10598_v20  ;;  %v3830_v9 = vld [vmem:[#allocation2 + $0x110] sm:$0xff] }
 0xa02   :  { %4177 = vrot.lane.b32.xlu1 %v4163_v6, %s11861_s2  ;;  %4175 = vrot.lane.b32.xlu0 %v4162_v1, %s11861_s2  ;;  %v4349_v47 = vmul.f32 %v4347_v48, %v10527_v3  ;;  %v4213_v44 = vmul.f32 %v10543_v16, %v10592_v32  ;;  %v4212_v0 = vmul.f32 %v10543_v16, %v10595_v41  ;;  %v3831_v1 = vld [vmem:[#allocation2 + $0x118] sm:$0xff] }
 0xa03   :  { %4173 = vrot.lane.b32.xlu2 %v4161_v34, %s11861_s2  ;;  %3869 = vmatpush.msra.mxu0 %v8859_v12  ;;  %v4211_v15 = vmul.f32 %v10543_v16, %v10598_v20 }
 0xa04   :  { %3807 = vmatpush.msrb.mxu3 %v8839_v25  ;;  %8283 = vmatmul.msk.f32.vlgmr.msrb.gmra.mxu2 %vm3372_vm15, %v3704_v42 }
 0xa05   :  { %8280 = vmatmul.msk.f32.gmra.mxu1 %vm3372_vm15, %v3643_v35 }
 0xa06   :  { %v8842_v43 = vpop.permute.xlu0 %8841 }
 0xa07   :  { %v8843_v18 = vunpack.i.l.bf16 %v8842_v43  ;;  %v8844_v62 = vunpack.i.h.bf16 %v8842_v43  ;;  %v10577_v45 = vpop.permute.xlu1 %4299 }
 0xa08   :  { %8262 = vmatmul.msk.f32.gmra.mxu0 %vm3372_vm15, %v3355_v53  ;;  %8273 = vmatmul.msk.f32.gmra.mxu3 %vm3372_vm15, %v3520_v54  ;;  %v4304_v39 = vmul.f32 %v10577_v45, %v10521_v31  ;;  %v4303_v27 = vmul.f32 %v10577_v45, %v10524_v8  ;;  %v4302_v56 = vmul.f32 %v10577_v45, %v10527_v3  ;;  %v10657_v53 = vpop.permute.xlu2 %4499 }
 0xa09   :  { %3808 = vmatpush.msrb.mxu3 %v8843_v18  ;;  %v4307_v43 = vmul.f32 %v10577_v45, %v10592_v32  ;;  %v4306_v18 = vmul.f32 %v10577_v45, %v10595_v41 }
 0xa0a   :  { %4224 = vrot.lane.b32.xlu1 %v4210_v61, %s11862_s21  ;;  %4222 = vrot.lane.b32.xlu0 %v4209_v21, %s11862_s21  ;;  %v4305_v61 = vmul.f32 %v10577_v45, %v10598_v20 }
 0xa0b   :  { %4220 = vrot.lane.b32.xlu2 %v4208_v24, %s11862_s21  ;;  %3809 = vmatpush.msrb.mxu3 %v8844_v62  ;;  %v4504_v62 = vmul.f32 %v10657_v53, %v10521_v31  ;;  %v4503_v24 = vmul.f32 %v10657_v53, %v10524_v8 }
 0xa0c   :  { %8284 = vmatmul.msk.f32.gmra.mxu2 %vm3372_vm15, %v3705_v22  ;;  %v4502_v22 = vmul.f32 %v10657_v53, %v10527_v3 }
 0xa0d   :  { %8281 = vmatmul.msk.f32.gmra.mxu1 %vm3372_vm15, %v3644_v37 }
 0xa0e   :  { %v8862_v19 = vpop.permute.xlu0 %8861 }
 0xa0f   :  { %v8863_v23 = vunpack.i.l.bf16 %v8862_v19  ;;  %v8864_v2 = vunpack.i.h.bf16 %v8862_v19  ;;  %v10651_v42 = vpop.permute.xlu1 %4447  ;;  %v4353_v19 = vmul.f32 %v4347_v48, %v10595_v41 }
 0xa10   :  { %8274 = vmatmul.msk.f32.gmra.mxu3 %vm3372_vm15, %v3521_v59  ;;  %8275 = vmatmul.msk.f32.vlgmr.msrb.gmra.mxu0 %vm3372_vm15, %v3580_v7  ;;  %v4452_v35 = vmul.f32 %v10651_v42, %v10521_v31  ;;  %v4451_v16 = vmul.f32 %v10651_v42, %v10524_v8  ;;  %v4450_v54 = vmul.f32 %v10651_v42, %v10527_v3  ;;  %v10672_v21 = vpop.permute.xlu2 %3900 }
 0xa11   :  { %3870 = vmatpush.msra.mxu0 %v8863_v23  ;;  %v4354_v7 = vmul.f32 %v4347_v48, %v10592_v32 }
 0xa13   :  { %3871 = vmatpush.msra.mxu0 %v8864_v2  ;;  %v4352_v2 = vmul.f32 %v4347_v48, %v10598_v20  ;;  %v4506_v48 = vmul.f32 %v10657_v53, %v10595_v41 }
 0xa14   :  { %8285 = vmatmul.msk.f32.gmra.mxu2 %vm3372_vm15, %v3706_v26 }
 0xa15   :  { %8282 = vmatmul.msk.f32.gmra.mxu1 %vm3372_vm15, %v3645_v55 }
 0xa16   :  { %v10563_v38 = vpop.permute.xlu0 %4252 }
 0xa17   :  { %v4257_v40 = vmul.f32 %v10563_v38, %v10521_v31  ;;  %v4256_v63 = vmul.f32 %v10563_v38, %v10524_v8  ;;  %v4255_v17 = vmul.f32 %v10563_v38, %v10527_v3  ;;  %v4260_v34 = vmul.f32 %v10563_v38, %v10592_v32  ;;  %v10688_v23 = vpop.permute.xlu1 %3905 }
 0xa18   :  { %8276 = vmatmul.msk.f32.gmra.mxu0 %vm3372_vm15, %v3581_v28  ;;  %8287 = vmatmul.msk.f32.vlgmr.msrb.gmra.mxu3 %vm3372_vm15, %v3766_v29  ;;  %v4259_v12 = vmul.f32 %v10563_v38, %v10595_v41  ;;  %v4258_v25 = vmul.f32 %v10563_v38, %v10598_v20  ;;  %v4548_v38 = vld [vmem:[%s11855_s20] sm:$0xff]  ;;  %s11869_s20 = smov 124  }
 0xa19   :  { %4271 = vrot.lane.b32.xlu1 %v4257_v40, %s11863_s22  ;;  %4269 = vrot.lane.b32.xlu0 %v4256_v63, %s11863_s22 }
 0xa1a   :  { %4267 = vrot.lane.b32.xlu2 %v4255_v17, %s11863_s22 }
 0xa1c   :  { %8286 = vmatmul.msk.f32.gmra.mxu2 %vm3372_vm15, %v3707_v57  ;;  %v10709_v57 = vpop.f32.mrf.mxu1 }
 0xa1e   :  { %v10629_v5 = vpop.permute.xlu0 %4393 }
 0xa1f   :  { %v4400_v58 = vmul.f32 %v10629_v5, %v10521_v31  ;;  %v4399_v10 = vmul.f32 %v10629_v5, %v10524_v8  ;;  %v4398_v6 = vmul.f32 %v10629_v5, %v10527_v3  ;;  %v4402_v28 = vmul.f32 %v10629_v5, %v10595_v41  ;;  %v10707_v63 = vpop.permute.xlu1 %4133 }
 0xa20   :  { %8277 = vmatmul.msk.f32.gmra.mxu0 %vm3372_vm15, %v3582_v4  ;;  %8288 = vmatmul.msk.f32.gmra.mxu3 %vm3372_vm15, %v3767_v50  ;;  %v4401_v29 = vmul.f32 %v10629_v5, %v10598_v20  ;;  %v4454_v4 = vmul.f32 %v10651_v42, %v10595_v41  ;;  %v4453_v50 = vmul.f32 %v10651_v42, %v10598_v20 }
 0xa21   :  { %4318 = vrot.lane.b32.xlu1 %v4304_v39, %s11864_s1  ;;  %4316 = vrot.lane.b32.xlu0 %v4303_v27, %s11864_s1  ;;  %v4403_v39 = vmul.f32 %v10629_v5, %v10592_v32 }
 0xa22   :  { %4314 = vrot.lane.b32.xlu2 %v4302_v56, %s11864_s1 }
 0xa26   :  { %v10684_v59 = vpop.permute.xlu0 %3910 }
 0xa28   :  { %8278 = vmatmul.msk.f32.gmra.mxu0 %vm3372_vm15, %v3583_v52  ;;  %8289 = vmatmul.msk.f32.gmra.mxu3 %vm3372_vm15, %v3768_v11 }
 0xa29   :  { %4183 = vrot.lane.b32.xlu1 %v4166_v14, %s11861_s2  ;;  %4181 = vrot.lane.b32.xlu0 %v4165_v30, %s11861_s2 }
 0xa2a   :  { %4179 = vrot.lane.b32.xlu2 %v4164_v46, %s11861_s2  ;;  %v10732_v46 = vpop.f32.mrf.mxu1 }
 0xa2e   :  { %v10703_v40 = vpop.permute.xlu0 %3895 }
 0xa30   :  { %8290 = vmatmul.msk.f32.gmra.mxu3 %vm3372_vm15, %v3769_v13  ;;  %8291 = vmatmul.msk.f32.vlgmr.msra.gmra.mxu0 %vm3372_vm15, %v3828_v33  ;;  %v4505_v13 = vmul.f32 %v10657_v53, %v10598_v20  ;;  %v4455_v33 = vmul.f32 %v10651_v42, %v10592_v32 }
 0xa31   :  { %4365 = vrot.lane.b32.xlu1 %v4351_v60, %s11865_s26  ;;  %4363 = vrot.lane.b32.xlu0 %v4350_v49, %s11865_s26 }
 0xa32   :  { %4361 = vrot.lane.b32.xlu2 %v4349_v47, %s11865_s26 }
 0xa38   :  { %8292 = vmatmul.msk.f32.gmra.mxu0 %vm3372_vm15, %v3829_v51 }
 0xa39   :  { %4230 = vrot.lane.b32.xlu1 %v4213_v44, %s11862_s21  ;;  %4228 = vrot.lane.b32.xlu0 %v4212_v0, %s11862_s21  ;;  %v4151_v44 = vmul.f32 %v10521_v31, %v10707_v63 }
 0xa3a   :  { %4226 = vrot.lane.b32.xlu2 %v4211_v15, %s11862_s21 }
 0xa40   :  { %8293 = vmatmul.msk.f32.gmra.mxu0 %vm3372_vm15, %v3830_v9 }
 0xa41   :  { %4416 = vrot.lane.b32.xlu1 %v4400_v58, %s11866_s30  ;;  %4414 = vrot.lane.b32.xlu0 %v4399_v10, %s11866_s30  ;;  %v4396_v58 = vperm.slane %v10516_v36, 6 }
 0xa42   :  { %4412 = vrot.lane.b32.xlu2 %v4398_v6, %s11866_s30 }
 0xa43   :  { %v4456_v6 = vmul.f32 %v10651_v42, %v4396_v58 }
 0xa48   :  { %8294 = vmatmul.msk.f32.gmra.mxu0 %vm3372_vm15, %v3831_v1  ;;  %v4404_v1 = vmul.f32 %v4396_v58, %v10629_v5  ;;  %v4149_v5 = vmul.f32 %v10527_v3, %v10707_v63 }
 0xa49   :  { %4277 = vrot.lane.b32.xlu1 %v4260_v34, %s11863_s22  ;;  %4275 = vrot.lane.b32.xlu0 %v4259_v12, %s11863_s22  ;;  %v4507_v34 = vmul.f32 %v10657_v53, %v10592_v32  ;;  %v10760_v12 = vpop.f32.mrf.mxu1 }
 0xa4a   :  { %4273 = vrot.lane.b32.xlu2 %v4258_v25, %s11863_s22 }
 0xa51   :  { %4468 = vrot.lane.b32.xlu1 %v4452_v35, %s11867_s12  ;;  %4466 = vrot.lane.b32.xlu0 %v4451_v16, %s11867_s12 }
 0xa52   :  { %4464 = vrot.lane.b32.xlu2 %v4450_v54, %s11867_s12 }
 0xa59   :  { %4324 = vrot.lane.b32.xlu1 %v4307_v43, %s11864_s1  ;;  %4322 = vrot.lane.b32.xlu0 %v4306_v18, %s11864_s1 }
 0xa5a   :  { %4320 = vrot.lane.b32.xlu2 %v4305_v61, %s11864_s1 }
 0xa5d   :  { %v4174_v37 = vpop.permute.xlu2 %4173 }
 0xa61   :  { %4520 = vrot.lane.b32.xlu1 %v4504_v62, %s11868_s18  ;;  %4518 = vrot.lane.b32.xlu0 %v4503_v24, %s11868_s18  ;;  %v4508_v62 = vmul.f32 %v10657_v53, %v4396_v58 }
 0xa62   :  { %4516 = vrot.lane.b32.xlu2 %v4502_v22, %s11868_s18  ;;  %v3452_v22 = vpop.f32.mrf.mxu1 }
 0xa65   :  { %v4221_v26 = vpop.permute.xlu2 %4220 }
 0xa67   :  { %v10719_v27 = vpop.f32.mrf.mxu2 }
 0xa69   :  { %4371 = vrot.lane.b32.xlu1 %v4354_v7, %s11865_s26  ;;  %4369 = vrot.lane.b32.xlu0 %v4353_v19, %s11865_s26 }
 0xa6a   :  { %4367 = vrot.lane.b32.xlu2 %v4352_v2, %s11865_s26 }
 0xa6d   :  { %v10694_v55 = vpop.f32.mrf.mxu0 }
 0xa6f   :  { %v3504_v60 = vpop.f32.mrf.mxu2 }
 0xa71   :  { %4420 = vrot.lane.b32.xlu1 %v4402_v28, %s11866_s30  ;;  %4418 = vrot.lane.b32.xlu0 %v4401_v29, %s11866_s30 }
 0xa72   :  { %4551 = vperm.xlu2 %8544, %v4548_v38  }
 0xa74   :  { %v4268_v17 = vpop.permute.xlu2 %4267  ;;  %v10721_v56 = vpop.permute.xlu0 %4175 }
 0xa75   :  { %v10711_v45 = vpop.f32.mrf.mxu0  ;;  %v10725_v52 = vpop.permute.xlu1 %4177  ;;  %v4185_v36 = vsel %vm151_vm0, %v4174_v37, %v10721_v56 }
 0xa76   :  { %v4196_v43 = vadd.f32 %v4185_v36, %v4149_v5 }
 0xa77   :  { %v10775_v35 = vpop.f32.mrf.mxu2 }
 0xa79   :  { %4472 = vrot.lane.b32.xlu1 %v4454_v4, %s11867_s12  ;;  %4470 = vrot.lane.b32.xlu0 %v4453_v50, %s11867_s12  ;;  %v4152_v50 = vmul.f32 %v10598_v20, %v10707_v63 }
 0xa7a   :  { %4422 = vrot.lane.b32.xlu2 %v4403_v39, %s11866_s30  ;;  %v4154_v39 = vmul.f32 %v10592_v32, %v10707_v63 }
 0xa7b   :  { %v10728_v11 = vpop.f32.mrf.mxu3 }
 0xa7c   :  { %v4315_v14 = vpop.permute.xlu2 %4314  ;;  %v10743_v49 = vpop.permute.xlu0 %4222 }
 0xa7d   :  { %v10730_v30 = vpop.f32.mrf.mxu0  ;;  %v10745_v47 = vpop.permute.xlu1 %4224  ;;  %v4232_v54 = vsel %vm200_vm1, %v4221_v26, %v10743_v49 }
 0xa7e   :  { %v4243_v24 = vadd.f32 %v4232_v54, %v4196_v43 }
 0xa7f   :  { %v3510_v38 = vpop.f32.mrf.mxu2 }
 0xa81   :  { %4524 = vrot.lane.b32.xlu1 %v4506_v48, %s11868_s18  ;;  %4522 = vrot.lane.b32.xlu0 %v4505_v13, %s11868_s18 }
 0xa82   :  { %4474 = vrot.lane.b32.xlu2 %v4455_v33, %s11867_s12  ;;  %v4153_v33 = vmul.f32 %v10595_v41, %v10707_v63 }
 0xa83   :  { %v10749_v0 = vpop.f32.mrf.mxu3 }
 0xa84   :  { %v4180_v51 = vpop.permute.xlu2 %4179 }
 0xa85   :  { %v4187_v15 = vsel %vm151_vm0, %v10725_v52, %v4180_v51  ;;  %v10753_v9 = vpop.f32.mrf.mxu0 }
 0xa86   :  { %v4198_v10 = vadd.f32 %v4187_v15, %v4151_v44  ;;  %v3687_v15 = vpop.f32.mrf.mxu1 }
 0xa89   :  { %4476 = vrot.lane.b32.xlu1 %v4456_v6, %s11867_s12  ;;  %4424 = vrot.lane.b32.xlu0 %v4404_v1, %s11866_s30 }
 0xa8a   :  { %4526 = vrot.lane.b32.xlu2 %v4507_v34, %s11868_s18 }
 0xa8b   :  { %v10765_v31 = vpop.permute.xlu0 %4269  ;;  %v10771_v42 = vpop.permute.xlu1 %4271 }
 0xa8c   :  { %v10769_v25 = vpop.permute.xlu2 %4361  ;;  %v10779_v18 = vpop.f32.mrf.mxu3  ;;  %v4279_v61 = vsel %vm249_vm2, %v4268_v17, %v10765_v31 }
 0xa8d   :  { %v3625_v16 = vpop.f32.mrf.mxu0  ;;  %v4290_v37 = vadd.f32 %v4279_v61, %v4243_v24 }
 0xa8e   :  { %v3690_v24 = vpop.f32.mrf.mxu1 }
 0xa92   :  { %4528 = vrot.lane.b32.xlu2 %v4508_v62, %s11868_s18 }
 0xa93   :  { %v10785_v3 = vpop.permute.xlu0 %4316  ;;  %v10789_v2 = vpop.permute.xlu1 %4318 }
 0xa94   :  { %v4326_v7 = vsel %vm298_vm3, %v4315_v14, %v10785_v3  ;;  %v4227_v19 = vpop.permute.xlu2 %4226  ;;  %v10795_v17 = vpop.f32.mrf.mxu3  ;;  %v3444_v14 = vadd.f32 %v10709_v57, %v10694_v55  ;;  %v3447_v55 = vadd.f32 %v10732_v46, %v10711_v45 }
 0xa95   :  { %v10791_v26 = vadd.f32 %v4326_v7, %v4290_v37  ;;  %v4234_v28 = vsel %vm200_vm1, %v10745_v47, %v4227_v19  ;;  %v3628_v29 = vpop.f32.mrf.mxu0  ;;  %v3749_v57 = vpop.f32.mrf.mxu2 }
 0xa96   :  { %v4245_v53 = vadd.f32 %v4234_v28, %v4198_v10  ;;  %v3513_v32 = vadd.f32 %v10719_v27, %v3444_v14  ;;  %v3514_v36 = vadd.f32 %v3504_v60, %v3447_v55 }
 0xa98   :  { %v3575_v41 = vadd.f32 %v10728_v11, %v3513_v32  ;;  %v3576_v45 = vadd.f32 %v10749_v0, %v3514_v36  ;;  %v3450_v11 = vadd.f32 %v10760_v12, %v10730_v30  ;;  %v3453_v30 = vadd.f32 %v3452_v22, %v10753_v9 }
 0xa9a   :  { %v3637_v27 = vadd.f32 %v3625_v16, %v3575_v41  ;;  %v3638_v37 = vadd.f32 %v3628_v29, %v3576_v45 }
 0xa9b   :  { %v4182_v4 = vpop.permute.xlu0 %4181  ;;  %v4184_v44 = vpop.permute.xlu1 %4183 }
 0xa9c   :  { %v4188_v48 = vsel %vm151_vm0, %v4180_v51, %v4182_v4  ;;  %v10804_v13 = vpop.permute.xlu2 %4412  ;;  %v4189_v10 = vsel %vm151_vm0, %v4182_v4, %v4184_v44  ;;  %v4201_v6 = vadd.f32 %v4184_v44, %v4154_v39  ;;  %v3811_v51 = vpop.f32.mrf.mxu3  ;;  %v3699_v46 = vadd.f32 %v3687_v15, %v3637_v27 }
 0xa9d   :  { %v4199_v58 = vadd.f32 %v4188_v48, %v4152_v50  ;;  %v3631_v20 = vpop.f32.mrf.mxu0  ;;  %v10809_v1 = vadd.f32 %v4189_v10, %v4153_v33  ;;  %v3752_v7 = vpop.f32.mrf.mxu2  ;;  %v3700_v14 = vadd.f32 %v3690_v24, %v3638_v37  ;;  %v3515_v48 = vadd.f32 %v10775_v35, %v3450_v11 }
 0xa9e   :  { %v3761_v39 = vadd.f32 %v3749_v57, %v3699_v46  ;;  %v3693_v33 = vpop.f32.mrf.mxu1  ;;  %v3516_v10 = vadd.f32 %v3510_v38, %v3453_v30 }
 0xaa0   :  { %v3823_v12 = vadd.f32 %v3811_v51, %v3761_v39 }
 0xaa3   :  { %v10814_v34 = vpop.permute.xlu0 %4363  ;;  %v10819_v54 = vpop.permute.xlu1 %4365 }
 0xaa4   :  { %v10817_v5 = vpop.permute.xlu2 %4273  ;;  %v3814_v16 = vpop.f32.mrf.mxu3 }
 0xaa5   :  { %v4281_v43 = vsel %vm249_vm2, %v10771_v42, %v10817_v5  ;;  %v3634_v61 = vpop.f32.mrf.mxu0  ;;  %v3755_v57 = vpop.f32.mrf.mxu2 }
 0xaa6   :  { %v4292_v62 = vadd.f32 %v4281_v43, %v4245_v53  ;;  %v3696_v37 = vpop.f32.mrf.mxu1 }
 0xaab   :  { %v10825_v60 = vpop.permute.xlu0 %4228  ;;  %v10833_v50 = vpop.permute.xlu1 %4230 }
 0xaac   :  { %v4235_v28 = vsel %vm200_vm1, %v4227_v19, %v10825_v60  ;;  %v10831_v4 = vpop.permute.xlu2 %4464  ;;  %v10838_v0 = vadd.f32 %v10833_v50, %v4201_v6  ;;  %v3762_v19 = vadd.f32 %v3752_v7, %v3700_v14  ;;  %v3817_v38 = vpop.f32.mrf.mxu3 }
 0xaad   :  { %v10835_v53 = vadd.f32 %v4235_v28, %v4199_v58  ;;  %v3873_v29 = vpop.f32.mrf.mxu0  ;;  %v3577_v58 = vadd.f32 %v10779_v18, %v3515_v48  ;;  %v3578_v18 = vadd.f32 %v10795_v17, %v3516_v10  ;;  %v3758_v17 = vpop.f32.mrf.mxu2  ;;  %v4150_v10 = vmul.f32 %v10524_v8, %v10707_v63 }
 0xaae   :  { %v3885_v44 = vadd.f32 %v3873_v29, %v3823_v12  ;;  %v3824_v32 = vadd.f32 %v3814_v16, %v3762_v19 }
 0xaaf   :  { %v3639_v22 = vadd.f32 %v3631_v20, %v3577_v58  ;;  %v3640_v24 = vadd.f32 %v3634_v61, %v3578_v18 }
 0xab0   :  { %v10853_v51 = vadd.f32 %v10703_v40, %v3885_v44 }
 0xab1   :  { %v3701_v27 = vadd.f32 %v3693_v33, %v3639_v22  ;;  %v3702_v16 = vadd.f32 %v3696_v37, %v3640_v24  ;;  %v4186_v33 = vsel %vm151_vm0, %v10721_v56, %v10725_v52 }
 0xab2   :  { %v3917_v45 = vmax.f32 %v10853_v51, 0.0  ;;  %v4197_v56 = vadd.f32 %v4186_v33, %v4150_v10 }
 0xab3   :  { %v10842_v15 = vpop.permute.xlu0 %4414  ;;  %v10847_v6 = vpop.permute.xlu1 %4416  ;;  %v3764_v39 = vadd.f32 %v3758_v17, %v3702_v16 }
 0xab4   :  { %v10845_v55 = vpop.permute.xlu2 %4320 }
 0xab5   :  { %v4328_v35 = vsel %vm298_vm3, %v10789_v2, %v10845_v55  ;;  %v3876_v9 = vpop.f32.mrf.mxu0 }
 0xab6   :  { %v4339_v36 = vadd.f32 %v4328_v35, %v4292_v62  ;;  %v3886_v41 = vadd.f32 %v3876_v9, %v3824_v32  ;;  %v3763_v62 = vadd.f32 %v3755_v57, %v3701_v27  ;;  %v4233_v35 = vsel %vm200_vm1, %v10743_v49, %v10745_v47 }
 0xab7   :  { %v4280_v9 = vsel %vm249_vm2, %v10765_v31, %v10771_v42  ;;  %v4244_v22 = vadd.f32 %v4233_v35, %v4197_v56  ;;  %v4373_v49 = vsel %vm347_vm4, %v10769_v25, %v10814_v34  ;;  %v4374_v31 = vsel %vm347_vm4, %v10814_v34, %v10819_v54 }
 0xab8   :  { %v3914_v43 = vadd.f32 %v10672_v21, %v3886_v41  ;;  %v3825_v29 = vadd.f32 %v3817_v38, %v3763_v62  ;;  %v3820_v21 = vpop.f32.mrf.mxu3  ;;  %v4426_v41 = vsel %vm402_vm5, %v10804_v13, %v10842_v15  ;;  %v4427_v25 = vsel %vm402_vm5, %v10842_v15, %v10847_v6 }
 0xab9   :  { %v3826_v48 = vadd.f32 %v3820_v21, %v3764_v39 }
 0xaba   :  { %v3918_v46 = vmax.f32 %v3914_v43, 0.0 }
 0xabb   :  { %v10858_v7 = vpop.permute.xlu0 %4275  ;;  %v10860_v20 = vpop.permute.xlu1 %4277 }
 0xabc   :  { %v4517_v11 = vpop.permute.xlu2 %4516  ;;  %v8870_v40 = vpack.i.bf16 %v3917_v45, %v3918_v46 }
 0xabd   :  { %v3879_v28 = vpop.f32.mrf.mxu0 }
 0xabe   :  { %8871 = vrot.lane.b32.xlu1 %v8870_v40, %s11861_s2  ;;  %v3887_v61 = vadd.f32 %v3879_v28, %v3825_v29 }
 0xac0   :  { %v3915_v58 = vadd.f32 %v10688_v23, %v3887_v61  ;;  %v4327_v23 = vsel %vm298_vm3, %v10785_v3, %v10789_v2  ;;  %v4384_v3 = vadd.f32 %v4373_v49, %v10791_v26  ;;  %v4236_v61 = vsel %vm200_vm1, %v10825_v60, %v10833_v50 }
 0xac2   :  { %v3919_v8 = vmax.f32 %v3915_v58, 0.0 }
 0xac3   :  { %v4467_v14 = vpop.permute.xlu0 %4466  ;;  %v10865_v12 = vpop.permute.xlu1 %4468 }
 0xac4   :  { %v10863_v30 = vpop.permute.xlu2 %4367  ;;  %v4478_v34 = vsel %vm456_vm6, %v10831_v4, %v4467_v14  ;;  %v4479_v38 = vsel %vm456_vm6, %v4467_v14, %v10865_v12  ;;  %v4282_v14 = vsel %vm249_vm2, %v10817_v5, %v10858_v7 }
 0xac5   :  { %v4375_v19 = vsel %vm347_vm4, %v10819_v54, %v10863_v30  ;;  %v3882_v44 = vpop.f32.mrf.mxu0  ;;  %v4438_v54 = vadd.f32 %v4426_v41, %v4384_v3  ;;  %v4293_v60 = vadd.f32 %v4282_v14, %v10835_v53 }
 0xac6   :  { %v10876_v32 = vadd.f32 %v4375_v19, %v4339_v36  ;;  %v3888_v57 = vadd.f32 %v3882_v44, %v3826_v48  ;;  %8876 = vrot.lane.b32.xlu1 %v8870_v40, %s11869_s20  ;;  %v4291_v36 = vadd.f32 %v4280_v9, %v4244_v22  ;;  %v4283_v48 = vsel %vm249_vm2, %v10858_v7, %v10860_v20 }
 0xac7   :  { %v4490_v18 = vadd.f32 %v4478_v34, %v4438_v54  ;;  %v4247_v19 = vadd.f32 %v4236_v61, %v10809_v1  ;;  %v4295_v34 = vadd.f32 %v10860_v20, %v10838_v0 }
 0xac8   :  { %v3916_v52 = vadd.f32 %v10684_v59, %v3888_v57  ;;  %v4338_v42 = vadd.f32 %v4327_v23, %v4291_v36 }
 0xac9   :  { %v4294_v50 = vadd.f32 %v4283_v48, %v4247_v19  ;;  %v3921_v19 = vld [vmem:[%s11791_s15] sm:$0xff] }
 0xaca   :  { %v3920_v63 = vmax.f32 %v3916_v52, 0.0  ;;  %v4385_v2 = vadd.f32 %v4374_v31, %v4338_v42 }
 0xacb   :  { %v4323_v51 = vpop.permute.xlu0 %4322  ;;  %v10892_v47 = vpop.permute.xlu1 %4324 }
 0xacc   :  { %3989 = vmatpush.msra.mxu2 %v3920_v63  ;;  %v8880_v59 = vpack.i.bf16 %v3919_v8, %v3920_v63  ;;  %v4439_v13 = vadd.f32 %v4427_v25, %v4385_v2  ;;  %v10911_v37 = vpop.permute.xlu2 %4551  ;;  %v4329_v44 = vsel %vm298_vm3, %v10845_v55, %v4323_v51  ;;  %v4330_v10 = vsel %vm298_vm3, %v4323_v51, %v10892_v47 }
 0xacd   :  { %v4340_v7 = vadd.f32 %v4329_v44, %v4293_v60  ;;  %v4341_v56 = vadd.f32 %v4330_v10, %v4294_v50  ;;  %v5914_v44 = vld [vmem:[%s11780_s4] sm:$0xff] }
 0xace   :  { %8881 = vrot.lane.b32.xlu2 %v8880_v59, %s11869_s20  ;;  %8866 = vrot.lane.b32.xlu0 %v8880_v59, %s11861_s2  ;;  %v4491_v27 = vadd.f32 %v4479_v38, %v4439_v13 }
 0xacf   :  { %3990 = vmatpush.msra.mxu2 %v3919_v8 }
 0xad1   :  { %3991 = vmatpush.msra.mxu2 %v3918_v46 }
 0xad3   :  { %3992 = vmatpush.msra.mxu2 %v3917_v45  ;;  %v4519_v43 = vpop.permute.xlu0 %4518  ;;  %v4521_v24 = vpop.permute.xlu1 %4520 }
 0xad4   :  { %v4530_v26 = vsel %vm510_vm7, %v4517_v11, %v4519_v43  ;;  %v4531_v28 = vsel %vm510_vm7, %v4519_v43, %v4521_v24  ;;  %v4423_v21 = vpop.permute.xlu2 %4422  ;;  %8299 = vmatmul.msk.f32.vlgmr.msra.gmra.mxu2 %vm3372_vm15, %v3921_v19 }
 0xad5   :  { %v4542_v15 = vadd.f32 %v4530_v26, %v4490_v18  ;;  %v4543_v62 = vadd.f32 %v4531_v28, %v4491_v27  ;;  %v4342_v18 = vadd.f32 %v10892_v47, %v4295_v34 }
 0xad6   :  { %8891 = vrot.lane.b32.xlu0 %v8880_v59, %s11870_s11  ;;  %8886 = vrot.lane.b32.xlu2 %v8870_v40, %s11870_s11 }
 0xad7   :  { %v4554_v4 = vadd.f32 %v10911_v37, %v4542_v15  ;;  %v4555_v46 = vadd.f32 %v10911_v37, %v4543_v62 }
 0xad9   :  { %v10918_v45 = vmax.f32 %v4554_v4, 0.0  ;;  %v10920_v16 = vmax.f32 %v4555_v46, 0.0 }
 0xadb   :  { %v4370_v11 = vpop.permute.xlu0 %4369  ;;  %v4372_v17 = vpop.permute.xlu1 %4371  ;;  %v10924_v29 = vpack.i.bf16 %v10920_v16, %v10918_v45 }
 0xadc   :  { %v4475_v33 = vpop.permute.xlu2 %4474  ;;  %v4376_v5 = vsel %vm347_vm4, %v10863_v30, %v4370_v11  ;;  %v4377_v35 = vsel %vm347_vm4, %v4370_v11, %v4372_v17 }
 0xadd   :  { %v4387_v9 = vadd.f32 %v4376_v5, %v4340_v7  ;;  %v4388_v22 = vadd.f32 %v4377_v35, %v4341_v56  ;;  %v8295_v7 = vld [vmem:[%s11791_s15 + $0x10] sm:$0xff] }
 0xade   :  { %8896 = vrot.lane.b32.xlu0 %v10924_v29, %s11861_s2 }
 0xae3   :  { %v4419_v39 = vpop.permute.xlu0 %4418  ;;  %v4421_v40 = vpop.permute.xlu1 %4420 }
 0xae4   :  { %v4428_v1 = vsel %vm402_vm5, %v10847_v6, %v4419_v39  ;;  %v4429_v55 = vsel %vm402_vm5, %v4419_v39, %v4421_v40  ;;  %v4430_v52 = vsel %vm402_vm5, %v4421_v40, %v4423_v21  ;;  %v4527_v36 = vpop.permute.xlu2 %4526 }
 0xae5   :  { %v4440_v8 = vadd.f32 %v4428_v1, %v10876_v32  ;;  %v4441_v23 = vadd.f32 %v4429_v55, %v4387_v9  ;;  %v4442_v51 = vadd.f32 %v4430_v52, %v4388_v22 }
 0xaeb   :  { %v4471_v58 = vpop.permute.xlu0 %4470  ;;  %v4473_v57 = vpop.permute.xlu1 %4472 }
 0xaec   :  { %v4480_v53 = vsel %vm456_vm6, %v10865_v12, %v4471_v58  ;;  %v4481_v30 = vsel %vm456_vm6, %v4471_v58, %v4473_v57  ;;  %v4482_v63 = vsel %vm456_vm6, %v4473_v57, %v4475_v33  ;;  %v4529_v4 = vpop.permute.xlu2 %4528 }
 0xaed   :  { %v4492_v49 = vadd.f32 %v4480_v53, %v4440_v8  ;;  %v4493_v59 = vadd.f32 %v4481_v30, %v4441_v23  ;;  %v4494_v31 = vadd.f32 %v4482_v63, %v4442_v51  ;;  %v8296_v51 = vld [vmem:[%s11791_s15 + $0x18] sm:$0x3] }
 0xaf3   :  { %v4523_v6 = vpop.permute.xlu0 %4522  ;;  %v4525_v41 = vpop.permute.xlu1 %4524 }
 0xaf4   :  { %v4532_v42 = vsel %vm510_vm7, %v4521_v24, %v4523_v6  ;;  %v4533_v25 = vsel %vm510_vm7, %v4523_v6, %v4525_v41  ;;  %v4534_v12 = vsel %vm510_vm7, %v4525_v41, %v4527_v36  ;;  %v4389_v24 = vadd.f32 %v4372_v17, %v4342_v18  ;;  %v8301_v41 = vld [vmem:[%s11791_s15 + $0x20] sm:$0xff] }
 0xaf5   :  { %v4544_v3 = vadd.f32 %v4532_v42, %v4492_v49  ;;  %v4545_v32 = vadd.f32 %v4533_v25, %v4493_v59  ;;  %v4546_v2 = vadd.f32 %v4534_v12, %v4494_v31  ;;  %v4535_v17 = vsel %vm510_vm7, %v4527_v36, %v4529_v4  ;;  %v8305_v49 = vld [vmem:[%s11791_s15 + $0x30] sm:$0xff]  ;;  %v8318_v31 = vld [vmem:[%s11857_s0 + $0x8] sm:$0xff]  ;;  %v11063_v25 = vld [vmem:[%s11857_s0] sm:$0xff] }
 0xaf6   :  { %v11083_v4 = vld [vmem:[%s11857_s0 + $0x10] sm:$0xff] }
 0xaf7   :  { %v4556_v54 = vadd.f32 %v10911_v37, %v4544_v3  ;;  %v4557_v38 = vadd.f32 %v10911_v37, %v4545_v32  ;;  %v4558_v13 = vadd.f32 %v10911_v37, %v4546_v2  ;;  %v8302_v3 = vld [vmem:[%s11791_s15 + $0x28] sm:$0x3] }
 0xaf9   :  { %v10964_v43 = vmax.f32 %v4556_v54, 0.0  ;;  %v10966_v27 = vmax.f32 %v4557_v38, 0.0  ;;  %v10968_v26 = vmax.f32 %v4558_v13, 0.0 }
 0xafb   :  { %v4425_v15 = vpop.permute.xlu0 %4424  ;;  %v4477_v62 = vpop.permute.xlu1 %4476  ;;  %v8910_v0 = vpack.i.bf16 %v10966_v27, %v10964_v43  ;;  %v8900_v20 = vpack.i.bf16 %v10968_v26, %v10966_v27  ;;  %v8915_v40 = vpack.i.bf16 %v10918_v45, %v10968_v26  ;;  %v8930_v48 = vpack.i.bf16 %v10968_v26, %v10964_v43 }
 0xafc   :  { %v4431_v28 = vsel %vm402_vm5, %v4423_v21, %v4425_v15  ;;  %v4483_v47 = vsel %vm456_vm6, %v4475_v33, %v4477_v62 }
 0xafd   :  { %v4443_v46 = vadd.f32 %v4431_v28, %v4389_v24  ;;  %8911 = vrot.lane.b32.xlu0 %v8910_v0, %s11862_s21  ;;  %8901 = vrot.lane.b32.xlu1 %v8900_v20, %s11861_s2 }
 0xaff   :  { %v4495_v11 = vadd.f32 %v4483_v47, %v4443_v46 }
 0xb01   :  { %v4547_v39 = vadd.f32 %v4535_v17, %v4495_v11 }
 0xb03   :  { %v4559_v21 = vadd.f32 %v10911_v37, %v4547_v39 }
 0xb05   :  { %v10982_v61 = vmax.f32 %v4559_v21, 0.0  ;;  %8926 = vrot.lane.b32.xlu0 %v10924_v29, %s11863_s22  ;;  %8916 = vrot.lane.b32.xlu1 %v8915_v40, %s11862_s21 }
 0xb07   :  { %v8905_v14 = vpack.i.bf16 %v10982_v61, %v10964_v43  ;;  %v8920_v37 = vpack.i.bf16 %v10982_v61, %v10920_v16  ;;  %v8935_v33 = vpack.i.bf16 %v10966_v27, %v10982_v61 }
 0xb09   :  { %8906 = vrot.lane.b32.xlu2 %v8905_v14, %s11861_s2 }
 0xb0d   :  { %8941 = vrot.lane.b32.xlu0 %v8910_v0, %s11864_s1  ;;  %8931 = vrot.lane.b32.xlu1 %v8930_v48, %s11863_s22 }
 0xb11   :  { %8921 = vrot.lane.b32.xlu2 %v8920_v37, %s11862_s21 }
 0xb15   :  { %8956 = vrot.lane.b32.xlu0 %v10924_v29, %s11865_s26  ;;  %8946 = vrot.lane.b32.xlu1 %v8915_v40, %s11864_s1 }
 0xb19   :  { %8936 = vrot.lane.b32.xlu2 %v8935_v33, %s11863_s22 }
 0xb1d   :  { %8971 = vrot.lane.b32.xlu0 %v8910_v0, %s11866_s30  ;;  %8961 = vrot.lane.b32.xlu1 %v8930_v48, %s11865_s26 }
 0xb21   :  { %8951 = vrot.lane.b32.xlu2 %v8920_v37, %s11864_s1 }
 0xb25   :  { %8986 = vrot.lane.b32.xlu0 %v10924_v29, %s11867_s12  ;;  %8976 = vrot.lane.b32.xlu1 %v8915_v40, %s11866_s30  ;;  %v3922_v29 = vld [vmem:[%s11791_s15 + $0x8] sm:$0x3] }
 0xb26   :  { %8300 = vmatmul.msk.f32.gmra.mxu2 %vm3372_vm15, %v3922_v29 }
 0xb28   :  { %v8882_v10 = vpop.permute.xlu2 %8881 }
 0xb29   :  { %8966 = vrot.lane.b32.xlu2 %v8935_v33, %s11865_s26  ;;  %v8883_v1 = vunpack.i.l.bf16 %v8882_v10  ;;  %v8884_v22 = vunpack.i.h.bf16 %v8882_v10  ;;  %s11872_s26 = smov 104  }
 0xb2d   :  { %9001 = vrot.lane.b32.xlu0 %v8910_v0, %s11868_s18  ;;  %8991 = vrot.lane.b32.xlu1 %v8930_v48, %s11867_s12 }
 0xb30   :  { %v8872_v58 = vpop.permute.xlu1 %8871  ;;  %v8887_v52 = vpop.permute.xlu2 %8886 }
 0xb31   :  { %8981 = vrot.lane.b32.xlu2 %v8920_v37, %s11866_s30  ;;  %v8873_v5 = vunpack.i.l.bf16 %v8872_v58  ;;  %v8874_v35 = vunpack.i.h.bf16 %v8872_v58  ;;  %v8888_v8 = vunpack.i.l.bf16 %v8887_v52  ;;  %v8889_v63 = vunpack.i.h.bf16 %v8887_v52  ;;  %s11885_s30 = smov 119  }
 0xb35   :  { %5772 = vrot.lane.b32.xlu0 %v10982_v61, %s11868_s18  ;;  %9006 = vrot.lane.b32.xlu1 %v8915_v40, %s11868_s18 }
 0xb38   :  { %v8877_v9 = vpop.permute.xlu1 %8876 }
 0xb39   :  { %8996 = vrot.lane.b32.xlu2 %v8935_v33, %s11867_s12  ;;  %v8878_v30 = vunpack.i.l.bf16 %v8877_v9  ;;  %v8879_v23 = vunpack.i.h.bf16 %v8877_v9  ;;  %s11878_s12 = sld [smem:[#allocation13_spill]] }
 0xb3d   :  { %5917 = vperm.xlu1 %8543, %v5914_v44  }
 0xb40   :  { %v8867_v60 = vpop.permute.xlu0 %8866 }
 0xb41   :  { %v8868_v50 = vunpack.i.l.bf16 %v8867_v60  ;;  %5764 = vrot.lane.b32.xlu2 %v10920_v16, %s11868_s18  ;;  %v8869_v57 = vunpack.i.h.bf16 %v8867_v60 }
 0xb43   :  { %3960 = vmatpush.msra.mxu1 %v8868_v50 }
 0xb45   :  { %3961 = vmatpush.msra.mxu1 %v8869_v57 }
 0xb47   :  { %3962 = vmatpush.msra.mxu1 %v8873_v5 }
 0xb48   :  { %v8892_v56 = vpop.permute.xlu0 %8891 }
 0xb49   :  { %v8893_v55 = vunpack.i.l.bf16 %v8892_v56  ;;  %3963 = vmatpush.msra.mxu1 %v8874_v35  ;;  %v8894_v53 = vunpack.i.h.bf16 %v8892_v56 }
 0xb4a   :  { %8297 = vmatmul.msk.f32.vlgmr.msra.gmra.mxu1 %vm3372_vm15, %v8295_v7 }
 0xb4b   :  { %4033 = vmatpush.msrb.mxu1 %v8883_v1  ;;  %4079 = vmatpush.msra.mxu3 %v8893_v55 }
 0xb4d   :  { %4034 = vmatpush.msrb.mxu1 %v8884_v22  ;;  %4080 = vmatpush.msra.mxu3 %v8894_v53 }
 0xb4f   :  { %4035 = vmatpush.msrb.mxu1 %v8878_v30  ;;  %4081 = vmatpush.msra.mxu3 %v8888_v8 }
 0xb50   :  { %v8897_v36 = vpop.permute.xlu0 %8896 }
 0xb51   :  { %v8899_v6 = vunpack.i.h.bf16 %v8897_v36  ;;  %v8898_v59 = vunpack.i.l.bf16 %v8897_v36  ;;  %4036 = vmatpush.msrb.mxu1 %v8879_v23  ;;  %4082 = vmatpush.msra.mxu3 %v8889_v63  ;;  %v11138_v36 = vld [vmem:[%s11857_s0 + $0x20] sm:$0xff] }
 0xb52   :  { %8298 = vmatmul.msk.f32.gmra.mxu1 %vm3372_vm15, %v8296_v51  ;;  %8307 = vmatmul.msk.f32.vlgmr.msra.gmra.mxu3 %vm3372_vm15, %v8305_v49 }
 0xb53   :  { %4738 = vmatpush.msrb.mxu3 %v10918_v45  ;;  %v4586_v42 = vsel %vm151_vm0, %v8898_v59, %v8899_v6  ;;  %v8306_v45 = vld [vmem:[%s11791_s15 + $0x38] sm:$0x3] }
 0xb54   :  { %4615 = vmatpush.msrb.mxu2 %v4586_v42 }
 0xb55   :  { %4818 = vmatpush.msra.mxu3 %v10968_v26  ;;  %8319 = vmatmul.msk.f32.vlgmr.msrb.gmra.mxu2 %vm579_vm8, %v8318_v31 }
 0xb5a   :  { %8303 = vmatmul.msk.f32.vlgmr.msrb.gmra.mxu1 %vm3372_vm15, %v8301_v41  ;;  %8308 = vmatmul.msk.f32.gmra.mxu3 %vm3372_vm15, %v8306_v45 }
 0xb62   :  { %8304 = vmatmul.msk.f32.gmra.mxu1 %vm3372_vm15, %v8302_v3  ;;  %8325 = vmatmul.msk.f32.vlgmr.msrb.gmra.mxu3 %vm579_vm8, %v11063_v25 }
 0xb63   :  { %v8907_v12 = vpop.permute.xlu2 %8906 }
 0xb64   :  { %v8908_v32 = vunpack.i.l.bf16 %v8907_v12  ;;  %v8909_v54 = vunpack.i.h.bf16 %v8907_v12 }
 0xb66   :  { %v4587_v2 = vsel %vm151_vm0, %v8899_v6, %v8908_v32 }
 0xb67   :  { %4635 = vmatpush.msrb.mxu0 %v4587_v2 }
 0xb68   :  { %8320 = vmatmul.msk.f32.vlgmr.msrb.gmra.mxu0 %vm579_vm8, %v8318_v31 }
 0xb6a   :  { %8329 = vmatmul.msk.f32.vlgmr.msra.gmra.mxu3 %vm579_vm8, %v11063_v25 }
 0xb6b   :  { %v11072_v34 = vpop.permute.xlu2 %8921 }
 0xb6c   :  { %v8923_v46 = vunpack.i.l.bf16 %v11072_v34  ;;  %v8924_v48 = vunpack.i.h.bf16 %v11072_v34 }
 0xb6f   :  { %v8912_v38 = vpop.permute.xlu0 %8911  ;;  %v8902_v13 = vpop.permute.xlu1 %8901 }
 0xb70   :  { %v8914_v18 = vunpack.i.h.bf16 %v8912_v38  ;;  %v8913_v26 = vunpack.i.l.bf16 %v8912_v38  ;;  %v8904_v24 = vunpack.i.h.bf16 %v8902_v13  ;;  %v8903_v15 = vunpack.i.l.bf16 %v8902_v13 }
 0xb72   :  { %v4588_v28 = vsel %vm151_vm0, %v8908_v32, %v8903_v15  ;;  %v4589_v62 = vsel %vm151_vm0, %v8903_v15, %v8904_v24  ;;  %v4590_v0 = vsel %vm151_vm0, %v8904_v24, %v8909_v54  ;;  %v4858_v20 = vsel %vm200_vm1, %v8913_v26, %v8914_v18  ;;  %v11159_v32 = vld [vmem:[%s11857_s0 + $0x28] sm:$0xff] }
 0xb73   :  { %4655 = vmatpush.msra.mxu1 %v4588_v28  ;;  %4675 = vmatpush.msra.mxu2 %v4589_v62  ;;  %v8937_v17 = vpop.permute.xlu2 %8936 }
 0xb74   :  { %4695 = vmatpush.msra.mxu0 %v4590_v0  ;;  %4925 = vmatpush.msrb.mxu3 %v4858_v20  ;;  %v8938_v19 = vunpack.i.l.bf16 %v8937_v17  ;;  %v8939_v57 = vunpack.i.h.bf16 %v8937_v17 }
 0xb75   :  { %8321 = vmatmul.msk.f32.vlgmr.msra.gmra.mxu1 %vm579_vm8, %v8318_v31  ;;  %8322 = vmatmul.msk.f32.vlgmr.msra.gmra.mxu2 %vm579_vm8, %v8318_v31 }
 0xb76   :  { %8323 = vmatmul.msk.f32.vlgmr.msra.gmra.mxu0 %vm579_vm8, %v8318_v31  ;;  %4715 = vmatpush.msrb.mxu1 %v8909_v54 }
 0xb77   :  { %4758 = vmatpush.msrb.mxu2 %v10920_v16  ;;  %4778 = vmatpush.msrb.mxu0 %v10964_v43  ;;  %v8927_v47 = vpop.permute.xlu0 %8926  ;;  %v8917_v11 = vpop.permute.xlu1 %8916 }
 0xb78   :  { %8334 = vmatmul.msk.f32.vlgmr.msrb.gmra.mxu3 %vm579_vm8, %v11083_v4  ;;  %4798 = vmatpush.msra.mxu1 %v10966_v27  ;;  %v8929_v39 = vunpack.i.h.bf16 %v8927_v47  ;;  %v8928_v21 = vunpack.i.l.bf16 %v8927_v47  ;;  %v8919_v40 = vunpack.i.h.bf16 %v8917_v11  ;;  %v8918_v14 = vunpack.i.l.bf16 %v8917_v11 }
 0xb79   :  { %4838 = vmatpush.msra.mxu2 %v10982_v61  ;;  %v4857_v27 = vsel %vm200_vm1, %v8923_v46, %v8913_v26  ;;  %v11105_v61 = vld [vmem:[%s11857_s0 + $0x18] sm:$0xff] }
 0xb7a   :  { %v4856_v16 = vsel %vm200_vm1, %v8919_v40, %v8923_v46  ;;  %v5009_v43 = vsel %vm249_vm2, %v8928_v21, %v8929_v39  ;;  %v4859_v37 = vsel %vm200_vm1, %v8914_v18, %v8918_v14  ;;  %v4860_v33 = vsel %vm200_vm1, %v8918_v14, %v8924_v48  ;;  %v8359_v40 = vld [vmem:[%s11857_s0 + $0x30] sm:$0xff] }
 0xb7b   :  { %4885 = vmatpush.msra.mxu0 %v4856_v16  ;;  %5038 = vmatpush.msra.mxu3 %v5009_v43  ;;  %v11111_v5 = vpop.permute.xlu2 %8951  ;;  %vm4096_vm1 = vcmask 7168  }
 0xb7c   :  { %v8953_v8 = vunpack.i.l.bf16 %v11111_v5 }
 0xb7d   :  { %8324 = vmatmul.msk.f32.vlgmr.msrb.gmra.mxu1 %vm579_vm8, %v8318_v31  ;;  %8326 = vmatmul.msk.f32.vlgmr.msrb.gmra.mxu2 %vm579_vm8, %v11063_v25 }
 0xb7e   :  { %8327 = vmatmul.msk.f32.vlgmr.msrb.gmra.mxu0 %vm579_vm8, %v11063_v25  ;;  %4905 = vmatpush.msrb.mxu1 %v4857_v27 }
 0xb7f   :  { %4945 = vmatpush.msrb.mxu2 %v4859_v37  ;;  %4965 = vmatpush.msrb.mxu0 %v4860_v33  ;;  %v8942_v29 = vpop.permute.xlu0 %8941  ;;  %v8932_v44 = vpop.permute.xlu1 %8931 }
 0xb80   :  { %8339 = vmatmul.msk.f32.vlgmr.msra.gmra.mxu3 %vm579_vm8, %v11105_v61  ;;  %v8944_v10 = vunpack.i.h.bf16 %v8942_v29  ;;  %v8943_v58 = vunpack.i.l.bf16 %v8942_v29  ;;  %v8934_v60 = vunpack.i.h.bf16 %v8932_v44  ;;  %v8933_v50 = vunpack.i.l.bf16 %v8932_v44 }
 0xb82   :  { %v5013_v35 = vsel %vm249_vm2, %v8934_v60, %v8938_v19  ;;  %v5164_v7 = vsel %vm298_vm3, %v8943_v58, %v8944_v10  ;;  %v5010_v56 = vsel %vm249_vm2, %v8929_v39, %v8933_v50  ;;  %v5011_v1 = vsel %vm249_vm2, %v8933_v50, %v8939_v57 }
 0xb83   :  { %5118 = vmatpush.msrb.mxu3 %v5013_v35  ;;  %v11127_v63 = vpop.permute.xlu2 %8966  ;;  %v5012_v51 = vsel %vm249_vm2, %v8939_v57, %v8934_v60  ;;  %v5163_v12 = vsel %vm298_vm3, %v8953_v8, %v8943_v58 }
 0xb84   :  { %v8968_v59 = vunpack.i.l.bf16 %v11127_v63  ;;  %v8969_v28 = vunpack.i.h.bf16 %v11127_v63 }
 0xb85   :  { %5231 = vmatpush.msra.mxu3 %v5164_v7  ;;  %8328 = vmatmul.msk.f32.vlgmr.msra.gmra.mxu1 %vm579_vm8, %v11063_v25 }
 0xb86   :  { %8330 = vmatmul.msk.f32.vlgmr.msra.gmra.mxu2 %vm579_vm8, %v11063_v25  ;;  %8332 = vmatmul.msk.f32.vlgmr.msra.gmra.mxu0 %vm579_vm8, %v11083_v4  ;;  %v8954_v25 = vunpack.i.h.bf16 %v11111_v5 }
 0xb87   :  { %4985 = vmatpush.msra.mxu1 %v8924_v48  ;;  %5058 = vmatpush.msra.mxu2 %v5010_v56  ;;  %v8957_v55 = vpop.permute.xlu0 %8956  ;;  %v8947_v52 = vpop.permute.xlu1 %8946 }
 0xb88   :  { %5078 = vmatpush.msra.mxu0 %v5011_v1  ;;  %8343 = vmatmul.msk.f32.vlgmr.msrb.gmra.mxu3 %vm579_vm8, %v11105_v61  ;;  %v8959_v9 = vunpack.i.h.bf16 %v8957_v55  ;;  %v8958_v22 = vunpack.i.l.bf16 %v8957_v55  ;;  %v8949_v53 = vunpack.i.h.bf16 %v8947_v52  ;;  %v8948_v42 = vunpack.i.l.bf16 %v8947_v52  ;;  %v8373_v1 = vld [vmem:[%s11857_s0 + $0x40] sm:$0xff] }
 0xb8a   :  { %v5315_v30 = vsel %vm347_vm4, %v8958_v22, %v8959_v9  ;;  %v5162_v23 = vsel %vm298_vm3, %v8949_v53, %v8953_v8  ;;  %v5165_v34 = vsel %vm298_vm3, %v8944_v10, %v8948_v42  ;;  %v5166_v54 = vsel %vm298_vm3, %v8948_v42, %v8954_v25 }
 0xb8b   :  { %5344 = vmatpush.msrb.mxu3 %v5315_v30  ;;  %v11161_v2 = vpop.permute.xlu2 %8981  ;;  %vm4098_vm3 = vcmask 1024  }
 0xb8c   :  { %v8983_v17 = vunpack.i.l.bf16 %v11161_v2  ;;  %v8984_v37 = vunpack.i.h.bf16 %v11161_v2 }
 0xb8d   :  { %8333 = vmatmul.msk.f32.vlgmr.msrb.gmra.mxu1 %vm579_vm8, %v11083_v4 }
 0xb8e   :  { %8335 = vmatmul.msk.f32.vlgmr.msrb.gmra.mxu2 %vm579_vm8, %v11083_v4  ;;  %8336 = vmatmul.msk.f32.vlgmr.msrb.gmra.mxu0 %vm579_vm8, %v11083_v4 }
 0xb8f   :  { %5098 = vmatpush.msrb.mxu1 %v5012_v51  ;;  %5138 = vmatpush.msrb.mxu2 %v8938_v19  ;;  %v11142_v49 = vpop.permute.xlu0 %8971  ;;  %v8962_v6 = vpop.permute.xlu1 %8961  ;;  %v8366_v19 = vld [vmem:[%s11857_s0 + $0x38] sm:$0xff]  ;;  %s11884_s0 = smov 120  }
 0xb90   :  { %5191 = vmatpush.msrb.mxu0 %v5162_v23  ;;  %8348 = vmatmul.msk.f32.vlgmr.msra.gmra.mxu3 %vm579_vm8, %v11138_v36  ;;  %v8964_v31 = vunpack.i.h.bf16 %v8962_v6  ;;  %v8974_v41 = vunpack.i.h.bf16 %v11142_v49  ;;  %v8973_v45 = vunpack.i.l.bf16 %v11142_v49  ;;  %v8963_v26 = vunpack.i.l.bf16 %v8962_v6  ;;  %v3994_v23 = vpop.f32.mrf.mxu2 }
 0xb92   :  { %v5319_v3 = vsel %vm347_vm4, %v8964_v31, %v8968_v59  ;;  %v5470_v38 = vsel %vm402_vm5, %v8973_v45, %v8974_v41  ;;  %v5316_v62 = vsel %vm347_vm4, %v8959_v9, %v8963_v26  ;;  %v5317_v0 = vsel %vm347_vm4, %v8963_v26, %v8969_v28 }
 0xb93   :  { %5424 = vmatpush.msra.mxu3 %v5319_v3  ;;  %v8997_v46 = vpop.permute.xlu2 %8996  ;;  %v5318_v21 = vsel %vm347_vm4, %v8969_v28, %v8964_v31  ;;  %vm11876_vm4 = vcmask 834560  }
 0xb94   :  { %v8998_v39 = vunpack.i.l.bf16 %v8997_v46  ;;  %v8999_v60 = vunpack.i.h.bf16 %v8997_v46 }
 0xb95   :  { %8337 = vmatmul.msk.f32.vlgmr.msra.gmra.mxu1 %vm579_vm8, %v11083_v4 }
 0xb96   :  { %8340 = vmatmul.msk.f32.vlgmr.msra.gmra.mxu2 %vm579_vm8, %v11105_v61  ;;  %8341 = vmatmul.msk.f32.vlgmr.msra.gmra.mxu0 %vm579_vm8, %v11105_v61 }
 0xb97   :  { %5211 = vmatpush.msra.mxu1 %v5163_v12  ;;  %5251 = vmatpush.msra.mxu2 %v5165_v34  ;;  %v11170_v13 = vpop.permute.xlu0 %8986  ;;  %v8977_v18 = vpop.permute.xlu1 %8976 }
 0xb98   :  { %5271 = vmatpush.msra.mxu0 %v5166_v54  ;;  %8353 = vmatmul.msk.f32.vlgmr.msrb.gmra.mxu3 %vm579_vm8, %v11159_v32  ;;  %v8989_v24 = vunpack.i.h.bf16 %v11170_v13  ;;  %v8988_v15 = vunpack.i.l.bf16 %v11170_v13  ;;  %v8979_v47 = vunpack.i.h.bf16 %v8977_v18  ;;  %v8978_v43 = vunpack.i.l.bf16 %v8977_v18 }
 0xb99   :  { %5537 = vmatpush.msrb.mxu3 %v5470_v38 }
 0xb9a   :  { %v5621_v20 = vsel %vm456_vm6, %v8988_v15, %v8989_v24  ;;  %v5468_v14 = vsel %vm402_vm5, %v8979_v47, %v8983_v17  ;;  %v5471_v29 = vsel %vm402_vm5, %v8974_v41, %v8978_v43  ;;  %v5472_v44 = vsel %vm402_vm5, %v8978_v43, %v8984_v37  ;;  %v4092_v41 = vld [vmem:[%s11792_s16] sm:$0xff] }
 0xb9b   :  { %v5765_v7 = vpop.permute.xlu2 %5764 }
 0xb9d   :  { %8342 = vmatmul.msk.f32.vlgmr.msrb.gmra.mxu1 %vm579_vm8, %v11105_v61 }
 0xb9e   :  { %8344 = vmatmul.msk.f32.vlgmr.msrb.gmra.mxu2 %vm579_vm8, %v11105_v61  ;;  %8346 = vmatmul.msk.f32.vlgmr.msrb.gmra.mxu0 %vm579_vm8, %v11138_v36  ;;  %v5469_v61 = vsel %vm402_vm5, %v8983_v17, %v8973_v45  ;;  %vm11877_vm5 = vmmov %vm11876_vm4 }
 0xb9f   :  { %5291 = vmatpush.msrb.mxu1 %v8954_v25  ;;  %5364 = vmatpush.msrb.mxu2 %v5316_v62  ;;  %v8992_v4 = vpop.permute.xlu1 %8991  ;;  %v9002_v16 = vpop.permute.xlu0 %9001 }
 0xba0   :  { %5384 = vmatpush.msrb.mxu0 %v5317_v0  ;;  %8357 = vmatmul.msk.f32.vlgmr.msra.gmra.mxu3 %vm579_vm8, %v11159_v32  ;;  %v8994_v11 = vunpack.i.h.bf16 %v8992_v4  ;;  %v9004_v33 = vunpack.i.h.bf16 %v9002_v16  ;;  %v9003_v27 = vunpack.i.l.bf16 %v9002_v16  ;;  %v8993_v58 = vunpack.i.l.bf16 %v8992_v4 }
 0xba1   :  { %5650 = vmatpush.msra.mxu3 %v5621_v20 }
 0xba2   :  { %v5625_v48 = vsel %vm456_vm6, %v8994_v11, %v8998_v39  ;;  %v5776_v10 = vsel %vm510_vm7, %v9003_v27, %v9004_v33  ;;  %v5622_v50 = vsel %vm456_vm6, %v8989_v24, %v8993_v58  ;;  %v5623_v57 = vsel %vm456_vm6, %v8993_v58, %v8999_v60 }
 0xba3   :  { %v5624_v56 = vsel %vm456_vm6, %v8999_v60, %v8994_v11  ;;  %v5775_v22 = vsel %vm510_vm7, %v5765_v7, %v9003_v27  ;;  %vm11880_vm6 = vcmask 646144  }
 0xba5   :  { %8347 = vmatmul.msk.f32.vlgmr.msra.gmra.mxu1 %vm579_vm8, %v11138_v36 }
 0xba6   :  { %8349 = vmatmul.msk.f32.vlgmr.msra.gmra.mxu2 %vm579_vm8, %v11138_v36  ;;  %8350 = vmatmul.msk.f32.vlgmr.msra.gmra.mxu0 %vm579_vm8, %v11138_v36 }
 0xba7   :  { %5404 = vmatpush.msra.mxu1 %v5318_v21  ;;  %5444 = vmatpush.msra.mxu2 %v8968_v59  ;;  %v9007_v5 = vpop.permute.xlu1 %9006  ;;  %v5773_v9 = vpop.permute.xlu0 %5772 }
 0xba8   :  { %5497 = vmatpush.msra.mxu0 %v5468_v14  ;;  %8362 = vmatmul.msk.f32.vlgmr.msrb.gmra.mxu3 %vm579_vm8, %v8359_v40  ;;  %v9009_v35 = vunpack.i.h.bf16 %v9007_v5  ;;  %v9008_v52 = vunpack.i.l.bf16 %v9007_v5 }
 0xba9   :  { %5730 = vmatpush.msrb.mxu3 %v5625_v48  ;;  %v3997_v59 = vpop.f32.mrf.mxu2 }
 0xbaa   :  { %v5774_v55 = vsel %vm510_vm7, %v9009_v35, %v5765_v7  ;;  %v5777_v53 = vsel %vm510_vm7, %v9004_v33, %v9008_v52  ;;  %v5778_v8 = vsel %vm510_vm7, %v9008_v52, %v5773_v9  ;;  %vm11881_vm7 = vmmov %vm11880_vm6 }
 0xbad   :  { %8351 = vmatmul.msk.f32.vlgmr.msrb.gmra.mxu1 %vm579_vm8, %v11138_v36 }
 0xbae   :  { %8354 = vmatmul.msk.f32.vlgmr.msrb.gmra.mxu2 %vm579_vm8, %v11159_v32  ;;  %8355 = vmatmul.msk.f32.vlgmr.msrb.gmra.mxu0 %vm579_vm8, %v11159_v32 }
 0xbaf   :  { %5517 = vmatpush.msrb.mxu1 %v5469_v61  ;;  %5557 = vmatpush.msrb.mxu2 %v5471_v29 }
 0xbb0   :  { %5577 = vmatpush.msrb.mxu0 %v5472_v44  ;;  %8367 = vmatmul.msk.f32.vlgmr.msra.gmra.mxu3 %vm579_vm8, %v8366_v19 }
 0xbb1   :  { %5843 = vmatpush.msra.mxu3 %v5776_v10 }
 0xbb5   :  { %8356 = vmatmul.msk.f32.vlgmr.msra.gmra.mxu1 %vm579_vm8, %v11159_v32 }
 0xbb6   :  { %8358 = vmatmul.msk.f32.vlgmr.msra.gmra.mxu2 %vm579_vm8, %v11159_v32  ;;  %8360 = vmatmul.msk.f32.vlgmr.msra.gmra.mxu0 %vm579_vm8, %v8359_v40  ;;  %v4093_v32 = vld [vmem:[%s11792_s16 + $0x8] sm:$0x3] }
 0xbb7   :  { %5597 = vmatpush.msra.mxu1 %v8984_v37  ;;  %5670 = vmatpush.msra.mxu2 %v5622_v50 }
 0xbb8   :  { %5690 = vmatpush.msra.mxu0 %v5623_v57  ;;  %8371 = vmatmul.msk.f32.vlgmr.msrb.gmra.mxu3 %vm579_vm8, %v8366_v19 }
 0xbbd   :  { %8361 = vmatmul.msk.f32.vlgmr.msrb.gmra.mxu1 %vm579_vm8, %v8359_v40 }
 0xbbe   :  { %8363 = vmatmul.msk.f32.vlgmr.msrb.gmra.mxu2 %vm579_vm8, %v8359_v40  ;;  %8364 = vmatmul.msk.f32.vlgmr.msrb.gmra.mxu0 %vm579_vm8, %v8359_v40 }
 0xbbf   :  { %5710 = vmatpush.msrb.mxu1 %v5624_v56  ;;  %5750 = vmatpush.msrb.mxu2 %v8998_v39 }
 0xbc0   :  { %5803 = vmatpush.msrb.mxu0 %v5774_v55  ;;  %8376 = vmatmul.msk.f32.vlgmr.msra.gmra.mxu3 %vm579_vm8, %v8373_v1 }
 0xbc5   :  { %8365 = vmatmul.msk.f32.vlgmr.msra.gmra.mxu1 %vm579_vm8, %v8359_v40 }
 0xbc6   :  { %8368 = vmatmul.msk.f32.vlgmr.msra.gmra.mxu2 %vm579_vm8, %v8366_v19  ;;  %8369 = vmatmul.msk.f32.vlgmr.msra.gmra.mxu0 %vm579_vm8, %v8366_v19 }
 0xbc7   :  { %5823 = vmatpush.msra.mxu1 %v5775_v22  ;;  %v3965_v30 = vpop.f32.mrf.mxu1  ;;  %5863 = vmatpush.msra.mxu2 %v5777_v53 }
 0xbc8   :  { %5883 = vmatpush.msra.mxu0 %v5778_v8  ;;  %v3995_v51 = vadd.f32 %v3994_v23, %v3965_v30 }
 0xbcd   :  { %8370 = vmatmul.msk.f32.vlgmr.msrb.gmra.mxu1 %vm579_vm8, %v8366_v19 }
 0xbce   :  { %8372 = vmatmul.msk.f32.vlgmr.msrb.gmra.mxu2 %vm579_vm8, %v8366_v19  ;;  %8374 = vmatmul.msk.f32.vlgmr.msrb.gmra.mxu0 %vm579_vm8, %v8373_v1 }
 0xbcf   :  { %5903 = vmatpush.msrb.mxu1 %v5773_v9  ;;  %v3968_v63 = vpop.f32.mrf.mxu1 }
 0xbd0   :  { %v3998_v42 = vadd.f32 %v3997_v59, %v3968_v63 }
 0xbd5   :  { %8375 = vmatmul.msk.f32.vlgmr.msra.gmra.mxu1 %vm579_vm8, %v8373_v1  ;;  %v4084_v36 = vpop.f32.mrf.mxu3 }
 0xbd6   :  { %8377 = vmatmul.msk.f32.vlgmr.msra.gmra.mxu2 %vm579_vm8, %v8373_v1  ;;  %8378 = vmatmul.msk.f32.vlgmr.msra.gmra.mxu0 %vm579_vm8, %v8373_v1 }
 0xbd7   :  { %v4038_v49 = vpop.f32.mrf.mxu1 }
 0xbd8   :  { %v4044_v6 = vadd.f32 %v4038_v49, %v3995_v51  ;;  %v11261_v0 = vpop.f32.mrf.mxu2 }
 0xbda   :  { %v4090_v31 = vadd.f32 %v4084_v36, %v4044_v6 }
 0xbdc   :  { %v4094_v25 = vadd.f32 %v4092_v41, %v4090_v31 }
 0xbdd   :  { %8379 = vmatmul.msk.f32.vlgmr.msrb.gmra.mxu1 %vm579_vm8, %v8373_v1  ;;  %v4087_v3 = vpop.f32.mrf.mxu3 }
 0xbde   :  { %v4097_v34 = vsel %vm4096_vm1, %v4094_v25, -inf }
 0xbdf   :  { %v4041_v45 = vpop.f32.mrf.mxu1 }
 0xbe0   :  { %v4045_v12 = vadd.f32 %v4041_v45, %v3998_v42 }
 0xbe2   :  { %v4091_v2 = vadd.f32 %v4087_v3, %v4045_v12 }
 0xbe4   :  { %v4095_v54 = vadd.f32 %v4093_v32, %v4091_v2 }
 0xbe5   :  { %v11257_v18 = vpop.f32.mrf.mxu3  ;;  %v11259_v24 = vpop.f32.mrf.mxu0 }
 0xbe6   :  { %v4099_v38 = vsel %vm4098_vm3, %v4095_v54, -inf }
 0xbe7   :  { %v4100_v13 = vmax.f32 %v4097_v34, %v4099_v38 }
 0xbe9   :  { %v4101_v26 = vrot.slane %v4100_v13, 4 }
 0xbeb   :  { %v4102_v15 = vmax.f32 %v4100_v13, %v4101_v26  ;;  %v4741_v26 = vadd.f32 %v11257_v18, %v11261_v0 }
 0xbed   :  { %v4103_v28 = vrot.slane %v4102_v15, 2  ;;  %v11263_v4 = vpop.f32.mrf.mxu3 }
 0xbef   :  { %v4104_v62 = vmax.f32 %v4102_v15, %v4103_v28 }
 0xbf1   :  { %v4105_v20 = vrot.slane %v4104_v62, 1 }
 0xbf2   :  { %v11265_v47 = vpop.f32.mrf.mxu1 }
 0xbf3   :  { %v4106_v46 = vmax.f32 %v4104_v62, %v4105_v20  ;;  %v11267_v11 = vpop.f32.mrf.mxu0 }
 0xbf5   :  { %v4107_v17 = vsub.f32 %v4094_v25, %v4106_v46  ;;  %v4108_v39 = vsub.f32 %v4095_v54, %v4106_v46  ;;  %v4821_v46 = vadd.f32 %v11263_v4, %v11267_v11 }
 0xbf7   :  { %v4109_v21 = vmul.f32 1.442695, %v4107_v17  ;;  %v4111_v40 = vmul.f32 1.442695, %v4108_v39 }
 0xbf8   :  { %v11269_v14 = vpop.f32.mrf.mxu2 }
 0xbf9   :  { %9245 = vpow2.f32 %v4109_v21 }
 0xbfa   :  { %9247 = vpow2.f32 %v4111_v40  ;;  %v11271_v48 = vpop.f32.mrf.mxu1 }
 0xbfb   :  { %v4780_v16 = vpop.f32.mrf.mxu0  ;;  %v4927_v43 = vpop.f32.mrf.mxu3 }
 0xbfc   :  { %v4781_v20 = vadd.f32 %v4780_v16, %v11265_v47 }
 0xbff   :  { %v9246_v37 = vpop.eup %9245 }
 0xc00   :  { %v9248_v33 = vpop.eup %9247  ;;  %v4113_v27 = vsel %vm4096_vm1, %v9246_v37, 0.0  ;;  %v4760_v19 = vpop.f32.mrf.mxu2  ;;  %v4992_v37 = vadd.f32 %v4927_v43, %v4781_v20 }
 0xc01   :  { %v4114_v61 = vsel %vm4098_vm3, %v9248_v33, 0.0 }
 0xc02   :  { %v4115_v29 = vadd.f32 %v4114_v61, %v4113_v27  ;;  %v11275_v44 = vpop.f32.mrf.mxu1  ;;  %v4761_v61 = vadd.f32 %v4760_v19, %v11259_v24 }
 0xc03   :  { %v4887_v58 = vpop.f32.mrf.mxu0  ;;  %v5040_v60 = vpop.f32.mrf.mxu3  ;;  %v4801_v11 = vadd.f32 %v11275_v44, %v11269_v14 }
 0xc04   :  { %v4116_v10 = vrot.slane %v4115_v29, 4  ;;  %v4990_v28 = vadd.f32 %v4887_v58, %v4741_v26 }
 0xc06   :  { %v4117_v50 = vadd.f32 %v4116_v10, %v4115_v29 }
 0xc08   :  { %v4118_v57 = vrot.slane %v4117_v50, 2 }
 0xc09   :  { %v11277_v5 = vpop.f32.mrf.mxu2 }
 0xc0a   :  { %v4119_v35 = vadd.f32 %v4118_v57, %v4117_v50  ;;  %v4907_v7 = vpop.f32.mrf.mxu1  ;;  %v4841_v24 = vadd.f32 %v11277_v5, %v11271_v48 }
 0xc0b   :  { %v4967_v1 = vpop.f32.mrf.mxu0  ;;  %v5120_v55 = vpop.f32.mrf.mxu3  ;;  %v4991_v18 = vadd.f32 %v4907_v7, %v4761_v61 }
 0xc0c   :  { %v4120_v56 = vrot.slane %v4119_v35, 1  ;;  %v4994_v21 = vadd.f32 %v4967_v1, %v4821_v46 }
 0xc0e   :  { %v4121_v52 = vadd.f32 %v4120_v56, %v4119_v35  ;;  %v5147_v10 = vadd.f32 %v5120_v55, %v4994_v21 }
 0xc10   :  { %9249 = vlog2.f32 %v4121_v52 }
 0xc11   :  { %v4947_v9 = vpop.f32.mrf.mxu2 }
 0xc12   :  { %v4987_v22 = vpop.f32.mrf.mxu1  ;;  %v4993_v1 = vadd.f32 %v4947_v9, %v4801_v11  ;;  %v6026_v11 = vld [vmem:[#allocation4 + $0xc0] sm:$0xff] }
 0xc13   :  { %v5080_v53 = vpop.f32.mrf.mxu0  ;;  %v5233_v63 = vpop.f32.mrf.mxu3  ;;  %v4995_v52 = vadd.f32 %v4987_v22, %v4841_v24  ;;  %v6058_v24 = vld [vmem:[#allocation4 + $0x1c0] sm:$0xff] }
 0xc14   :  { %v5145_v29 = vadd.f32 %v5080_v53, %v4992_v37 }
 0xc16   :  { %v9250_v8 = vpop.eup %9249  ;;  %v5298_v47 = vadd.f32 %v5233_v63, %v5145_v29 }
 0xc17   :  { %v4123_v30 = vmul.f32 0.6931472, %v9250_v8 }
 0xc19   :  { %v4124_v23 = vsub.f32 %v4107_v17, %v4123_v30  ;;  %v4125_v51 = vsub.f32 %v4108_v39, %v4123_v30  ;;  %v5060_v36 = vpop.f32.mrf.mxu2  ;;  %v5143_v39 = vadd.f32 %v5040_v60, %v4990_v28 }
 0xc1a   :  { %v5100_v49 = vpop.f32.mrf.mxu1  ;;  %v5144_v16 = vadd.f32 %v5060_v36, %v4991_v18  ;;  %v5918_v36 = vpop.permute.xlu1 %5917  ;;  %v6064_v18 = vld [vmem:[#allocation4 + $0x1f0] sm:$0xff] }
 0xc1b   :  { %4126 = vst.msk [vmem:[%s11795_s19] sm:$0xff] %vm4096_vm1, %v4124_v23  ;;  %v5193_v6 = vpop.f32.mrf.mxu0  ;;  %v5346_v59 = vpop.f32.mrf.mxu3  ;;  %v5146_v8 = vadd.f32 %v5100_v49, %v4993_v1  ;;  %6191 = vmatpush.msrb.mxu2 %v6064_v18  ;;  %v6024_v1 = vld [vmem:[#allocation4 + $0xb0] sm:$0xff]  ;;  %v6114_v18 = vld [vmem:[#allocation4 + $0x380] sm:$0xff] }
 0xc1c   :  { %4127 = vst.msk [vmem:[%s11795_s19 + $0x8] sm:$0x3] %vm4098_vm3, %v4125_v51  ;;  %v5296_v33 = vadd.f32 %v5193_v6, %v5143_v39 }
 0xc1e   :  { %v5449_v0 = vadd.f32 %v5346_v59, %v5296_v33 }
 0xc21   :  { %v5140_v31 = vpop.f32.mrf.mxu2 }
 0xc22   :  { %v5213_v42 = vpop.f32.mrf.mxu1  ;;  %v5148_v6 = vadd.f32 %v5140_v31, %v4995_v52  ;;  %v6056_v52 = vld [vmem:[#allocation4 + $0x1b0] sm:$0xff] }
 0xc23   :  { %v5273_v41 = vpop.f32.mrf.mxu0  ;;  %v5426_v3 = vpop.f32.mrf.mxu3  ;;  %v5297_v60 = vadd.f32 %v5213_v42, %v5144_v16  ;;  %v6028_v16 = vld [vmem:[#allocation4 + $0xd0] sm:$0xff] }
 0xc24   :  { %v5300_v58 = vadd.f32 %v5273_v41, %v5147_v10  ;;  %v6032_v10 = vld [vmem:[#allocation4 + $0xf0] sm:$0xff] }
 0xc25   :  { %6171 = vmatpush.msrb.mxu3 %v6032_v10  ;;  %v6082_v10 = vld [vmem:[#allocation4 + $0x280] sm:$0xff] }
 0xc26   :  { %v5453_v19 = vadd.f32 %v5426_v3, %v5300_v58 }
 0xc29   :  { %v5253_v45 = vpop.f32.mrf.mxu2 }
 0xc2a   :  { %v5293_v25 = vpop.f32.mrf.mxu1  ;;  %v5299_v14 = vadd.f32 %v5253_v45, %v5146_v8 }
 0xc2b   :  { %v5386_v12 = vpop.f32.mrf.mxu0  ;;  %v5539_v54 = vpop.f32.mrf.mxu3  ;;  %v5301_v48 = vadd.f32 %v5293_v25, %v5148_v6  ;;  %v6054_v6 = vld [vmem:[#allocation4 + $0x1a0] sm:$0xff] }
 0xc2c   :  { %v5451_v43 = vadd.f32 %v5386_v12, %v5298_v47 }
 0xc2e   :  { %v5604_v30 = vadd.f32 %v5539_v54, %v5451_v43 }
 0xc31   :  { %v5366_v32 = vpop.f32.mrf.mxu2 }
 0xc32   :  { %v5406_v2 = vpop.f32.mrf.mxu1  ;;  %v5450_v7 = vadd.f32 %v5366_v32, %v5297_v60  ;;  %v6096_v60 = vld [vmem:[#allocation4 + $0x2f0] sm:$0xff] }
 0xc33   :  { %v5499_v34 = vpop.f32.mrf.mxu0  ;;  %v5652_v62 = vpop.f32.mrf.mxu3  ;;  %v5452_v5 = vadd.f32 %v5406_v2, %v5299_v14  ;;  %6211 = vmatpush.msrb.mxu0 %v6096_v60  ;;  %v6090_v14 = vld [vmem:[#allocation4 + $0x2c0] sm:$0xff]  ;;  %v6160_v60 = vld [vmem:[#allocation4 + $0x4f0] sm:$0x7f] }
 0xc34   :  { %v5602_v35 = vadd.f32 %v5499_v34, %v5449_v0  ;;  %v6030_v0 = vld [vmem:[#allocation4 + $0xe0] sm:$0xff] }
 0xc35   :  { %6172 = vmatpush.msrb.mxu3 %v6030_v0  ;;  %v6004_v0 = vld [vmem:[#allocation4 + $0x10] sm:$0xff] }
 0xc36   :  { %v5755_v55 = vadd.f32 %v5652_v62, %v5602_v35 }
 0xc37   :  { %6173 = vmatpush.msrb.mxu3 %v6028_v16  ;;  %v6002_v16 = vld [vmem:[#allocation4] sm:$0xff] }
 0xc39   :  { %v5446_v38 = vpop.f32.mrf.mxu2  ;;  %6174 = vmatpush.msrb.mxu3 %v6026_v11  ;;  %v6110_v11 = vld [vmem:[#allocation4 + $0x360] sm:$0xff] }
 0xc3a   :  { %v5519_v13 = vpop.f32.mrf.mxu1  ;;  %v5454_v49 = vadd.f32 %v5446_v38, %v5301_v48 }
 0xc3b   :  { %v5579_v15 = vpop.f32.mrf.mxu0  ;;  %v5732_v50 = vpop.f32.mrf.mxu3  ;;  %v5603_v63 = vadd.f32 %v5519_v13, %v5450_v7  ;;  %v6094_v7 = vld [vmem:[#allocation4 + $0x2e0] sm:$0xff]  ;;  %6175 = vmatpush.msrb.mxu3 %v6024_v1  ;;  %v6031_v1 = vld [vmem:[#allocation4 + $0xe8] sm:$0xff] }
 0xc3c   :  { %v5606_v53 = vadd.f32 %v5579_v15, %v5453_v19  ;;  %v6128_v19 = vld [vmem:[#allocation4 + $0x3f0] sm:$0xff]  ;;  %6212 = vmatpush.msrb.mxu0 %v6094_v7  ;;  %v6074_v7 = vld [vmem:[#allocation4 + $0x240] sm:$0xff] }
 0xc3d   :  { %6231 = vmatpush.msra.mxu1 %v6128_v19  ;;  %v6158_v19 = vld [vmem:[#allocation4 + $0x4e0] sm:$0xff] }
 0xc3e   :  { %v5759_v42 = vadd.f32 %v5732_v50, %v5606_v53  ;;  %v6092_v53 = vld [vmem:[#allocation4 + $0x2d0] sm:$0xff] }
 0xc3f   :  { %6213 = vmatpush.msrb.mxu0 %v6092_v53  ;;  %v6029_v53 = vld [vmem:[#allocation4 + $0xd8] sm:$0xff] }
 0xc41   :  { %v5559_v17 = vpop.f32.mrf.mxu2  ;;  %6214 = vmatpush.msrb.mxu0 %v6090_v14  ;;  %v6025_v14 = vld [vmem:[#allocation4 + $0xb8] sm:$0xff] }
 0xc42   :  { %v5599_v40 = vpop.f32.mrf.mxu1  ;;  %v5605_v34 = vadd.f32 %v5559_v17, %v5452_v5 }
 0xc43   :  { %v5692_v27 = vpop.f32.mrf.mxu0  ;;  %v5845_v41 = vpop.f32.mrf.mxu3  ;;  %v5607_v31 = vadd.f32 %v5599_v40, %v5454_v49  ;;  %v6050_v49 = vld [vmem:[#allocation4 + $0x180] sm:$0xff] }
 0xc44   :  { %v5757_v44 = vadd.f32 %v5692_v27, %v5604_v30  ;;  %v6022_v30 = vld [vmem:[#allocation4 + $0xa0] sm:$0xff] }
 0xc45   :  { %6176 = vmatpush.msrb.mxu3 %v6022_v30  ;;  %v6104_v30 = vld [vmem:[#allocation4 + $0x330] sm:$0xff] }
 0xc46   :  { %v5910_v54 = vadd.f32 %v5845_v41, %v5757_v44  ;;  %v6374_v44 = vld [vmem:[%s11782_s6 + $0x8] sm:$0xff] }
 0xc48   :  { %v11305_v2 = vadd.f32 %v5918_v36, %v5910_v54  ;;  %v6088_v54 = vld [vmem:[#allocation4 + $0x2b0] sm:$0xff] }
 0xc49   :  { %v5672_v57 = vpop.f32.mrf.mxu2  ;;  %6215 = vmatpush.msrb.mxu0 %v6088_v54  ;;  %v6146_v54 = vld [vmem:[#allocation4 + $0x480] sm:$0xff] }
 0xc4a   :  { %v5712_v4 = vpop.f32.mrf.mxu1  ;;  %v5756_v59 = vadd.f32 %v5672_v57, %v5603_v63  ;;  %v5928_v40 = vmax.f32 %v11305_v2, 0.0  ;;  %v6062_v57 = vld [vmem:[#allocation4 + $0x1e0] sm:$0xff]  ;;  %v6124_v63 = vld [vmem:[#allocation4 + $0x3d0] sm:$0xff] }
 0xc4b   :  { %v5805_v56 = vpop.f32.mrf.mxu0  ;;  %v5758_v45 = vadd.f32 %v5712_v4, %v5605_v34  ;;  %6192 = vmatpush.msrb.mxu2 %v6062_v57  ;;  %v6060_v4 = vld [vmem:[#allocation4 + $0x1d0] sm:$0xff] }
 0xc4c   :  { %v5908_v23 = vadd.f32 %v5805_v56, %v5755_v55  ;;  %v6126_v55 = vld [vmem:[#allocation4 + $0x3e0] sm:$0xff]  ;;  %v6016_v34 = vld [vmem:[#allocation4 + $0x70] sm:$0xff] }
 0xc4d   :  { %6193 = vmatpush.msrb.mxu2 %v6060_v4  ;;  %6232 = vmatpush.msra.mxu1 %v6126_v55  ;;  %v6080_v57 = vld [vmem:[#allocation4 + $0x270] sm:$0xff]  ;;  %v6078_v4 = vld [vmem:[#allocation4 + $0x260] sm:$0xff] }
 0xc4e   :  { %v11297_v9 = vadd.f32 %v5918_v36, %v5908_v23  ;;  %v6106_v55 = vld [vmem:[#allocation4 + $0x340] sm:$0xff] }
 0xc4f   :  { %6194 = vmatpush.msrb.mxu2 %v6058_v24  ;;  %6233 = vmatpush.msra.mxu1 %v6124_v63  ;;  %v6108_v24 = vld [vmem:[#allocation4 + $0x350] sm:$0xff]  ;;  %v6154_v63 = vld [vmem:[#allocation4 + $0x4c0] sm:$0xff] }
 0xc50   :  { %v5926_v15 = vmax.f32 %v11297_v9, 0.0 }
 0xc51   :  { %v5752_v51 = vpop.f32.mrf.mxu2  ;;  %6195 = vmatpush.msrb.mxu2 %v6056_v52  ;;  %v6156_v52 = vld [vmem:[#allocation4 + $0x4d0] sm:$0xff] }
 0xc52   :  { %v5825_v12 = vpop.f32.mrf.mxu1  ;;  %v5760_v20 = vadd.f32 %v5752_v51, %v5607_v31  ;;  %v6014_v31 = vld [vmem:[#allocation4 + $0x60] sm:$0xff] }
 0xc53   :  { %v5909_v3 = vadd.f32 %v5825_v12, %v5756_v59  ;;  %v5885_v22 = vpop.f32.mrf.mxu0  ;;  %v6020_v59 = vld [vmem:[#allocation4 + $0x90] sm:$0xff]  ;;  %6196 = vmatpush.msrb.mxu2 %v6054_v6 }
 0xc54   :  { %v5912_v32 = vadd.f32 %v5885_v22, %v5759_v42  ;;  %v6052_v12 = vld [vmem:[#allocation4 + $0x190] sm:$0xff]  ;;  %v6018_v22 = vld [vmem:[#allocation4 + $0x80] sm:$0xff]  ;;  %6177 = vmatpush.msrb.mxu3 %v6020_v59 }
 0xc55   :  { %v11299_v13 = vadd.f32 %v5918_v36, %v5909_v3  ;;  %6197 = vmatpush.msrb.mxu2 %v6052_v12  ;;  %v6152_v6 = vld [vmem:[#allocation4 + $0x4b0] sm:$0xff]  ;;  %v6066_v12 = vld [vmem:[#allocation4 + $0x200] sm:$0xff] }
 0xc56   :  { %v5924_v26 = vadd.f32 %v5918_v36, %v5912_v32  ;;  %v6122_v32 = vld [vmem:[#allocation4 + $0x3c0] sm:$0xff]  ;;  %6178 = vmatpush.msrb.mxu3 %v6018_v22  ;;  %v6100_v59 = vld [vmem:[#allocation4 + $0x310] sm:$0xff] }
 0xc57   :  { %v5927_v28 = vmax.f32 %v11299_v13, 0.0  ;;  %v6048_v13 = vld [vmem:[#allocation4 + $0x170] sm:$0xff]  ;;  %6234 = vmatpush.msra.mxu1 %v6122_v32  ;;  %6198 = vmatpush.msrb.mxu2 %v6050_v49  ;;  %v6098_v22 = vld [vmem:[#allocation4 + $0x300] sm:$0xff]  ;;  %v6021_v49 = vld [vmem:[#allocation4 + $0x98] sm:$0xff] }
 0xc58   :  { %v11303_v62 = vmax.f32 %v5924_v26, 0.0  ;;  %v6120_v26 = vld [vmem:[#allocation4 + $0x3b0] sm:$0xff]  ;;  %6179 = vmatpush.msrb.mxu3 %v6016_v34  ;;  %v6097_v34 = vld [vmem:[#allocation4 + $0x2f8] sm:$0xff] }
 0xc59   :  { %v5865_v25 = vpop.f32.mrf.mxu2  ;;  %v9010_v38 = vpack.i.bf16 %v5927_v28, %v5926_v15  ;;  %6199 = vmatpush.msrb.mxu2 %v6048_v13  ;;  %6235 = vmatpush.msra.mxu1 %v6120_v26  ;;  %v6148_v32 = vld [vmem:[#allocation4 + $0x490] sm:$0xff]  ;;  %v6019_v13 = vld [vmem:[#allocation4 + $0x88] sm:$0xff] }
 0xc5a   :  { %v5911_v46 = vadd.f32 %v5865_v25, %v5758_v45  ;;  %5945 = vrot.lane.b32.xlu1 %v11303_v62, %s11861_s2  ;;  %v5905_v17 = vpop.f32.mrf.mxu1  ;;  %6180 = vmatpush.msrb.mxu3 %v6014_v31  ;;  %v6044_v25 = vld [vmem:[#allocation4 + $0x150] sm:$0xff]  ;;  %v6063_v26 = vld [vmem:[#allocation4 + $0x1e8] sm:$0xff] }
 0xc5b   :  { %v5913_v21 = vadd.f32 %v5905_v17, %v5760_v20  ;;  %9011 = vrot.lane.b32.xlu2 %v9010_v38, %s11861_s2  ;;  %v6373_v38 = vld [vmem:[%s11782_s6] sm:$0xff]  ;;  %v6095_v31 = vld [vmem:[#allocation4 + $0x2e8] sm:$0xff] }
 0xc5c   :  { %v11313_v39 = vadd.f32 %v5918_v36, %v5911_v46  ;;  %v6010_v46 = vld [vmem:[#allocation4 + $0x40] sm:$0xff] }
 0xc5d   :  { %v11318_v33 = vadd.f32 %v5918_v36, %v5913_v21  ;;  %v6042_v17 = vld [vmem:[#allocation4 + $0x140] sm:$0xff] }
 0xc5e   :  { %v5929_v37 = vmax.f32 %v11313_v39, 0.0  ;;  %v6086_v39 = vld [vmem:[#allocation4 + $0x2a0] sm:$0xff] }
 0xc5f   :  { %v5931_v61 = vmax.f32 %v11318_v33, 0.0  ;;  %v6118_v21 = vld [vmem:[#allocation4 + $0x3a0] sm:$0xff]  ;;  %6216 = vmatpush.msrb.mxu0 %v6086_v39  ;;  %v6084_v33 = vld [vmem:[#allocation4 + $0x290] sm:$0xff] }
 0xc60   :  { %v9015_v27 = vpack.i.bf16 %v5929_v37, %v5928_v40  ;;  %6236 = vmatpush.msra.mxu1 %v6118_v21  ;;  %v6140_v39 = vld [vmem:[#allocation4 + $0x450] sm:$0xff]  ;;  %v6013_v21 = vld [vmem:[#allocation4 + $0x58] sm:$0xff] }
 0xc61   :  { %6217 = vmatpush.msrb.mxu0 %v6084_v33  ;;  %v6138_v33 = vld [vmem:[#allocation4 + $0x440] sm:$0xff] }
 0xc62   :  { %9016 = vrot.lane.b32.xlu0 %v9015_v27, %s11861_s2  ;;  %v6116_v27 = vld [vmem:[#allocation4 + $0x390] sm:$0xff] }
 0xc63   :  { %5962 = vrot.lane.b32.xlu2 %v5931_v61, %s11861_s2  ;;  %6237 = vmatpush.msra.mxu1 %v6116_v27  ;;  %v6011_v27 = vld [vmem:[#allocation4 + $0x48] sm:$0xff] }
 0xc64   :  { %6218 = vmatpush.msrb.mxu0 %v6082_v10  ;;  %v6136_v10 = vld [vmem:[#allocation4 + $0x430] sm:$0xff] }
 0xc65   :  { %6238 = vmatpush.msra.mxu1 %v6114_v18  ;;  %v6009_v18 = vld [vmem:[#allocation4 + $0x38] sm:$0xff] }
 0xc66   :  { %6219 = vmatpush.msrb.mxu0 %v6080_v57  ;;  %v6134_v57 = vld [vmem:[#allocation4 + $0x420] sm:$0xff] }
 0xc68   :  { %6220 = vmatpush.msrb.mxu0 %v6078_v4  ;;  %v6132_v4 = vld [vmem:[#allocation4 + $0x410] sm:$0xff] }
 0xcb5   :  { %v9012_v29 = vpop.permute.xlu2 %9011 }
 0xcb6   :  { %v9014_v43 = vunpack.i.h.bf16 %v9012_v29  ;;  %v9013_v56 = vunpack.i.l.bf16 %v9012_v29  ;;  %v6038_v29 = vld [vmem:[#allocation4 + $0x120] sm:$0xff] }
 0xcb8   :  { %v5947_v23 = vsel %vm151_vm0, %v9013_v56, %v9014_v43  ;;  %v6076_v56 = vld [vmem:[#allocation4 + $0x250] sm:$0xff] }
 0xcb9   :  { %v11344_v48 = vmax.f32 %v5926_v15, %v5947_v23  ;;  %v6046_v15 = vld [vmem:[#allocation4 + $0x160] sm:$0xff]  ;;  %6221 = vmatpush.msrb.mxu0 %v6076_v56  ;;  %v6027_v23 = vld [vmem:[#allocation4 + $0xc8] sm:$0xff] }
 0xcba   :  { %6200 = vmatpush.msrb.mxu2 %v6046_v15  ;;  %v6017_v15 = vld [vmem:[#allocation4 + $0x78] sm:$0xff]  ;;  %v6130_v56 = vld [vmem:[#allocation4 + $0x400] sm:$0xff] }
 0xcbb   :  { %6222 = vmatpush.msrb.mxu0 %v6074_v7  ;;  %v6045_v7 = vld [vmem:[#allocation4 + $0x158] sm:$0xff] }
 0xcbc   :  { %6201 = vmatpush.msrb.mxu2 %v6044_v25  ;;  %v6093_v25 = vld [vmem:[#allocation4 + $0x2d8] sm:$0xff] }
 0xcbd   :  { %v11327_v58 = vpop.permute.xlu2 %5962 }
 0xcbe   :  { %v5968_v20 = vmax.f32 %v5931_v61, %v11327_v58  ;;  %6202 = vmatpush.msrb.mxu2 %v6042_v17  ;;  %v6006_v61 = vld [vmem:[#allocation4 + $0x20] sm:$0xff]  ;;  %v6091_v17 = vld [vmem:[#allocation4 + $0x2c8] sm:$0xff] }
 0xccc   :  { %v11329_v50 = vpop.permute.xlu1 %5945 }
 0xccd   :  { %v5964_v47 = vsel %vm151_vm0, %v11329_v50, %v11327_v58  ;;  %v6036_v58 = vld [vmem:[#allocation4 + $0x110] sm:$0xff] }
 0xcce   :  { %v5967_v35 = vmax.f32 %v11303_v62, %v5964_v47  ;;  %v6112_v47 = vld [vmem:[#allocation4 + $0x370] sm:$0xff] }
 0xccf   :  { %6239 = vmatpush.msra.mxu1 %v6112_v47  ;;  %v6007_v47 = vld [vmem:[#allocation4 + $0x28] sm:$0xff] }
 0xcd0   :  { %5983 = vrot.lane.b32.xlu2 %v5967_v35, %s11863_s22  ;;  %v6034_v35 = vld [vmem:[#allocation4 + $0x100] sm:$0xff] }
 0xcd1   :  { %6240 = vmatpush.msra.mxu1 %v6110_v11  ;;  %v6005_v11 = vld [vmem:[#allocation4 + $0x18] sm:$0xff] }
 0xcd3   :  { %6241 = vmatpush.msra.mxu1 %v6108_v24  ;;  %v6003_v24 = vld [vmem:[#allocation4 + $0x8] sm:$0xff] }
 0xcd4   :  { %v9017_v8 = vpop.permute.xlu0 %9016 }
 0xcd5   :  { %v9019_v51 = vunpack.i.h.bf16 %v9017_v8  ;;  %v9018_v36 = vunpack.i.l.bf16 %v9017_v8  ;;  %v6072_v8 = vld [vmem:[#allocation4 + $0x230] sm:$0xff]  ;;  %6242 = vmatpush.msra.mxu1 %v6106_v55  ;;  %v6077_v55 = vld [vmem:[#allocation4 + $0x258] sm:$0xff] }
 0xcd6   :  { %6223 = vmatpush.msrb.mxu0 %v6072_v8  ;;  %v6041_v8 = vld [vmem:[#allocation4 + $0x138] sm:$0xff] }
 0xcd7   :  { %v5948_v42 = vsel %vm151_vm0, %v9014_v43, %v9018_v36  ;;  %v5949_v41 = vsel %vm151_vm0, %v9018_v36, %v9019_v51  ;;  %v5950_v45 = vsel %vm151_vm0, %v9019_v51, %v11329_v50  ;;  %v6033_v43 = vld [vmem:[#allocation4 + $0xf8] sm:$0xff]  ;;  %v6070_v51 = vld [vmem:[#allocation4 + $0x220] sm:$0xff]  ;;  %6243 = vmatpush.msra.mxu1 %v6104_v30 }
 0xcd8   :  { %v11348_v5 = vmax.f32 %v5927_v28, %v5948_v42  ;;  %v11350_v3 = vmax.f32 %v5928_v40, %v5949_v41  ;;  %6382 = vperm.xlu2 %8544, %v6374_v44   ;;  %v6012_v28 = vld [vmem:[#allocation4 + $0x50] sm:$0xff]  ;;  %v11361_v2 = vmax.f32 %v5929_v37, %v5950_v45  ;;  %v6102_v36 = vld [vmem:[#allocation4 + $0x320] sm:$0xff]  ;;  %6224 = vmatpush.msrb.mxu0 %v6070_v51  ;;  %v6023_v41 = vld [vmem:[#allocation4 + $0xa8] sm:$0xff] }
 0xcd9   :  { %6181 = vmatpush.msrb.mxu3 %v6012_v28  ;;  %v6008_v40 = vld [vmem:[#allocation4 + $0x30] sm:$0xff]  ;;  %6244 = vmatpush.msra.mxu1 %v6102_v36  ;;  %v6150_v42 = vld [vmem:[#allocation4 + $0x4a0] sm:$0xff]  ;;  %v6061_v28 = vld [vmem:[#allocation4 + $0x1d8] sm:$0xff] }
 0xcda   :  { %5979 = vrot.lane.b32.xlu1 %v11350_v3, %s11863_s22  ;;  %v9020_v9 = vpack.i.bf16 %v11348_v5, %v11344_v48  ;;  %v6040_v37 = vld [vmem:[#allocation4 + $0x130] sm:$0xff]  ;;  %v6073_v30 = vld [vmem:[#allocation4 + $0x238] sm:$0xff] }
 0xcdb   :  { %6182 = vmatpush.msrb.mxu3 %v6010_v46  ;;  %6203 = vmatpush.msrb.mxu2 %v6040_v37  ;;  %v6068_v44 = vld [vmem:[#allocation4 + $0x210] sm:$0xff]  ;;  %v6059_v46 = vld [vmem:[#allocation4 + $0x1c8] sm:$0xff]  ;;  %v6089_v37 = vld [vmem:[#allocation4 + $0x2b8] sm:$0xff] }
 0xcdc   :  { %9021 = vrot.lane.b32.xlu0 %v9020_v9, %s11863_s22  ;;  %6225 = vmatpush.msrb.mxu0 %v6068_v44  ;;  %v6065_v9 = vld [vmem:[#allocation4 + $0x1f8] sm:$0xff]  ;;  %v6144_v45 = vld [vmem:[#allocation4 + $0x470] sm:$0xff] }
 0xcdd   :  { %6183 = vmatpush.msrb.mxu3 %v6008_v40  ;;  %6204 = vmatpush.msrb.mxu2 %v6038_v29  ;;  %v6057_v40 = vld [vmem:[#allocation4 + $0x1b8] sm:$0xff]  ;;  %v6087_v29 = vld [vmem:[#allocation4 + $0x2a8] sm:$0xff] }
 0xcde   :  { %6245 = vmatpush.msra.mxu1 %v6100_v59  ;;  %6226 = vmatpush.msrb.mxu0 %v6066_v12  ;;  %v6037_v51 = vld [vmem:[#allocation4 + $0x118] sm:$0xff] }
 0xcdf   :  { %6184 = vmatpush.msrb.mxu3 %v6006_v61  ;;  %6205 = vmatpush.msrb.mxu2 %v6036_v58  ;;  %v6055_v61 = vld [vmem:[#allocation4 + $0x1a8] sm:$0xff]  ;;  %v6085_v58 = vld [vmem:[#allocation4 + $0x298] sm:$0xff] }
 0xce0   :  { %6246 = vmatpush.msra.mxu1 %v6098_v22  ;;  %6291 = vmatpush.msra.mxu0 %v6065_v9  ;;  %v6069_v36 = vld [vmem:[#allocation4 + $0x218] sm:$0xff] }
 0xce1   :  { %6185 = vmatpush.msrb.mxu3 %v6004_v0  ;;  %6206 = vmatpush.msrb.mxu2 %v6034_v35  ;;  %v6053_v0 = vld [vmem:[#allocation4 + $0x198] sm:$0xff]  ;;  %v6083_v35 = vld [vmem:[#allocation4 + $0x288] sm:$0xff] }
 0xce2   :  { %5981 = vrot.lane.b32.xlu1 %v11361_v2, %s11863_s22  ;;  %6311 = vmatpush.msrb.mxu1 %v6097_v34  ;;  %v6129_v9 = vld [vmem:[#allocation4 + $0x3f8] sm:$0xff] }
 0xce3   :  { %6186 = vmatpush.msrb.mxu3 %v6002_v16  ;;  %6271 = vmatpush.msra.mxu2 %v6033_v43  ;;  %v6051_v16 = vld [vmem:[#allocation4 + $0x188] sm:$0xff]  ;;  %v6081_v43 = vld [vmem:[#allocation4 + $0x278] sm:$0xff] }
 0xce4   :  { %5985 = vrot.lane.b32.xlu0 %v5968_v20, %s11863_s22  ;;  %6292 = vmatpush.msra.mxu0 %v6063_v26  ;;  %v6142_v20 = vld [vmem:[#allocation4 + $0x460] sm:$0xff]  ;;  %v6161_v34 = vld [vmem:[#allocation4 + $0x4f8] sm:$0x7f]  ;;  %v6127_v26 = vld [vmem:[#allocation4 + $0x3e8] sm:$0xff]  ;;  %s11883_s22 = smov 122  }
 0xce5   :  { %8380 = vmatpush.msk.msra.mxu3 %vm2155_vm9, %v6160_v60  ;;  %6272 = vmatpush.msra.mxu2 %v6031_v1  ;;  %v6049_v60 = vld [vmem:[#allocation4 + $0x178] sm:$0xff]  ;;  %v6079_v1 = vld [vmem:[#allocation4 + $0x268] sm:$0xff] }
 0xce6   :  { %6312 = vmatpush.msrb.mxu1 %v6095_v31  ;;  %6293 = vmatpush.msra.mxu0 %v6061_v28  ;;  %v6159_v31 = vld [vmem:[#allocation4 + $0x4e8] sm:$0xff] }
 0xce7   :  { %6252 = vmatpush.msra.mxu3 %v6158_v19  ;;  %6273 = vmatpush.msra.mxu2 %v6029_v53  ;;  %v6047_v19 = vld [vmem:[#allocation4 + $0x168] sm:$0xff] }
 0xce8   :  { %6313 = vmatpush.msrb.mxu1 %v6093_v25  ;;  %6294 = vmatpush.msra.mxu0 %v6059_v46  ;;  %v6075_v53 = vld [vmem:[#allocation4 + $0x248] sm:$0xff]  ;;  %v6125_v25 = vld [vmem:[#allocation4 + $0x3d8] sm:$0xff]  ;;  %v5960_v46 = vmax.f32 %v11303_v62, %v11329_v50 }
 0xce9   :  { %6253 = vmatpush.msra.mxu3 %v6156_v52  ;;  %6274 = vmatpush.msra.mxu2 %v6027_v23  ;;  %v6043_v52 = vld [vmem:[#allocation4 + $0x148] sm:$0xff]  ;;  %v6117_v62 = vld [vmem:[#allocation4 + $0x398] sm:$0xff] }
 0xcea   :  { %6314 = vmatpush.msrb.mxu1 %v6091_v17  ;;  %6295 = vmatpush.msra.mxu0 %v6057_v40  ;;  %v6071_v23 = vld [vmem:[#allocation4 + $0x228] sm:$0xff]  ;;  %v6149_v50 = vld [vmem:[#allocation4 + $0x498] sm:$0xff] }
 0xceb   :  { %6254 = vmatpush.msra.mxu3 %v6154_v63  ;;  %6275 = vmatpush.msra.mxu2 %v6025_v14  ;;  %v6039_v63 = vld [vmem:[#allocation4 + $0x128] sm:$0xff] }
 0xcec   :  { %6377 = vperm.xlu0 %8542, %v6373_v38   ;;  %v6015_v38 = vld [vmem:[#allocation4 + $0x68] sm:$0xff]  ;;  %6315 = vmatpush.msrb.mxu1 %v6089_v37 }
 0xced   :  { %6255 = vmatpush.msra.mxu3 %v6152_v6  ;;  %6276 = vmatpush.msra.mxu2 %v6023_v41  ;;  %v6035_v6 = vld [vmem:[#allocation4 + $0x108] sm:$0xff] }
 0xcee   :  { %6296 = vmatpush.msra.mxu0 %v6055_v61  ;;  %6316 = vmatpush.msrb.mxu1 %v6087_v29  ;;  %v6067_v14 = vld [vmem:[#allocation4 + $0x208] sm:$0xff]  ;;  %v6113_v61 = vld [vmem:[#allocation4 + $0x378] sm:$0xff] }
 0xcef   :  { %6256 = vmatpush.msra.mxu3 %v6150_v42  ;;  %6277 = vmatpush.msra.mxu2 %v6021_v49  ;;  %v6123_v17 = vld [vmem:[#allocation4 + $0x3c8] sm:$0xff]  ;;  %v6145_v29 = vld [vmem:[#allocation4 + $0x478] sm:$0xff] }
 0xcf0   :  { %6297 = vmatpush.msra.mxu0 %v6053_v0  ;;  %6317 = vmatpush.msrb.mxu1 %v6085_v58  ;;  %v6119_v40 = vld [vmem:[#allocation4 + $0x3a8] sm:$0xff]  ;;  %v6109_v0 = vld [vmem:[#allocation4 + $0x358] sm:$0xff] }
 0xcf1   :  { %6257 = vmatpush.msra.mxu3 %v6148_v32  ;;  %6278 = vmatpush.msra.mxu2 %v6019_v13  ;;  %v6151_v37 = vld [vmem:[#allocation4 + $0x4a8] sm:$0xff]  ;;  %v6141_v58 = vld [vmem:[#allocation4 + $0x458] sm:$0xff] }
 0xcf2   :  { %6298 = vmatpush.msra.mxu0 %v6051_v16  ;;  %6318 = vmatpush.msrb.mxu1 %v6083_v35  ;;  %v6105_v16 = vld [vmem:[#allocation4 + $0x338] sm:$0xff] }
 0xcf3   :  { %6258 = vmatpush.msra.mxu3 %v6146_v54  ;;  %6279 = vmatpush.msra.mxu2 %v6017_v15  ;;  %v6137_v35 = vld [vmem:[#allocation4 + $0x438] sm:$0xff] }
 0xcf4   :  { %6299 = vmatpush.msra.mxu0 %v6049_v60  ;;  %6319 = vmatpush.msrb.mxu1 %v6081_v43  ;;  %v6101_v60 = vld [vmem:[#allocation4 + $0x318] sm:$0xff] }
 0xcf5   :  { %6259 = vmatpush.msra.mxu3 %v6144_v45  ;;  %6280 = vmatpush.msra.mxu2 %v6015_v38  ;;  %v6133_v43 = vld [vmem:[#allocation4 + $0x418] sm:$0xff] }
 0xcf6   :  { %6300 = vmatpush.msra.mxu0 %v6047_v19  ;;  %6320 = vmatpush.msrb.mxu1 %v6079_v1 }
 0xcf7   :  { %6260 = vmatpush.msra.mxu3 %v6142_v20  ;;  %6281 = vmatpush.msra.mxu2 %v6013_v21  ;;  %v6157_v20 = vld [vmem:[#allocation4 + $0x4d8] sm:$0xff] }
 0xcf8   :  { %6301 = vmatpush.msra.mxu0 %v6045_v7  ;;  %6321 = vmatpush.msrb.mxu1 %v6077_v55  ;;  %v6153_v21 = vld [vmem:[#allocation4 + $0x4b8] sm:$0xff] }
 0xcf9   :  { %6261 = vmatpush.msra.mxu3 %v6140_v39  ;;  %6282 = vmatpush.msra.mxu2 %v6011_v27  ;;  %v6155_v39 = vld [vmem:[#allocation4 + $0x4c8] sm:$0xff] }
 0xcfa   :  { %6302 = vmatpush.msra.mxu0 %v6043_v52  ;;  %6322 = vmatpush.msrb.mxu1 %v6075_v53  ;;  %v6147_v27 = vld [vmem:[#allocation4 + $0x488] sm:$0xff] }
 0xcfb   :  { %6262 = vmatpush.msra.mxu3 %v6138_v33  ;;  %6283 = vmatpush.msra.mxu2 %v6009_v18  ;;  %v6115_v33 = vld [vmem:[#allocation4 + $0x388] sm:$0xff] }
 0xcfc   :  { %6303 = vmatpush.msra.mxu0 %v6041_v8  ;;  %6323 = vmatpush.msrb.mxu1 %v6073_v30  ;;  %v6143_v18 = vld [vmem:[#allocation4 + $0x468] sm:$0xff] }
 0xcfd   :  { %6263 = vmatpush.msra.mxu3 %v6136_v10  ;;  %6284 = vmatpush.msra.mxu2 %v6007_v47  ;;  %v6111_v10 = vld [vmem:[#allocation4 + $0x368] sm:$0xff] }
 0xcfe   :  { %6304 = vmatpush.msra.mxu0 %v6039_v63  ;;  %6324 = vmatpush.msrb.mxu1 %v6071_v23  ;;  %v6139_v47 = vld [vmem:[#allocation4 + $0x448] sm:$0xff]  ;;  %v6371_v23 = vld [vmem:[%s11781_s5] sm:$0xff] }
 0xcff   :  { %6264 = vmatpush.msra.mxu3 %v6134_v57  ;;  %6285 = vmatpush.msra.mxu2 %v6005_v11  ;;  %v6107_v57 = vld [vmem:[#allocation4 + $0x348] sm:$0xff] }
 0xd00   :  { %6305 = vmatpush.msra.mxu0 %v6037_v51  ;;  %6325 = vmatpush.msrb.mxu1 %v6069_v36  ;;  %v6135_v11 = vld [vmem:[#allocation4 + $0x428] sm:$0xff] }
 0xd01   :  { %6265 = vmatpush.msra.mxu3 %v6132_v4  ;;  %6286 = vmatpush.msra.mxu2 %v6003_v24  ;;  %v6103_v4 = vld [vmem:[#allocation4 + $0x328] sm:$0xff] }
 0xd02   :  { %6306 = vmatpush.msra.mxu0 %v6035_v6  ;;  %6326 = vmatpush.msrb.mxu1 %v6067_v14  ;;  %v6131_v24 = vld [vmem:[#allocation4 + $0x408] sm:$0xff] }
 0xd03   :  { %6266 = vmatpush.msra.mxu3 %v6130_v56  ;;  %v6099_v56 = vld [vmem:[#allocation4 + $0x308] sm:$0xff] }
 0xd04   :  { %v6372_v51 = vld [vmem:[%s11781_s5 + $0x8] sm:$0xff]  ;;  %s11871_s5 = smov 116  }
 0xd2a   :  { %v5984_v54 = vpop.permute.xlu2 %5983 }
 0xd4c   :  { %v5980_v44 = vpop.permute.xlu1 %5979 }
 0xd4e   :  { %v9022_v59 = vpop.permute.xlu0 %9021 }
 0xd4f   :  { %v9024_v42 = vunpack.i.h.bf16 %v9022_v59  ;;  %v9023_v41 = vunpack.i.l.bf16 %v9022_v59 }
 0xd51   :  { %v5988_v12 = vsel %vm249_vm2, %v9024_v42, %v5980_v44  ;;  %v5987_v22 = vsel %vm249_vm2, %v9023_v41, %v9024_v42 }
 0xd52   :  { %v5998_v32 = vmax.f32 %v11348_v5, %v5988_v12  ;;  %v5997_v49 = vmax.f32 %v11344_v48, %v5987_v22 }
 0xd54   :  { %v5982_v13 = vpop.permute.xlu1 %5981  ;;  %6187 = vmatmul.f32.vlgmr.msrb.gmra.mxu3 %v5997_v49  ;;  %6207 = vmatmul.f32.vlgmr.msrb.gmra.mxu2 %v5998_v32 }
 0xd55   :  { %v5989_v45 = vsel %vm249_vm2, %v5980_v44, %v5982_v13  ;;  %v5990_v15 = vsel %vm249_vm2, %v5982_v13, %v5984_v54  ;;  %6331 = vmatpush.msrb.mxu3 %v6129_v9  ;;  %8382 = vmatpush.msk.msrb.mxu2 %vm2155_vm9, %v6161_v34  ;;  %v6383_v34 = vpop.permute.xlu2 %6382 }
 0xd56   :  { %v5999_v28 = vmax.f32 %v11350_v3, %v5989_v45  ;;  %v11382_v5 = vmax.f32 %v11361_v2, %v5990_v15  ;;  %v5986_v48 = vpop.permute.xlu0 %5985  ;;  %v6121_v2 = vld [vmem:[#allocation4 + $0x3b8] sm:$0xff] }
 0xd57   :  { %v5991_v38 = vsel %vm249_vm2, %v5984_v54, %v5986_v48  ;;  %6332 = vmatpush.msrb.mxu3 %v6127_v26  ;;  %6352 = vmatpush.msrb.mxu2 %v6159_v31 }
 0xd58   :  { %6227 = vmatmul.f32.vlgmr.msrb.gmra.mxu0 %v5999_v28  ;;  %6247 = vmatmul.f32.vlgmr.msra.gmra.mxu1 %v11382_v5  ;;  %v6001_v3 = vmax.f32 %v5960_v46, %v5991_v38 }
 0xd59   :  { %6333 = vmatpush.msrb.mxu3 %v6125_v25  ;;  %6353 = vmatpush.msrb.mxu2 %v6157_v20 }
 0xd5b   :  { %6334 = vmatpush.msrb.mxu3 %v6123_v17  ;;  %6354 = vmatpush.msrb.mxu2 %v6155_v39  ;;  %v6822_v17 = vld [vmem:[%s11784_s8] sm:$0xff]  ;;  %v6823_v39 = vld [vmem:[%s11784_s8 + $0x8] sm:$0xff] }
 0xd5c   :  { %8381 = vmatmul.msk.f32.vlgmr.msra.gmra.mxu3 %vm151_vm0, %v6001_v3  ;;  %6287 = vmatmul.f32.vlgmr.msra.gmra.mxu2 %v5997_v49 }
 0xd5d   :  { %6335 = vmatpush.msrb.mxu3 %v6121_v2  ;;  %6355 = vmatpush.msrb.mxu2 %v6153_v21 }
 0xd5e   :  { %v6378_v49 = vpop.permute.xlu0 %6377 }
 0xd5f   :  { %6336 = vmatpush.msrb.mxu3 %v6119_v40  ;;  %6356 = vmatpush.msrb.mxu2 %v6151_v37  ;;  %v8394_v40 = vld [vmem:[%s11783_s7 + $0x20] sm:$0xff] }
 0xd60   :  { %6307 = vmatmul.f32.vlgmr.msra.gmra.mxu0 %v5998_v32  ;;  %6327 = vmatmul.f32.vlgmr.msrb.gmra.mxu1 %v5999_v28  ;;  %v6441_v37 = vld [vmem:[%s11783_s7] sm:$0xff] }
 0xd61   :  { %6337 = vmatpush.msrb.mxu3 %v6117_v62  ;;  %6357 = vmatpush.msrb.mxu2 %v6149_v50 }
 0xd63   :  { %6338 = vmatpush.msrb.mxu3 %v6115_v33  ;;  %6358 = vmatpush.msrb.mxu2 %v6147_v27  ;;  %v8395_v33 = vld [vmem:[%s11783_s7 + $0x28] sm:$0xff] }
 0xd65   :  { %6339 = vmatpush.msrb.mxu3 %v6113_v61  ;;  %6359 = vmatpush.msrb.mxu2 %v6145_v29 }
 0xd67   :  { %6340 = vmatpush.msrb.mxu3 %v6111_v10  ;;  %6360 = vmatpush.msrb.mxu2 %v6143_v18  ;;  %v8388_v18 = vld [vmem:[%s11783_s7 + $0x10] sm:$0xff] }
 0xd69   :  { %6341 = vmatpush.msrb.mxu3 %v6109_v0  ;;  %6361 = vmatpush.msrb.mxu2 %v6141_v58  ;;  %v6442_v0 = vld [vmem:[%s11783_s7 + $0x8] sm:$0xff] }
 0xd6b   :  { %6342 = vmatpush.msrb.mxu3 %v6107_v57  ;;  %6362 = vmatpush.msrb.mxu2 %v6139_v47  ;;  %v8389_v57 = vld [vmem:[%s11783_s7 + $0x18] sm:$0xff] }
 0xd6d   :  { %6343 = vmatpush.msrb.mxu3 %v6105_v16  ;;  %6363 = vmatpush.msrb.mxu2 %v6137_v35 }
 0xd6f   :  { %6344 = vmatpush.msrb.mxu3 %v6103_v4  ;;  %6364 = vmatpush.msrb.mxu2 %v6135_v11 }
 0xd71   :  { %6345 = vmatpush.msrb.mxu3 %v6101_v60  ;;  %6365 = vmatpush.msrb.mxu2 %v6133_v43 }
 0xd73   :  { %6346 = vmatpush.msrb.mxu3 %v6099_v56  ;;  %6366 = vmatpush.msrb.mxu2 %v6131_v24 }
 0xd74   :  { %6347 = vmatmul.f32.vlgmr.msrb.gmra.mxu3 %v11382_v5  ;;  %8383 = vmatmul.msk.f32.vlgmr.msrb.gmra.mxu2 %vm151_vm0, %v6001_v3  ;;  %vm11874_vm0 = vcmask 850944  }
 0xd75   :  { %vm11875_vm2 = vmmov %vm11874_vm0 }
 0xdd5   :  { %v6228_v55 = vpop.f32.mrf.mxu0  ;;  %v6248_v53 = vpop.f32.mrf.mxu1 }
 0xdd7   :  { %v6188_v19 = vpop.f32.mrf.mxu3  ;;  %v6208_v1 = vpop.f32.mrf.mxu2 }
 0xdd8   :  { %v6209_v7 = vadd.f32 %v6208_v1, %v6188_v19 }
 0xdda   :  { %v6229_v52 = vadd.f32 %v6228_v55, %v6209_v7 }
 0xddc   :  { %v6249_v8 = vadd.f32 %v6248_v53, %v6229_v52  ;;  %v8398_v53 = vld [vmem:[%s11783_s7 + $0x30] sm:$0xff] }
 0xddd   :  { %v6308_v6 = vpop.f32.mrf.mxu0  ;;  %v6328_v44 = vpop.f32.mrf.mxu1 }
 0xddf   :  { %v6268_v30 = vpop.f32.mrf.mxu3  ;;  %v6288_v36 = vpop.f32.mrf.mxu2 }
 0xde0   :  { %v6269_v63 = vadd.f32 %v6268_v30, %v6249_v8  ;;  %v6309_v14 = vadd.f32 %v6308_v6, %v6288_v36 }
 0xde2   :  { %6406 = vmatpush.msrb.mxu0 %v6269_v63  ;;  %v6329_v59 = vadd.f32 %v6328_v44, %v6309_v14  ;;  %v8410_v63 = vld [vmem:[%s11783_s7 + $0x60] sm:$0xff] }
 0xde3   :  { %8384 = vmatmul.msk.f32.vlgmr.msrb.gmra.mxu0 %vm579_vm8, %v6371_v23 }
 0xdeb   :  { %8385 = vmatmul.msk.f32.gmra.mxu0 %vm579_vm8, %v6372_v51 }
 0xdf7   :  { %v6348_v42 = vpop.f32.mrf.mxu3  ;;  %v6368_v12 = vpop.f32.mrf.mxu2 }
 0xdf8   :  { %v6349_v41 = vadd.f32 %v6348_v42, %v6329_v59  ;;  %v8402_v42 = vld [vmem:[%s11783_s7 + $0x40] sm:$0xff] }
 0xdfa   :  { %v6369_v22 = vadd.f32 %v6368_v12, %v6349_v41 }
 0xdfc   :  { %6429 = vmatpush.msra.mxu1 %v6369_v22  ;;  %v8399_v22 = vld [vmem:[%s11783_s7 + $0x38] sm:$0xff] }
 0xdfd   :  { %8386 = vmatmul.msk.f32.vlgmr.msra.gmra.mxu1 %vm579_vm8, %v6371_v23 }
 0xe05   :  { %8387 = vmatmul.msk.f32.gmra.mxu1 %vm579_vm8, %v6372_v51 }
 0xe60   :  { %v6408_v32 = vpop.f32.mrf.mxu0 }
 0xe61   :  { %v6409_v9 = vadd.f32 %v6408_v32, %v6378_v49  ;;  %v8411_v32 = vld [vmem:[%s11783_s7 + $0x68] sm:$0xff] }
 0xe63   :  { %v6437_v26 = vmax.f32 %v6409_v9, 0.0 }
 0xe68   :  { %v6411_v54 = vpop.f32.mrf.mxu0 }
 0xe69   :  { %v6412_v13 = vadd.f32 %v6411_v54, %v6383_v34 }
 0xe6b   :  { %v6439_v31 = vmax.f32 %v6412_v13, 0.0 }
 0xe6d   :  { %6502 = vmatpush.msrb.mxu1 %v6439_v31  ;;  %v9030_v45 = vpack.i.bf16 %v6437_v26, %v6439_v31 }
 0xe6f   :  { %9031 = vrot.lane.b32.xlu2 %v9030_v45, %s11862_s21  ;;  %9026 = vrot.lane.b32.xlu1 %v9030_v45, %s11861_s2 }
 0xe70   :  { %6503 = vmatpush.msrb.mxu1 %v6437_v26 }
 0xe71   :  { %8392 = vmatmul.msk.f32.vlgmr.msrb.gmra.mxu1 %vm2445_vm10, %v6441_v37  ;;  %v8418_v37 = vld [vmem:[%s11783_s7 + $0x80] sm:$0xff] }
 0xe79   :  { %8393 = vmatmul.msk.f32.gmra.mxu1 %vm2445_vm10, %v6442_v0 }
 0xe7a   :  { %v6431_v15 = vpop.f32.mrf.mxu1 }
 0xe7b   :  { %v6432_v28 = vadd.f32 %v6431_v15, %v6378_v49 }
 0xe7d   :  { %v6438_v5 = vmax.f32 %v6432_v28, 0.0 }
 0xe7f   :  { %v9035_v48 = vpack.i.bf16 %v6438_v5, %v6437_v26 }
 0xe81   :  { %9036 = vrot.lane.b32.xlu1 %v9035_v48, %s11871_s5 }
 0xe82   :  { %v6434_v25 = vpop.f32.mrf.mxu1 }
 0xe83   :  { %v6435_v20 = vadd.f32 %v6434_v25, %v6383_v34  ;;  %v8403_v25 = vld [vmem:[%s11783_s7 + $0x48] sm:$0xff] }
 0xe85   :  { %v6440_v38 = vmax.f32 %v6435_v20, 0.0 }
 0xe87   :  { %v9040_v46 = vpack.i.bf16 %v6440_v38, %v6439_v31  ;;  %v8414_v38 = vld [vmem:[%s11783_s7 + $0x70] sm:$0xff] }
 0xe89   :  { %9041 = vrot.lane.b32.xlu0 %v9040_v46, %s11871_s5  ;;  %9051 = vrot.lane.b32.xlu2 %v9040_v46, %s11858_s28 }
 0xe8a   :  { %9066 = vrot.lane.b32.xlu1 %v9040_v46, %s11872_s26 }
 0xe91   :  { %9046 = vrot.lane.b32.xlu0 %v9035_v48, %s11858_s28  ;;  %9056 = vrot.lane.b32.xlu2 %v9035_v48, %s11872_s26 }
 0xe92   :  { %9081 = vrot.lane.b32.xlu1 %v9040_v46, %s11873_s23 }
 0xe99   :  { %9071 = vrot.lane.b32.xlu0 %v9040_v46, %s11860_s24  ;;  %9061 = vrot.lane.b32.xlu2 %v9035_v48, %s11860_s24 }
 0xe9a   :  { %9086 = vrot.lane.b32.xlu1 %v9040_v46, %s11859_s3 }
 0xea1   :  { %9076 = vrot.lane.b32.xlu0 %v9035_v48, %s11873_s23  ;;  %9091 = vrot.lane.b32.xlu2 %v9035_v48, %s11859_s3 }
 0xea2   :  { %6826 = vperm.xlu1 %8543, %v6822_v17  }
 0xea9   :  { %6831 = vperm.xlu0 %8542, %v6823_v39  }
 0xec9   :  { %v9032_v3 = vpop.permute.xlu2 %9031 }
 0xeca   :  { %v9033_v2 = vunpack.i.l.bf16 %v9032_v3  ;;  %v9034_v21 = vunpack.i.h.bf16 %v9032_v3 }
 0xecc   :  { %6539 = vmatpush.msra.mxu3 %v9033_v2 }
 0xece   :  { %6540 = vmatpush.msra.mxu3 %v9034_v21  ;;  %v8406_v21 = vld [vmem:[%s11783_s7 + $0x50] sm:$0xff] }
 0xecf   :  { %8396 = vmatmul.msk.f32.vlgmr.msra.gmra.mxu3 %vm2445_vm10, %v8394_v40 }
 0xed7   :  { %8397 = vmatmul.msk.f32.gmra.mxu3 %vm2445_vm10, %v8395_v33  ;;  %v8419_v33 = vld [vmem:[%s11783_s7 + $0x88] sm:$0xff] }
 0xee1   :  { %v9027_v62 = vpop.permute.xlu1 %9026 }
 0xee2   :  { %v9028_v50 = vunpack.i.l.bf16 %v9027_v62  ;;  %v9029_v61 = vunpack.i.h.bf16 %v9027_v62  ;;  %v8415_v62 = vld [vmem:[%s11783_s7 + $0x78] sm:$0xff] }
 0xee3   :  { %v9052_v27 = vpop.permute.xlu2 %9051 }
 0xee4   :  { %v9054_v29 = vunpack.i.h.bf16 %v9052_v27  ;;  %v9053_v10 = vunpack.i.l.bf16 %v9052_v27  ;;  %6473 = vmatpush.msra.mxu0 %v9028_v50  ;;  %v8407_v50 = vld [vmem:[%s11783_s7 + $0x58] sm:$0xff] }
 0xee6   :  { %6474 = vmatpush.msra.mxu0 %v9029_v61  ;;  %v6608_v58 = vsel %vm2604_vm13, %v9053_v10, %v9054_v29 }
 0xee7   :  { %8390 = vmatmul.msk.f32.vlgmr.msra.gmra.mxu0 %vm2445_vm10, %v8388_v18 }
 0xee8   :  { %6631 = vmatpush.msrb.mxu0 %v6608_v58 }
 0xeeb   :  { %v9057_v16 = vpop.permute.xlu2 %9056 }
 0xeec   :  { %v9059_v24 = vunpack.i.h.bf16 %v9057_v16  ;;  %v9058_v19 = vunpack.i.l.bf16 %v9057_v16 }
 0xeee   :  { %v6697_v23 = vsel %vm11875_vm2, %v9058_v19, %v9059_v24  ;;  %v6505_v10 = vpop.f32.mrf.mxu1 }
 0xeef   :  { %8391 = vmatmul.msk.f32.gmra.mxu0 %vm2445_vm10, %v8389_v57 }
 0xef3   :  { %v9037_v47 = vpop.permute.xlu1 %9036  ;;  %v9062_v8 = vpop.permute.xlu2 %9061 }
 0xef4   :  { %v9039_v4 = vunpack.i.h.bf16 %v9037_v47  ;;  %v9038_v11 = vunpack.i.l.bf16 %v9037_v47  ;;  %v9064_v34 = vunpack.i.h.bf16 %v9062_v8  ;;  %v9063_v54 = vunpack.i.l.bf16 %v9062_v8 }
 0xef6   :  { %v6562_v30 = vsel %vm2557_vm14, %v9038_v11, %v9039_v4  ;;  %v6742_v46 = vsel %vm2745_vm11, %v9063_v54, %v9064_v34  ;;  %v6508_v47 = vpop.f32.mrf.mxu1  ;;  %v7181_v54 = vld [vmem:[%s11786_s10] sm:$0xff] }
 0xefb   :  { %v9042_v35 = vpop.permute.xlu0 %9041  ;;  %v9092_v49 = vpop.permute.xlu2 %9091 }
 0xefc   :  { %v9044_v60 = vunpack.i.h.bf16 %v9042_v35  ;;  %v9043_v43 = vunpack.i.l.bf16 %v9042_v35  ;;  %v9067_v56 = vpop.permute.xlu1 %9066  ;;  %v9094_v45 = vunpack.i.h.bf16 %v9092_v49  ;;  %v9093_v15 = vunpack.i.l.bf16 %v9092_v49 }
 0xefd   :  { %v9069_v1 = vunpack.i.h.bf16 %v9067_v56  ;;  %v9068_v7 = vunpack.i.l.bf16 %v9067_v56 }
 0xefe   :  { %v6563_v55 = vsel %vm2557_vm14, %v9043_v43, %v9044_v60  ;;  %v6787_v17 = vsel %vm11877_vm5, %v9093_v15, %v9094_v45 }
 0xeff   :  { %6586 = vmatpush.msra.mxu2 %v6563_v55  ;;  %v6698_v52 = vsel %vm11874_vm0, %v9068_v7, %v9069_v1 }
 0xf00   :  { %6721 = vmatpush.msrb.mxu3 %v6698_v52 }
 0xf01   :  { %6587 = vmatpush.msra.mxu2 %v6562_v30 }
 0xf02   :  { %6722 = vmatpush.msrb.mxu3 %v6697_v23  ;;  %8400 = vmatmul.msk.f32.vlgmr.msra.gmra.mxu2 %vm2445_vm10, %v8398_v53 }
 0xf03   :  { %v9047_v51 = vpop.permute.xlu0 %9046  ;;  %8412 = vmatmul.msk.f32.vlgmr.msrb.gmra.mxu3 %vm2445_vm10, %v8410_v63 }
 0xf04   :  { %v9049_v36 = vunpack.i.h.bf16 %v9047_v51  ;;  %v9048_v6 = vunpack.i.l.bf16 %v9047_v51  ;;  %v9082_v14 = vpop.permute.xlu1 %9081 }
 0xf05   :  { %v9084_v44 = vunpack.i.h.bf16 %v9082_v14  ;;  %v9083_v59 = vunpack.i.l.bf16 %v9082_v14 }
 0xf06   :  { %v6607_v41 = vsel %vm2604_vm13, %v9048_v6, %v9049_v36 }
 0xf07   :  { %6632 = vmatpush.msrb.mxu0 %v6607_v41  ;;  %v6653_v12 = vsel %vm2651_vm12, %v9083_v59, %v9084_v44 }
 0xf08   :  { %6676 = vmatpush.msra.mxu1 %v6653_v12  ;;  %8404 = vmatmul.msk.f32.vlgmr.msrb.gmra.mxu0 %vm2445_vm10, %v8402_v42 }
 0xf0a   :  { %8401 = vmatmul.msk.f32.gmra.mxu2 %vm2445_vm10, %v8399_v22 }
 0xf0b   :  { %v9072_v9 = vpop.permute.xlu0 %9071  ;;  %8413 = vmatmul.msk.f32.gmra.mxu3 %vm2445_vm10, %v8411_v32 }
 0xf0c   :  { %v9074_v13 = vunpack.i.h.bf16 %v9072_v9  ;;  %v9073_v26 = vunpack.i.l.bf16 %v9072_v9  ;;  %v9087_v31 = vpop.permute.xlu1 %9086 }
 0xf0d   :  { %v9089_v28 = vunpack.i.h.bf16 %v9087_v31  ;;  %v9088_v5 = vunpack.i.l.bf16 %v9087_v31  ;;  %v6839_v31 = vld [vmem:[%s11785_s9 + $0x8] sm:$0xff] }
 0xf0e   :  { %v6743_v48 = vsel %vm2745_vm11, %v9073_v26, %v9074_v13  ;;  %v7182_v13 = vld [vmem:[%s11786_s10 + $0x8] sm:$0xff]  ;;  %v6838_v26 = vld [vmem:[%s11785_s9] sm:$0xff] }
 0xf0f   :  { %6766 = vmatpush.msrb.mxu2 %v6743_v48  ;;  %v6788_v20 = vsel %vm11876_vm4, %v9088_v5, %v9089_v28  ;;  %v8422_v5 = vld [vmem:[%s11785_s9 + $0x10] sm:$0xff] }
 0xf10   :  { %6811 = vmatpush.msra.mxu0 %v6788_v20 }
 0xf11   :  { %6767 = vmatpush.msrb.mxu2 %v6742_v46  ;;  %8405 = vmatmul.msk.f32.gmra.mxu0 %vm2445_vm10, %v8403_v25  ;;  %v8436_v46 = vld [vmem:[%s11785_s9 + $0x40] sm:$0xff] }
 0xf12   :  { %6812 = vmatpush.msra.mxu0 %v6787_v17  ;;  %8416 = vmatmul.msk.f32.vlgmr.msrb.gmra.mxu2 %vm2445_vm10, %v8414_v38  ;;  %v8423_v38 = vld [vmem:[%s11785_s9 + $0x18] sm:$0xff] }
 0xf13   :  { %v9077_v39 = vpop.permute.xlu0 %9076 }
 0xf14   :  { %v9079_v3 = vunpack.i.h.bf16 %v9077_v39  ;;  %v9078_v2 = vunpack.i.l.bf16 %v9077_v39  ;;  %v6827_v42 = vpop.permute.xlu1 %6826 }
 0xf16   :  { %v6652_v40 = vsel %vm2651_vm12, %v9078_v2, %v9079_v3 }
 0xf17   :  { %6677 = vmatpush.msra.mxu1 %v6652_v40 }
 0xf18   :  { %8408 = vmatmul.msk.f32.vlgmr.msra.gmra.mxu1 %vm2445_vm10, %v8406_v21 }
 0xf19   :  { %8420 = vmatmul.msk.f32.vlgmr.msra.gmra.mxu0 %vm2445_vm10, %v8418_v37 }
 0xf1a   :  { %8417 = vmatmul.msk.f32.gmra.mxu2 %vm2445_vm10, %v8415_v62  ;;  %v8428_v62 = vld [vmem:[%s11785_s9 + $0x20] sm:$0xff] }
 0xf1b   :  { %v6832_v22 = vpop.permute.xlu0 %6831 }
 0xf20   :  { %8409 = vmatmul.msk.f32.gmra.mxu1 %vm2445_vm10, %v8407_v50 }
 0xf21   :  { %8421 = vmatmul.msk.f32.gmra.mxu0 %vm2445_vm10, %v8419_v33  ;;  %v8432_v33 = vld [vmem:[%s11785_s9 + $0x30] sm:$0xff] }
 0xf52   :  { %v6542_v29 = vpop.f32.mrf.mxu3 }
 0xf5a   :  { %v6545_v57 = vpop.f32.mrf.mxu3 }
 0xf64   :  { %v6476_v27 = vpop.f32.mrf.mxu0 }
 0xf65   :  { %v6506_v58 = vadd.f32 %v6505_v10, %v6476_v27  ;;  %v8437_v27 = vld [vmem:[%s11785_s9 + $0x48] sm:$0xff] }
 0xf67   :  { %v6548_v35 = vadd.f32 %v6542_v29, %v6506_v58 }
 0xf6c   :  { %v6479_v61 = vpop.f32.mrf.mxu0 }
 0xf6d   :  { %v6509_v60 = vadd.f32 %v6508_v47, %v6479_v61  ;;  %v8429_v47 = vld [vmem:[%s11785_s9 + $0x28] sm:$0xff] }
 0xf6f   :  { %v6549_v1 = vadd.f32 %v6545_v57, %v6509_v60 }
 0xf85   :  { %v6589_v18 = vpop.f32.mrf.mxu2  ;;  %v6634_v0 = vpop.f32.mrf.mxu0 }
 0xf86   :  { %v6595_v11 = vadd.f32 %v6589_v18, %v6548_v35  ;;  %v6724_v43 = vpop.f32.mrf.mxu3  ;;  %v8433_v35 = vld [vmem:[%s11785_s9 + $0x38] sm:$0xff] }
 0xf88   :  { %v6640_v56 = vadd.f32 %v6634_v0, %v6595_v11 }
 0xf8d   :  { %v6592_v16 = vpop.f32.mrf.mxu2 }
 0xf8e   :  { %v6637_v4 = vpop.f32.mrf.mxu0  ;;  %v6596_v52 = vadd.f32 %v6592_v16, %v6549_v1  ;;  %v6727_v23 = vpop.f32.mrf.mxu3  ;;  %v8440_v16 = vld [vmem:[%s11785_s9 + $0x50] sm:$0xff]  ;;  %v8445_v1 = vld [vmem:[%s11785_s9 + $0x68] sm:$0xff] }
 0xf90   :  { %v6641_v8 = vadd.f32 %v6637_v4, %v6596_v52 }
 0xf95   :  { %v6679_v24 = vpop.f32.mrf.mxu1  ;;  %v6769_v19 = vpop.f32.mrf.mxu2 }
 0xf96   :  { %v6685_v7 = vadd.f32 %v6679_v24, %v6640_v56  ;;  %v6814_v55 = vpop.f32.mrf.mxu0  ;;  %v8444_v56 = vld [vmem:[%s11785_s9 + $0x60] sm:$0xff]  ;;  %v8448_v24 = vld [vmem:[%s11785_s9 + $0x70] sm:$0xff] }
 0xf98   :  { %v6730_v53 = vadd.f32 %v6724_v43, %v6685_v7  ;;  %v8441_v43 = vld [vmem:[%s11785_s9 + $0x58] sm:$0xff] }
 0xf99   :  { %v8449_v7 = vld [vmem:[%s11785_s9 + $0x78] sm:$0xff] }
 0xf9a   :  { %v6775_v30 = vadd.f32 %v6769_v19, %v6730_v53  ;;  %v8452_v19 = vld [vmem:[%s11785_s9 + $0x80] sm:$0xff] }
 0xf9c   :  { %v6820_v6 = vadd.f32 %v6814_v55, %v6775_v30  ;;  %v8453_v55 = vld [vmem:[%s11785_s9 + $0x88] sm:$0xff] }
 0xf9d   :  { %v6682_v63 = vpop.f32.mrf.mxu1  ;;  %v6772_v36 = vpop.f32.mrf.mxu2 }
 0xf9e   :  { %v6686_v51 = vadd.f32 %v6682_v63, %v6641_v8  ;;  %v6817_v44 = vpop.f32.mrf.mxu0  ;;  %v6834_v41 = vadd.f32 %v6827_v42, %v6820_v6 }
 0xfa0   :  { %v6731_v14 = vadd.f32 %v6727_v23, %v6686_v51  ;;  %v6836_v49 = vmax.f32 %v6834_v41, 0.0 }
 0xfa2   :  { %v6776_v59 = vadd.f32 %v6772_v36, %v6731_v14 }
 0xfa4   :  { %v6821_v12 = vadd.f32 %v6817_v44, %v6776_v59 }
 0xfa6   :  { %v6835_v32 = vadd.f32 %v6832_v22, %v6821_v12 }
 0xfa8   :  { %v6837_v9 = vmax.f32 %v6835_v32, 0.0 }
 0xfaa   :  { %6899 = vmatpush.msra.mxu3 %v6837_v9  ;;  %v9105_v34 = vpack.i.bf16 %v6836_v49, %v6837_v9 }
 0xfac   :  { %9106 = vrot.lane.b32.xlu1 %v9105_v34, %s11871_s5  ;;  %9101 = vrot.lane.b32.xlu0 %v9105_v34, %s11862_s21 }
 0xfad   :  { %9096 = vrot.lane.b32.xlu2 %v9105_v34, %s11861_s2  ;;  %6900 = vmatpush.msra.mxu3 %v6836_v49 }
 0xfae   :  { %8426 = vmatmul.msk.f32.vlgmr.msra.gmra.mxu3 %vm2445_vm10, %v6838_v26 }
 0xfb4   :  { %9121 = vrot.lane.b32.xlu1 %v9105_v34, %s11872_s26  ;;  %9116 = vrot.lane.b32.xlu0 %v9105_v34, %s11873_s23 }
 0xfb5   :  { %9111 = vrot.lane.b32.xlu2 %v9105_v34, %s11858_s28  ;;  %s11879_s28 = sld [smem:[#allocation14_spill]] }
 0xfb6   :  { %8427 = vmatmul.msk.f32.gmra.mxu3 %vm2445_vm10, %v6839_v31 }
 0xfbc   :  { %7185 = vperm.xlu1 %8543, %v7181_v54   ;;  %9131 = vrot.lane.b32.xlu0 %v9105_v34, %s11859_s3 }
 0xfbd   :  { %9126 = vrot.lane.b32.xlu2 %v9105_v34, %s11860_s24 }
 0xfc5   :  { %7190 = vperm.xlu2 %8544, %v7182_v13  }
0x1007   :  { %v9097_v45 = vpop.permute.xlu2 %9096 }
0x1008   :  { %v9098_v15 = vunpack.i.l.bf16 %v9097_v45  ;;  %v9099_v28 = vunpack.i.h.bf16 %v9097_v45 }
0x100a   :  { %6870 = vmatpush.msrb.mxu1 %v9098_v15 }
0x100c   :  { %6871 = vmatpush.msrb.mxu1 %v9099_v28 }
0x100d   :  { %8424 = vmatmul.msk.f32.vlgmr.msrb.gmra.mxu1 %vm2445_vm10, %v8422_v5 }
0x100f   :  { %v9112_v48 = vpop.permute.xlu2 %9111 }
0x1010   :  { %v9113_v25 = vunpack.i.l.bf16 %v9112_v48  ;;  %v9114_v20 = vunpack.i.h.bf16 %v9112_v48 }
0x1012   :  { %7014 = vmatpush.msra.mxu1 %v9113_v25 }
0x1014   :  { %7015 = vmatpush.msra.mxu1 %v9114_v20 }
0x1015   :  { %8425 = vmatmul.msk.f32.gmra.mxu1 %vm2445_vm10, %v8423_v38 }
0x1017   :  { %v9127_v3 = vpop.permute.xlu2 %9126 }
0x1018   :  { %v9128_v50 = vunpack.i.l.bf16 %v9127_v3  ;;  %v9129_v61 = vunpack.i.h.bf16 %v9127_v3 }
0x101d   :  { %8438 = vmatmul.msk.f32.vlgmr.msra.gmra.mxu1 %vm2445_vm10, %v8436_v46 }
0x101e   :  { %v9107_v17 = vpop.permute.xlu1 %9106  ;;  %v9102_v39 = vpop.permute.xlu0 %9101 }
0x101f   :  { %v9108_v2 = vunpack.i.l.bf16 %v9107_v17  ;;  %v9103_v21 = vunpack.i.l.bf16 %v9102_v39  ;;  %v9109_v40 = vunpack.i.h.bf16 %v9107_v17  ;;  %v9104_v37 = vunpack.i.h.bf16 %v9102_v39 }
0x1021   :  { %6936 = vmatpush.msra.mxu2 %v9103_v21  ;;  %6975 = vmatpush.msrb.mxu0 %v9108_v2  ;;  %v7191_v21 = vpop.permute.xlu2 %7190 }
0x1023   :  { %6937 = vmatpush.msra.mxu2 %v9104_v37  ;;  %6976 = vmatpush.msrb.mxu0 %v9109_v40 }
0x1024   :  { %8430 = vmatmul.msk.f32.vlgmr.msra.gmra.mxu2 %vm2445_vm10, %v8428_v62  ;;  %8434 = vmatmul.msk.f32.vlgmr.msrb.gmra.mxu0 %vm2445_vm10, %v8432_v33  ;;  %v7266_v62 = vld [vmem:[%s11878_s12 + $0x18] sm:$0xff]  ;;  %v7226_v33 = vld [vmem:[%s11879_s28 + $0x48] sm:$0x7f] }
0x1025   :  { %7131 = vmatpush.msra.mxu0 %v9128_v50  ;;  %8439 = vmatmul.msk.f32.gmra.mxu1 %vm2445_vm10, %v8437_v27  ;;  %v7263_v50 = vld [vmem:[%s11878_s12] sm:$0xff] }
0x1026   :  { %v9122_v29 = vpop.permute.xlu1 %9121  ;;  %v9117_v10 = vpop.permute.xlu0 %9116  ;;  %v7225_v27 = vld [vmem:[%s11879_s28 + $0x40] sm:$0xff] }
0x1027   :  { %7132 = vmatpush.msra.mxu0 %v9129_v61  ;;  %v9123_v18 = vunpack.i.l.bf16 %v9122_v29  ;;  %v9118_v0 = vunpack.i.l.bf16 %v9117_v10  ;;  %v9124_v58 = vunpack.i.h.bf16 %v9122_v29  ;;  %v9119_v57 = vunpack.i.h.bf16 %v9117_v10  ;;  %v7224_v61 = vld [vmem:[%s11879_s28 + $0x38] sm:$0xff]  ;;  %v7223_v29 = vld [vmem:[%s11879_s28 + $0x30] sm:$0xff]  ;;  %v7222_v10 = vld [vmem:[%s11879_s28 + $0x28] sm:$0xff] }
0x1029   :  { %7053 = vmatpush.msrb.mxu3 %v9118_v0  ;;  %7092 = vmatpush.msrb.mxu2 %v9123_v18  ;;  %v7221_v0 = vld [vmem:[%s11879_s28 + $0x20] sm:$0xff] }
0x102b   :  { %7054 = vmatpush.msrb.mxu3 %v9119_v57  ;;  %7093 = vmatpush.msrb.mxu2 %v9124_v58  ;;  %v7220_v57 = vld [vmem:[%s11879_s28 + $0x18] sm:$0xff] }
0x102c   :  { %8431 = vmatmul.msk.f32.gmra.mxu2 %vm2445_vm10, %v8429_v47  ;;  %8442 = vmatmul.msk.f32.vlgmr.msrb.gmra.mxu3 %vm2445_vm10, %v8440_v16  ;;  %v7219_v47 = vld [vmem:[%s11879_s28 + $0x10] sm:$0xff]  ;;  %v7218_v16 = vld [vmem:[%s11879_s28 + $0x8] sm:$0xff] }
0x102d   :  { %8435 = vmatmul.msk.f32.gmra.mxu0 %vm2445_vm10, %v8433_v35  ;;  %8456 = vmatpush.msk.msra.mxu3 %vm2155_vm9, %v7226_v33 }
0x102e   :  { %v9132_v4 = vpop.permute.xlu0 %9131  ;;  %v7186_v5 = vpop.permute.xlu1 %7185 }
0x102f   :  { %v9133_v11 = vunpack.i.l.bf16 %v9132_v4  ;;  %v9134_v60 = vunpack.i.h.bf16 %v9132_v4  ;;  %7243 = vmatpush.msra.mxu3 %v7225_v27  ;;  %v7265_v4 = vld [vmem:[%s11878_s12 + $0x10] sm:$0xff] }
0x1031   :  { %7170 = vmatpush.msrb.mxu1 %v9133_v11  ;;  %v6902_v8 = vpop.f32.mrf.mxu3  ;;  %7244 = vmatpush.msra.mxu3 %v7224_v61  ;;  %v7337_v61 = vld [vmem:[#allocation2 + $0x28] sm:$0xff] }
0x1033   :  { %7171 = vmatpush.msrb.mxu1 %v9134_v60  ;;  %7245 = vmatpush.msra.mxu3 %v7223_v29  ;;  %v7264_v60 = vld [vmem:[%s11878_s12 + $0x8] sm:$0xff]  ;;  %s11882_s12 = sld [smem:[#allocation12_spill]] }
0x1034   :  { %8443 = vmatmul.msk.f32.gmra.mxu3 %vm2445_vm10, %v8441_v43  ;;  %8446 = vmatmul.msk.f32.vlgmr.msrb.gmra.mxu2 %vm2445_vm10, %v8444_v56  ;;  %v7217_v43 = vld [vmem:[%s11879_s28] sm:$0xff] }
0x1035   :  { %8450 = vmatmul.msk.f32.vlgmr.msra.gmra.mxu0 %vm2445_vm10, %v8448_v24  ;;  %8454 = vmatmul.msk.f32.vlgmr.msrb.gmra.mxu1 %vm2445_vm10, %v8452_v19 }
0x1036   :  { %7246 = vmatpush.msra.mxu3 %v7222_v10 }
0x1038   :  { %7247 = vmatpush.msra.mxu3 %v7221_v0 }
0x1039   :  { %v6905_v51 = vpop.f32.mrf.mxu3 }
0x103a   :  { %7248 = vmatpush.msra.mxu3 %v7220_v57 }
0x103c   :  { %8447 = vmatmul.msk.f32.gmra.mxu2 %vm2445_vm10, %v8445_v1  ;;  %7249 = vmatpush.msra.mxu3 %v7219_v47 }
0x103d   :  { %8451 = vmatmul.msk.f32.gmra.mxu0 %vm2445_vm10, %v8449_v7  ;;  %8455 = vmatmul.msk.f32.gmra.mxu1 %vm2445_vm10, %v8453_v55 }
0x103e   :  { %7250 = vmatpush.msra.mxu3 %v7218_v16  ;;  %v7338_v16 = vld [vmem:[#allocation2 + $0x30] sm:$0xff] }
0x1040   :  { %7251 = vmatpush.msra.mxu3 %v7217_v43 }
0x108a   :  { %v6873_v52 = vpop.f32.mrf.mxu1 }
0x108b   :  { %v6903_v36 = vadd.f32 %v6902_v8, %v6873_v52  ;;  %v7259_v52 = vld [vmem:[%s11882_s12] sm:$0xff]  ;;  %v7261_v8 = vld [vmem:[%s11882_s12 + $0x10] sm:$0xff] }
0x1092   :  { %v6876_v53 = vpop.f32.mrf.mxu1 }
0x1093   :  { %v6906_v12 = vadd.f32 %v6905_v51, %v6876_v53  ;;  %v7260_v53 = vld [vmem:[%s11882_s12 + $0x8] sm:$0xff] }
0x109a   :  { %v7017_v63 = vpop.f32.mrf.mxu1 }
0x10a1   :  { %v6978_v30 = vpop.f32.mrf.mxu0 }
0x10a2   :  { %v7020_v44 = vpop.f32.mrf.mxu1 }
0x10a7   :  { %v6939_v23 = vpop.f32.mrf.mxu2 }
0x10a8   :  { %v6945_v14 = vadd.f32 %v6939_v23, %v6903_v36 }
0x10aa   :  { %v6981_v6 = vpop.f32.mrf.mxu0  ;;  %v6984_v42 = vadd.f32 %v6978_v30, %v6945_v14  ;;  %v7262_v30 = vld [vmem:[%s11882_s12 + $0x18] sm:$0xff] }
0x10ac   :  { %v7023_v22 = vadd.f32 %v7017_v63, %v6984_v42 }
0x10af   :  { %v6942_v59 = vpop.f32.mrf.mxu2  ;;  %v7056_v41 = vpop.f32.mrf.mxu3 }
0x10b0   :  { %v6946_v32 = vadd.f32 %v6942_v59, %v6906_v12  ;;  %v7062_v9 = vadd.f32 %v7056_v41, %v7023_v22 }
0x10b2   :  { %v7134_v49 = vpop.f32.mrf.mxu0  ;;  %v7173_v54 = vpop.f32.mrf.mxu1  ;;  %v6985_v13 = vadd.f32 %v6981_v6, %v6946_v32 }
0x10b4   :  { %v7024_v15 = vadd.f32 %v7020_v44, %v6985_v13 }
0x10b7   :  { %v7095_v34 = vpop.f32.mrf.mxu2  ;;  %v7059_v45 = vpop.f32.mrf.mxu3 }
0x10b8   :  { %v7101_v26 = vadd.f32 %v7095_v34, %v7062_v9  ;;  %v7063_v48 = vadd.f32 %v7059_v45, %v7024_v15  ;;  %v7867_v45 = vld [vmem:[%s11790_s14 + $0x10] sm:$0xff]  ;;  %v7866_v15 = vld [vmem:[%s11790_s14 + $0x8] sm:$0xff] }
0x10ba   :  { %v7140_v31 = vadd.f32 %v7134_v49, %v7101_v26  ;;  %v7137_v38 = vpop.f32.mrf.mxu0  ;;  %v7176_v39 = vpop.f32.mrf.mxu1  ;;  %v7868_v26 = vld [vmem:[%s11790_s14 + $0x18] sm:$0xff] }
0x10bc   :  { %v7179_v28 = vadd.f32 %v7173_v54, %v7140_v31  ;;  %v7865_v31 = vld [vmem:[%s11790_s14] sm:$0xff] }
0x10be   :  { %v7193_v25 = vadd.f32 %v7186_v5, %v7179_v28  ;;  %v7332_v28 = vld [vmem:[#allocation2] sm:$0xff]  ;;  %v7333_v5 = vld [vmem:[#allocation2 + $0x8] sm:$0xff] }
0x10bf   :  { %v7098_v20 = vpop.f32.mrf.mxu2 }
0x10c0   :  { %v7195_v46 = vmax.f32 %v7193_v25, 0.0  ;;  %v7102_v17 = vadd.f32 %v7098_v20, %v7063_v48  ;;  %v7334_v48 = vld [vmem:[#allocation2 + $0x10] sm:$0xff] }
0x10c2   :  { %v7141_v3 = vadd.f32 %v7137_v38, %v7102_v17  ;;  %7199 = vrot.lane.b32.xlu0 %v7195_v46, %s11861_s2 }
0x10c4   :  { %v7180_v2 = vadd.f32 %v7176_v39, %v7141_v3 }
0x10c6   :  { %v7194_v40 = vadd.f32 %v7191_v21, %v7180_v2 }
0x10c8   :  { %v7196_v37 = vmax.f32 %v7194_v40, 0.0 }
0x10ca   :  { %7201 = vrot.lane.b32.xlu1 %v7196_v37, %s11861_s2 }
0x10d2   :  { %7284 = vperm.xlu1 %8543, %v7266_v62  }
0x10da   :  { %7269 = vperm.xlu1 %8543, %v7263_v50  }
0x1134   :  { %v7200_v18 = vpop.permute.xlu0 %7199 }
0x1135   :  { %v7205_v58 = vmax.f32 %v7195_v46, %v7200_v18  ;;  %v7335_v46 = vld [vmem:[#allocation2 + $0x18] sm:$0xff] }
0x1137   :  { %7209 = vrot.lane.b32.xlu2 %v7205_v58, %s11871_s5 }
0x113c   :  { %v7202_v35 = vpop.permute.xlu1 %7201 }
0x113d   :  { %v7206_v11 = vmax.f32 %v7196_v37, %v7202_v35  ;;  %v7336_v37 = vld [vmem:[#allocation2 + $0x20] sm:$0xff] }
0x113f   :  { %7211 = vrot.lane.b32.xlu0 %v7206_v11, %s11871_s5  ;;  %7279 = vperm.xlu2 %8544, %v7265_v4  }
0x1144   :  { %v7285_v63 = vpop.permute.xlu1 %7284 }
0x1147   :  { %7274 = vperm.xlu0 %8542, %v7264_v60  }
0x114c   :  { %v7270_v51 = vpop.permute.xlu1 %7269 }
0x1191   :  { %v7210_v56 = vpop.permute.xlu2 %7209 }
0x1192   :  { %v7215_v24 = vmax.f32 %v7205_v58, %v7210_v56 }
0x1194   :  { %8457 = vmatmul.msk.f32.vlgmr.msra.gmra.mxu3 %vm11880_vm6, %v7215_v24 }
0x1199   :  { %v7280_v22 = vpop.permute.xlu2 %7279 }
0x11b1   :  { %v7212_v19 = vpop.permute.xlu0 %7211 }
0x11b2   :  { %v7216_v1 = vmax.f32 %v7206_v11, %v7212_v19  ;;  %v7438_v11 = vld [vmem:[#allocation2 + $0x40] sm:$0xff] }
0x11b4   :  { %8458 = vmatmul.msk.f32.gmra.mxu3 %vm11881_vm7, %v7216_v1  ;;  %v7499_v1 = vld [vmem:[#allocation2 + $0x60] sm:$0xff] }
0x11b9   :  { %v7275_v6 = vpop.permute.xlu0 %7274 }
0x1217   :  { %v7253_v7 = vpop.f32.mrf.mxu3 }
0x1237   :  { %v7256_v55 = vpop.f32.mrf.mxu3 }
0x1238   :  { %7313 = vmatpush.msra.mxu2 %v7256_v55  ;;  %v7339_v55 = vld [vmem:[#allocation2 + $0x38] sm:$0xff] }
0x123a   :  { %7314 = vmatpush.msra.mxu2 %v7253_v7 }
0x123b   :  { %8459 = vmatmul.msk.f32.vlgmr.msra.gmra.mxu2 %vm2445_vm10, %v7259_v52 }
0x1243   :  { %8460 = vmatmul.msk.f32.gmra.mxu2 %vm2445_vm10, %v7260_v53 }
0x124b   :  { %8461 = vmatmul.msk.f32.gmra.mxu2 %vm2445_vm10, %v7261_v8 }
0x1253   :  { %8462 = vmatmul.msk.f32.gmra.mxu2 %vm2445_vm10, %v7262_v30  ;;  %v7439_v30 = vld [vmem:[#allocation2 + $0x48] sm:$0xff] }
0x12be   :  { %v7316_v23 = vpop.f32.mrf.mxu2 }
0x12bf   :  { %v7317_v36 = vadd.f32 %v7316_v23, %v7270_v51 }
0x12c1   :  { %v7328_v59 = vmax.f32 %v7317_v36, 0.0 }
0x12c6   :  { %v7319_v14 = vpop.f32.mrf.mxu2 }
0x12c7   :  { %v7320_v44 = vadd.f32 %v7319_v14, %v7275_v6 }
0x12c9   :  { %v7329_v42 = vmax.f32 %v7320_v44, 0.0 }
0x12cb   :  { %v9140_v41 = vpack.i.bf16 %v7328_v59, %v7329_v42 }
0x12cd   :  { %9141 = vrot.lane.b32.xlu0 %v9140_v41, %s11861_s2 }
0x12ce   :  { %v7322_v12 = vpop.f32.mrf.mxu2 }
0x12cf   :  { %v7323_v32 = vadd.f32 %v7322_v12, %v7280_v22  ;;  %v7621_v12 = vld [vmem:[#allocation2 + $0xa0] sm:$0xff]  ;;  %v7440_v22 = vld [vmem:[#allocation2 + $0x50] sm:$0xff] }
0x12d1   :  { %v7330_v34 = vmax.f32 %v7323_v32, 0.0 }
0x12d5   :  { %9146 = vrot.lane.b32.xlu0 %v9140_v41, %s11862_s21 }
0x12d6   :  { %v7325_v49 = vpop.f32.mrf.mxu2 }
0x12d7   :  { %v7326_v9 = vadd.f32 %v7325_v49, %v7285_v63 }
0x12d9   :  { %v7331_v54 = vmax.f32 %v7326_v9, 0.0 }
0x12db   :  { %7421 = vmatpush.msra.mxu1 %v7331_v54  ;;  %v9150_v13 = vpack.i.bf16 %v7330_v34, %v7331_v54  ;;  %v7561_v54 = vld [vmem:[#allocation2 + $0x88] sm:$0xff] }
0x12dd   :  { %9151 = vrot.lane.b32.xlu1 %v9150_v13, %s11862_s21  ;;  %9136 = vrot.lane.b32.xlu2 %v9150_v13, %s11861_s2 }
0x12de   :  { %7422 = vmatpush.msra.mxu1 %v7330_v34  ;;  %9171 = vrot.lane.b32.xlu0 %v9140_v41, %s11870_s11  ;;  %v7501_v34 = vld [vmem:[#allocation2 + $0x70] sm:$0xff] }
0x12e0   :  { %7423 = vmatpush.msra.mxu1 %v7329_v42 }
0x12e2   :  { %7424 = vmatpush.msra.mxu1 %v7328_v59  ;;  %v7500_v59 = vld [vmem:[#allocation2 + $0x68] sm:$0xff] }
0x12e3   :  { %8467 = vmatmul.msk.f32.vlgmr.msra.gmra.mxu1 %vm3372_vm15, %v7332_v28 }
0x12e5   :  { %9161 = vrot.lane.b32.xlu2 %v9150_v13, %s11869_s20  ;;  %9156 = vrot.lane.b32.xlu1 %v9140_v41, %s11869_s20 }
0x12e6   :  { %9196 = vrot.lane.b32.xlu0 %v9150_v13, %s11883_s22 }
0x12eb   :  { %8468 = vmatmul.msk.f32.gmra.mxu1 %vm3372_vm15, %v7333_v5  ;;  %v7502_v5 = vld [vmem:[#allocation2 + $0x78] sm:$0xff] }
0x12ed   :  { %9166 = vrot.lane.b32.xlu2 %v9150_v13, %s11870_s11  ;;  %9176 = vrot.lane.b32.xlu1 %v9150_v13, %s11884_s0 }
0x12ee   :  { %9201 = vrot.lane.b32.xlu0 %v9140_v41, %s11883_s22 }
0x12f3   :  { %8469 = vmatmul.msk.f32.gmra.mxu1 %vm3372_vm15, %v7334_v48  ;;  %v7562_v48 = vld [vmem:[#allocation2 + $0x90] sm:$0xff] }
0x12f5   :  { %9186 = vrot.lane.b32.xlu2 %v9150_v13, %s11885_s30  ;;  %9181 = vrot.lane.b32.xlu1 %v9140_v41, %s11884_s0 }
0x12f6   :  { %7886 = vperm.xlu0 %8542, %v7868_v26   ;;  %v7441_v26 = vld [vmem:[#allocation2 + $0x58] sm:$0xff] }
0x12fb   :  { %8470 = vmatmul.msk.f32.gmra.mxu1 %vm3372_vm15, %v7335_v46 }
0x12fd   :  { %9191 = vrot.lane.b32.xlu2 %v9140_v41, %s11885_s30  ;;  %9206 = vrot.lane.b32.xlu1 %v9150_v13, %s9335_s13  ;;  %v7622_v13 = vld [vmem:[#allocation2 + $0xa8] sm:$0xff] }
0x12fe   :  { %7871 = vperm.xlu0 %8542, %v7865_v31  }
0x1305   :  { %9211 = vrot.lane.b32.xlu2 %v9140_v41, %s9335_s13  ;;  %7881 = vperm.xlu1 %8543, %v7867_v45   ;;  %v7560_v41 = vld [vmem:[#allocation2 + $0x80] sm:$0xff] }
0x130d   :  { %7876 = vperm.xlu2 %8544, %v7866_v15  }
0x1337   :  { %v9137_v25 = vpop.permute.xlu2 %9136 }
0x1338   :  { %v9138_v20 = vunpack.i.l.bf16 %v9137_v25  ;;  %v9139_v38 = vunpack.i.h.bf16 %v9137_v25  ;;  %v7623_v25 = vld [vmem:[#allocation2 + $0xb0] sm:$0xff] }
0x133a   :  { %7380 = vmatpush.msrb.mxu0 %v9138_v20 }
0x133c   :  { %7381 = vmatpush.msrb.mxu0 %v9139_v38  ;;  %v7682_v38 = vld [vmem:[#allocation2 + $0xc0] sm:$0xff] }
0x133f   :  { %v9162_v17 = vpop.permute.xlu2 %9161  ;;  %v9142_v39 = vpop.permute.xlu0 %9141 }
0x1340   :  { %v9163_v3 = vunpack.i.l.bf16 %v9162_v17  ;;  %v9143_v2 = vunpack.i.l.bf16 %v9142_v39  ;;  %v9164_v21 = vunpack.i.h.bf16 %v9162_v17  ;;  %v9144_v40 = vunpack.i.h.bf16 %v9142_v39  ;;  %v7743_v17 = vld [vmem:[#allocation2 + $0xe0] sm:$0xff]  ;;  %v7563_v39 = vld [vmem:[#allocation2 + $0x98] sm:$0xff] }
0x1342   :  { %7382 = vmatpush.msrb.mxu0 %v9143_v2  ;;  %7539 = vmatpush.msrb.mxu2 %v9163_v3  ;;  %v7624_v3 = vld [vmem:[#allocation2 + $0xb8] sm:$0xff]  ;;  %v7683_v2 = vld [vmem:[#allocation2 + $0xc8] sm:$0xff] }
0x1344   :  { %7383 = vmatpush.msrb.mxu0 %v9144_v40  ;;  %7540 = vmatpush.msrb.mxu2 %v9164_v21  ;;  %v7744_v21 = vld [vmem:[#allocation2 + $0xe8] sm:$0xff]  ;;  %v7804_v40 = vld [vmem:[#allocation2 + $0x100] sm:$0xff] }
0x1345   :  { %8463 = vmatmul.msk.f32.vlgmr.msrb.gmra.mxu0 %vm3372_vm15, %v7336_v37  ;;  %v7684_v37 = vld [vmem:[#allocation2 + $0xd0] sm:$0xff] }
0x1347   :  { %v9167_v62 = vpop.permute.xlu2 %9166  ;;  %v9147_v50 = vpop.permute.xlu0 %9146 }
0x1348   :  { %v9168_v33 = vunpack.i.l.bf16 %v9167_v62  ;;  %v9169_v27 = vunpack.i.h.bf16 %v9167_v62  ;;  %v9148_v35 = vunpack.i.l.bf16 %v9147_v50  ;;  %v9149_v4 = vunpack.i.h.bf16 %v9147_v50  ;;  %v7745_v62 = vld [vmem:[#allocation2 + $0xf0] sm:$0xff]  ;;  %v7805_v50 = vld [vmem:[#allocation2 + $0x108] sm:$0xff] }
0x134a   :  { %7600 = vmatpush.msra.mxu0 %v9168_v33  ;;  %v7685_v33 = vld [vmem:[#allocation2 + $0xd8] sm:$0xff] }
0x134c   :  { %7601 = vmatpush.msra.mxu0 %v9169_v27  ;;  %v7746_v27 = vld [vmem:[#allocation2 + $0xf8] sm:$0xff] }
0x134d   :  { %8464 = vmatmul.msk.f32.gmra.mxu0 %vm3372_vm15, %v7337_v61  ;;  %v7806_v61 = vld [vmem:[#allocation2 + $0x110] sm:$0xff] }
0x134f   :  { %v9152_v29 = vpop.permute.xlu1 %9151  ;;  %v9187_v57 = vpop.permute.xlu2 %9186 }
0x1350   :  { %v9153_v10 = vunpack.i.l.bf16 %v9152_v29  ;;  %v9172_v18 = vpop.permute.xlu0 %9171  ;;  %v9154_v58 = vunpack.i.h.bf16 %v9152_v29  ;;  %v9188_v52 = vunpack.i.l.bf16 %v9187_v57  ;;  %v9189_v8 = vunpack.i.h.bf16 %v9187_v57  ;;  %v7807_v29 = vld [vmem:[#allocation2 + $0x118] sm:$0xff] }
0x1351   :  { %v9173_v0 = vunpack.i.l.bf16 %v9172_v18  ;;  %v9174_v47 = vunpack.i.h.bf16 %v9172_v18 }
0x1352   :  { %7478 = vmatpush.msrb.mxu3 %v9153_v10 }
0x1353   :  { %7602 = vmatpush.msra.mxu0 %v9173_v0 }
0x1354   :  { %7479 = vmatpush.msrb.mxu3 %v9154_v58 }
0x1355   :  { %7603 = vmatpush.msra.mxu0 %v9174_v47 }
0x1356   :  { %8465 = vmatmul.msk.f32.gmra.mxu0 %vm3372_vm15, %v7338_v16  ;;  %7480 = vmatpush.msrb.mxu3 %v9148_v35 }
0x1357   :  { %v9157_v60 = vpop.permute.xlu1 %9156  ;;  %v9192_v53 = vpop.permute.xlu2 %9191 }
0x1358   :  { %v9158_v43 = vunpack.i.l.bf16 %v9157_v60  ;;  %v9197_v56 = vpop.permute.xlu0 %9196  ;;  %7481 = vmatpush.msrb.mxu3 %v9149_v4  ;;  %v9159_v19 = vunpack.i.h.bf16 %v9157_v60  ;;  %v9193_v23 = vunpack.i.l.bf16 %v9192_v53  ;;  %v9194_v14 = vunpack.i.h.bf16 %v9192_v53 }
0x1359   :  { %v9198_v24 = vunpack.i.l.bf16 %v9197_v56  ;;  %8471 = vmatmul.msk.f32.vlgmr.msrb.gmra.mxu3 %vm3372_vm15, %v7438_v11  ;;  %v9199_v7 = vunpack.i.h.bf16 %v9197_v56 }
0x135a   :  { %7541 = vmatpush.msrb.mxu2 %v9158_v43 }
0x135b   :  { %7661 = vmatpush.msrb.mxu1 %v9198_v24 }
0x135c   :  { %7542 = vmatpush.msrb.mxu2 %v9159_v19 }
0x135d   :  { %7662 = vmatpush.msrb.mxu1 %v9199_v7  ;;  %8475 = vmatmul.msk.f32.vlgmr.msrb.gmra.mxu2 %vm3372_vm15, %v7499_v1 }
0x135e   :  { %8466 = vmatmul.msk.f32.gmra.mxu0 %vm3372_vm15, %v7339_v55  ;;  %7783 = vmatpush.msra.mxu2 %v9188_v52 }
0x135f   :  { %v9177_v63 = vpop.permute.xlu1 %9176  ;;  %v9212_v15 = vpop.permute.xlu2 %9211 }
0x1360   :  { %v9178_v51 = vunpack.i.l.bf16 %v9177_v63  ;;  %7784 = vmatpush.msra.mxu2 %v9189_v8  ;;  %v9202_v36 = vpop.permute.xlu0 %9201  ;;  %v9179_v44 = vunpack.i.h.bf16 %v9177_v63  ;;  %v9213_v20 = vunpack.i.l.bf16 %v9212_v15  ;;  %v9214_v46 = vunpack.i.h.bf16 %v9212_v15  ;;  %v7426_v0 = vpop.f32.mrf.mxu1 }
0x1361   :  { %v9203_v6 = vunpack.i.l.bf16 %v9202_v36  ;;  %8472 = vmatmul.msk.f32.gmra.mxu3 %vm3372_vm15, %v7439_v30  ;;  %v9204_v42 = vunpack.i.h.bf16 %v9202_v36 }
0x1362   :  { %7785 = vmatpush.msra.mxu2 %v9193_v23  ;;  %7722 = vmatpush.msra.mxu3 %v9178_v51 }
0x1363   :  { %7663 = vmatpush.msrb.mxu1 %v9203_v6 }
0x1364   :  { %7786 = vmatpush.msra.mxu2 %v9194_v14  ;;  %7723 = vmatpush.msra.mxu3 %v9179_v44 }
0x1365   :  { %7664 = vmatpush.msrb.mxu1 %v9204_v42  ;;  %8476 = vmatmul.msk.f32.gmra.mxu2 %vm3372_vm15, %v7500_v59 }
0x1366   :  { %8479 = vmatmul.msk.f32.vlgmr.msra.gmra.mxu0 %vm3372_vm15, %v7560_v41  ;;  %8483 = vmatmul.msk.f32.vlgmr.msrb.gmra.mxu1 %vm3372_vm15, %v7621_v12 }
0x1367   :  { %v9182_v32 = vpop.permute.xlu1 %9181 }
0x1368   :  { %v9183_v49 = vunpack.i.l.bf16 %v9182_v32  ;;  %v9184_v9 = vunpack.i.h.bf16 %v9182_v32  ;;  %v7429_v57 = vpop.f32.mrf.mxu1  ;;  %v7887_v12 = vpop.permute.xlu0 %7886 }
0x1369   :  { %8473 = vmatmul.msk.f32.gmra.mxu3 %vm3372_vm15, %v7440_v22 }
0x136a   :  { %7724 = vmatpush.msra.mxu3 %v9183_v49 }
0x136c   :  { %7725 = vmatpush.msra.mxu3 %v9184_v9 }
0x136d   :  { %8477 = vmatmul.msk.f32.gmra.mxu2 %vm3372_vm15, %v7501_v34 }
0x136e   :  { %8480 = vmatmul.msk.f32.gmra.mxu0 %vm3372_vm15, %v7561_v54  ;;  %8484 = vmatmul.msk.f32.gmra.mxu1 %vm3372_vm15, %v7622_v13 }
0x136f   :  { %v9207_v31 = vpop.permute.xlu1 %9206 }
0x1370   :  { %v9208_v45 = vunpack.i.l.bf16 %v9207_v31  ;;  %v9209_v28 = vunpack.i.h.bf16 %v9207_v31  ;;  %v7432_v4 = vpop.f32.mrf.mxu1 }
0x1371   :  { %8474 = vmatmul.msk.f32.gmra.mxu3 %vm3372_vm15, %v7441_v26 }
0x1372   :  { %7844 = vmatpush.msrb.mxu0 %v9208_v45 }
0x1374   :  { %7845 = vmatpush.msrb.mxu0 %v9209_v28 }
0x1375   :  { %8478 = vmatmul.msk.f32.gmra.mxu2 %vm3372_vm15, %v7502_v5 }
0x1376   :  { %8481 = vmatmul.msk.f32.gmra.mxu0 %vm3372_vm15, %v7562_v48  ;;  %8485 = vmatmul.msk.f32.gmra.mxu1 %vm3372_vm15, %v7623_v25 }
0x1377   :  { %7846 = vmatpush.msrb.mxu0 %v9213_v20  ;;  %v7872_v20 = vpop.permute.xlu0 %7871 }
0x1378   :  { %v7435_v24 = vpop.f32.mrf.mxu1 }
0x1379   :  { %7847 = vmatpush.msrb.mxu0 %v9214_v46  ;;  %8487 = vmatmul.msk.f32.vlgmr.msra.gmra.mxu3 %vm3372_vm15, %v7682_v38 }
0x137d   :  { %8491 = vmatmul.msk.f32.vlgmr.msra.gmra.mxu2 %vm3372_vm15, %v7743_v17 }
0x137e   :  { %8482 = vmatmul.msk.f32.gmra.mxu0 %vm3372_vm15, %v7563_v39  ;;  %8486 = vmatmul.msk.f32.gmra.mxu1 %vm3372_vm15, %v7624_v3 }
0x1381   :  { %8488 = vmatmul.msk.f32.gmra.mxu3 %vm3372_vm15, %v7683_v2 }
0x1385   :  { %8492 = vmatmul.msk.f32.gmra.mxu2 %vm3372_vm15, %v7744_v21  ;;  %v7877_v21 = vpop.permute.xlu2 %7876 }
0x1386   :  { %8495 = vmatmul.msk.f32.vlgmr.msrb.gmra.mxu0 %vm3372_vm15, %v7804_v40 }
0x1389   :  { %8489 = vmatmul.msk.f32.gmra.mxu3 %vm3372_vm15, %v7684_v37 }
0x138d   :  { %8493 = vmatmul.msk.f32.gmra.mxu2 %vm3372_vm15, %v7745_v62 }
0x138e   :  { %8496 = vmatmul.msk.f32.gmra.mxu0 %vm3372_vm15, %v7805_v50 }
0x1391   :  { %8490 = vmatmul.msk.f32.gmra.mxu3 %vm3372_vm15, %v7685_v33 }
0x1395   :  { %8494 = vmatmul.msk.f32.gmra.mxu2 %vm3372_vm15, %v7746_v27 }
0x1396   :  { %8497 = vmatmul.msk.f32.gmra.mxu0 %vm3372_vm15, %v7806_v61 }
0x139e   :  { %8498 = vmatmul.msk.f32.gmra.mxu0 %vm3372_vm15, %v7807_v29 }
0x13c2   :  { %v7385_v10 = vpop.f32.mrf.mxu0 }
0x13c3   :  { %v7427_v55 = vadd.f32 %v7426_v0, %v7385_v10 }
0x13ca   :  { %v7388_v18 = vpop.f32.mrf.mxu0 }
0x13cb   :  { %v7430_v23 = vadd.f32 %v7429_v57, %v7388_v18 }
0x13d3   :  { %v7391_v58 = vpop.f32.mrf.mxu0 }
0x13d4   :  { %v7433_v9 = vadd.f32 %v7432_v4, %v7391_v58 }
0x13db   :  { %v7394_v47 = vpop.f32.mrf.mxu0 }
0x13dc   :  { %v7483_v16 = vpop.f32.mrf.mxu3  ;;  %v7436_v48 = vadd.f32 %v7435_v24, %v7394_v47 }
0x13dd   :  { %v7495_v8 = vadd.f32 %v7483_v16, %v7427_v55 }
0x13e0   :  { %v7544_v35 = vpop.f32.mrf.mxu2 }
0x13e1   :  { %v7556_v30 = vadd.f32 %v7544_v35, %v7495_v8 }
0x13e3   :  { %v7605_v11 = vpop.f32.mrf.mxu0  ;;  %v7666_v52 = vpop.f32.mrf.mxu1 }
0x13e4   :  { %v7486_v60 = vpop.f32.mrf.mxu3  ;;  %v7617_v6 = vadd.f32 %v7605_v11, %v7556_v30 }
0x13e5   :  { %v7496_v51 = vadd.f32 %v7486_v60, %v7430_v23  ;;  %v7882_v60 = vpop.permute.xlu1 %7881 }
0x13e6   :  { %v7678_v42 = vadd.f32 %v7666_v52, %v7617_v6  ;;  %v7897_v52 = vld [vmem:[%s11791_s15] sm:$0xff] }
0x13e8   :  { %v7547_v43 = vpop.f32.mrf.mxu2 }
0x13e9   :  { %v7557_v44 = vadd.f32 %v7547_v43, %v7496_v51 }
0x13eb   :  { %v7608_v56 = vpop.f32.mrf.mxu0  ;;  %v7669_v59 = vpop.f32.mrf.mxu1 }
0x13ec   :  { %v7489_v19 = vpop.f32.mrf.mxu3  ;;  %v7618_v22 = vadd.f32 %v7608_v56, %v7557_v44 }
0x13ed   :  { %v7497_v26 = vadd.f32 %v7489_v19, %v7433_v9 }
0x13ee   :  { %v7679_v13 = vadd.f32 %v7669_v59, %v7618_v22  ;;  %v8509_v22 = vld [vmem:[%s11791_s15 + $0x30] sm:$0xff] }
0x13f0   :  { %v7550_v1 = vpop.f32.mrf.mxu2 }
0x13f1   :  { %v7558_v45 = vadd.f32 %v7550_v1, %v7497_v26  ;;  %v8500_v26 = vld [vmem:[%s11791_s15 + $0x18] sm:$0x3] }
0x13f3   :  { %v7611_v7 = vpop.f32.mrf.mxu0  ;;  %v7672_v15 = vpop.f32.mrf.mxu1 }
0x13f4   :  { %v7492_v53 = vpop.f32.mrf.mxu3  ;;  %v7619_v17 = vadd.f32 %v7611_v7, %v7558_v45  ;;  %v8505_v45 = vld [vmem:[%s11791_s15 + $0x20] sm:$0xff] }
0x13f5   :  { %v7498_v38 = vadd.f32 %v7492_v53, %v7436_v48  ;;  %v7898_v53 = vld [vmem:[%s11791_s15 + $0x8] sm:$0x3] }
0x13f6   :  { %v7680_v62 = vadd.f32 %v7672_v15, %v7619_v17  ;;  %v8506_v15 = vld [vmem:[%s11791_s15 + $0x28] sm:$0x3] }
0x13f8   :  { %v7553_v63 = vpop.f32.mrf.mxu2 }
0x13f9   :  { %v7559_v40 = vadd.f32 %v7553_v63, %v7498_v38 }
0x13fb   :  { %v7614_v36 = vpop.f32.mrf.mxu0  ;;  %v7675_v29 = vpop.f32.mrf.mxu1 }
0x13fc   :  { %v7727_v14 = vpop.f32.mrf.mxu3  ;;  %v7620_v61 = vadd.f32 %v7614_v36, %v7559_v40 }
0x13fd   :  { %v7739_v32 = vadd.f32 %v7727_v14, %v7678_v42 }
0x13fe   :  { %v7681_v47 = vadd.f32 %v7675_v29, %v7620_v61 }
0x1400   :  { %v7788_v41 = vpop.f32.mrf.mxu2 }
0x1401   :  { %v7800_v34 = vadd.f32 %v7788_v41, %v7739_v32 }
0x1403   :  { %v7849_v49 = vpop.f32.mrf.mxu0 }
0x1404   :  { %v7730_v54 = vpop.f32.mrf.mxu3  ;;  %v7861_v28 = vadd.f32 %v7849_v49, %v7800_v34 }
0x1405   :  { %v7740_v31 = vadd.f32 %v7730_v54, %v7679_v13 }
0x1406   :  { %v7889_v39 = vadd.f32 %v7872_v20, %v7861_v28 }
0x1408   :  { %v7791_v5 = vpop.f32.mrf.mxu2  ;;  %v7893_v50 = vmax.f32 %v7889_v39, 0.0 }
0x1409   :  { %v7801_v25 = vadd.f32 %v7791_v5, %v7740_v31  ;;  %v8510_v31 = vld [vmem:[%s11791_s15 + $0x38] sm:$0x3] }
0x140b   :  { %v7852_v46 = vpop.f32.mrf.mxu0 }
0x140c   :  { %v7862_v3 = vadd.f32 %v7852_v46, %v7801_v25  ;;  %v7733_v2 = vpop.f32.mrf.mxu3 }
0x140d   :  { %v7741_v10 = vadd.f32 %v7733_v2, %v7680_v62  ;;  %v8065_v2 = vld [vmem:[%s11792_s16] sm:$0xff]  ;;  %v8066_v62 = vld [vmem:[%s11792_s16 + $0x8] sm:$0x3] }
0x140e   :  { %v7890_v37 = vadd.f32 %v7877_v21, %v7862_v3 }
0x1410   :  { %v7894_v33 = vmax.f32 %v7890_v37, 0.0  ;;  %v7794_v27 = vpop.f32.mrf.mxu2 }
0x1411   :  { %v7802_v58 = vadd.f32 %v7794_v27, %v7741_v10 }
0x1412   :  { %v9220_v18 = vpack.i.bf16 %v7893_v50, %v7894_v33 }
0x1413   :  { %v7855_v0 = vpop.f32.mrf.mxu0 }
0x1414   :  { %9221 = vrot.lane.b32.xlu2 %v9220_v18, %s11861_s2  ;;  %v7736_v57 = vpop.f32.mrf.mxu3  ;;  %v7863_v35 = vadd.f32 %v7855_v0, %v7802_v58 }
0x1415   :  { %v7742_v16 = vadd.f32 %v7736_v57, %v7681_v47 }
0x1416   :  { %v7891_v56 = vadd.f32 %v7882_v60, %v7863_v35 }
0x1418   :  { %v7797_v4 = vpop.f32.mrf.mxu2  ;;  %v7895_v1 = vmax.f32 %v7891_v56, 0.0 }
0x1419   :  { %v7803_v11 = vadd.f32 %v7797_v4, %v7742_v16 }
0x141b   :  { %v7858_v43 = vpop.f32.mrf.mxu0 }
0x141c   :  { %v7864_v24 = vadd.f32 %v7858_v43, %v7803_v11  ;;  %9236 = vrot.lane.b32.xlu2 %v9220_v18, %s11870_s11 }
0x141e   :  { %v7892_v19 = vadd.f32 %v7887_v12, %v7864_v24  ;;  %v8499_v12 = vld [vmem:[%s11791_s15 + $0x10] sm:$0xff] }
0x1420   :  { %v7896_v7 = vmax.f32 %v7892_v19, 0.0 }
0x1422   :  { %7964 = vmatpush.msrb.mxu3 %v7896_v7  ;;  %v9225_v55 = vpack.i.bf16 %v7895_v1, %v7896_v7 }
0x1424   :  { %9226 = vrot.lane.b32.xlu0 %v9225_v55, %s11870_s11  ;;  %9216 = vrot.lane.b32.xlu1 %v9225_v55, %s11861_s2 }
0x1425   :  { %7965 = vmatpush.msrb.mxu3 %v7895_v1 }
0x1427   :  { %7966 = vmatpush.msrb.mxu3 %v7894_v33 }
0x1429   :  { %7967 = vmatpush.msrb.mxu3 %v7893_v50 }
0x142a   :  { %8503 = vmatmul.msk.f32.vlgmr.msrb.gmra.mxu3 %vm3372_vm15, %v7897_v52 }
0x142c   :  { %9231 = vrot.lane.b32.xlu1 %v9225_v55, %s11869_s20  ;;  %9241 = vrot.lane.b32.xlu0 %v9220_v18, %s11869_s20 }
0x1432   :  { %8504 = vmatmul.msk.f32.gmra.mxu3 %vm3372_vm15, %v7898_v53 }
0x146e   :  { %v9222_v8 = vpop.permute.xlu2 %9221 }
0x146f   :  { %v9223_v44 = vunpack.i.l.bf16 %v9222_v8  ;;  %v9224_v42 = vunpack.i.h.bf16 %v9222_v8 }
0x1476   :  { %v9237_v36 = vpop.permute.xlu2 %9236 }
0x1477   :  { %v9238_v59 = vunpack.i.l.bf16 %v9237_v36  ;;  %v9239_v41 = vunpack.i.h.bf16 %v9237_v36 }
0x1496   :  { %v9227_v30 = vpop.permute.xlu0 %9226  ;;  %v9217_v63 = vpop.permute.xlu1 %9216 }
0x1497   :  { %v9228_v23 = vunpack.i.l.bf16 %v9227_v30  ;;  %v9218_v51 = vunpack.i.l.bf16 %v9217_v63  ;;  %v9229_v6 = vunpack.i.h.bf16 %v9227_v30  ;;  %v9219_v14 = vunpack.i.h.bf16 %v9217_v63 }
0x1499   :  { %7935 = vmatpush.msra.mxu1 %v9218_v51  ;;  %8052 = vmatpush.msrb.mxu2 %v9228_v23 }
0x149b   :  { %7936 = vmatpush.msra.mxu1 %v9219_v14  ;;  %8053 = vmatpush.msrb.mxu2 %v9229_v6 }
0x149d   :  { %7937 = vmatpush.msra.mxu1 %v9223_v44  ;;  %8054 = vmatpush.msrb.mxu2 %v9238_v59 }
0x149e   :  { %v9232_v32 = vpop.permute.xlu1 %9231  ;;  %v9242_v9 = vpop.permute.xlu0 %9241 }
0x149f   :  { %v9233_v49 = vunpack.i.l.bf16 %v9232_v32  ;;  %7938 = vmatpush.msra.mxu1 %v9224_v42  ;;  %8055 = vmatpush.msrb.mxu2 %v9239_v41  ;;  %v9234_v34 = vunpack.i.h.bf16 %v9232_v32  ;;  %v9243_v54 = vunpack.i.l.bf16 %v9242_v9  ;;  %v9244_v13 = vunpack.i.h.bf16 %v9242_v9 }
0x14a0   :  { %8501 = vmatmul.msk.f32.vlgmr.msra.gmra.mxu1 %vm3372_vm15, %v8499_v12  ;;  %8511 = vmatmul.msk.f32.vlgmr.msrb.gmra.mxu2 %vm3372_vm15, %v8509_v22 }
0x14a1   :  { %8007 = vmatpush.msrb.mxu1 %v9233_v49 }
0x14a3   :  { %8008 = vmatpush.msrb.mxu1 %v9234_v34 }
0x14a5   :  { %8009 = vmatpush.msrb.mxu1 %v9243_v54 }
0x14a7   :  { %8010 = vmatpush.msrb.mxu1 %v9244_v13 }
0x14a8   :  { %8502 = vmatmul.msk.f32.gmra.mxu1 %vm3372_vm15, %v8500_v26  ;;  %8512 = vmatmul.msk.f32.gmra.mxu2 %vm3372_vm15, %v8510_v31 }
0x14ad   :  { %v7969_v48 = vpop.f32.mrf.mxu3 }
0x14b0   :  { %8507 = vmatmul.msk.f32.vlgmr.msrb.gmra.mxu1 %vm3372_vm15, %v8505_v45 }
0x14b5   :  { %v7972_v17 = vpop.f32.mrf.mxu3 }
0x14b8   :  { %8508 = vmatmul.msk.f32.gmra.mxu1 %vm3372_vm15, %v8506_v15 }
0x151d   :  { %v7940_v28 = vpop.f32.mrf.mxu1 }
0x151e   :  { %v7970_v38 = vadd.f32 %v7969_v48, %v7940_v28 }
0x1523   :  { %v8057_v25 = vpop.f32.mrf.mxu2 }
0x1525   :  { %v7943_v5 = vpop.f32.mrf.mxu1 }
0x1526   :  { %v7973_v3 = vadd.f32 %v7972_v17, %v7943_v5 }
0x152b   :  { %v8060_v40 = vpop.f32.mrf.mxu2 }
0x152d   :  { %v8012_v20 = vpop.f32.mrf.mxu1 }
0x152e   :  { %v8018_v46 = vadd.f32 %v8012_v20, %v7970_v38 }
0x1530   :  { %v8063_v39 = vadd.f32 %v8057_v25, %v8018_v46 }
0x1532   :  { %v8067_v50 = vadd.f32 %v8065_v2, %v8063_v39 }
0x1534   :  { %v8069_v61 = vsel %vm4096_vm1, %v8067_v50, -inf }
0x1535   :  { %v8015_v21 = vpop.f32.mrf.mxu1 }
0x1536   :  { %v8019_v37 = vadd.f32 %v8015_v21, %v7973_v3 }
0x1538   :  { %v8064_v33 = vadd.f32 %v8060_v40, %v8019_v37 }
0x153a   :  { %v8068_v27 = vadd.f32 %v8066_v62, %v8064_v33 }
0x153c   :  { %v8070_v29 = vsel %vm4098_vm3, %v8068_v27, -inf }
0x153d   :  { %v8071_v10 = vmax.f32 %v8069_v61, %v8070_v29 }
0x153f   :  { %v8072_v18 = vrot.slane %v8071_v10, 4 }
0x1541   :  { %v8073_v0 = vmax.f32 %v8071_v10, %v8072_v18 }
0x1543   :  { %v8074_v58 = vrot.slane %v8073_v0, 2 }
0x1545   :  { %v8075_v57 = vmax.f32 %v8073_v0, %v8074_v58 }
0x1547   :  { %v8076_v47 = vrot.slane %v8075_v57, 1 }
0x1549   :  { %v8077_v16 = vmax.f32 %v8075_v57, %v8076_v47 }
0x154b   :  { %v8078_v35 = vsub.f32 %v8067_v50, %v8077_v16  ;;  %v8079_v4 = vsub.f32 %v8068_v27, %v8077_v16 }
0x154d   :  { %v8080_v11 = vmul.f32 1.442695, %v8078_v35  ;;  %v8082_v60 = vmul.f32 1.442695, %v8079_v4 }
0x154f   :  { %9251 = vpow2.f32 %v8080_v11 }
0x1550   :  { %9253 = vpow2.f32 %v8082_v60 }
0x1555   :  { %v9252_v43 = vpop.eup %9251 }
0x1556   :  { %v9254_v56 = vpop.eup %9253  ;;  %v8084_v24 = vsel %vm4096_vm1, %v9252_v43, 0.0 }
0x1557   :  { %v8085_v19 = vsel %vm4098_vm3, %v9254_v56, 0.0 }
0x1558   :  { %v8086_v1 = vadd.f32 %v8085_v19, %v8084_v24 }
0x155a   :  { %v8087_v7 = vrot.slane %v8086_v1, 4 }
0x155c   :  { %v8088_v55 = vadd.f32 %v8087_v7, %v8086_v1 }
0x155e   :  { %v8089_v52 = vrot.slane %v8088_v55, 2 }
0x1560   :  { %v8090_v53 = vadd.f32 %v8089_v52, %v8088_v55 }
0x1562   :  { %v8091_v8 = vrot.slane %v8090_v53, 1 }
0x1564   :  { %v8092_v30 = vadd.f32 %v8091_v8, %v8090_v53 }
0x1566   :  { %9255 = vlog2.f32 %v8092_v30 }
0x156c   :  { %v9256_v63 = vpop.eup %9255 }
0x156d   :  { %v8094_v23 = vmul.f32 0.6931472, %v9256_v63 }
0x156f   :  { %v8095_v51 = vsub.f32 %v8078_v35, %v8094_v23  ;;  %v8096_v36 = vsub.f32 %v8079_v4, %v8094_v23 }
0x1571   :  { %8513 = vst.msk [vmem:[%s11795_s19 + $0x10] sm:$0xff] %vm4096_vm1, %v8095_v51 }
0x1572   :  { %8514 = vst.msk [vmem:[%s11795_s19 + $0x18] sm:$0x3] %vm4098_vm3, %v8096_v36 }
0x1573   :  { %8104 = vsyncpa [#allocation3], 1 }
0x1574   :  { %8105 = vsyncpa [#allocation5], 1 }

</bundles_post_ra>
